<compile_context>
chip_gen: v6e
topology: v6e:2x2x1
jax: 0.10.0
libtpu: 0.0.40
codegen_flags: <defaults>
</compile_context>

<pallas_src>
import functools

import jax
import jax.numpy as jnp
from jax import lax
from jax.experimental import pallas as pl
from jax.experimental.pallas import tpu as pltpu

# (C_in, C_out, kernel_size, pool_size) for conv1..conv5 (pool=1 means no pool)
LAYERS = [
    (1, 16, 128, 4),
    (16, 32, 64, 4),
    (32, 64, 16, 2),
    (64, 128, 3, 2),
    (128, 256, 2, 1),
]
BN_EPS = 1e-5  # nn.BatchNorm1d default

# MXU operand dtype (accumulation is always f32).  bf16 is native on v5e's MXU and
# ~2x rate on v6e/v7x; contraction depths reach 1024, so the check in __main__ uses a
# 2e-2 relative-L2 tolerance.  Set to jnp.float32 for bit-level parity with reference.
COMPUTE_DTYPE = jnp.bfloat16


# ----------------------------- Pallas kernel --------------------------------
def _fused_kernel(x_ref, *refs, layer_specs, compute_dtype):
    """All 5 conv blocks for one batch element; activations never leave VMEM.

    x_ref : (1, LP1, K1*Cin0) lane-dense layer-1 im2col patches (built in glue).
    refs  : w1..w5, sh, o_ref, c_ref
            w_i  : (A_i*Cin_i, nb_i*Cout_i) packed weights (BN scale folded in, taps
                   stacked along N -> one wide MXU matmul per layer)
            sh   : (8, 256) consolidated conv-bias + BN shift (one row per layer)
            o_ref: (1, L5, C5) output
            c_ref: VMEM scratch for the coarse im2col matrix (layers 2-3)
    """
    c_ref = refs[-1]
    o_ref = refs[-2]
    sh_ref = refs[-3]
    w_refs = refs[:-3]

    x = x_ref[0]                                      # layer-1 patches (compute dtype)
    for idx, (cin, cout, nb, a_groups, pool, lout, lpool, lc) in enumerate(layer_specs):
        xc = x if x.dtype == compute_dtype else x.astype(compute_dtype)

        if a_groups > 1:
            # Coarse im2col in VMEM: C[m, a*cin + ci] = x[m + 8a, ci].
            # Row shifts are multiples of 8 -> sublane-aligned slices; only a_groups
            # (<=8) block-column writes, no per-lane stores, no HBM traffic.
            for a in range(a_groups):
                c_ref[0:lc, a * cin:(a + 1) * cin] = xc[8 * a: 8 * a + lc, :]
            lhs = c_ref[0:lc, 0:a_groups * cin]
        else:
            lhs = xc                                   # (lin, cin) used directly

        # ONE wide MXU matmul per layer (taps stacked along N), f32 accumulation.
        yw = jnp.dot(lhs, w_refs[idx][...], preferred_element_type=jnp.float32)

        # Tap reduction: acc[m, co] = sum_b yw[m + b, b*cout + co]
        # (static shifted slices -> VPU adds / XLU relayouts, overlaps the MXU).
        if nb == 1:
            acc = yw
        else:
            acc = yw[0:lout, 0:cout]
            for b in range(1, nb):
                acc = acc + yw[b:b + lout, b * cout:(b + 1) * cout]

        # Fused conv-bias + BatchNorm shift, then ReLU (Dropout = identity in eval).
        y = jnp.maximum(acc + sh_ref[idx:idx + 1, 0:cout], 0.0)

        if pool > 1:
            # MaxPool1d(kernel=pool, stride=pool), floor semantics (drop tail).
            y = y[: lpool * pool, :].reshape(lpool, pool, cout).max(axis=1)
        x = y

    o_ref[0] = x                                       # (L5, C5) f32, lane-dense C5


# ------------------------------ JAX wrapper ----------------------------------
def feature_extractor_forward(x_ncl, params):
    """x_ncl: (B, C_in, L) like PyTorch. Returns (B, C5*L5) like torch.flatten(x, 1)."""
    B, cin0, L = x_ncl.shape
    x_nlc = jnp.transpose(x_ncl, (0, 2, 1))            # NCL -> NLC (channels-last)

    # ---- layer-1 im2col in the glue: lane-dense first kernel input ----
    k1 = LAYERS[0][2]
    lout1 = L - k1 + 1
    lp1 = -(-lout1 // 8) * 8                            # pad rows to a sublane multiple
    # P[n, m, t*cin0 + ci] = x_nlc[n, m + t, ci]
    patches = jnp.concatenate([x_nlc[:, t:t + lout1, :] for t in range(k1)], axis=2)
    patches = jnp.pad(patches, ((0, 0), (0, lp1 - lout1), (0, 0)))
    patches = patches.astype(COMPUTE_DTYPE)

    wn_list, layer_specs = [], []
    max_cout = max(c for (_, c, _, _) in LAYERS)
    sh_cols = -(-max_cout // 128) * 128
    sh_all = jnp.zeros((8, sh_cols), jnp.float32)
    max_lc, max_w = 8, 128
    lcur = L
    for li, ((w, b, gamma, beta, mean, var), (cin, cout, k, pool)) in enumerate(
            zip(params, LAYERS)):
        inv = gamma / jnp.sqrt(var + BN_EPS)
        w_fold = w * inv[:, None, None]                 # BN scale folded into weights
        shift = (b - mean) * inv + beta                 # conv-bias + BN shift
        sh_all = sh_all.at[li, :cout].set(shift)

        lout = lcur - k + 1
        assert lout > 0, "input length too small for this layer stack"
        lpool = lout // pool if pool > 1 else lout

        if li == 0:                      # full im2col already done in the glue (tap step 1)
            A, nb, build = k, 1, False
        elif k >= 8:                     # coarse im2col in-kernel, taps t = 8a + b
            assert k % 8 == 0, "kernel sizes past layer 1 must be <8 or multiples of 8"
            A, nb, build = k // 8, 8, True
        else:                            # k < 8: activation itself is the LHS
            A, nb, build = 1, k, False
        lc = lout + nb - 1

        # Wn[a*cin + ci, b*cout + co] = w_fold[co, ci, a*nb + b]
        wn = jnp.transpose(w_fold.reshape(cout, cin, A, nb), (2, 1, 3, 0))
        wn = wn.reshape(A * cin, nb * cout).astype(COMPUTE_DTYPE)
        wn_list.append(wn)

        a_groups = A if build else 1
        if build:
            max_lc = max(max_lc, lc)
            max_w = max(max_w, A * cin)
        layer_specs.append((cin, cout, nb, a_groups, pool, lout, lpool, lc))
        lcur = lpool

    max_lc = -(-max_lc // 8) * 8
    max_w = -(-max_w // 128) * 128
    lf, cf = layer_specs[-1][6], layer_specs[-1][1]

    kernel = functools.partial(_fused_kernel,
                               layer_specs=tuple(layer_specs),
                               compute_dtype=COMPUTE_DTYPE)

    # Grid-invariant weights/shift: single-buffered, constant block index.
    w_specs = [pl.BlockSpec(wn.shape, lambda i: (0, 0), pipeline_mode=pl.Buffered(1))
               for wn in wn_list]
    sh_spec = pl.BlockSpec(sh_all.shape, lambda i: (0, 0), pipeline_mode=pl.Buffered(1))

    y = pl.pallas_call(
        kernel,
        out_shape=jax.ShapeDtypeStruct((B, lf, cf), jnp.float32),
        grid=(B,),
        in_specs=[pl.BlockSpec((1, lp1, k1 * cin0), lambda i: (i, 0, 0))]
                 + w_specs + [sh_spec],
        out_specs=pl.BlockSpec((1, lf, cf), lambda i: (i, 0, 0)),
        scratch_shapes=[pltpu.VMEM((max_lc, max_w), COMPUTE_DTYPE)],
        compiler_params=pltpu.CompilerParams(
            dimension_semantics=("parallel",),   # v7x: 2 TCs split the batch (keep B even)
            vmem_limit_bytes=32 * 1024 * 1024),
    )(patches, *wn_list, sh_all)

    # (B, L5, C5) -> NCL -> flatten; matches torch.flatten(x, 1). Tiny glue op.
    return jnp.transpose(y, (0, 2, 1)).reshape(B, -1)


# ----------------------------- Pure-JAX reference ----------------------------
def reference_forward(x_ncl, params):
    y = x_ncl
    for (w, b, gamma, beta, mean, var), (cin, cout, k, pool) in zip(params, LAYERS):
        y = lax.conv_general_dilated(
            y, w, window_strides=(1,), padding="VALID",
            dimension_numbers=("NCH", "OIH", "NCH"))
        y = y + b[None, :, None]
        inv = gamma / jnp.sqrt(var + BN_EPS)
        y = (y - mean[None, :, None]) * inv[None, :, None] + beta[None, :, None]
        y = jnp.maximum(y, 0.0)
        if pool > 1:
            y = lax.reduce_window(y, -jnp.inf, lax.max,
                                  (1, 1, pool), (1, 1, pool), "VALID")
    return y.reshape(y.shape[0], -1)


# --------------------------------- main ---------------------------------------
if __name__ == "__main__":
    key = jax.random.PRNGKey(0)
    B, Cin, L = 2, 1, 1024  # min L for this net is 811; L=1024 -> final (B, 256, 4)
    key, xk = jax.random.split(key)
    x = jax.random.normal(xk, (B, Cin, L), dtype=jnp.float32)

    # Deterministic synthetic parameters (PyTorch-like uniform conv init,
    # non-trivial BatchNorm running stats / affine params).
    params = []
    for (cin, cout, k, pool) in LAYERS:
        key, kw, kb, kg, kbt, km, kv = jax.random.split(key, 7)
        bound = 1.0 / jnp.sqrt(cin * k)
        w = jax.random.uniform(kw, (cout, cin, k), jnp.float32, -bound, bound)
        b = jax.random.uniform(kb, (cout,), jnp.float32, -bound, bound)
        gamma = 0.5 + jax.random.uniform(kg, (cout,), jnp.float32)
        beta = jax.random.normal(kbt, (cout,), jnp.float32) * 0.1
        mean = jax.random.normal(km, (cout,), jnp.float32) * 0.1
        var = 0.5 + jax.random.uniform(kv, (cout,), jnp.float32)
        params.append((w, b, gamma, beta, mean, var))

    fwd = jax.jit(feature_extractor_forward)
    out = jax.block_until_ready(fwd(x, params))
    ref = jax.block_until_ready(jax.jit(reference_forward)(x, params))

    assert out.shape == (B, 256 * 4), out.shape
    rel_err = float(jnp.linalg.norm(out - ref) / (jnp.linalg.norm(ref) + 1e-12))
    tol = 2e-2 if COMPUTE_DTYPE == jnp.bfloat16 else 1e-4
    assert rel_err < tol, f"relative L2 error vs reference: {rel_err}"
    print("KERNEL_OK")
</pallas_src>

<mosaic_0001>
module attributes {stable_mosaic.version = 11 : i64} {
  func.func @_fused_kernel(%arg0: i32, %arg1: memref<1x904x128xbf16, #tpu.memory_space<vmem>>, %arg2: memref<128x16xbf16, #tpu.memory_space<vmem>>, %arg3: memref<128x256xbf16, #tpu.memory_space<vmem>>, %arg4: memref<64x512xbf16, #tpu.memory_space<vmem>>, %arg5: memref<64x384xbf16, #tpu.memory_space<vmem>>, %arg6: memref<128x512xbf16, #tpu.memory_space<vmem>>, %arg7: memref<8x256xf32, #tpu.memory_space<vmem>>, %arg8: memref<1x4x256xf32, #tpu.memory_space<vmem>>, %arg9: memref<168x128xbf16, #tpu.memory_space<vmem>>) attributes {dimension_semantics = [#tpu.dimension_semantics<parallel>], iteration_bounds = array<i64: 2>, scalar_prefetch = 0 : i64, scratch_operands = 1 : i64, tpu.core_type = #tpu.core_type<tc>, window_params = [{transform_indices = @transform_0, window_bounds = array<i64: 1, 904, 128>}, {pipeline_mode = #tpu.pipeline_mode<synchronous>, transform_indices = @transform_1, window_bounds = array<i64: 128, 16>}, {pipeline_mode = #tpu.pipeline_mode<synchronous>, transform_indices = @transform_2, window_bounds = array<i64: 128, 256>}, {pipeline_mode = #tpu.pipeline_mode<synchronous>, transform_indices = @transform_3, window_bounds = array<i64: 64, 512>}, {pipeline_mode = #tpu.pipeline_mode<synchronous>, transform_indices = @transform_4, window_bounds = array<i64: 64, 384>}, {pipeline_mode = #tpu.pipeline_mode<synchronous>, transform_indices = @transform_5, window_bounds = array<i64: 128, 512>}, {pipeline_mode = #tpu.pipeline_mode<synchronous>, transform_indices = @transform_6, window_bounds = array<i64: 8, 256>}, {transform_indices = @transform_7, window_bounds = array<i64: 1, 4, 256>}]} {
    %c0 = arith.constant 0 : index
    %c0_0 = arith.constant 0 : index
    %c0_1 = arith.constant 0 : index
    %0 = vector.load %arg1[%c0, %c0_0, %c0_1] : memref<1x904x128xbf16, #tpu.memory_space<vmem>>, vector<1x904x128xbf16>
    %1 = vector.shape_cast %0 : vector<1x904x128xbf16> to vector<904x128xbf16>
    %c0_2 = arith.constant 0 : index
    %c0_3 = arith.constant 0 : index
    %2 = vector.load %arg2[%c0_2, %c0_3] : memref<128x16xbf16, #tpu.memory_space<vmem>>, vector<128x16xbf16>
    %cst = arith.constant dense<0.000000e+00> : vector<904x16xf32>
    %3 = tpu.matmul %1, %2, %cst {dimension_numbers = #tpu.dot_dimension_numbers<[1], [0], [0], [1], [0, 0, 1, 1], [], []>} : vector<904x128xbf16>, vector<128x16xbf16>, vector<904x16xf32> -> vector<904x16xf32>
    %c0_4 = arith.constant 0 : index
    %c0_5 = arith.constant 0 : index
    %4 = vector.load %arg7[%c0_4, %c0_5] : memref<8x256xf32, #tpu.memory_space<vmem>>, vector<1x16xf32>
    %5 = vector.broadcast %4 : vector<1x16xf32> to vector<904x16xf32>
    %6 = arith.addf %3, %5 : vector<904x16xf32>
    %cst_6 = arith.constant 0.000000e+00 : f32
    %7 = vector.broadcast %cst_6 : f32 to vector<904x16xf32>
    %8 = arith.maximumf %6, %7 : vector<904x16xf32>
    %9 = vector.extract_strided_slice %8 {offsets = [0, 0], sizes = [896, 16], strides = [1, 1]} : vector<904x16xf32> to vector<896x16xf32>
    %10 = vector.shape_cast %9 : vector<896x16xf32> to vector<224x4x16xf32>
    %cst_7 = arith.constant dense<0xFF800000> : vector<224x16xf32>
    %11 = vector.multi_reduction <maximumf>, %10, %cst_7 [1] : vector<224x4x16xf32> to vector<224x16xf32>
    %12 = arith.truncf %11 : vector<224x16xf32> to vector<224x16xbf16>
    %13 = vector.extract_strided_slice %12 {offsets = [0, 0], sizes = [168, 16], strides = [1, 1]} : vector<224x16xbf16> to vector<168x16xbf16>
    %c0_8 = arith.constant 0 : index
    %c0_9 = arith.constant 0 : index
    %14 = vector.load %arg9[%c0_8, %c0_9] : memref<168x128xbf16, #tpu.memory_space<vmem>>, vector<168x16xbf16>
    tpu.vector_store %arg9[%c0_8, %c0_9], %13 {strides = array<i32>} : memref<168x128xbf16, #tpu.memory_space<vmem>>, vector<168x16xbf16>,
    %15 = vector.extract_strided_slice %12 {offsets = [8, 0], sizes = [168, 16], strides = [1, 1]} : vector<224x16xbf16> to vector<168x16xbf16>
    %c0_10 = arith.constant 0 : index
    %c16 = arith.constant 16 : index
    %16 = vector.load %arg9[%c0_10, %c16] : memref<168x128xbf16, #tpu.memory_space<vmem>>, vector<168x16xbf16>
    tpu.vector_store %arg9[%c0_10, %c16], %15 {strides = array<i32>} : memref<168x128xbf16, #tpu.memory_space<vmem>>, vector<168x16xbf16>,
    %17 = vector.extract_strided_slice %12 {offsets = [16, 0], sizes = [168, 16], strides = [1, 1]} : vector<224x16xbf16> to vector<168x16xbf16>
    %c0_11 = arith.constant 0 : index
    %c32 = arith.constant 32 : index
    %18 = vector.load %arg9[%c0_11, %c32] : memref<168x128xbf16, #tpu.memory_space<vmem>>, vector<168x16xbf16>
    tpu.vector_store %arg9[%c0_11, %c32], %17 {strides = array<i32>} : memref<168x128xbf16, #tpu.memory_space<vmem>>, vector<168x16xbf16>,
    %19 = vector.extract_strided_slice %12 {offsets = [24, 0], sizes = [168, 16], strides = [1, 1]} : vector<224x16xbf16> to vector<168x16xbf16>
    %c0_12 = arith.constant 0 : index
    %c48 = arith.constant 48 : index
    %20 = vector.load %arg9[%c0_12, %c48] : memref<168x128xbf16, #tpu.memory_space<vmem>>, vector<168x16xbf16>
    tpu.vector_store %arg9[%c0_12, %c48], %19 {strides = array<i32>} : memref<168x128xbf16, #tpu.memory_space<vmem>>, vector<168x16xbf16>,
    %21 = vector.extract_strided_slice %12 {offsets = [32, 0], sizes = [168, 16], strides = [1, 1]} : vector<224x16xbf16> to vector<168x16xbf16>
    %c0_13 = arith.constant 0 : index
    %c64 = arith.constant 64 : index
    %22 = vector.load %arg9[%c0_13, %c64] : memref<168x128xbf16, #tpu.memory_space<vmem>>, vector<168x16xbf16>
    tpu.vector_store %arg9[%c0_13, %c64], %21 {strides = array<i32>} : memref<168x128xbf16, #tpu.memory_space<vmem>>, vector<168x16xbf16>,
    %23 = vector.extract_strided_slice %12 {offsets = [40, 0], sizes = [168, 16], strides = [1, 1]} : vector<224x16xbf16> to vector<168x16xbf16>
    %c0_14 = arith.constant 0 : index
    %c80 = arith.constant 80 : index
    %24 = vector.load %arg9[%c0_14, %c80] : memref<168x128xbf16, #tpu.memory_space<vmem>>, vector<168x16xbf16>
    tpu.vector_store %arg9[%c0_14, %c80], %23 {strides = array<i32>} : memref<168x128xbf16, #tpu.memory_space<vmem>>, vector<168x16xbf16>,
    %25 = vector.extract_strided_slice %12 {offsets = [48, 0], sizes = [168, 16], strides = [1, 1]} : vector<224x16xbf16> to vector<168x16xbf16>
    %c0_15 = arith.constant 0 : index
    %c96 = arith.constant 96 : index
    %26 = vector.load %arg9[%c0_15, %c96] : memref<168x128xbf16, #tpu.memory_space<vmem>>, vector<168x16xbf16>
    tpu.vector_store %arg9[%c0_15, %c96], %25 {strides = array<i32>} : memref<168x128xbf16, #tpu.memory_space<vmem>>, vector<168x16xbf16>,
    %27 = vector.extract_strided_slice %12 {offsets = [56, 0], sizes = [168, 16], strides = [1, 1]} : vector<224x16xbf16> to vector<168x16xbf16>
    %c0_16 = arith.constant 0 : index
    %c112 = arith.constant 112 : index
    %28 = vector.load %arg9[%c0_16, %c112] : memref<168x128xbf16, #tpu.memory_space<vmem>>, vector<168x16xbf16>
    tpu.vector_store %arg9[%c0_16, %c112], %27 {strides = array<i32>} : memref<168x128xbf16, #tpu.memory_space<vmem>>, vector<168x16xbf16>,
    %c0_17 = arith.constant 0 : index
    %c0_18 = arith.constant 0 : index
    %29 = vector.load %arg9[%c0_17, %c0_18] : memref<168x128xbf16, #tpu.memory_space<vmem>>, vector<168x128xbf16>
    %c0_19 = arith.constant 0 : index
    %c0_20 = arith.constant 0 : index
    %30 = vector.load %arg3[%c0_19, %c0_20] : memref<128x256xbf16, #tpu.memory_space<vmem>>, vector<128x256xbf16>
    %cst_21 = arith.constant dense<0.000000e+00> : vector<168x256xf32>
    %31 = tpu.matmul %29, %30, %cst_21 {dimension_numbers = #tpu.dot_dimension_numbers<[1], [0], [0], [1], [0, 0, 1, 1], [], []>} : vector<168x128xbf16>, vector<128x256xbf16>, vector<168x256xf32> -> vector<168x256xf32>
    %32 = vector.extract_strided_slice %31 {offsets = [0, 0], sizes = [161, 32], strides = [1, 1]} : vector<168x256xf32> to vector<161x32xf32>
    %33 = vector.extract_strided_slice %31 {offsets = [1, 32], sizes = [161, 32], strides = [1, 1]} : vector<168x256xf32> to vector<161x32xf32>
    %34 = arith.addf %32, %33 : vector<161x32xf32>
    %35 = vector.extract_strided_slice %31 {offsets = [2, 64], sizes = [161, 32], strides = [1, 1]} : vector<168x256xf32> to vector<161x32xf32>
    %36 = arith.addf %34, %35 : vector<161x32xf32>
    %37 = vector.extract_strided_slice %31 {offsets = [3, 96], sizes = [161, 32], strides = [1, 1]} : vector<168x256xf32> to vector<161x32xf32>
    %38 = arith.addf %36, %37 : vector<161x32xf32>
    %39 = vector.extract_strided_slice %31 {offsets = [4, 128], sizes = [161, 32], strides = [1, 1]} : vector<168x256xf32> to vector<161x32xf32>
    %40 = arith.addf %38, %39 : vector<161x32xf32>
    %41 = vector.extract_strided_slice %31 {offsets = [5, 160], sizes = [161, 32], strides = [1, 1]} : vector<168x256xf32> to vector<161x32xf32>
    %42 = arith.addf %40, %41 : vector<161x32xf32>
    %43 = vector.extract_strided_slice %31 {offsets = [6, 192], sizes = [161, 32], strides = [1, 1]} : vector<168x256xf32> to vector<161x32xf32>
    %44 = arith.addf %42, %43 : vector<161x32xf32>
    %45 = vector.extract_strided_slice %31 {offsets = [7, 224], sizes = [161, 32], strides = [1, 1]} : vector<168x256xf32> to vector<161x32xf32>
    %46 = arith.addf %44, %45 : vector<161x32xf32>
    %c1 = arith.constant 1 : index
    %c0_22 = arith.constant 0 : index
    %47 = vector.load %arg7[%c1, %c0_22] : memref<8x256xf32, #tpu.memory_space<vmem>>, vector<1x32xf32>
    %48 = vector.broadcast %47 : vector<1x32xf32> to vector<161x32xf32>
    %49 = arith.addf %46, %48 : vector<161x32xf32>
    %cst_23 = arith.constant 0.000000e+00 : f32
    %50 = vector.broadcast %cst_23 : f32 to vector<161x32xf32>
    %51 = arith.maximumf %49, %50 : vector<161x32xf32>
    %52 = vector.extract_strided_slice %51 {offsets = [0, 0], sizes = [160, 32], strides = [1, 1]} : vector<161x32xf32> to vector<160x32xf32>
    %53 = vector.shape_cast %52 : vector<160x32xf32> to vector<40x4x32xf32>
    %cst_24 = arith.constant dense<0xFF800000> : vector<40x32xf32>
    %54 = vector.multi_reduction <maximumf>, %53, %cst_24 [1] : vector<40x4x32xf32> to vector<40x32xf32>
    %55 = arith.truncf %54 : vector<40x32xf32> to vector<40x32xbf16>
    %56 = vector.extract_strided_slice %55 {offsets = [0, 0], sizes = [32, 32], strides = [1, 1]} : vector<40x32xbf16> to vector<32x32xbf16>
    %c0_25 = arith.constant 0 : index
    %c0_26 = arith.constant 0 : index
    %57 = vector.load %arg9[%c0_25, %c0_26] : memref<168x128xbf16, #tpu.memory_space<vmem>>, vector<32x32xbf16>
    tpu.vector_store %arg9[%c0_25, %c0_26], %56 {strides = array<i32>} : memref<168x128xbf16, #tpu.memory_space<vmem>>, vector<32x32xbf16>,
    %58 = vector.extract_strided_slice %55 {offsets = [8, 0], sizes = [32, 32], strides = [1, 1]} : vector<40x32xbf16> to vector<32x32xbf16>
    %c0_27 = arith.constant 0 : index
    %c32_28 = arith.constant 32 : index
    %59 = vector.load %arg9[%c0_27, %c32_28] : memref<168x128xbf16, #tpu.memory_space<vmem>>, vector<32x32xbf16>
    tpu.vector_store %arg9[%c0_27, %c32_28], %58 {strides = array<i32>} : memref<168x128xbf16, #tpu.memory_space<vmem>>, vector<32x32xbf16>,
    %c0_29 = arith.constant 0 : index
    %c0_30 = arith.constant 0 : index
    %60 = vector.load %arg9[%c0_29, %c0_30] : memref<168x128xbf16, #tpu.memory_space<vmem>>, vector<32x64xbf16>
    %c0_31 = arith.constant 0 : index
    %c0_32 = arith.constant 0 : index
    %61 = vector.load %arg4[%c0_31, %c0_32] : memref<64x512xbf16, #tpu.memory_space<vmem>>, vector<64x512xbf16>
    %cst_33 = arith.constant dense<0.000000e+00> : vector<32x512xf32>
    %62 = tpu.matmul %60, %61, %cst_33 {dimension_numbers = #tpu.dot_dimension_numbers<[1], [0], [0], [1], [0, 0, 1, 1], [], []>} : vector<32x64xbf16>, vector<64x512xbf16>, vector<32x512xf32> -> vector<32x512xf32>
    %63 = vector.extract_strided_slice %62 {offsets = [0, 0], sizes = [25, 64], strides = [1, 1]} : vector<32x512xf32> to vector<25x64xf32>
    %64 = vector.extract_strided_slice %62 {offsets = [1, 64], sizes = [25, 64], strides = [1, 1]} : vector<32x512xf32> to vector<25x64xf32>
    %65 = arith.addf %63, %64 : vector<25x64xf32>
    %66 = vector.extract_strided_slice %62 {offsets = [2, 128], sizes = [25, 64], strides = [1, 1]} : vector<32x512xf32> to vector<25x64xf32>
    %67 = arith.addf %65, %66 : vector<25x64xf32>
    %68 = vector.extract_strided_slice %62 {offsets = [3, 192], sizes = [25, 64], strides = [1, 1]} : vector<32x512xf32> to vector<25x64xf32>
    %69 = arith.addf %67, %68 : vector<25x64xf32>
    %70 = vector.extract_strided_slice %62 {offsets = [4, 256], sizes = [25, 64], strides = [1, 1]} : vector<32x512xf32> to vector<25x64xf32>
    %71 = arith.addf %69, %70 : vector<25x64xf32>
    %72 = vector.extract_strided_slice %62 {offsets = [5, 320], sizes = [25, 64], strides = [1, 1]} : vector<32x512xf32> to vector<25x64xf32>
    %73 = arith.addf %71, %72 : vector<25x64xf32>
    %74 = vector.extract_strided_slice %62 {offsets = [6, 384], sizes = [25, 64], strides = [1, 1]} : vector<32x512xf32> to vector<25x64xf32>
    %75 = arith.addf %73, %74 : vector<25x64xf32>
    %76 = vector.extract_strided_slice %62 {offsets = [7, 448], sizes = [25, 64], strides = [1, 1]} : vector<32x512xf32> to vector<25x64xf32>
    %77 = arith.addf %75, %76 : vector<25x64xf32>
    %c2 = arith.constant 2 : index
    %c0_34 = arith.constant 0 : index
    %78 = vector.load %arg7[%c2, %c0_34] : memref<8x256xf32, #tpu.memory_space<vmem>>, vector<1x64xf32>
    %79 = vector.broadcast %78 : vector<1x64xf32> to vector<25x64xf32>
    %80 = arith.addf %77, %79 : vector<25x64xf32>
    %cst_35 = arith.constant 0.000000e+00 : f32
    %81 = vector.broadcast %cst_35 : f32 to vector<25x64xf32>
    %82 = arith.maximumf %80, %81 : vector<25x64xf32>
    %83 = vector.extract_strided_slice %82 {offsets = [0, 0], sizes = [24, 64], strides = [1, 1]} : vector<25x64xf32> to vector<24x64xf32>
    %84 = vector.shape_cast %83 : vector<24x64xf32> to vector<12x2x64xf32>
    %cst_36 = arith.constant dense<0xFF800000> : vector<12x64xf32>
    %85 = vector.multi_reduction <maximumf>, %84, %cst_36 [1] : vector<12x2x64xf32> to vector<12x64xf32>
    %86 = arith.truncf %85 : vector<12x64xf32> to vector<12x64xbf16>
    %c0_37 = arith.constant 0 : index
    %c0_38 = arith.constant 0 : index
    %87 = vector.load %arg5[%c0_37, %c0_38] : memref<64x384xbf16, #tpu.memory_space<vmem>>, vector<64x384xbf16>
    %cst_39 = arith.constant dense<0.000000e+00> : vector<12x384xf32>
    %88 = tpu.matmul %86, %87, %cst_39 {dimension_numbers = #tpu.dot_dimension_numbers<[1], [0], [0], [1], [0, 0, 1, 1], [], []>} : vector<12x64xbf16>, vector<64x384xbf16>, vector<12x384xf32> -> vector<12x384xf32>
    %89 = vector.extract_strided_slice %88 {offsets = [0, 0], sizes = [10, 128], strides = [1, 1]} : vector<12x384xf32> to vector<10x128xf32>
    %90 = vector.extract_strided_slice %88 {offsets = [1, 128], sizes = [10, 128], strides = [1, 1]} : vector<12x384xf32> to vector<10x128xf32>
    %91 = arith.addf %89, %90 : vector<10x128xf32>
    %92 = vector.extract_strided_slice %88 {offsets = [2, 256], sizes = [10, 128], strides = [1, 1]} : vector<12x384xf32> to vector<10x128xf32>
    %93 = arith.addf %91, %92 : vector<10x128xf32>
    %c3 = arith.constant 3 : index
    %c0_40 = arith.constant 0 : index
    %94 = vector.load %arg7[%c3, %c0_40] : memref<8x256xf32, #tpu.memory_space<vmem>>, vector<1x128xf32>
    %95 = vector.broadcast %94 : vector<1x128xf32> to vector<10x128xf32>
    %96 = arith.addf %93, %95 : vector<10x128xf32>
    %cst_41 = arith.constant 0.000000e+00 : f32
    %97 = vector.broadcast %cst_41 : f32 to vector<10x128xf32>
    %98 = arith.maximumf %96, %97 : vector<10x128xf32>
    %99 = vector.shape_cast %98 : vector<10x128xf32> to vector<5x2x128xf32>
    %cst_42 = arith.constant dense<0xFF800000> : vector<5x128xf32>
    %100 = vector.multi_reduction <maximumf>, %99, %cst_42 [1] : vector<5x2x128xf32> to vector<5x128xf32>
    %101 = arith.truncf %100 : vector<5x128xf32> to vector<5x128xbf16>
    %c0_43 = arith.constant 0 : index
    %c0_44 = arith.constant 0 : index
    %102 = vector.load %arg6[%c0_43, %c0_44] : memref<128x512xbf16, #tpu.memory_space<vmem>>, vector<128x512xbf16>
    %cst_45 = arith.constant dense<0.000000e+00> : vector<5x512xf32>
    %103 = tpu.matmul %101, %102, %cst_45 {dimension_numbers = #tpu.dot_dimension_numbers<[1], [0], [0], [1], [0, 0, 1, 1], [], []>} : vector<5x128xbf16>, vector<128x512xbf16>, vector<5x512xf32> -> vector<5x512xf32>
    %104 = vector.extract_strided_slice %103 {offsets = [0, 0], sizes = [4, 256], strides = [1, 1]} : vector<5x512xf32> to vector<4x256xf32>
    %105 = vector.extract_strided_slice %103 {offsets = [1, 256], sizes = [4, 256], strides = [1, 1]} : vector<5x512xf32> to vector<4x256xf32>
    %106 = arith.addf %104, %105 : vector<4x256xf32>
    %c4 = arith.constant 4 : index
    %c0_46 = arith.constant 0 : index
    %107 = vector.load %arg7[%c4, %c0_46] : memref<8x256xf32, #tpu.memory_space<vmem>>, vector<1x256xf32>
    %108 = vector.broadcast %107 : vector<1x256xf32> to vector<4x256xf32>
    %109 = arith.addf %106, %108 : vector<4x256xf32>
    %cst_47 = arith.constant 0.000000e+00 : f32
    %110 = vector.broadcast %cst_47 : f32 to vector<4x256xf32>
    %111 = arith.maximumf %109, %110 : vector<4x256xf32>
    %c0_48 = arith.constant 0 : index
    %c0_49 = arith.constant 0 : index
    %c0_50 = arith.constant 0 : index
    %112 = vector.load %arg8[%c0_48, %c0_49, %c0_50] : memref<1x4x256xf32, #tpu.memory_space<vmem>>, vector<1x4x256xf32>
    %113 = vector.shape_cast %112 : vector<1x4x256xf32> to vector<4x256xf32>
    %114 = vector.shape_cast %111 : vector<4x256xf32> to vector<1x4x256xf32>
    tpu.vector_store %arg8[%c0_48, %c0_49, %c0_50], %114 {strides = array<i32>} : memref<1x4x256xf32, #tpu.memory_space<vmem>>, vector<1x4x256xf32>,
    return
  }
  func.func @transform_0(%arg0: i32) -> (i32, i32, i32) {
    %c0_i32 = arith.constant 0 : i32
    %c0_i32_0 = arith.constant 0 : i32
    %c0_i32_1 = arith.constant 0 : i32
    return %arg0, %c0_i32, %c0_i32_0 : i32, i32, i32
  }
  func.func @transform_1(%arg0: i32) -> (i32, i32) {
    %c0_i32 = arith.constant 0 : i32
    %c0_i32_0 = arith.constant 0 : i32
    %c0_i32_1 = arith.constant 0 : i32
    return %c0_i32, %c0_i32_0 : i32, i32
  }
  func.func @transform_2(%arg0: i32) -> (i32, i32) {
    %c0_i32 = arith.constant 0 : i32
    %c0_i32_0 = arith.constant 0 : i32
    %c0_i32_1 = arith.constant 0 : i32
    return %c0_i32, %c0_i32_0 : i32, i32
  }
  func.func @transform_3(%arg0: i32) -> (i32, i32) {
    %c0_i32 = arith.constant 0 : i32
    %c0_i32_0 = arith.constant 0 : i32
    %c0_i32_1 = arith.constant 0 : i32
    return %c0_i32, %c0_i32_0 : i32, i32
  }
  func.func @transform_4(%arg0: i32) -> (i32, i32) {
    %c0_i32 = arith.constant 0 : i32
    %c0_i32_0 = arith.constant 0 : i32
    %c0_i32_1 = arith.constant 0 : i32
    return %c0_i32, %c0_i32_0 : i32, i32
  }
  func.func @transform_5(%arg0: i32) -> (i32, i32) {
    %c0_i32 = arith.constant 0 : i32
    %c0_i32_0 = arith.constant 0 : i32
    %c0_i32_1 = arith.constant 0 : i32
    return %c0_i32, %c0_i32_0 : i32, i32
  }
  func.func @transform_6(%arg0: i32) -> (i32, i32) {
    %c0_i32 = arith.constant 0 : i32
    %c0_i32_0 = arith.constant 0 : i32
    %c0_i32_1 = arith.constant 0 : i32
    return %c0_i32, %c0_i32_0 : i32, i32
  }
  func.func @transform_7(%arg0: i32) -> (i32, i32, i32) {
    %c0_i32 = arith.constant 0 : i32
    %c0_i32_0 = arith.constant 0 : i32
    %c0_i32_1 = arith.constant 0 : i32
    return %arg0, %c0_i32, %c0_i32_0 : i32, i32, i32
  }
}

</mosaic_0001>

<bundles_post_ra>
// kernel: mul.27
= control target key start
LH: loop header
LB: loop body
LE: loop exit
PB: predicated region body
PF: predicated region fallthrough
CT: control target
= control target key end

     0   :  { %s36_s0 = inlined_call_operand.vmem [shape: f32[16], index: 0, kind: input, shape index: {}]   ;;  %s37_s1 = inlined_call_operand.vmem [shape: f32[16,1,128], index: 1, kind: output, shape index: {}]  }
   0x1   :  { %v4_v0 = vld [vmem:[%s36_s0] ss:$0 sm:$0xff] }
   0x2   :  { %6 = vbcast.lane.b32.xlu0 %v4_v0, 256 }
   0x6   :  { %12 = vbcast.lane.b32.xlu0 %v4_v0, 264 }
  0x74   :  { %v7_v1 = vpop.permute.xlu0 %6 }
  0x75   :  { %8 = vst [vmem:[%s37_s1] sm:$0xff] %v7_v1 }
  0x78   :  { %v13_v2 = vpop.permute.xlu0 %12 }
  0x79   :  { %16 = vst [vmem:[%s37_s1 + $0x8] sm:$0xff] %v13_v2 }

// kernel: mul.28
= control target key start
LH: loop header
LB: loop body
LE: loop exit
PB: predicated region body
PF: predicated region fallthrough
CT: control target
= control target key end

     0   :  { %v222_v12 = vmov 0.0   ;;  %s398_s0 = inlined_call_operand.vmem [shape: f32[16,1,128], index: 0, kind: input, shape index: {}]   ;;  %s399_s1 = inlined_call_operand.vmem [shape: f32[16,1,128], index: 1, kind: input, shape index: {}]   ;;  %s400_s2 = inlined_call_operand.vmem [shape: bf16[16,1,128], index: 2, kind: output, shape index: {}]  }
   0x1   :  { %v3_v0 = vld [vmem:[%s398_s0] sm:$0x1]  ;;  %v176_v2 = vld [vmem:[%s398_s0 + $0x1] sm:$0x1]  ;;  %v179_v5 = vld [vmem:[%s398_s0 + $0x2] sm:$0x1] }
   0x2   :  { %v4_v1 = vld [vmem:[%s399_s1] sm:$0x1]  ;;  %v177_v4 = vld [vmem:[%s399_s1 + $0x1] sm:$0x1]  ;;  %v180_v6 = vld [vmem:[%s399_s1 + $0x2] sm:$0x1] }
   0x3   :  { %v7_v3 = vmul.f32 %v4_v1, %v3_v0  ;;  %v17_v7 = vmul.f32 %v177_v4, %v176_v2  ;;  %v28_v8 = vmul.f32 %v180_v6, %v179_v5  ;;  %v182_v9 = vld [vmem:[%s398_s0 + $0x3] sm:$0x1]  ;;  %v185_v11 = vld [vmem:[%s398_s0 + $0x4] sm:$0x1]  ;;  %v188_v16 = vld [vmem:[%s398_s0 + $0x5] sm:$0x1] }
   0x4   :  { %v183_v10 = vld [vmem:[%s399_s1 + $0x3] sm:$0x1]  ;;  %v186_v15 = vld [vmem:[%s399_s1 + $0x4] sm:$0x1]  ;;  %v189_v17 = vld [vmem:[%s399_s1 + $0x5] sm:$0x1] }
   0x5   :  { %v9_v13 = vpack.c.bf16 %v222_v12, %v7_v3  ;;  %v39_v14 = vmul.f32 %v183_v10, %v182_v9  ;;  %v20_v18 = vpack.c.bf16 %v222_v12, %v17_v7  ;;  %v31_v19 = vpack.c.bf16 %v222_v12, %v28_v8  ;;  %v191_v22 = vld [vmem:[%s398_s0 + $0x6] sm:$0x1]  ;;  %v194_v24 = vld [vmem:[%s398_s0 + $0x7] sm:$0x1]  ;;  %v197_v28 = vld [vmem:[%s398_s0 + $0x8] sm:$0x1] }
   0x6   :  { %v50_v20 = vmul.f32 %v186_v15, %v185_v11  ;;  %v61_v21 = vmul.f32 %v189_v17, %v188_v16  ;;  %v192_v23 = vld [vmem:[%s399_s1 + $0x6] sm:$0x1]  ;;  %v195_v27 = vld [vmem:[%s399_s1 + $0x7] sm:$0x1]  ;;  %v198_v29 = vld [vmem:[%s399_s1 + $0x8] sm:$0x1] }
   0x7   :  { %10 = vst [vmem:[%s400_s2] sm:$0x1] %v9_v13  ;;  %v42_v25 = vpack.c.bf16 %v222_v12, %v39_v14  ;;  %v72_v26 = vmul.f32 %v192_v23, %v191_v22  ;;  %178 = vst [vmem:[%s400_s2 + $0x1] sm:$0x1] %v20_v18  ;;  %v83_v32 = vmul.f32 %v195_v27, %v194_v24  ;;  %v200_v34 = vld [vmem:[%s398_s0 + $0x9] sm:$0x1] }
   0x8   :  { %181 = vst [vmem:[%s400_s2 + $0x2] sm:$0x1] %v31_v19  ;;  %v53_v30 = vpack.c.bf16 %v222_v12, %v50_v20  ;;  %v64_v31 = vpack.c.bf16 %v222_v12, %v61_v21  ;;  %v94_v33 = vmul.f32 %v198_v29, %v197_v28  ;;  %v201_v35 = vld [vmem:[%s399_s1 + $0x9] sm:$0x1]  ;;  %v203_v36 = vld [vmem:[%s398_s0 + $0xa] sm:$0x1] }
   0x9   :  { %184 = vst [vmem:[%s400_s2 + $0x3] sm:$0x1] %v42_v25  ;;  %v75_v37 = vpack.c.bf16 %v222_v12, %v72_v26  ;;  %v105_v38 = vmul.f32 %v201_v35, %v200_v34  ;;  %v204_v39 = vld [vmem:[%s399_s1 + $0xa] sm:$0x1]  ;;  %v206_v40 = vld [vmem:[%s398_s0 + $0xb] sm:$0x1]  ;;  %v86_v42 = vpack.c.bf16 %v222_v12, %v83_v32 }
   0xa   :  { %v207_v41 = vld [vmem:[%s399_s1 + $0xb] sm:$0x1]  ;;  %187 = vst [vmem:[%s400_s2 + $0x4] sm:$0x1] %v53_v30  ;;  %190 = vst [vmem:[%s400_s2 + $0x5] sm:$0x1] %v64_v31  ;;  %v97_v43 = vpack.c.bf16 %v222_v12, %v94_v33  ;;  %v116_v44 = vmul.f32 %v204_v39, %v203_v36 }
   0xb   :  { %v127_v45 = vmul.f32 %v207_v41, %v206_v40  ;;  %v209_v46 = vld [vmem:[%s398_s0 + $0xc] sm:$0x1]  ;;  %v212_v48 = vld [vmem:[%s398_s0 + $0xd] sm:$0x1]  ;;  %193 = vst [vmem:[%s400_s2 + $0x6] sm:$0x1] %v75_v37  ;;  %v108_v49 = vpack.c.bf16 %v222_v12, %v105_v38 }
   0xc   :  { %v210_v47 = vld [vmem:[%s399_s1 + $0xc] sm:$0x1]  ;;  %v213_v51 = vld [vmem:[%s399_s1 + $0xd] sm:$0x1]  ;;  %v215_v52 = vld [vmem:[%s398_s0 + $0xe] sm:$0x1]  ;;  %v119_v54 = vpack.c.bf16 %v222_v12, %v116_v44 }
   0xd   :  { %v138_v50 = vmul.f32 %v210_v47, %v209_v46  ;;  %v216_v53 = vld [vmem:[%s399_s1 + $0xe] sm:$0x1]  ;;  %196 = vst [vmem:[%s400_s2 + $0x7] sm:$0x1] %v86_v42  ;;  %199 = vst [vmem:[%s400_s2 + $0x8] sm:$0x1] %v97_v43  ;;  %v130_v55 = vpack.c.bf16 %v222_v12, %v127_v45  ;;  %v149_v56 = vmul.f32 %v213_v51, %v212_v48 }
   0xe   :  { %v160_v57 = vmul.f32 %v216_v53, %v215_v52  ;;  %v218_v58 = vld [vmem:[%s398_s0 + $0xf] sm:$0x1]  ;;  %202 = vst [vmem:[%s400_s2 + $0x9] sm:$0x1] %v108_v49  ;;  %205 = vst [vmem:[%s400_s2 + $0xa] sm:$0x1] %v119_v54 }
   0xf   :  { %v219_v59 = vld [vmem:[%s399_s1 + $0xf] sm:$0x1]  ;;  %v141_v60 = vpack.c.bf16 %v222_v12, %v138_v50  ;;  %208 = vst [vmem:[%s400_s2 + $0xb] sm:$0x1] %v130_v55  ;;  %v152_v62 = vpack.c.bf16 %v222_v12, %v149_v56 }
  0x10   :  { %v171_v61 = vmul.f32 %v219_v59, %v218_v58  ;;  %v163_v63 = vpack.c.bf16 %v222_v12, %v160_v57 }
  0x11   :  { %211 = vst [vmem:[%s400_s2 + $0xc] sm:$0x1] %v141_v60  ;;  %214 = vst [vmem:[%s400_s2 + $0xd] sm:$0x1] %v152_v62 }
  0x12   :  { %v174_v0 = vpack.c.bf16 %v222_v12, %v171_v61  ;;  %217 = vst [vmem:[%s400_s2 + $0xe] sm:$0x1] %v163_v63 }
  0x14   :  { %220 = vst [vmem:[%s400_s2 + $0xf] sm:$0x1] %v174_v0 }

// kernel: feature_extractor_forward.1
= control target key start
LH: loop header
LB: loop body
LE: loop exit
PB: predicated region body
PF: predicated region fallthrough
CT: control target
= control target key end

     0   :  { %s9628_s24 = smov 0   ;;  %s12874_s0 = inlined_call_operand.vmem [shape: bf16[2,904,128], index: 0, kind: input, shape index: {}]   ;;  %s12875_s1 = inlined_call_operand.vmem [shape: bf16[128,16], index: 1, kind: input, shape index: {}]   ;;  %s12876_s2 = inlined_call_operand.vmem [shape: bf16[128,256], index: 2, kind: input, shape index: {}]   ;;  %s12877_s3 = inlined_call_operand.vmem [shape: bf16[64,512], index: 3, kind: input, shape index: {}]   ;;  %s12878_s4 = inlined_call_operand.vmem [shape: bf16[64,384], index: 4, kind: input, shape index: {}]   ;;  %s12879_s5 = inlined_call_operand.vmem [shape: bf16[128,512], index: 5, kind: input, shape index: {}]   ;;  %s12880_s6 = inlined_call_operand.vmem [shape: f32[8,256], index: 6, kind: input, shape index: {}]   ;;  %s12881_s7 = inlined_call_operand.vmem [shape: f32[2,4,256], index: 7, kind: output, shape index: {}]  }
   0x1 LB: > { %s8310_s25 = sadd.s32 4294967295, %s9575_s24   ;;  %p8314_p0 = scmp.ge.s32.totalorder %s9575_s24, 1  ;;  %s9575_s24 = sphi %s9628_s24, %s17_s24  }
   0x2   : > { %p237_p1 = scmp.lt.s32.totalorder %s9575_s24, 3 }
   0x4   : > { %p238_p2 = pnand %p8314_p0, %p237_p1 }
   0x6   : > { %241 = sbr.rel (%p238_p2) target bundleno = 2431 (0x97f), region = 48 }
   0xb   : > { %v9372_v0 = vld [vmem:[%s12875_s1 + $0x38] sm:$0xff]   ;;  %v12882_v1 = vmov 0.0   ;;  %v9373_v2 = vld [vmem:[%s12875_s1 + $0x30] sm:$0xff]   ;;  %p269_p3 = scmp.lt.s32.totalorder %s8310_s25, 1  ;;  %vm12887_vm0 = vmmov 0   ;;  %v9374_v3 = vld [vmem:[%s12875_s1 + $0x28] sm:$0xff]  }
   0xc   : > { %9080 = vmatprep.subr.bf16.mxu0 %v12882_v1  ;;  %9336 = vmatprep.subr.bf16.mxu1 %v12882_v1  ;;  %v9375_v4 = vld [vmem:[%s12875_s1 + $0x20] sm:$0xff]   ;;  %v9376_v5 = vld [vmem:[%s12875_s1 + $0x18] sm:$0xff]   ;;  %v9377_v6 = vld [vmem:[%s12875_s1 + $0x10] sm:$0xff]   ;;  %vm1733_vm1 = vcmask 125952   ;;  %vm4198_vm2 = vcmask 1041409   ;;  %vm4200_vm3 = vcmask 1042434  }
   0xd   : > { %9081 = vmatpush3.bf16.msra.mxu0 %v9372_v0  ;;  %9344 = vmatpush3.bf16.msra.mxu1 %v9372_v0  ;;  %s13076_s25 = smov (!%p269_p3, %s8310_s25), 1  ;;  %v9378_v7 = vld [vmem:[%s12875_s1 + $0x8] sm:$0xff]   ;;  %v9379_v8 = vld [vmem:[%s12875_s1] sm:$0xff]   ;;  %vm12892_vm4 = vcmask 1043459   ;;  %vm12891_vm5 = vcmask 1044484   ;;  %vm12890_vm6 = vcmask 1045509  }
   0xe   : > { %9082 = vmatprep.subr.bf16.mxu0 %v12882_v1  ;;  %9337 = vmatprep.subr.bf16.mxu1 %v12882_v1  ;;  %s9352_s9 = smul.u32 452, %s13076_s25  ;;  %v9788_v42 = vld [vmem:[%s12880_s6] ss:$0 sm:$0xff]  ;;  %vm12889_vm7 = vcmask 1046534   ;;  %vm12888_vm8 = vcmask 1047559   ;;  %s9579_s27 = smov 112  }
   0xf   : > { %9096 = vmatprep.mubr.msk.bf16.mxu0 %vm12887_vm0, %v12882_v1  ;;  %9264 = vmatprep.mubr.msk.bf16.mxu1 %vm12887_vm0, %v12882_v1  ;;  %s9580_s28 = smov 96   ;;  %s9581_s29 = smov 80   ;;  %vm4518_vm9 = vcmask 257152   ;;  %vm4643_vm10 = vcmask 388352   ;;  %vm4768_vm11 = vcmask 519552   ;;  %vm4893_vm12 = vcmask 650752  }
  0x10   : > { %s9661_s12 = scalar_lea.vmem %s12874_s0, %s9352_s9  ;;  %s9582_s30 = smov 64   ;;  %vm5018_vm13 = vcmask 781952   ;;  %vm5143_vm14 = vcmask 913152   ;;  %vm5268_vm15 = vcmask 1044352  }
  0x11   : > { %9083 = vmatpush3.bf16.msra.mxu0 %v9373_v2  ;;  %9345 = vmatpush3.bf16.msra.mxu1 %v9373_v2  ;;  %v9380_v9 = vld [vmem:[%s9661_s12] sm:$0xff]   ;;  %v9381_v10 = vld [vmem:[%s9661_s12 + $0x150] sm:$0xff]   ;;  %v9382_v11 = vld [vmem:[%s9661_s12 + $0x8] sm:$0xff]   ;;  %s9583_s8 = smov 48   ;;  %s9584_s9 = smov 32  }
  0x12   : > { %9084 = vmatprep.subr.bf16.mxu0 %v12882_v1  ;;  %9338 = vmatprep.subr.bf16.mxu1 %v12882_v1  ;;  %v9383_v12 = vld [vmem:[%s9661_s12 + $0x158] sm:$0xff]   ;;  %v9384_v13 = vld [vmem:[%s9661_s12 + $0x10] sm:$0xff]   ;;  %v9385_v14 = vld [vmem:[%s9661_s12 + $0x160] sm:$0xff]   ;;  %s9585_s13 = smov 16   ;;  %s8745_s16 = sshll.u32 %s13076_s25, 3 }
  0x13   : > { %v9386_v15 = vld [vmem:[%s9661_s12 + $0x18] sm:$0xff]   ;;  %v9387_v16 = vld [vmem:[%s9661_s12 + $0x168] sm:$0xff]   ;;  %v9388_v17 = vld [vmem:[%s9661_s12 + $0x20] sm:$0xff]   ;;  %s278_s19 = scalar_lea.vmem %s12881_s7, %s8745_s16 }
  0x14   : > { %v9390_v18 = vld [vmem:[%s9661_s12 + $0x170] sm:$0xff]   ;;  %v9389_v19 = vld [vmem:[%s9661_s12 + $0x28] sm:$0xff]   ;;  %v9392_v20 = vld [vmem:[%s9661_s12 + $0x178] sm:$0xff]  }
  0x15   : > { %9085 = vmatpush3.bf16.msra.mxu0 %v9374_v3  ;;  %9346 = vmatpush3.bf16.msra.mxu1 %v9374_v3  ;;  %v9391_v21 = vld [vmem:[%s9661_s12 + $0x30] sm:$0xff]   ;;  %v9394_v22 = vld [vmem:[%s9661_s12 + $0x180] sm:$0xff]   ;;  %v9393_v23 = vld [vmem:[%s9661_s12 + $0x38] sm:$0xff]  }
  0x16   : > { %9086 = vmatprep.subr.bf16.mxu0 %v12882_v1  ;;  %9339 = vmatprep.subr.bf16.mxu1 %v12882_v1  ;;  %v9396_v24 = vld [vmem:[%s9661_s12 + $0x188] sm:$0xff]   ;;  %v9395_v25 = vld [vmem:[%s9661_s12 + $0x40] sm:$0xff]   ;;  %v9398_v27 = vld [vmem:[%s9661_s12 + $0x50] sm:$0xff]  }
  0x17   : > { %v9397_v26 = vld [vmem:[%s9661_s12 + $0x48] sm:$0xff]   ;;  %v9399_v28 = vld [vmem:[%s9661_s12 + $0x58] sm:$0xff]   ;;  %v9400_v29 = vld [vmem:[%s9661_s12 + $0x60] sm:$0xff]  }
  0x18   : > { %v9401_v30 = vld [vmem:[%s9661_s12 + $0x68] sm:$0xff]   ;;  %v9402_v31 = vld [vmem:[%s9661_s12 + $0x70] sm:$0xff]   ;;  %v9403_v32 = vld [vmem:[%s9661_s12 + $0x78] sm:$0xff]  }
  0x19   : > { %9087 = vmatpush3.bf16.msra.mxu0 %v9375_v4  ;;  %9347 = vmatpush3.bf16.msra.mxu1 %v9375_v4  ;;  %v9404_v33 = vld [vmem:[%s9661_s12 + $0x80] sm:$0xff]   ;;  %v9405_v34 = vld [vmem:[%s9661_s12 + $0x88] sm:$0xff]   ;;  %v9406_v35 = vld [vmem:[%s9661_s12 + $0x90] sm:$0xff]  }
  0x1a   : > { %9088 = vmatprep.subr.bf16.mxu0 %v12882_v1  ;;  %9340 = vmatprep.subr.bf16.mxu1 %v12882_v1  ;;  %v9407_v36 = vld [vmem:[%s9661_s12 + $0x98] sm:$0xff]   ;;  %v9408_v37 = vld [vmem:[%s9661_s12 + $0xa0] sm:$0xff]   ;;  %v9409_v38 = vld [vmem:[%s9661_s12 + $0xa8] sm:$0xff]  }
  0x1b   : > { %v9410_v39 = vld [vmem:[%s9661_s12 + $0xb0] sm:$0xff]   ;;  %v9411_v40 = vld [vmem:[%s9661_s12 + $0xb8] sm:$0xff]   ;;  %v9412_v41 = vld [vmem:[%s9661_s12 + $0xc0] sm:$0xff]  }
  0x1c   : > { %v9413_v52 = vld [vmem:[%s9661_s12 + $0xc8] sm:$0xff]  }
  0x1d   : > { %9089 = vmatpush3.bf16.msra.mxu0 %v9376_v5  ;;  %9348 = vmatpush3.bf16.msra.mxu1 %v9376_v5 }
  0x1e   : > { %9090 = vmatprep.subr.bf16.mxu0 %v12882_v1  ;;  %9341 = vmatprep.subr.bf16.mxu1 %v12882_v1 }
  0x21   : > { %9091 = vmatpush3.bf16.msra.mxu0 %v9377_v6  ;;  %9349 = vmatpush3.bf16.msra.mxu1 %v9377_v6 }
  0x22   : > { %9092 = vmatprep.subr.bf16.mxu0 %v12882_v1  ;;  %9342 = vmatprep.subr.bf16.mxu1 %v12882_v1 }
  0x25   : > { %9093 = vmatpush3.bf16.msra.mxu0 %v9378_v7  ;;  %9350 = vmatpush3.bf16.msra.mxu1 %v9378_v7 }
  0x26   : > { %9094 = vmatprep.subr.bf16.mxu0 %v12882_v1  ;;  %9343 = vmatprep.subr.bf16.mxu1 %v12882_v1 }
  0x29   : > { %9095 = vmatpush3.bf16.msra.mxu0 %v9379_v8  ;;  %9351 = vmatpush3.bf16.msra.mxu1 %v9379_v8 }
  0x2c   : > { %9097 = vmatmul.mubr.bf16.vlgmr.msra.gmra.mxu0 %v9380_v9  ;;  %9265 = vmatmul.mubr.bf16.vlgmr.msra.gmra.mxu1 %v9381_v10 }
  0x2d   : > { %9100 = vmatprep.mubr.msk.bf16.mxu0 %vm12887_vm0, %v12882_v1  ;;  %9268 = vmatprep.mubr.msk.bf16.mxu1 %vm12887_vm0, %v12882_v1 }
  0x34   : > { %9101 = vmatmul.mubr.bf16.gmra.mxu0 %v9382_v11  ;;  %9269 = vmatmul.mubr.bf16.gmra.mxu1 %v9383_v12 }
  0x35   : > { %9104 = vmatprep.mubr.msk.bf16.mxu0 %vm12887_vm0, %v12882_v1  ;;  %9272 = vmatprep.mubr.msk.bf16.mxu1 %vm12887_vm0, %v12882_v1 }
  0x3c   : > { %9105 = vmatmul.mubr.bf16.gmra.mxu0 %v9384_v13  ;;  %9273 = vmatmul.mubr.bf16.gmra.mxu1 %v9385_v14 }
  0x3d   : > { %9108 = vmatprep.mubr.msk.bf16.mxu0 %vm12887_vm0, %v12882_v1  ;;  %9276 = vmatprep.mubr.msk.bf16.mxu1 %vm12887_vm0, %v12882_v1 }
  0x44   : > { %9109 = vmatmul.mubr.bf16.gmra.mxu0 %v9386_v15  ;;  %9277 = vmatmul.mubr.bf16.gmra.mxu1 %v9387_v16 }
  0x45   : > { %9112 = vmatprep.mubr.msk.bf16.mxu0 %vm12887_vm0, %v12882_v1  ;;  %9280 = vmatprep.mubr.msk.bf16.mxu1 %vm12887_vm0, %v12882_v1 }
  0x4c   : > { %9113 = vmatmul.mubr.bf16.gmra.mxu0 %v9388_v17  ;;  %9281 = vmatmul.mubr.bf16.gmra.mxu1 %v9390_v18 }
  0x4d   : > { %9116 = vmatprep.mubr.msk.bf16.mxu0 %vm12887_vm0, %v12882_v1  ;;  %9284 = vmatprep.mubr.msk.bf16.mxu1 %vm12887_vm0, %v12882_v1 }
  0x54   : > { %9117 = vmatmul.mubr.bf16.gmra.mxu0 %v9389_v19  ;;  %9285 = vmatmul.mubr.bf16.gmra.mxu1 %v9392_v20 }
  0x55   : > { %9120 = vmatprep.mubr.msk.bf16.mxu0 %vm12887_vm0, %v12882_v1  ;;  %9288 = vmatprep.mubr.msk.bf16.mxu1 %vm12887_vm0, %v12882_v1 }
  0x5c   : > { %9121 = vmatmul.mubr.bf16.gmra.mxu0 %v9391_v21  ;;  %9289 = vmatmul.mubr.bf16.gmra.mxu1 %v9394_v22 }
  0x5d   : > { %9124 = vmatprep.mubr.msk.bf16.mxu0 %vm12887_vm0, %v12882_v1  ;;  %9292 = vmatprep.mubr.msk.bf16.mxu1 %vm12887_vm0, %v12882_v1 }
  0x64   : > { %9125 = vmatmul.mubr.bf16.gmra.mxu0 %v9393_v23  ;;  %9293 = vmatmul.mubr.bf16.gmra.mxu1 %v9396_v24 }
  0x65   : > { %9128 = vmatprep.mubr.msk.bf16.mxu0 %vm12887_vm0, %v12882_v1  ;;  %9296 = vmatprep.mubr.msk.bf16.mxu1 %vm12887_vm0, %v12882_v1 }
  0x6c   : > { %9129 = vmatmul.mubr.bf16.gmra.mxu0 %v9395_v25 }
  0x6d   : > { %9132 = vmatprep.mubr.msk.bf16.mxu0 %vm12887_vm0, %v12882_v1 }
  0x74   : > { %9133 = vmatmul.mubr.bf16.gmra.mxu0 %v9397_v26 }
  0x75   : > { %9136 = vmatprep.mubr.msk.bf16.mxu0 %vm12887_vm0, %v12882_v1 }
  0x7c   : > { %9137 = vmatmul.mubr.bf16.gmra.mxu0 %v9398_v27 }
  0x7d   : > { %9140 = vmatprep.mubr.msk.bf16.mxu0 %vm12887_vm0, %v12882_v1 }
  0x84   : > { %9141 = vmatmul.mubr.bf16.gmra.mxu0 %v9399_v28 }
  0x85   : > { %9144 = vmatprep.mubr.msk.bf16.mxu0 %vm12887_vm0, %v12882_v1 }
  0x8c   : > { %9145 = vmatmul.mubr.bf16.gmra.mxu0 %v9400_v29  ;;  %v9414_v29 = vld [vmem:[%s9661_s12 + $0xd0] sm:$0xff]  }
  0x8d   : > { %9148 = vmatprep.mubr.msk.bf16.mxu0 %vm12887_vm0, %v12882_v1 }
  0x94   : > { %9149 = vmatmul.mubr.bf16.gmra.mxu0 %v9401_v30 }
  0x95   : > { %9152 = vmatprep.mubr.msk.bf16.mxu0 %vm12887_vm0, %v12882_v1 }
  0x9c   : > { %9153 = vmatmul.mubr.bf16.gmra.mxu0 %v9402_v31 }
  0x9d   : > { %9156 = vmatprep.mubr.msk.bf16.mxu0 %vm12887_vm0, %v12882_v1 }
  0xa4   : > { %9157 = vmatmul.mubr.bf16.gmra.mxu0 %v9403_v32 }
  0xa5   : > { %9160 = vmatprep.mubr.msk.bf16.mxu0 %vm12887_vm0, %v12882_v1 }
  0xac   : > { %9161 = vmatmul.mubr.bf16.gmra.mxu0 %v9404_v33 }
  0xad   : > { %9164 = vmatprep.mubr.msk.bf16.mxu0 %vm12887_vm0, %v12882_v1 }
  0xb4   : > { %9165 = vmatmul.mubr.bf16.gmra.mxu0 %v9405_v34 }
  0xb5   : > { %9168 = vmatprep.mubr.msk.bf16.mxu0 %vm12887_vm0, %v12882_v1 }
  0xbc   : > { %9169 = vmatmul.mubr.bf16.gmra.mxu0 %v9406_v35 }
  0xbd   : > { %9172 = vmatprep.mubr.msk.bf16.mxu0 %vm12887_vm0, %v12882_v1 }
  0xc4   : > { %9173 = vmatmul.mubr.bf16.gmra.mxu0 %v9407_v36 }
  0xc5   : > { %9176 = vmatprep.mubr.msk.bf16.mxu0 %vm12887_vm0, %v12882_v1 }
  0xcc   : > { %9177 = vmatmul.mubr.bf16.gmra.mxu0 %v9408_v37 }
  0xcd   : > { %9180 = vmatprep.mubr.msk.bf16.mxu0 %vm12887_vm0, %v12882_v1 }
  0xd4   : > { %9181 = vmatmul.mubr.bf16.gmra.mxu0 %v9409_v38 }
  0xd5   : > { %9184 = vmatprep.mubr.msk.bf16.mxu0 %vm12887_vm0, %v12882_v1 }
  0xdc   : > { %9185 = vmatmul.mubr.bf16.gmra.mxu0 %v9410_v39 }
  0xdd   : > { %9188 = vmatprep.mubr.msk.bf16.mxu0 %vm12887_vm0, %v12882_v1 }
  0xe4   : > { %9189 = vmatmul.mubr.bf16.gmra.mxu0 %v9411_v40 }
  0xe5   : > { %9192 = vmatprep.mubr.msk.bf16.mxu0 %vm12887_vm0, %v12882_v1 }
  0xec   : > { %v832_v43 = vpop.f32.mrf.mxu0  ;;  %9193 = vmatmul.mubr.bf16.gmra.mxu0 %v9412_v41  ;;  %v1168_v44 = vpop.f32.mrf.mxu1 }
  0xed   : > { %v833_v45 = vadd.f32 %v832_v43, %v9788_v42  ;;  %v1169_v46 = vadd.f32 %v1168_v44, %v9788_v42  ;;  %9196 = vmatprep.mubr.msk.bf16.mxu0 %vm12887_vm0, %v12882_v1 }
  0xee   : > { %v9098_v47 = vpop.f32.mrf.mxu0  ;;  %v9266_v48 = vpop.f32.mrf.mxu1 }
  0xef   : > { %v1285_v49 = vmax.f32 %v833_v45, 0.0  ;;  %v1369_v50 = vmax.f32 %v1169_v46, 0.0 }
  0xf0   : > { %v835_v51 = vpop.f32.mrf.mxu0  ;;  %v1171_v53 = vpop.f32.mrf.mxu1 }
  0xf1   : > { %v1509_v54 = vcombine.high %v1285_v49, %v1285_v49  ;;  %v1734_v55 = vsel %vm1733_vm1, %v1285_v49, -inf  ;;  %v836_v56 = vadd.f32 %v835_v51, %v9788_v42  ;;  %v1593_v57 = vcombine.high %v1369_v50, %v1369_v50 }
  0xf2   : > { %v1735_v58 = vrot.slane %v1734_v55, 4  ;;  %v2910_v59 = vsel %vm1733_vm1, %v1369_v50, -inf  ;;  %v9099_v60 = vpop.f32.mrf.mxu0  ;;  %v1172_v61 = vadd.f32 %v1171_v53, %v9788_v42  ;;  %v9267_v62 = vpop.f32.mrf.mxu1 }
  0xf3   : > { %v1741_v63 = vsel %vm1733_vm1, %v1509_v54, -inf  ;;  %v1286_v0 = vmax.f32 %v836_v56, 0.0  ;;  %v2911_v2 = vrot.slane %v2910_v59, 4  ;;  %v2917_v3 = vsel %vm1733_vm1, %v1593_v57, -inf }
  0xf4   : > { %v1736_v4 = vmax.f32 %v1734_v55, %v1735_v58  ;;  %v1742_v5 = vrot.slane %v1741_v63, 4  ;;  %v2918_v6 = vrot.slane %v2917_v3, 4  ;;  %v840_v7 = vpop.f32.mrf.mxu0  ;;  %9197 = vmatmul.mubr.bf16.gmra.mxu0 %v9413_v52  ;;  %v9801_v8 = vmax.f32 %v1172_v61, 0.0  ;;  %v9803_v9 = vpop.f32.mrf.mxu1 }
  0xf5   : > { %v1510_v10 = vcombine.high %v1286_v0, %v1286_v0  ;;  %v1748_v11 = vsel %vm1733_vm1, %v1286_v0, -inf  ;;  %v2912_v12 = vmax.f32 %v2910_v59, %v2911_v2  ;;  %v841_v13 = vadd.f32 %v840_v7, %v9788_v42  ;;  %9200 = vmatprep.mubr.msk.bf16.mxu0 %vm12887_vm0, %v12882_v1 }
  0xf6   : > { %v1737_v14 = vrot.slane %v1736_v4, 2  ;;  %v1743_v15 = vmax.f32 %v1741_v63, %v1742_v5  ;;  %v1749_v16 = vrot.slane %v1748_v11, 4  ;;  %v2919_v17 = vmax.f32 %v2917_v3, %v2918_v6  ;;  %v9102_v18 = vpop.f32.mrf.mxu0  ;;  %v9270_v19 = vpop.f32.mrf.mxu1 }
  0xf7   : > { %v1755_v20 = vsel %vm1733_vm1, %v1510_v10, -inf  ;;  %v2913_v21 = vrot.slane %v2912_v12, 2  ;;  %v1287_v22 = vmax.f32 %v841_v13, 0.0  ;;  %v1594_v23 = vcombine.high %v9801_v8, %v9801_v8  ;;  %v9415_v10 = vld [vmem:[%s9661_s12 + $0xd8] sm:$0xff]  }
  0xf8   : > { %v1738_v24 = vmax.f32 %v1736_v4, %v1737_v14  ;;  %v1744_v25 = vrot.slane %v1743_v15, 2  ;;  %v1750_v26 = vmax.f32 %v1748_v11, %v1749_v16  ;;  %v1756_v27 = vrot.slane %v1755_v20, 4  ;;  %v9812_v28 = vpop.f32.mrf.mxu0  ;;  %v9815_v30 = vpop.f32.mrf.mxu1 }
  0xf9   : > { %v2914_v31 = vmax.f32 %v2912_v12, %v2913_v21  ;;  %v2920_v32 = vrot.slane %v2919_v17, 2  ;;  %v1511_v33 = vcombine.high %v1287_v22, %v1287_v22  ;;  %v1762_v34 = vsel %vm1733_vm1, %v1287_v22, -inf }
  0xfa   : > { %v1739_v35 = vrot.slane %v1738_v24, 1  ;;  %v1745_v36 = vmax.f32 %v1743_v15, %v1744_v25  ;;  %v1751_v37 = vrot.slane %v1750_v26, 2  ;;  %v1757_v38 = vmax.f32 %v1755_v20, %v1756_v27  ;;  %v9103_v39 = vpop.f32.mrf.mxu0  ;;  %v9271_v40 = vpop.f32.mrf.mxu1 }
  0xfb   : > { %v2915_v41 = vrot.slane %v2914_v31, 1  ;;  %v2921_v43 = vmax.f32 %v2919_v17, %v2920_v32  ;;  %v1763_v44 = vrot.slane %v1762_v34, 4  ;;  %v1769_v45 = vsel %vm1733_vm1, %v1511_v33, -inf }
  0xfc   : > { %v1740_v46 = vmax.f32 %v1738_v24, %v1739_v35  ;;  %v1746_v47 = vrot.slane %v1745_v36, 1  ;;  %v1752_v48 = vmax.f32 %v1750_v26, %v1751_v37  ;;  %v1758_v49 = vrot.slane %v1757_v38, 2  ;;  %v9819_v50 = vpop.f32.mrf.mxu0  ;;  %9201 = vmatmul.mubr.bf16.gmra.mxu0 %v9414_v29  ;;  %v9821_v51 = vpop.f32.mrf.mxu1 }
  0xfd   : > { %v2916_v52 = vmax.f32 %v2914_v31, %v2915_v41  ;;  %v2922_v53 = vrot.slane %v2921_v43, 1  ;;  %v1764_v54 = vmax.f32 %v1762_v34, %v1763_v44  ;;  %v1770_v55 = vrot.slane %v1769_v45, 4  ;;  %9204 = vmatprep.mubr.msk.bf16.mxu0 %vm12887_vm0, %v12882_v1 }
  0xfe   : > { %v1747_v56 = vmax.f32 %v1745_v36, %v1746_v47  ;;  %v8746_v57 = vpack.c.bf16 %v1740_v46, %v1740_v46  ;;  %v1753_v58 = vrot.slane %v1752_v48, 1  ;;  %v1759_v59 = vmax.f32 %v1757_v38, %v1758_v49  ;;  %v9106_v60 = vpop.f32.mrf.mxu0  ;;  %v9274_v61 = vpop.f32.mrf.mxu1 }
  0xff   : > { %v2923_v62 = vmax.f32 %v2921_v43, %v2922_v53  ;;  %v8914_v63 = vpack.c.bf16 %v2916_v52, %v2916_v52  ;;  %v1765_v0 = vrot.slane %v1764_v54, 2  ;;  %v1771_v2 = vmax.f32 %v1769_v45, %v1770_v55 }
 0x100   : > { %v8747_v3 = vpack.c.bf16 %v1747_v56, %v1747_v56  ;;  %v4030_v4 = vunpack.c.l.b16 %v8746_v57  ;;  %v1754_v5 = vmax.f32 %v1752_v48, %v1753_v58  ;;  %v1760_v6 = vrot.slane %v1759_v59, 1  ;;  %v9825_v7 = vpop.f32.mrf.mxu0  ;;  %v9828_v11 = vpop.f32.mrf.mxu1 }
 0x101   : > { %v8915_v12 = vpack.c.bf16 %v2923_v62, %v2923_v62  ;;  %v4439_v13 = vunpack.c.l.b16 %v8914_v63  ;;  %v1766_v14 = vmax.f32 %v1764_v54, %v1765_v0  ;;  %v1772_v15 = vrot.slane %v1771_v2, 2  ;;  %v9416_v54 = vld [vmem:[%s9661_s12 + $0xe0] sm:$0xff]  }
 0x102   : > { %v4031_v16 = vunpack.c.l.b16 %v8747_v3  ;;  %v1761_v17 = vmax.f32 %v1759_v59, %v1760_v6  ;;  %v8748_v18 = vpack.c.bf16 %v1754_v5, %v1754_v5  ;;  %v2924_v19 = vsel %vm1733_vm1, %v9801_v8, -inf  ;;  %v9107_v20 = vpop.f32.mrf.mxu0  ;;  %v9275_v21 = vpop.f32.mrf.mxu1 }
 0x103   : > { %v4440_v22 = vunpack.c.l.b16 %v8915_v12  ;;  %v1767_v24 = vrot.slane %v1766_v14, 1  ;;  %v1773_v25 = vmax.f32 %v1771_v2, %v1772_v15  ;;  %v2925_v26 = vrot.slane %v2924_v19, 4 }
 0x104   : > { %v4199_v27 = vsel %vm4198_vm2, %v4031_v16, %v4030_v4  ;;  %v8749_v29 = vpack.c.bf16 %v1761_v17, %v1761_v17  ;;  %v4032_v31 = vunpack.c.l.b16 %v8748_v18  ;;  %v2931_v32 = vsel %vm1733_vm1, %v1594_v23, -inf  ;;  %v9837_v33 = vpop.f32.mrf.mxu0  ;;  %9205 = vmatmul.mubr.bf16.gmra.mxu0 %v9415_v10  ;;  %v9839_v34 = vpop.f32.mrf.mxu1 }
 0x105   : > { %v1768_v35 = vmax.f32 %v1766_v14, %v1767_v24  ;;  %v1774_v36 = vrot.slane %v1773_v25, 1  ;;  %v2926_v37 = vmax.f32 %v2924_v19, %v2925_v26  ;;  %9208 = vmatprep.mubr.msk.bf16.mxu0 %vm12887_vm0, %v12882_v1  ;;  %v9847_v39 = vsel %vm4198_vm2, %v4440_v22, %v4439_v13 }
 0x106   : > { %v9844_v38 = vsel %vm4200_vm3, %v4032_v31, %v4199_v27  ;;  %v2932_v8 = vrot.slane %v2931_v32, 4  ;;  %v844_v23 = vadd.f32 %v9812_v28, %v9788_v42  ;;  %v9110_v40 = vpop.f32.mrf.mxu0  ;;  %v9278_v41 = vpop.f32.mrf.mxu1  ;;  %v1177_v46 = vadd.f32 %v9803_v9, %v9788_v42 }
 0x107   : > { %12922 = vst [vmem:[#allocation3_spill] sm:$0xff] %v9844_v38  ;;  %v9851_v43 = vmax.f32 %v1773_v25, %v1774_v36  ;;  %v8750_v44 = vpack.c.bf16 %v1768_v35, %v1768_v35  ;;  %v2927_v45 = vrot.slane %v2926_v37, 2  ;;  %v9855_v47 = vunpack.c.l.b16 %v8749_v29 }
 0x108   : > { %v2933_v48 = vmax.f32 %v2931_v32, %v2932_v8  ;;  %v1288_v49 = vmax.f32 %v844_v23, 0.0  ;;  %v849_v52 = vadd.f32 %v9819_v50, %v9788_v42  ;;  %v9859_v53 = vpop.f32.mrf.mxu0  ;;  %v9862_v28 = vpop.f32.mrf.mxu1  ;;  %v1371_v57 = vmax.f32 %v1177_v46, 0.0 }
 0x109   : > { %12923 = vst [vmem:[#allocation4_spill] sm:$0xff] %v9855_v47  ;;  %v8751_v55 = vpack.c.bf16 %v9851_v43, %v9851_v43  ;;  %v2928_v56 = vmax.f32 %v2926_v37, %v2927_v45  ;;  %v9868_v9 = vadd.f32 %v9815_v30, %v9788_v42  ;;  %v9871_v63 = vunpack.c.l.b16 %v8750_v44  ;;  %v9417_v37 = vld [vmem:[%s9661_s12 + $0xe8] sm:$0xff]  }
 0x10a   : > { %v2934_v58 = vrot.slane %v2933_v48, 2  ;;  %v1512_v59 = vcombine.high %v1288_v49, %v1288_v49  ;;  %v1776_v60 = vsel %vm1733_vm1, %v1288_v49, -inf  ;;  %v1289_v61 = vmax.f32 %v849_v52, 0.0  ;;  %v9111_v50 = vpop.f32.mrf.mxu0  ;;  %v9279_v62 = vpop.f32.mrf.mxu1 }
 0x10b   : > { %12924 = vst [vmem:[#allocation5_spill] sm:$0xff] %v9871_v63  ;;  %v2929_v0 = vrot.slane %v2928_v56, 1  ;;  %v1777_v2 = vrot.slane %v1776_v60, 4  ;;  %v1595_v3 = vcombine.high %v1371_v57, %v1371_v57  ;;  %v2938_v6 = vsel %vm1733_vm1, %v1371_v57, -inf }
 0x10c   : > { %v2935_v4 = vmax.f32 %v2933_v48, %v2934_v58  ;;  %v1783_v5 = vsel %vm1733_vm1, %v1512_v59, -inf  ;;  %v1513_v10 = vcombine.high %v1289_v61, %v1289_v61  ;;  %v9875_v30 = vpop.f32.mrf.mxu0  ;;  %9209 = vmatmul.mubr.bf16.gmra.mxu0 %v9416_v54  ;;  %v9877_v12 = vpop.f32.mrf.mxu1  ;;  %v2939_v16 = vrot.slane %v2938_v6, 4 }
 0x10d   : > { %v2930_v13 = vmax.f32 %v2928_v56, %v2929_v0  ;;  %v1778_v14 = vmax.f32 %v1776_v60, %v1777_v2  ;;  %v1784_v15 = vrot.slane %v1783_v5, 4  ;;  %9212 = vmatprep.mubr.msk.bf16.mxu0 %vm12887_vm0, %v12882_v1  ;;  %v2945_v18 = vsel %vm1733_vm1, %v1595_v3, -inf }
 0x10e   : > { %v2936_v17 = vrot.slane %v2935_v4, 1  ;;  %v1790_v19 = vsel %vm1733_vm1, %v1289_v61, -inf  ;;  %v1797_v20 = vsel %vm1733_vm1, %v1513_v10, -inf  ;;  %v9114_v21 = vpop.f32.mrf.mxu0  ;;  %v9282_v22 = vpop.f32.mrf.mxu1  ;;  %v2940_v27 = vmax.f32 %v2938_v6, %v2939_v16 }
 0x10f   : > { %v8916_v24 = vpack.c.bf16 %v2930_v13, %v2930_v13  ;;  %v1779_v25 = vrot.slane %v1778_v14, 2  ;;  %v1785_v26 = vmax.f32 %v1783_v5, %v1784_v15  ;;  %v2946_v31 = vrot.slane %v2945_v18, 4 }
 0x110   : > { %v2937_v29 = vmax.f32 %v2935_v4, %v2936_v17  ;;  %v1791_v32 = vrot.slane %v1790_v19, 4  ;;  %v1798_v35 = vrot.slane %v1797_v20, 4  ;;  %v9884_v36 = vpop.f32.mrf.mxu0  ;;  %v9887_v8 = vpop.f32.mrf.mxu1  ;;  %v2941_v44 = vrot.slane %v2940_v27, 2 }
 0x111   : > { %v4441_v23 = vunpack.c.l.b16 %v8916_v24  ;;  %v1780_v40 = vmax.f32 %v1778_v14, %v1779_v25  ;;  %v1786_v41 = vrot.slane %v1785_v26, 2  ;;  %v2947_v46 = vmax.f32 %v2945_v18, %v2946_v31  ;;  %v9418_v24 = vld [vmem:[%s9661_s12 + $0xf0] sm:$0xff]  }
 0x112   : > { %v8917_v45 = vpack.c.bf16 %v2937_v29, %v2937_v29  ;;  %v1792_v48 = vmax.f32 %v1790_v19, %v1791_v32  ;;  %v1799_v49 = vmax.f32 %v1797_v20, %v1798_v35  ;;  %v9115_v52 = vpop.f32.mrf.mxu0  ;;  %v9283_v54 = vpop.f32.mrf.mxu1  ;;  %v2942_v59 = vmax.f32 %v2940_v27, %v2941_v44  ;;  %v9424_v27 = vld [vmem:[%s9661_s12 + $0x120] sm:$0xff]  }
 0x113   : > { %v4448_v56 = vsel %vm4200_vm3, %v4441_v23, %v9847_v39  ;;  %v1781_v57 = vrot.slane %v1780_v40, 1  ;;  %v1787_v58 = vmax.f32 %v1785_v26, %v1786_v41  ;;  %v2948_v61 = vrot.slane %v2947_v46, 2 }
 0x114   : > { %v4442_v60 = vunpack.c.l.b16 %v8917_v45  ;;  %v1793_v50 = vrot.slane %v1792_v48, 2  ;;  %v1800_v62 = vrot.slane %v1799_v49, 2  ;;  %v9891_v0 = vpop.f32.mrf.mxu0  ;;  %9213 = vmatmul.mubr.bf16.gmra.mxu0 %v9417_v37  ;;  %v9893_v2 = vpop.f32.mrf.mxu1  ;;  %v2943_v5 = vrot.slane %v2942_v59, 1 }
 0x115   : > { %v9895_v3 = vmax.f32 %v1780_v40, %v1781_v57  ;;  %v1788_v4 = vrot.slane %v1787_v58, 1  ;;  %v1372_v6 = vmax.f32 %v9868_v9, 0.0  ;;  %9216 = vmatprep.mubr.msk.bf16.mxu0 %vm12887_vm0, %v12882_v1  ;;  %v9903_v39 = vunpack.c.l.b16 %v8751_v55 }
 0x116   : > { %v2949_v10 = vmax.f32 %v2947_v46, %v2948_v61  ;;  %v1794_v13 = vmax.f32 %v1792_v48, %v1793_v50  ;;  %v1801_v14 = vmax.f32 %v1799_v49, %v1800_v62  ;;  %v9118_v15 = vpop.f32.mrf.mxu0  ;;  %v9286_v16 = vpop.f32.mrf.mxu1  ;;  %v4449_v17 = vsel %vm12892_vm4, %v4442_v60, %v4448_v56 }
 0x117   : > { %12925 = vst [vmem:[#allocation6_spill] sm:$0xff] %v9903_v39  ;;  %v9906_v18 = vmax.f32 %v1787_v58, %v1788_v4  ;;  %v2944_v19 = vmax.f32 %v2942_v59, %v2943_v5  ;;  %v1596_v9 = vcombine.high %v1372_v6, %v1372_v6  ;;  %v2952_v43 = vsel %vm1733_vm1, %v1372_v6, -inf }
 0x118   : > { %v2950_v20 = vrot.slane %v2949_v10, 1  ;;  %v1795_v21 = vrot.slane %v1794_v13, 1  ;;  %v1802_v22 = vrot.slane %v1801_v14, 1  ;;  %v9909_v55 = vpop.f32.mrf.mxu0  ;;  %v9912_v25 = vpop.f32.mrf.mxu1  ;;  %v8752_v26 = vpack.c.bf16 %v9895_v3, %v9895_v3 }
 0x119   : > { %v8918_v29 = vpack.c.bf16 %v2944_v19, %v2944_v19  ;;  %v2953_v31 = vrot.slane %v2952_v43, 4  ;;  %v2959_v23 = vsel %vm1733_vm1, %v1596_v9, -inf  ;;  %v852_v48 = vadd.f32 %v9825_v7, %v9788_v42 }
 0x11a   : > { %v2951_v32 = vmax.f32 %v2949_v10, %v2950_v20  ;;  %v1796_v35 = vmax.f32 %v1794_v13, %v1795_v21  ;;  %v1803_v37 = vmax.f32 %v1801_v14, %v1802_v22  ;;  %v9119_v40 = vpop.f32.mrf.mxu0  ;;  %v9287_v41 = vpop.f32.mrf.mxu1  ;;  %v2960_v46 = vrot.slane %v2959_v23, 4  ;;  %v9419_v21 = vld [vmem:[%s9661_s12 + $0xf8] sm:$0xff]  }
 0x11b   : > { %v4443_v44 = vunpack.c.l.b16 %v8918_v29  ;;  %v2954_v45 = vmax.f32 %v2952_v43, %v2953_v31  ;;  %v1185_v56 = vadd.f32 %v9821_v51, %v9788_v42  ;;  %v1290_v50 = vmax.f32 %v852_v48, 0.0 }
 0x11c   : > { %v8919_v49 = vpack.c.bf16 %v2951_v32, %v2951_v32  ;;  %v8754_v52 = vpack.c.bf16 %v1796_v35, %v1796_v35  ;;  %v8755_v54 = vpack.c.bf16 %v1803_v37, %v1803_v37  ;;  %v9923_v57 = vpop.f32.mrf.mxu0  ;;  %9217 = vmatmul.mubr.bf16.gmra.mxu0 %v9418_v24  ;;  %v9925_v58 = vpop.f32.mrf.mxu1  ;;  %v2961_v61 = vmax.f32 %v2959_v23, %v2960_v46 }
 0x11d   : > { %v4450_v59 = vsel %vm12891_vm5, %v4443_v44, %v4449_v17  ;;  %v2955_v60 = vrot.slane %v2954_v45, 2  ;;  %9220 = vmatprep.mubr.msk.bf16.mxu0 %vm12887_vm0, %v12882_v1  ;;  %v1373_v5 = vmax.f32 %v1185_v56, 0.0  ;;  %v1514_v14 = vcombine.high %v1290_v50, %v1290_v50 }
 0x11e   : > { %v4444_v7 = vunpack.c.l.b16 %v8919_v49  ;;  %v4038_v62 = vunpack.c.l.b16 %v8754_v52  ;;  %v4039_v4 = vunpack.c.l.b16 %v8755_v54  ;;  %v9122_v6 = vpop.f32.mrf.mxu0  ;;  %v9290_v51 = vpop.f32.mrf.mxu1  ;;  %v2962_v13 = vrot.slane %v2961_v61, 2 }
 0x11f   : > { %v2956_v10 = vmax.f32 %v2954_v45, %v2955_v60  ;;  %v1804_v15 = vsel %vm1733_vm1, %v1290_v50, -inf  ;;  %v1597_v9 = vcombine.high %v1373_v5, %v1373_v5  ;;  %v1811_v29 = vsel %vm1733_vm1, %v1514_v14, -inf }
 0x120   : > { %v4451_v16 = vsel %vm12890_vm6, %v4444_v7, %v4450_v59  ;;  %v9933_v17 = vsel %vm4198_vm2, %v4039_v4, %v4038_v62  ;;  %v1805_v19 = vrot.slane %v1804_v15, 4  ;;  %v9935_v20 = vpop.f32.mrf.mxu0  ;;  %v9938_v22 = vpop.f32.mrf.mxu1  ;;  %v2963_v24 = vmax.f32 %v2961_v61, %v2962_v13 }
 0x121   : > { %v2957_v43 = vrot.slane %v2956_v10, 1  ;;  %v2966_v31 = vsel %vm1733_vm1, %v1373_v5, -inf  ;;  %v1812_v35 = vrot.slane %v1811_v29, 4  ;;  %v2973_v23 = vsel %vm1733_vm1, %v1597_v9, -inf }
 0x122   : > { %v1806_v32 = vmax.f32 %v1804_v15, %v1805_v19  ;;  %v2967_v37 = vrot.slane %v2966_v31, 4  ;;  %v9123_v40 = vpop.f32.mrf.mxu0  ;;  %v9291_v41 = vpop.f32.mrf.mxu1  ;;  %v2964_v45 = vrot.slane %v2963_v24, 1  ;;  %v2974_v46 = vrot.slane %v2973_v23, 4 }
 0x123   : > { %v2958_v44 = vmax.f32 %v2956_v10, %v2957_v43  ;;  %v857_v48 = vadd.f32 %v9837_v33, %v9788_v42  ;;  %v1813_v52 = vmax.f32 %v1811_v29, %v1812_v35  ;;  %v1188_v56 = vadd.f32 %v9828_v11, %v9788_v42  ;;  %v9420_v29 = vld [vmem:[%s9661_s12 + $0x100] sm:$0xff]  }
 0x124   : > { %v1807_v49 = vrot.slane %v1806_v32, 2  ;;  %v2968_v54 = vmax.f32 %v2966_v31, %v2967_v37  ;;  %v9947_v59 = vpop.f32.mrf.mxu0  ;;  %9221 = vmatmul.mubr.bf16.gmra.mxu0 %v9419_v21  ;;  %v9949_v60 = vpop.f32.mrf.mxu1  ;;  %v2965_v61 = vmax.f32 %v2963_v24, %v2964_v45  ;;  %v2975_v7 = vmax.f32 %v2973_v23, %v2974_v46 }
 0x125   : > { %v8920_v50 = vpack.c.bf16 %v2958_v44, %v2958_v44  ;;  %v1291_v62 = vmax.f32 %v857_v48, 0.0  ;;  %9224 = vmatprep.mubr.msk.bf16.mxu0 %vm12887_vm0, %v12882_v1  ;;  %v1814_v4 = vrot.slane %v1813_v52, 2  ;;  %v1374_v6 = vmax.f32 %v1188_v56, 0.0 }
 0x126   : > { %v1808_v33 = vmax.f32 %v1806_v32, %v1807_v49  ;;  %v2969_v5 = vrot.slane %v2968_v54, 2  ;;  %v9126_v51 = vpop.f32.mrf.mxu0  ;;  %v9294_v10 = vpop.f32.mrf.mxu1  ;;  %v8921_v11 = vpack.c.bf16 %v2965_v61, %v2965_v61  ;;  %v2976_v14 = vrot.slane %v2975_v7, 2 }
 0x127   : > { %v4445_v13 = vunpack.c.l.b16 %v8920_v50  ;;  %v1515_v15 = vcombine.high %v1291_v62, %v1291_v62  ;;  %v1815_v9 = vmax.f32 %v1813_v52, %v1814_v4  ;;  %v1818_v43 = vsel %vm1733_vm1, %v1291_v62, -inf }
 0x128   : > { %v1809_v19 = vrot.slane %v1808_v33, 1  ;;  %v2970_v21 = vmax.f32 %v2968_v54, %v2969_v5  ;;  %v9954_v24 = vpop.f32.mrf.mxu0  ;;  %v9957_v31 = vpop.f32.mrf.mxu1  ;;  %v4446_v32 = vunpack.c.l.b16 %v8921_v11  ;;  %v2977_v37 = vmax.f32 %v2975_v7, %v2976_v14 }
 0x129   : > { %v4452_v35 = vsel %vm12889_vm7, %v4445_v13, %v4451_v16  ;;  %v1819_v23 = vrot.slane %v1818_v43, 4  ;;  %v1816_v41 = vrot.slane %v1815_v9, 1  ;;  %v1825_v45 = vsel %vm1733_vm1, %v1515_v15, -inf }
 0x12a   : > { %v1810_v40 = vmax.f32 %v1808_v33, %v1809_v19  ;;  %v2971_v44 = vrot.slane %v2970_v21, 1  ;;  %v9127_v46 = vpop.f32.mrf.mxu0  ;;  %v9295_v48 = vpop.f32.mrf.mxu1  ;;  %v4453_v49 = vsel %vm12888_vm8, %v4446_v32, %v4452_v35  ;;  %v2978_v52 = vrot.slane %v2977_v37, 1 }
 0x12b   : > { %v1820_v54 = vmax.f32 %v1818_v43, %v1819_v23  ;;  %v1826_v56 = vrot.slane %v1825_v45, 4  ;;  %v9962_v61 = vpack.c.b16 %v4453_v49, %v4453_v49  ;;  %v1817_v50 = vmax.f32 %v1815_v9, %v1816_v41 }
 0x12c   : > { %v8756_v62 = vpack.c.bf16 %v1810_v40, %v1810_v40  ;;  %v2972_v4 = vmax.f32 %v2970_v21, %v2971_v44  ;;  %v9964_v16 = vpop.f32.mrf.mxu0  ;;  %9225 = vmatmul.mubr.bf16.gmra.mxu0 %v9420_v29  ;;  %v2979_v7 = vmax.f32 %v2977_v37, %v2978_v52  ;;  %v1598_v51 = vcombine.high %v1374_v6, %v1374_v6 }
 0x12d   : > { %12926 = vst [vmem:[#allocation7_spill] sm:$0xff] %v9962_v61  ;;  %v1821_v33 = vrot.slane %v1820_v54, 2  ;;  %v1827_v5 = vmax.f32 %v1825_v45, %v1826_v56  ;;  %9228 = vmatprep.mubr.msk.bf16.mxu0 %vm12887_vm0, %v12882_v1  ;;  %v8757_v10 = vpack.c.bf16 %v1817_v50, %v1817_v50  ;;  %v2980_v14 = vsel %vm1733_vm1, %v1374_v6, -inf  ;;  %5233 = vrot.lane.b32.xlu0 %v9962_v61, %s9579_s27 }
 0x12e   : > { %v4040_v11 = vunpack.c.l.b16 %v8756_v62  ;;  %v8922_v13 = vpack.c.bf16 %v2972_v4, %v2972_v4  ;;  %5110 = vrot.lane.b32.xlu1 %v9962_v61, %s9580_s28  ;;  %v9130_v15 = vpop.f32.mrf.mxu0  ;;  %v8923_v19 = vpack.c.bf16 %v2979_v7, %v2979_v7  ;;  %v2981_v43 = vrot.slane %v2980_v14, 4 }
 0x12f   : > { %v1822_v9 = vmax.f32 %v1820_v54, %v1821_v33  ;;  %v1828_v21 = vrot.slane %v1827_v5, 2  ;;  %v9976_v29 = vunpack.c.l.b16 %v8752_v26  ;;  %v2987_v35 = vsel %vm1733_vm1, %v1598_v51, -inf  ;;  %v9421_v54 = vld [vmem:[%s9661_s12 + $0x108] sm:$0xff]  }
 0x130   : > { %v9980_v6 = vsel %vm4200_vm3, %v4040_v11, %v9933_v17  ;;  %v4564_v32 = vunpack.c.l.b16 %v8922_v13  ;;  %v9983_v37 = vpop.f32.mrf.mxu0  ;;  %v4565_v23 = vunpack.c.l.b16 %v8923_v19  ;;  %v2982_v44 = vmax.f32 %v2980_v14, %v2981_v43 }
 0x131   : > { %12927 = vst [vmem:[#allocation8_spill] sm:$0xff] %v9976_v29  ;;  %v1823_v40 = vrot.slane %v1822_v9, 1  ;;  %v1829_v41 = vmax.f32 %v1827_v5, %v1828_v21  ;;  %v2988_v45 = vrot.slane %v2987_v35, 4  ;;  %v860_v3 = vadd.f32 %v9859_v53, %v9788_v42  ;;  %4987 = vrot.lane.b32.xlu0 %v9962_v61, %s9581_s29 }
 0x132   : > { %v1193_v26 = vadd.f32 %v9839_v34, %v9788_v42  ;;  %v865_v17 = vadd.f32 %v9875_v30, %v9788_v42  ;;  %4864 = vrot.lane.b32.xlu1 %v9962_v61, %s9582_s30  ;;  %v9131_v46 = vpop.f32.mrf.mxu0  ;;  %v9995_v48 = vunpack.c.l.b16 %v8757_v10  ;;  %v2983_v53 = vrot.slane %v2982_v44, 2 }
 0x133   : > { %v1824_v49 = vmax.f32 %v1822_v9, %v1823_v40  ;;  %v1830_v52 = vrot.slane %v1829_v41, 1  ;;  %v4572_v34 = vsel %vm4198_vm2, %v4565_v23, %v4564_v32  ;;  %v2989_v56 = vmax.f32 %v2987_v35, %v2988_v45 }
 0x134   : > { %v1292_v50 = vmax.f32 %v860_v3, 0.0  ;;  %v1375_v30 = vmax.f32 %v1193_v26, 0.0  ;;  %v2984_v7 = vmax.f32 %v2982_v44, %v2983_v53  ;;  %v1293_v33 = vmax.f32 %v865_v17, 0.0  ;;  %v10001_v5 = vpop.f32.mrf.mxu0  ;;  %9229 = vmatmul.mubr.bf16.gmra.mxu0 %v9421_v54 }
 0x135   : > { %v9999_v62 = vmax.f32 %v1829_v41, %v1830_v52  ;;  %v8758_v4 = vpack.c.bf16 %v1824_v49, %v1824_v49  ;;  %v2990_v51 = vrot.slane %v2989_v56, 2  ;;  %4741 = vrot.lane.b32.xlu0 %v9962_v61, %s9583_s8  ;;  %v1196_v9 = vadd.f32 %v9862_v28, %v9788_v42  ;;  %9232 = vmatprep.mubr.msk.bf16.mxu0 %vm12887_vm0, %v12882_v1 }
 0x136   : > { %v1516_v10 = vcombine.high %v1292_v50, %v1292_v50  ;;  %v1832_v11 = vsel %vm1733_vm1, %v1292_v50, -inf  ;;  %v1599_v13 = vcombine.high %v1375_v30, %v1375_v30  ;;  %4618 = vrot.lane.b32.xlu1 %v9962_v61, %s9584_s9  ;;  %v2985_v15 = vrot.slane %v2984_v7, 1  ;;  %v9134_v21 = vpop.f32.mrf.mxu0  ;;  %v9422_v50 = vld [vmem:[%s9661_s12 + $0x110] sm:$0xff]  }
 0x137   : > { %v8759_v14 = vpack.c.bf16 %v9999_v62, %v9999_v62  ;;  %v1833_v19 = vrot.slane %v1832_v11, 4  ;;  %v2991_v43 = vmax.f32 %v2989_v56, %v2990_v51  ;;  %v2994_v35 = vsel %vm1733_vm1, %v1375_v30, -inf }
 0x138   : > { %v1839_v32 = vsel %vm1733_vm1, %v1516_v10, -inf  ;;  %v3001_v23 = vsel %vm1733_vm1, %v1599_v13, -inf  ;;  %v10017_v40 = vunpack.c.l.b16 %v8758_v4  ;;  %v2986_v41 = vmax.f32 %v2984_v7, %v2985_v15  ;;  %v10019_v3 = vpop.f32.mrf.mxu0 }
 0x139   : > { %v1834_v44 = vmax.f32 %v1832_v11, %v1833_v19  ;;  %v1840_v45 = vrot.slane %v1839_v32, 4  ;;  %v2992_v28 = vrot.slane %v2991_v43, 1  ;;  %v2995_v26 = vrot.slane %v2994_v35, 4 }
 0x13a   : > { %v3002_v17 = vrot.slane %v3001_v23, 4  ;;  %v1517_v46 = vcombine.high %v1293_v33, %v1293_v33  ;;  %v8924_v49 = vpack.c.bf16 %v2986_v41, %v2986_v41  ;;  %v1846_v54 = vsel %vm1733_vm1, %v1293_v33, -inf  ;;  %v9135_v56 = vpop.f32.mrf.mxu0 }
 0x13b   : > { %v1835_v52 = vrot.slane %v1834_v44, 2  ;;  %v1841_v53 = vmax.f32 %v1839_v32, %v1840_v45  ;;  %v2993_v30 = vmax.f32 %v2991_v43, %v2992_v28  ;;  %v2996_v62 = vmax.f32 %v2994_v35, %v2995_v26 }
 0x13c   : > { %v3003_v4 = vmax.f32 %v3001_v23, %v3002_v17  ;;  %v1847_v51 = vrot.slane %v1846_v54, 4  ;;  %v4566_v7 = vunpack.c.l.b16 %v8924_v49  ;;  %v1853_v13 = vsel %vm1733_vm1, %v1517_v46, -inf  ;;  %v10024_v15 = vpop.f32.mrf.mxu0  ;;  %9233 = vmatmul.mubr.bf16.gmra.mxu0 %v9422_v50 }
 0x13d   : > { %v1836_v10 = vmax.f32 %v1834_v44, %v1835_v52  ;;  %v1842_v11 = vrot.slane %v1841_v53, 2  ;;  %v8925_v19 = vpack.c.bf16 %v2993_v30, %v2993_v30  ;;  %v2997_v21 = vrot.slane %v2996_v62, 2  ;;  %9236 = vmatprep.mubr.msk.bf16.mxu0 %vm12887_vm0, %v12882_v1 }
 0x13e   : > { %v3004_v41 = vrot.slane %v3003_v4, 2  ;;  %v1848_v32 = vmax.f32 %v1846_v54, %v1847_v51  ;;  %v4573_v33 = vsel %vm4200_vm3, %v4566_v7, %v4572_v34  ;;  %v1854_v23 = vrot.slane %v1853_v13, 4  ;;  %v9138_v44 = vpop.f32.mrf.mxu0 }
 0x13f   : > { %v1837_v43 = vrot.slane %v1836_v10, 1  ;;  %v10029_v35 = vmax.f32 %v1841_v53, %v1842_v11  ;;  %v4567_v45 = vunpack.c.l.b16 %v8925_v19  ;;  %v2998_v28 = vmax.f32 %v2996_v62, %v2997_v21  ;;  %v9423_v21 = vld [vmem:[%s9661_s12 + $0x118] sm:$0xff]  }
 0x140   : > { %v3005_v26 = vmax.f32 %v3003_v4, %v3004_v41  ;;  %v1849_v17 = vrot.slane %v1848_v32, 2  ;;  %v10031_v46 = vunpack.c.l.b16 %v8759_v14  ;;  %v1855_v52 = vmax.f32 %v1853_v13, %v1854_v23  ;;  %v10035_v56 = vpop.f32.mrf.mxu0 }
 0x141   : > { %v10033_v49 = vmax.f32 %v1836_v10, %v1837_v43  ;;  %v1376_v54 = vmax.f32 %v1196_v9, 0.0  ;;  %v2999_v50 = vrot.slane %v2998_v28, 1  ;;  %v4574_v51 = vsel %vm12892_vm4, %v4567_v45, %v4573_v33 }
 0x142   : > { %v3006_v53 = vrot.slane %v3005_v26, 1  ;;  %v1850_v30 = vmax.f32 %v1848_v32, %v1849_v17  ;;  %v1856_v7 = vrot.slane %v1855_v52, 2  ;;  %v9139_v14 = vpop.f32.mrf.mxu0  ;;  %v868_v32 = vadd.f32 %v9884_v36, %v9788_v42 }
 0x143   : > { %v1600_v62 = vcombine.high %v1376_v54, %v1376_v54  ;;  %v3008_v4 = vsel %vm1733_vm1, %v1376_v54, -inf  ;;  %v3000_v11 = vmax.f32 %v2998_v28, %v2999_v50  ;;  %v873_v50 = vadd.f32 %v9891_v0, %v9788_v42 }
 0x144   : > { %v3007_v10 = vmax.f32 %v3005_v26, %v3006_v53  ;;  %v1851_v19 = vrot.slane %v1850_v30, 1  ;;  %v3009_v13 = vrot.slane %v3008_v4, 4  ;;  %v1857_v41 = vmax.f32 %v1855_v52, %v1856_v7  ;;  %v10046_v17 = vpop.f32.mrf.mxu0  ;;  %9237 = vmatmul.mubr.bf16.gmra.mxu0 %v9423_v21 }
 0x145   : > { %v3015_v43 = vsel %vm1733_vm1, %v1600_v62, -inf  ;;  %v8926_v33 = vpack.c.bf16 %v3000_v11, %v3000_v11  ;;  %v1294_v54 = vmax.f32 %v868_v32, 0.0  ;;  %9240 = vmatprep.mubr.msk.bf16.mxu0 %vm12887_vm0, %v12882_v1 }
 0x146   : > { %v8927_v23 = vpack.c.bf16 %v3007_v10, %v3007_v10  ;;  %v1852_v44 = vmax.f32 %v1850_v30, %v1851_v19  ;;  %v3010_v45 = vmax.f32 %v3008_v4, %v3009_v13  ;;  %v1858_v28 = vrot.slane %v1857_v41, 1  ;;  %v9142_v62 = vpop.f32.mrf.mxu0 }
 0x147   : > { %v3016_v26 = vrot.slane %v3015_v43, 4  ;;  %v4568_v52 = vunpack.c.l.b16 %v8926_v33  ;;  %v1518_v4 = vcombine.high %v1294_v54, %v1294_v54  ;;  %v1860_v11 = vsel %vm1733_vm1, %v1294_v54, -inf }
 0x148   : > { %v4569_v53 = vunpack.c.l.b16 %v8927_v23  ;;  %v8762_v7 = vpack.c.bf16 %v1852_v44, %v1852_v44  ;;  %v3011_v36 = vrot.slane %v3010_v45, 2  ;;  %v1859_v14 = vmax.f32 %v1857_v41, %v1858_v28  ;;  %v10054_v0 = vpop.f32.mrf.mxu0 }
 0x149   : > { %v3017_v30 = vmax.f32 %v3015_v43, %v3016_v26  ;;  %v4575_v10 = vsel %vm12891_vm5, %v4568_v52, %v4574_v51  ;;  %v1861_v21 = vrot.slane %v1860_v11, 4  ;;  %v1867_v44 = vsel %vm1733_vm1, %v1518_v4, -inf }
 0x14a   : > { %v4046_v19 = vunpack.c.l.b16 %v8762_v7  ;;  %v3012_v13 = vmax.f32 %v3010_v45, %v3011_v36  ;;  %v4576_v32 = vsel %vm12890_vm6, %v4569_v53, %v4575_v10  ;;  %v8763_v33 = vpack.c.bf16 %v1859_v14, %v1859_v14  ;;  %v9143_v26 = vpop.f32.mrf.mxu0 }
 0x14b   : > { %v3018_v23 = vrot.slane %v3017_v30, 2  ;;  %v1862_v41 = vmax.f32 %v1860_v11, %v1861_v21  ;;  %v1868_v43 = vrot.slane %v1867_v44, 4  ;;  %v1295_v28 = vmax.f32 %v873_v50, 0.0 }
 0x14c   : > { %v3013_v62 = vrot.slane %v3012_v13, 1  ;;  %v4047_v54 = vunpack.c.l.b16 %v8763_v33  ;;  %v1201_v51 = vadd.f32 %v9877_v12, %v9788_v42  ;;  %v876_v45 = vadd.f32 %v9909_v55, %v9788_v42  ;;  %v10063_v14 = vpop.f32.mrf.mxu0  ;;  %9241 = vmatmul.mubr.bf16.gmra.mxu0 %v9424_v27 }
 0x14d   : > { %v3019_v34 = vmax.f32 %v3017_v30, %v3018_v23  ;;  %v1863_v53 = vrot.slane %v1862_v41, 2  ;;  %v1869_v7 = vmax.f32 %v1867_v44, %v1868_v43  ;;  %v1519_v36 = vcombine.high %v1295_v28, %v1295_v28  ;;  %9244 = vmatprep.mubr.msk.bf16.mxu0 %vm12887_vm0, %v12882_v1 }
 0x14e   : > { %v3014_v52 = vmax.f32 %v3012_v13, %v3013_v62  ;;  %v4219_v4 = vsel %vm4198_vm2, %v4047_v54, %v4046_v19  ;;  %v1874_v11 = vsel %vm1733_vm1, %v1295_v28, -inf  ;;  %v1377_v10 = vmax.f32 %v1201_v51, 0.0  ;;  %v9146_v55 = vpop.f32.mrf.mxu0 }
 0x14f   : > { %v3020_v50 = vrot.slane %v3019_v34, 1  ;;  %v1864_v30 = vmax.f32 %v1862_v41, %v1863_v53  ;;  %v1870_v21 = vrot.slane %v1869_v7, 2  ;;  %v1875_v42 = vrot.slane %v1874_v11, 4 }
 0x150   : > { %v8928_v12 = vpack.c.bf16 %v3014_v52, %v3014_v52  ;;  %v1881_v33 = vsel %vm1733_vm1, %v1519_v36, -inf  ;;  %v1601_v23 = vcombine.high %v1377_v10, %v1377_v10  ;;  %v3022_v27 = vsel %vm1733_vm1, %v1377_v10, -inf  ;;  %v10071_v28 = vpop.f32.mrf.mxu0 }
 0x151   : > { %v3021_v13 = vmax.f32 %v3019_v34, %v3020_v50  ;;  %v1865_v19 = vrot.slane %v1864_v30, 1  ;;  %v1871_v62 = vmax.f32 %v1869_v7, %v1870_v21  ;;  %v1876_v43 = vmax.f32 %v1874_v11, %v1875_v42  ;;  %v9425_v7 = vld [vmem:[%s9661_s12 + $0x128] sm:$0xff]  }
 0x152   : > { %v4570_v44 = vunpack.c.l.b16 %v8928_v12  ;;  %v1882_v54 = vrot.slane %v1881_v33, 4  ;;  %v3023_v51 = vrot.slane %v3022_v27, 4  ;;  %v3029_v41 = vsel %vm1733_vm1, %v1601_v23, -inf  ;;  %v9147_v50 = vpop.f32.mrf.mxu0 }
 0x153   : > { %v8929_v26 = vpack.c.bf16 %v3021_v13, %v3021_v13  ;;  %v1866_v34 = vmax.f32 %v1864_v30, %v1865_v19  ;;  %v1872_v53 = vrot.slane %v1871_v62, 1  ;;  %v1877_v36 = vrot.slane %v1876_v43, 2 }
 0x154   : > { %v4577_v52 = vsel %vm12889_vm7, %v4570_v44, %v4576_v32  ;;  %v1883_v10 = vmax.f32 %v1881_v33, %v1882_v54  ;;  %v3024_v12 = vmax.f32 %v3022_v27, %v3023_v51  ;;  %v3030_v1 = vrot.slane %v3029_v41, 4  ;;  %v10076_v13 = vpop.f32.mrf.mxu0  ;;  %9245 = vmatmul.mubr.bf16.gmra.mxu0 %v9425_v7 }
 0x155   : > { %v4571_v55 = vunpack.c.l.b16 %v8929_v26  ;;  %v1873_v21 = vmax.f32 %v1871_v62, %v1872_v53  ;;  %v8764_v11 = vpack.c.bf16 %v1866_v34, %v1866_v34  ;;  %v1878_v42 = vmax.f32 %v1876_v43, %v1877_v36 }
 0x156   : > { %v1296_v9 = vmax.f32 %v876_v45, 0.0  ;;  %v1884_v23 = vrot.slane %v1883_v10, 2  ;;  %v3025_v29 = vrot.slane %v3024_v12, 2  ;;  %v3031_v32 = vmax.f32 %v3029_v41, %v3030_v1  ;;  %v9150_v62 = vpop.f32.mrf.mxu0 }
 0x157   : > { %v4578_v61 = vsel %vm12888_vm8, %v4571_v55, %v4577_v52  ;;  %v12928_v30 = vpack.c.bf16 %v10033_v49, %v10033_v49  ;;  %v4048_v27 = vunpack.c.l.b16 %v8764_v11  ;;  %v1879_v19 = vrot.slane %v1878_v42, 1 }
 0x158   : > { %v10084_v33 = vpack.c.b16 %v4578_v61, %v4578_v61  ;;  %v12930_v43 = vmov 0.0   ;;  %v1885_v45 = vmax.f32 %v1883_v10, %v1884_v23  ;;  %v3026_v26 = vmax.f32 %v3024_v12, %v3025_v29  ;;  %v10094_v50 = vpop.f32.mrf.mxu0 }
 0x159   : > { %v10082_v44 = vunpack.c.l.b16 %v12928_v30  ;;  %9248 = vmatprep.mubr.msk.bf16.mxu0 %vm12887_vm0, %v12930_v43  ;;  %v3032_v54 = vrot.slane %v3031_v32, 2  ;;  %v1520_v51 = vcombine.high %v1296_v9, %v1296_v9  ;;  %v8765_v52 = vpack.c.bf16 %v1873_v21, %v1873_v21 }
 0x15a   : > { %12929 = vst [vmem:[#allocation9_spill] sm:$0xff] %v10084_v33  ;;  %v10089_v1 = vsel %vm4200_vm3, %v4048_v27, %v4219_v4  ;;  %v1880_v41 = vmax.f32 %v1878_v42, %v1879_v19  ;;  %v1888_v49 = vsel %vm1733_vm1, %v1296_v9, -inf  ;;  %5235 = vrot.lane.b32.xlu1 %v10084_v33, %s9579_s27  ;;  %v1886_v61 = vrot.slane %v1885_v45, 1  ;;  %v10100_v4 = vld [vmem:[%s12880_s6] ss:$0 sm:$0xff]  ;;  %v9151_v42 = vpop.f32.mrf.mxu0 }
 0x15b   : > { %v3027_v34 = vrot.slane %v3026_v26, 1  ;;  %v3033_v53 = vmax.f32 %v3031_v32, %v3032_v54  ;;  %v1889_v36 = vrot.slane %v1888_v49, 4  ;;  %v1895_v29 = vsel %vm1733_vm1, %v1520_v51, -inf }
 0x15c   : > { %v8766_v55 = vpack.c.bf16 %v1880_v41, %v1880_v41  ;;  %v1204_v9 = vadd.f32 %v10100_v4, %v9887_v8  ;;  %v881_v10 = vadd.f32 %v10100_v4, %v9923_v57  ;;  %v1887_v12 = vmax.f32 %v1885_v45, %v1886_v61  ;;  %v10113_v41 = vpop.f32.mrf.mxu0 }
 0x15d   : > { %v3028_v7 = vmax.f32 %v3026_v26, %v3027_v34  ;;  %v3034_v21 = vrot.slane %v3033_v53, 1  ;;  %v1890_v11 = vmax.f32 %v1888_v49, %v1889_v36  ;;  %v10106_v23 = vunpack.c.l.b16 %v8765_v52  ;;  %12931 = vst [vmem:[#allocation10_spill] sm:$0xff] %v10113_v41  ;;  %v9426_v52 = vld [vmem:[%s9661_s12 + $0x130] sm:$0xff]  }
 0x15e   : > { %v1896_v32 = vrot.slane %v1895_v29, 4  ;;  %v1378_v30 = vmax.f32 %v1204_v9, 0.0  ;;  %v1297_v27 = vmax.f32 %v881_v10, 0.0  ;;  %4989 = vrot.lane.b32.xlu1 %v10084_v33, %s9581_s29  ;;  %v10110_v19 = vunpack.c.l.b16 %v8766_v55  ;;  %9249 = vmatmul.mubr.bf16.gmra.mxu0 %v9426_v52 }
 0x15f   : > { %v3035_v8 = vmax.f32 %v3033_v53, %v3034_v21  ;;  %v8930_v62 = vpack.c.bf16 %v3028_v7, %v3028_v7  ;;  %v1891_v54 = vrot.slane %v1890_v11, 2  ;;  %v8767_v49 = vpack.c.bf16 %v1887_v12, %v1887_v12  ;;  %9252 = vmatprep.mubr.msk.bf16.mxu0 %vm12887_vm0, %v12930_v43 }
 0x160   : > { %v1897_v57 = vmax.f32 %v1895_v29, %v1896_v32  ;;  %v1602_v45 = vcombine.high %v1378_v30, %v1378_v30  ;;  %v3036_v26 = vsel %vm1733_vm1, %v1378_v30, -inf  ;;  %v1521_v51 = vcombine.high %v1297_v27, %v1297_v27  ;;  %v9154_v29 = vpop.f32.mrf.mxu0 }
 0x161   : > { %v8931_v61 = vpack.c.bf16 %v3035_v8, %v3035_v8  ;;  %v4689_v34 = vunpack.c.l.b16 %v8930_v62  ;;  %v1892_v36 = vmax.f32 %v1890_v11, %v1891_v54  ;;  %v3037_v10 = vrot.slane %v3036_v26, 4 }
 0x162   : > { %v1898_v9 = vrot.slane %v1897_v57, 2  ;;  %v3043_v55 = vsel %vm1733_vm1, %v1602_v45, -inf  ;;  %v1902_v53 = vsel %vm1733_vm1, %v1297_v27, -inf  ;;  %4743 = vrot.lane.b32.xlu1 %v10084_v33, %s9583_s8  ;;  %v1909_v30 = vsel %vm1733_vm1, %v1521_v51, -inf  ;;  %v10130_v63 = vpop.f32.mrf.mxu0 }
 0x163   : > { %v4690_v7 = vunpack.c.l.b16 %v8931_v61  ;;  %v1893_v21 = vrot.slane %v1892_v36, 1  ;;  %v3044_v42 = vrot.slane %v3043_v55, 4  ;;  %v1903_v32 = vrot.slane %v1902_v53, 4  ;;  %12932 = vst [vmem:[#allocation11_spill] sm:$0xff] %v10130_v63 }
 0x164   : > { %v10122_v12 = vmax.f32 %v1897_v57, %v1898_v9  ;;  %v3038_v11 = vmax.f32 %v3036_v26, %v3037_v10  ;;  %v1209_v27 = vadd.f32 %v10100_v4, %v9893_v2  ;;  %v10127_v8 = vunpack.c.l.b16 %v8767_v49 }
 0x165   : > { %v1894_v62 = vmax.f32 %v1892_v36, %v1893_v21  ;;  %v3045_v54 = vmax.f32 %v3043_v55, %v3044_v42  ;;  %v1904_v45 = vmax.f32 %v1902_v53, %v1903_v32  ;;  %v4697_v52 = vsel %vm4198_vm2, %v4690_v7, %v4689_v34  ;;  %v9155_v55 = vpop.f32.mrf.mxu0 }
 0x166   : > { %v3039_v61 = vrot.slane %v3038_v11, 2  ;;  %v1910_v29 = vrot.slane %v1909_v30, 4  ;;  %v1379_v39 = vmax.f32 %v1209_v27, 0.0  ;;  %v884_v51 = vadd.f32 %v10100_v4, %v9935_v20 }
 0x167   : > { %v3046_v26 = vrot.slane %v3045_v54, 2  ;;  %v1905_v9 = vrot.slane %v1904_v45, 2  ;;  %v8768_v53 = vpack.c.bf16 %v1894_v62, %v1894_v62  ;;  %v9427_v62 = vld [vmem:[%s9661_s12 + $0x138] sm:$0xff]  }
 0x168   : > { %v3040_v2 = vmax.f32 %v3038_v11, %v3039_v61  ;;  %v1911_v49 = vmax.f32 %v1909_v30, %v1910_v29  ;;  %v1603_v10 = vcombine.high %v1379_v39, %v1379_v39  ;;  %v3050_v36 = vsel %vm1733_vm1, %v1379_v39, -inf  ;;  %v10138_v29 = vpop.f32.mrf.mxu0  ;;  %9253 = vmatmul.mubr.bf16.gmra.mxu0 %v9427_v62 }
 0x169   : > { %v3047_v34 = vmax.f32 %v3045_v54, %v3046_v26  ;;  %v1906_v7 = vmax.f32 %v1904_v45, %v1905_v9  ;;  %v3051_v21 = vrot.slane %v3050_v36, 4  ;;  %v1298_v57 = vmax.f32 %v884_v51, 0.0  ;;  %9256 = vmatprep.mubr.msk.bf16.mxu0 %vm12887_vm0, %v12930_v43 }
 0x16a   : > { %v3041_v42 = vrot.slane %v3040_v2, 1  ;;  %v1912_v32 = vrot.slane %v1911_v49, 2  ;;  %v3057_v27 = vsel %vm1733_vm1, %v1603_v10, -inf }
 0x16b   : > { %v3048_v47 = vrot.slane %v3047_v34, 1  ;;  %v1907_v38 = vrot.slane %v1906_v7, 1  ;;  %v3052_v63 = vmax.f32 %v3050_v36, %v3051_v21  ;;  %v3058_v20 = vrot.slane %v3057_v27, 4  ;;  %v9158_v36 = vpop.f32.mrf.mxu0 }
 0x16c   : > { %v3042_v11 = vmax.f32 %v3040_v2, %v3041_v42  ;;  %v1913_v30 = vmax.f32 %v1911_v49, %v1912_v32  ;;  %v1522_v61 = vcombine.high %v1298_v57, %v1298_v57  ;;  %v1916_v39 = vsel %vm1733_vm1, %v1298_v57, -inf }
 0x16d   : > { %v3049_v54 = vmax.f32 %v3047_v34, %v3048_v47  ;;  %v1908_v45 = vmax.f32 %v1906_v7, %v1907_v38  ;;  %v3053_v26 = vrot.slane %v3052_v63, 2  ;;  %v3059_v9 = vmax.f32 %v3057_v27, %v3058_v20 }
 0x16e   : > { %v8932_v55 = vpack.c.bf16 %v3042_v11, %v3042_v11  ;;  %v1914_v41 = vrot.slane %v1913_v30, 1  ;;  %v1917_v10 = vrot.slane %v1916_v39, 4  ;;  %v1923_v51 = vsel %vm1733_vm1, %v1522_v61, -inf }
 0x16f   : > { %v8933_v21 = vpack.c.bf16 %v3049_v54, %v3049_v54  ;;  %v8770_v2 = vpack.c.bf16 %v1908_v45, %v1908_v45  ;;  %v3054_v49 = vmax.f32 %v3052_v63, %v3053_v26  ;;  %v3060_v42 = vrot.slane %v3059_v9, 2  ;;  %v10146_v54 = vpop.f32.mrf.mxu0 }
 0x170   : > { %v4691_v57 = vunpack.c.l.b16 %v8932_v55  ;;  %v1915_v32 = vmax.f32 %v1913_v30, %v1914_v41  ;;  %v1918_v47 = vmax.f32 %v1916_v39, %v1917_v10  ;;  %v1924_v38 = vrot.slane %v1923_v51, 4 }
 0x171   : > { %v10144_v34 = vunpack.c.l.b16 %v8768_v53  ;;  %v4692_v7 = vunpack.c.l.b16 %v8933_v21  ;;  %v3055_v27 = vrot.slane %v3054_v49, 1  ;;  %v3061_v20 = vmax.f32 %v3059_v9, %v3060_v42  ;;  %v9159_v10 = vpop.f32.mrf.mxu0 }
 0x172   : > { %v8771_v11 = vpack.c.bf16 %v1915_v32, %v1915_v32  ;;  %v4054_v61 = vunpack.c.l.b16 %v8770_v2  ;;  %v1919_v62 = vrot.slane %v1918_v47, 2  ;;  %v1925_v36 = vmax.f32 %v1923_v51, %v1924_v38 }
 0x173   : > { %v4698_v63 = vsel %vm4200_vm3, %v4691_v57, %v4697_v52  ;;  %v3056_v45 = vmax.f32 %v3054_v49, %v3055_v27  ;;  %v3062_v26 = vrot.slane %v3061_v20, 1  ;;  %v1212_v41 = vadd.f32 %v10100_v4, %v9912_v25 }
 0x174   : > { %v4055_v30 = vunpack.c.l.b16 %v8771_v11  ;;  %v1920_v39 = vmax.f32 %v1918_v47, %v1919_v62  ;;  %v1926_v53 = vrot.slane %v1925_v36, 2  ;;  %v12933_v55 = vrot.slane %v10029_v35, 1 }
 0x175   : > { %v3063_v21 = vmax.f32 %v3061_v20, %v3062_v26  ;;  %v8934_v51 = vpack.c.bf16 %v3056_v45, %v3056_v45  ;;  %v1380_v2 = vmax.f32 %v1212_v41, 0.0  ;;  %v4214_v52 = vsel %vm12892_vm4, %v9995_v48, %v9980_v6  ;;  %v9428_v20 = vld [vmem:[%s9661_s12 + $0x140] sm:$0xff]   ;;  %v9429_v41 = vld [vmem:[%s9661_s12 + $0x190] sm:$0xff]  }
 0x176   : > { %v1845_v9 = vmax.f32 %v10029_v35, %v12933_v55  ;;  %v4699_v49 = vsel %vm12892_vm4, %v4692_v7, %v4698_v63  ;;  %v1921_v25 = vrot.slane %v1920_v39, 1  ;;  %v1927_v42 = vmax.f32 %v1925_v36, %v1926_v53  ;;  %v10159_v35 = vpop.f32.mrf.mxu0  ;;  %9257 = vmatmul.mubr.bf16.gmra.mxu0 %v9428_v20  ;;  %9297 = vmatmul.mubr.bf16.gmra.mxu1 %v9429_v41 }
 0x177   : > { %v8935_v32 = vpack.c.bf16 %v3063_v21, %v3063_v21  ;;  %v4693_v47 = vunpack.c.l.b16 %v8934_v51  ;;  %v1604_v38 = vcombine.high %v1380_v2, %v1380_v2  ;;  %v3064_v27 = vsel %vm1733_vm1, %v1380_v2, -inf  ;;  %9260 = vmatprep.mubr.msk.bf16.mxu0 %vm12887_vm0, %v12930_v43  ;;  %9300 = vmatprep.mubr.msk.bf16.mxu1 %vm12887_vm0, %v12930_v43 }
 0x178   : > { %v8761_v57 = vpack.c.bf16 %v1845_v9, %v1845_v9  ;;  %v4226_v11 = vsel %vm4198_vm2, %v4055_v30, %v4054_v61  ;;  %v1922_v62 = vmax.f32 %v1920_v39, %v1921_v25  ;;  %v1928_v45 = vrot.slane %v1927_v42, 1  ;;  %v9162_v63 = vpop.f32.mrf.mxu0 }
 0x179   : > { %v3065_v26 = vrot.slane %v3064_v27, 4  ;;  %v4694_v6 = vunpack.c.l.b16 %v8935_v32  ;;  %v4700_v48 = vsel %vm12891_vm5, %v4693_v47, %v4699_v49  ;;  %v3071_v7 = vsel %vm1733_vm1, %v1604_v38, -inf }
 0x17a   : > { %v4215_v36 = vsel %vm12891_vm5, %v10017_v40, %v4214_v52  ;;  %v1929_v53 = vmax.f32 %v1927_v42, %v1928_v45  ;;  %v8772_v55 = vpack.c.bf16 %v1922_v62, %v1922_v62  ;;  %v3072_v10 = vrot.slane %v3071_v7, 4 }
 0x17b   : > { %v3066_v9 = vmax.f32 %v3064_v27, %v3065_v26  ;;  %v4045_v61 = vunpack.c.l.b16 %v8761_v57  ;;  %v4216_v30 = vsel %vm12890_vm6, %v10031_v46, %v4215_v36  ;;  %v889_v39 = vadd.f32 %v10100_v4, %v9947_v59  ;;  %v10183_v57 = vpop.f32.mrf.mxu0 }
 0x17c   : > { %v1217_v40 = vadd.f32 %v10100_v4, %v9925_v58  ;;  %v8773_v21 = vpack.c.bf16 %v1929_v53, %v1929_v53  ;;  %v4056_v51 = vunpack.c.l.b16 %v8772_v55  ;;  %v3073_v52 = vmax.f32 %v3071_v7, %v3072_v10 }
 0x17d   : > { %v3067_v2 = vrot.slane %v3066_v9, 2  ;;  %v10179_v49 = vsel %vm12890_vm6, %v4694_v6, %v4700_v48  ;;  %v4217_v25 = vsel %vm12889_vm7, %v10082_v44, %v4216_v30  ;;  %v1299_v46 = vmax.f32 %v889_v39, 0.0  ;;  %v9163_v45 = vpop.f32.mrf.mxu0 }
 0x17e   : > { %v1381_v42 = vmax.f32 %v1217_v40, 0.0  ;;  %v4057_v59 = vunpack.c.l.b16 %v8773_v21  ;;  %v3074_v58 = vrot.slane %v3073_v52, 2  ;;  %v892_v47 = vadd.f32 %v10100_v4, %v9954_v24  ;;  %v9430_v40 = vld [vmem:[%s9661_s12 + $0x148] sm:$0xff]  }
 0x17f   : > { %v3068_v32 = vmax.f32 %v3066_v9, %v3067_v2  ;;  %v4218_v38 = vsel %vm12888_vm8, %v4045_v61, %v4217_v25  ;;  %v1523_v27 = vcombine.high %v1299_v46, %v1299_v46  ;;  %v1930_v20 = vsel %vm1733_vm1, %v1299_v46, -inf  ;;  %v10198_v39 = vpop.f32.mrf.mxu0  ;;  %v9431_v25 = vld [vmem:[%s9661_s12 + $0x198] sm:$0xff]   ;;  %9261 = vmatmul.mubr.bf16.gmra.mxu0 %v9430_v40 }
 0x180   : > { %v1605_v62 = vcombine.high %v1381_v42, %v1381_v42  ;;  %v4227_v26 = vsel %vm4200_vm3, %v4056_v51, %v4226_v11  ;;  %v3075_v41 = vmax.f32 %v3073_v52, %v3074_v58  ;;  %v4353_v6 = vpack.c.b16 %v4218_v38, %v4218_v38  ;;  %9301 = vmatmul.mubr.bf16.gmra.mxu1 %v9431_v25 }
 0x181   : > { %v3069_v44 = vrot.slane %v3068_v32, 1  ;;  %v1931_v48 = vrot.slane %v1930_v20, 4  ;;  %v1937_v7 = vsel %vm1733_vm1, %v1523_v27, -inf  ;;  %v3078_v36 = vsel %vm1733_vm1, %v1381_v42, -inf  ;;  %v9166_v38 = vpop.f32.mrf.mxu0  ;;  %9304 = vmatprep.mubr.msk.bf16.mxu1 %vm12887_vm0, %v12930_v43 }
 0x182   : > { %v3085_v24 = vsel %vm1733_vm1, %v1605_v62, -inf  ;;  %v3076_v53 = vrot.slane %v3075_v41, 1  ;;  %4455 = vrot.lane.b32.xlu0 %v4353_v6, %s9585_s13  ;;  %4395 = vst.msk [vmem:[#allocation2 + $0x4] sm:$0xf] %vm1733_vm1, %v4353_v6  ;;  %v1938_v11 = vrot.slane %v1937_v7, 4  ;;  %v3079_v55 = vrot.slane %v3078_v36, 4 }
 0x183   : > { %v3070_v63 = vmax.f32 %v3068_v32, %v3069_v44  ;;  %v10196_v9 = vsel %vm12892_vm4, %v4057_v59, %v4227_v26  ;;  %v1932_v10 = vmax.f32 %v1930_v20, %v1931_v48  ;;  %v3086_v61 = vrot.slane %v3085_v24, 4 }
 0x184   : > { %v1300_v30 = vmax.f32 %v892_v47, 0.0  ;;  %v3077_v21 = vmax.f32 %v3075_v41, %v3076_v53  ;;  %v1939_v2 = vmax.f32 %v1937_v7, %v1938_v11  ;;  %v3080_v52 = vmax.f32 %v3078_v36, %v3079_v55  ;;  %v10212_v53 = vpop.f32.mrf.mxu0 }
 0x185   : > { %v8936_v51 = vpack.c.bf16 %v3070_v63, %v3070_v63  ;;  %v1933_v46 = vrot.slane %v1932_v10, 2  ;;  %v3087_v42 = vmax.f32 %v3085_v24, %v3086_v61  ;;  %v1220_v47 = vadd.f32 %v10100_v4, %v9938_v22 }
 0x186   : > { %v1524_v32 = vcombine.high %v1300_v30, %v1300_v30  ;;  %v1944_v58 = vsel %vm1733_vm1, %v1300_v30, -inf  ;;  %v8937_v59 = vpack.c.bf16 %v3077_v21, %v3077_v21  ;;  %v1940_v27 = vrot.slane %v1939_v2, 2  ;;  %5112 = vrot.lane.b32.xlu0 %v10084_v33, %s9580_s28 }
 0x187   : > { %v3081_v20 = vrot.slane %v3080_v52, 2  ;;  %v1934_v62 = vmax.f32 %v1932_v10, %v1933_v46  ;;  %v3088_v45 = vrot.slane %v3087_v42, 2  ;;  %v1945_v26 = vrot.slane %v1944_v58, 4 }
 0x188   : > { %v1951_v44 = vsel %vm1733_vm1, %v1524_v32, -inf  ;;  %v4695_v41 = vunpack.c.l.b16 %v8936_v51  ;;  %v10210_v6 = vunpack.c.l.b16 %v8937_v59  ;;  %v1941_v48 = vmax.f32 %v1939_v2, %v1940_v27  ;;  %v9167_v2 = vpop.f32.mrf.mxu0 }
 0x189   : > { %v3082_v7 = vmax.f32 %v3080_v52, %v3081_v20  ;;  %v1935_v36 = vrot.slane %v1934_v62, 1  ;;  %v3089_v24 = vmax.f32 %v3087_v42, %v3088_v45  ;;  %v1946_v22 = vmax.f32 %v1944_v58, %v1945_v26 }
 0x18a   : > { %v1952_v63 = vrot.slane %v1951_v44, 4  ;;  %v1942_v11 = vrot.slane %v1941_v48, 1  ;;  %v1382_v10 = vmax.f32 %v1220_v47, 0.0  ;;  %v897_v61 = vadd.f32 %v10100_v4, %v9964_v16  ;;  %4866 = vrot.lane.b32.xlu0 %v10084_v33, %s9582_s30 }
 0x18b   : > { %v3083_v55 = vrot.slane %v3082_v7, 1  ;;  %v1936_v30 = vmax.f32 %v1934_v62, %v1935_v36  ;;  %v3090_v40 = vrot.slane %v3089_v24, 1  ;;  %v1947_v21 = vrot.slane %v1946_v22, 2  ;;  %v10220_v62 = vpop.f32.mrf.mxu0 }
 0x18c   : > { %v1953_v51 = vmax.f32 %v1951_v44, %v1952_v63  ;;  %v1943_v52 = vmax.f32 %v1941_v48, %v1942_v11  ;;  %v1606_v46 = vcombine.high %v1382_v10, %v1382_v10  ;;  %v3092_v42 = vsel %vm1733_vm1, %v1382_v10, -inf }
 0x18d   : > { %v3084_v25 = vmax.f32 %v3082_v7, %v3083_v55  ;;  %v8774_v32 = vpack.c.bf16 %v1936_v30, %v1936_v30  ;;  %v3091_v58 = vmax.f32 %v3089_v24, %v3090_v40  ;;  %v1948_v38 = vmax.f32 %v1946_v22, %v1947_v21  ;;  %v9432_v7 = vld [vmem:[%s9661_s12 + $0x1a0] sm:$0xff]   ;;  %v9170_v11 = vpop.f32.mrf.mxu0 }
 0x18e   : > { %v1954_v59 = vrot.slane %v1953_v51, 2  ;;  %v8775_v27 = vpack.c.bf16 %v1943_v52, %v1943_v52  ;;  %v3093_v20 = vrot.slane %v3092_v42, 4  ;;  %v3099_v47 = vsel %vm1733_vm1, %v1606_v46, -inf  ;;  %9305 = vmatmul.mubr.bf16.gmra.mxu1 %v9432_v7 }
 0x18f   : > { %v8938_v16 = vpack.c.bf16 %v3084_v25, %v3084_v25  ;;  %v4058_v45 = vunpack.c.l.b16 %v8774_v32  ;;  %v8939_v26 = vpack.c.bf16 %v3091_v58, %v3091_v58  ;;  %v1949_v44 = vrot.slane %v1948_v38, 1  ;;  %9308 = vmatprep.mubr.msk.bf16.mxu1 %vm12887_vm0, %v12930_v43 }
 0x190   : > { %v1955_v48 = vmax.f32 %v1953_v51, %v1954_v59  ;;  %v10225_v36 = vsel %vm12889_vm7, %v4695_v41, %v10179_v49  ;;  %v10227_v63 = vunpack.c.l.b16 %v8775_v27  ;;  %v3094_v24 = vmax.f32 %v3092_v42, %v3093_v20 }
 0x191   : > { %v3100_v22 = vrot.slane %v3099_v47, 4  ;;  %v4814_v55 = vunpack.c.l.b16 %v8938_v16  ;;  %v4815_v10 = vunpack.c.l.b16 %v8939_v26  ;;  %v1950_v30 = vmax.f32 %v1948_v38, %v1949_v44  ;;  %v10240_v38 = vpop.f32.mrf.mxu0 }
 0x192   : > { %v1956_v40 = vrot.slane %v1955_v48, 1  ;;  %v3095_v21 = vrot.slane %v3094_v24, 2  ;;  %v1301_v52 = vmax.f32 %v897_v61, 0.0  ;;  %v1225_v51 = vadd.f32 %v10100_v4, %v9949_v60 }
 0x193   : > { %v3101_v2 = vmax.f32 %v3099_v47, %v3100_v22  ;;  %v10235_v49 = vsel %vm12891_vm5, %v4058_v45, %v10196_v9  ;;  %v8776_v25 = vpack.c.bf16 %v1950_v30, %v1950_v30  ;;  %v900_v46 = vadd.f32 %v10100_v4, %v9983_v37  ;;  %v9171_v26 = vpop.f32.mrf.mxu0 }
 0x194   : > { %v1957_v41 = vmax.f32 %v1955_v48, %v1956_v40  ;;  %v3096_v42 = vmax.f32 %v3094_v24, %v3095_v21  ;;  %v1525_v58 = vcombine.high %v1301_v52, %v1301_v52  ;;  %v1958_v61 = vsel %vm1733_vm1, %v1301_v52, -inf }
 0x195   : > { %v3102_v32 = vrot.slane %v3101_v2, 2  ;;  %v4822_v60 = vsel %vm4198_vm2, %v4815_v10, %v4814_v55  ;;  %v1959_v27 = vrot.slane %v1958_v61, 4  ;;  %v1383_v16 = vmax.f32 %v1225_v51, 0.0 }
 0x196   : > { %v8777_v59 = vpack.c.bf16 %v1957_v41, %v1957_v41  ;;  %v3097_v20 = vrot.slane %v3096_v42, 1  ;;  %v1965_v47 = vsel %vm1733_vm1, %v1525_v58, -inf  ;;  %v1302_v45 = vmax.f32 %v900_v46, 0.0 }
 0x197   : > { %v3103_v9 = vmax.f32 %v3101_v2, %v3102_v32  ;;  %v10244_v44 = vunpack.c.l.b16 %v8776_v25  ;;  %v1960_v37 = vmax.f32 %v1958_v61, %v1959_v27  ;;  %v1966_v48 = vrot.slane %v1965_v47, 4  ;;  %v10249_v25 = vpop.f32.mrf.mxu0  ;;  %v9433_v61 = vld [vmem:[%s9661_s12 + $0x1a8] sm:$0xff]  }
 0x198   : > { %v1607_v7 = vcombine.high %v1383_v16, %v1383_v16  ;;  %v3098_v24 = vmax.f32 %v3096_v42, %v3097_v20  ;;  %v3106_v11 = vsel %vm1733_vm1, %v1383_v16, -inf  ;;  %v1526_v55 = vcombine.high %v1302_v45, %v1302_v45  ;;  %9309 = vmatmul.mubr.bf16.gmra.mxu1 %v9433_v61 }
 0x199   : > { %v3104_v22 = vrot.slane %v3103_v9, 1  ;;  %v1961_v10 = vrot.slane %v1960_v37, 2  ;;  %v1967_v30 = vmax.f32 %v1965_v47, %v1966_v48  ;;  %v3107_v40 = vrot.slane %v3106_v11, 4  ;;  %v9174_v26 = vpop.f32.mrf.mxu0  ;;  %9312 = vmatprep.mubr.msk.bf16.mxu1 %vm12887_vm0, %v12930_v43 }
 0x19a   : > { %v3113_v21 = vsel %vm1733_vm1, %v1607_v7, -inf  ;;  %v8940_v52 = vpack.c.bf16 %v3098_v24, %v3098_v24  ;;  %v1972_v41 = vsel %vm1733_vm1, %v1302_v45, -inf  ;;  %v1979_v47 = vsel %vm1733_vm1, %v1526_v55, -inf }
 0x19b   : > { %v3105_v2 = vmax.f32 %v3103_v9, %v3104_v22  ;;  %v3114_v51 = vrot.slane %v3113_v21, 4  ;;  %v1962_v46 = vmax.f32 %v1960_v37, %v1961_v10  ;;  %v1968_v32 = vrot.slane %v1967_v30, 2 }
 0x19c   : > { %v3108_v42 = vmax.f32 %v3106_v11, %v3107_v40  ;;  %v1973_v58 = vrot.slane %v1972_v41, 4  ;;  %v4816_v16 = vunpack.c.l.b16 %v8940_v52  ;;  %v10253_v22 = vunpack.c.l.b16 %v8777_v59 }
 0x19d   : > { %v8941_v27 = vpack.c.bf16 %v3105_v2, %v3105_v2  ;;  %v3115_v20 = vmax.f32 %v3113_v21, %v3114_v51  ;;  %v1963_v48 = vrot.slane %v1962_v46, 1  ;;  %v1969_v7 = vmax.f32 %v1967_v30, %v1968_v32  ;;  %v10260_v51 = vpop.f32.mrf.mxu0 }
 0x19e   : > { %v3109_v9 = vrot.slane %v3108_v42, 2  ;;  %v1974_v24 = vmax.f32 %v1972_v41, %v1973_v58  ;;  %v1980_v37 = vrot.slane %v1979_v47, 4  ;;  %v4823_v55 = vsel %vm4200_vm3, %v4816_v16, %v4822_v60  ;;  %12934 = vst [vmem:[#allocation12_spill] sm:$0xff] %v10260_v51 }
 0x19f   : > { %v4817_v45 = vunpack.c.l.b16 %v8941_v27  ;;  %v3116_v33 = vrot.slane %v3115_v20, 2  ;;  %v1964_v11 = vmax.f32 %v1962_v46, %v1963_v48  ;;  %v1970_v10 = vrot.slane %v1969_v7, 1  ;;  %v9175_v48 = vpop.f32.mrf.mxu0 }
 0x1a0   : > { %v3110_v40 = vmax.f32 %v3108_v42, %v3109_v9  ;;  %v1975_v21 = vrot.slane %v1974_v24, 2  ;;  %v1981_v52 = vmax.f32 %v1979_v47, %v1980_v37  ;;  %v1228_v30 = vadd.f32 %v10100_v4, %v9957_v31 }
 0x1a1   : > { %v3117_v2 = vmax.f32 %v3115_v20, %v3116_v33  ;;  %v1971_v59 = vmax.f32 %v1969_v7, %v1970_v10  ;;  %v8778_v41 = vpack.c.bf16 %v1964_v11, %v1964_v11  ;;  %v12935_v46 = vrot.slane %v10122_v12, 1 }
 0x1a2   : > { %v3111_v32 = vrot.slane %v3110_v40, 1  ;;  %v1976_v58 = vmax.f32 %v1974_v24, %v1975_v21  ;;  %v1982_v27 = vrot.slane %v1981_v52, 2  ;;  %v1384_v26 = vmax.f32 %v1228_v30, 0.0  ;;  %v10266_v21 = vpop.f32.mrf.mxu0 }
 0x1a3   : > { %v3118_v61 = vrot.slane %v3117_v2, 1  ;;  %v1901_v42 = vmax.f32 %v10122_v12, %v12935_v46  ;;  %v8779_v60 = vpack.c.bf16 %v1971_v59, %v1971_v59  ;;  %v4062_v33 = vunpack.c.l.b16 %v8778_v41  ;;  %v9434_v41 = vld [vmem:[%s9661_s12 + $0x1b0] sm:$0xff]  }
 0x1a4   : > { %v3112_v16 = vmax.f32 %v3110_v40, %v3111_v32  ;;  %v1977_v20 = vrot.slane %v1976_v58, 1  ;;  %v1983_v47 = vmax.f32 %v1981_v52, %v1982_v27  ;;  %v1608_v9 = vcombine.high %v1384_v26, %v1384_v26  ;;  %9313 = vmatmul.mubr.bf16.gmra.mxu1 %v9434_v41 }
 0x1a5   : > { %v3119_v31 = vmax.f32 %v3117_v2, %v3118_v61  ;;  %v3120_v7 = vsel %vm1733_vm1, %v1384_v26, -inf  ;;  %v4063_v37 = vunpack.c.l.b16 %v8779_v60  ;;  %v8769_v59 = vpack.c.bf16 %v1901_v42, %v1901_v42  ;;  %v9178_v61 = vpop.f32.mrf.mxu0  ;;  %9316 = vmatprep.mubr.msk.bf16.mxu1 %vm12887_vm0, %v12930_v43 }
 0x1a6   : > { %v8942_v24 = vpack.c.bf16 %v3112_v16, %v3112_v16  ;;  %v1978_v11 = vmax.f32 %v1976_v58, %v1977_v20  ;;  %v3121_v10 = vrot.slane %v3120_v7, 4  ;;  %v1984_v51 = vrot.slane %v1983_v47, 1 }
 0x1a7   : > { %v8943_v30 = vpack.c.bf16 %v3119_v31, %v3119_v31  ;;  %v3127_v12 = vsel %vm1733_vm1, %v1608_v9, -inf  ;;  %v4824_v40 = vsel %vm12892_vm4, %v4817_v45, %v4823_v55  ;;  %v4233_v27 = vsel %vm4198_vm2, %v4063_v37, %v4062_v33 }
 0x1a8   : > { %v4818_v32 = vunpack.c.l.b16 %v8942_v24  ;;  %v8780_v2 = vpack.c.bf16 %v1978_v11, %v1978_v11  ;;  %v3122_v52 = vmax.f32 %v3120_v7, %v3121_v10  ;;  %v1985_v58 = vmax.f32 %v1983_v47, %v1984_v51 }
 0x1a9   : > { %v10272_v26 = vunpack.c.l.b16 %v8943_v30  ;;  %v3128_v46 = vrot.slane %v3127_v12, 4  ;;  %v4053_v16 = vunpack.c.l.b16 %v8769_v59  ;;  %v4221_v42 = vsel %vm12892_vm4, %v10106_v23, %v10089_v1  ;;  %v10290_v23 = vpop.f32.mrf.mxu0 }
 0x1aa   : > { %v4064_v48 = vunpack.c.l.b16 %v8780_v2  ;;  %v3123_v60 = vrot.slane %v3122_v52, 2  ;;  %v8781_v45 = vpack.c.bf16 %v1985_v58, %v1985_v58  ;;  %v4222_v33 = vsel %vm12891_vm5, %v10110_v19, %v4221_v42 }
 0x1ab   : > { %v3129_v55 = vmax.f32 %v3127_v12, %v3128_v46  ;;  %v905_v51 = vadd.f32 %v10100_v4, %v10001_v5  ;;  %v10284_v20 = vsel %vm12891_vm5, %v4818_v32, %v4824_v40  ;;  %v4223_v47 = vsel %vm12890_vm6, %v10127_v8, %v4222_v33  ;;  %v9179_v30 = vpop.f32.mrf.mxu0 }
 0x1ac   : > { %v3124_v31 = vmax.f32 %v3122_v52, %v3123_v60  ;;  %v908_v1 = vadd.f32 %v10100_v4, %v10019_v3  ;;  %v4234_v9 = vsel %vm4200_vm3, %v4064_v48, %v4233_v27  ;;  %v4224_v19 = vsel %vm12889_vm7, %v10144_v34, %v4223_v47 }
 0x1ad   : > { %v3130_v7 = vrot.slane %v3129_v55, 2  ;;  %v1303_v37 = vmax.f32 %v905_v51, 0.0  ;;  %v4065_v5 = vunpack.c.l.b16 %v8781_v45  ;;  %v4225_v11 = vsel %vm12888_vm8, %v4053_v16, %v4224_v19  ;;  %v10308_v48 = vpop.f32.mrf.mxu0 }
 0x1ae   : > { %v3125_v24 = vrot.slane %v3124_v31, 1  ;;  %v1304_v10 = vmax.f32 %v908_v1, 0.0  ;;  %v4354_v8 = vpack.c.b16 %v4225_v11, %v4225_v11  ;;  %v4703_v3 = vsel %vm12888_vm8, %v10210_v6, %v10225_v36 }
 0x1af   : > { %v3131_v12 = vmax.f32 %v3129_v55, %v3130_v7  ;;  %v1527_v59 = vcombine.high %v1303_v37, %v1303_v37  ;;  %v1986_v40 = vsel %vm1733_vm1, %v1303_v37, -inf  ;;  %v10306_v46 = vpack.c.b16 %v4703_v3, %v4703_v3  ;;  %v9435_v55 = vld [vmem:[%s9661_s12 + $0x1b8] sm:$0xff]   ;;  %v9182_v1 = vpop.f32.mrf.mxu0 }
 0x1b0   : > { %v3126_v41 = vmax.f32 %v3124_v31, %v3125_v24  ;;  %v1528_v32 = vcombine.high %v1304_v10, %v1304_v10  ;;  %v2000_v34 = vsel %vm1733_vm1, %v1304_v10, -inf  ;;  %4580 = vrot.lane.b32.xlu1 %v4354_v8, %s9584_s9  ;;  %4396 = vst.msk [vmem:[#allocation2 + $0x8] sm:$0xf] %vm1733_vm1, %v4354_v8  ;;  %4457 = vrot.lane.b32.xlu0 %v4354_v8, %s9585_s13  ;;  %v1987_v52 = vrot.slane %v1986_v40, 4 }
 0x1b1   : > { %v3132_v2 = vrot.slane %v3131_v12, 1  ;;  %v1993_v61 = vsel %vm1733_vm1, %v1527_v59, -inf  ;;  %v2001_v27 = vrot.slane %v2000_v34, 4  ;;  %v4235_v33 = vsel %vm12892_vm4, %v4065_v5, %v4234_v9  ;;  %9317 = vmatmul.mubr.bf16.gmra.mxu1 %v9435_v55 }
 0x1b2   : > { %v8944_v58 = vpack.c.bf16 %v3126_v41, %v3126_v41  ;;  %v1994_v6 = vrot.slane %v1993_v61, 4  ;;  %v2007_v36 = vsel %vm1733_vm1, %v1528_v32, -inf  ;;  %v1988_v16 = vmax.f32 %v1986_v40, %v1987_v52  ;;  %9320 = vmatprep.mubr.msk.bf16.mxu1 %vm12887_vm0, %v12930_v43 }
 0x1b3   : > { %v3133_v60 = vmax.f32 %v3131_v12, %v3132_v2  ;;  %v2002_v42 = vmax.f32 %v2000_v34, %v2001_v27  ;;  %v2008_v45 = vrot.slane %v2007_v36, 4  ;;  %v913_v31 = vadd.f32 %v10100_v4, %v10024_v15 }
 0x1b4   : > { %v1995_v51 = vmax.f32 %v1993_v61, %v1994_v6  ;;  %v916_v47 = vadd.f32 %v10100_v4, %v10035_v56  ;;  %v10316_v7 = vunpack.c.l.b16 %v8944_v58  ;;  %v1989_v19 = vrot.slane %v1988_v16, 2  ;;  %5114 = vrot.lane.b32.xlu1 %v10306_v46, %s9580_s28  ;;  %5237 = vrot.lane.b32.xlu0 %v10306_v46, %s9579_s27 }
 0x1b5   : > { %v2003_v37 = vrot.slane %v2002_v42, 2  ;;  %v2009_v24 = vmax.f32 %v2007_v36, %v2008_v45  ;;  %v8945_v9 = vpack.c.bf16 %v3133_v60, %v3133_v60  ;;  %v1305_v11 = vmax.f32 %v913_v31, 0.0 }
 0x1b6   : > { %v1996_v5 = vrot.slane %v1995_v51, 2  ;;  %v1306_v10 = vmax.f32 %v916_v47, 0.0  ;;  %v1990_v15 = vmax.f32 %v1988_v16, %v1989_v19  ;;  %v4230_v12 = vsel %vm12890_vm6, %v10227_v63, %v10235_v49 }
 0x1b7   : > { %v2004_v30 = vmax.f32 %v2002_v42, %v2003_v37  ;;  %v2010_v56 = vrot.slane %v2009_v24, 2  ;;  %v1529_v59 = vcombine.high %v1305_v11, %v1305_v11  ;;  %v2014_v3 = vsel %vm1733_vm1, %v1305_v11, -inf }
 0x1b8   : > { %v1997_v8 = vmax.f32 %v1995_v51, %v1996_v5  ;;  %v1530_v41 = vcombine.high %v1306_v10, %v1306_v10  ;;  %v1991_v40 = vrot.slane %v1990_v15, 1  ;;  %v2015_v2 = vrot.slane %v2014_v3, 4  ;;  %4868 = vrot.lane.b32.xlu1 %v10306_v46, %s9582_s30  ;;  %4991 = vrot.lane.b32.xlu0 %v10306_v46, %s9581_s29 }
 0x1b9   : > { %v2005_v32 = vrot.slane %v2004_v30, 1  ;;  %v2011_v34 = vmax.f32 %v2009_v24, %v2010_v56  ;;  %v2021_v63 = vsel %vm1733_vm1, %v1529_v59, -inf  ;;  %v2028_v49 = vsel %vm1733_vm1, %v1306_v10, -inf }
 0x1ba   : > { %v1998_v52 = vrot.slane %v1997_v8, 1  ;;  %v2035_v61 = vsel %vm1733_vm1, %v1530_v41, -inf  ;;  %v1992_v27 = vmax.f32 %v1990_v15, %v1991_v40  ;;  %v2016_v36 = vmax.f32 %v2014_v3, %v2015_v2 }
 0x1bb   : > { %v2006_v58 = vmax.f32 %v2004_v30, %v2005_v32  ;;  %v2012_v6 = vrot.slane %v2011_v34, 1  ;;  %v2022_v16 = vrot.slane %v2021_v63, 4  ;;  %v2029_v42 = vrot.slane %v2028_v49, 4 }
 0x1bc   : > { %v1999_v60 = vmax.f32 %v1997_v8, %v1998_v52  ;;  %v2036_v45 = vrot.slane %v2035_v61, 4  ;;  %v8782_v55 = vpack.c.bf16 %v1992_v27, %v1992_v27  ;;  %v2017_v47 = vrot.slane %v2016_v36, 2 }
 0x1bd   : > { %v2013_v51 = vmax.f32 %v2011_v34, %v2012_v6  ;;  %v8784_v31 = vpack.c.bf16 %v2006_v58, %v2006_v58  ;;  %v2023_v19 = vmax.f32 %v2021_v63, %v2022_v16  ;;  %v2030_v37 = vmax.f32 %v2028_v49, %v2029_v42 }
 0x1be   : > { %v8783_v1 = vpack.c.bf16 %v1999_v60, %v1999_v60  ;;  %v2037_v24 = vmax.f32 %v2035_v61, %v2036_v45  ;;  %v4821_v5 = vunpack.c.l.b16 %v8945_v9  ;;  %v4066_v11 = vunpack.c.l.b16 %v8782_v55 }
 0x1bf   : > { %v4068_v10 = vunpack.c.l.b16 %v8784_v31  ;;  %v2018_v56 = vmax.f32 %v2016_v36, %v2017_v47  ;;  %v2024_v30 = vrot.slane %v2023_v19, 2  ;;  %v2031_v59 = vrot.slane %v2030_v37, 2 }
 0x1c0   : > { %v4067_v15 = vunpack.c.l.b16 %v8783_v1  ;;  %v2038_v3 = vrot.slane %v2037_v24, 2  ;;  %v4236_v8 = vsel %vm12891_vm5, %v4066_v11, %v4235_v33  ;;  %v8785_v41 = vpack.c.bf16 %v2013_v51, %v2013_v51 }
 0x1c1   : > { %v2019_v40 = vrot.slane %v2018_v56, 1  ;;  %v4231_v32 = vsel %vm12889_vm7, %v10244_v44, %v4230_v12  ;;  %v2025_v2 = vmax.f32 %v2023_v19, %v2024_v30  ;;  %v2032_v52 = vmax.f32 %v2030_v37, %v2031_v59 }
 0x1c2   : > { %v4237_v34 = vsel %vm12890_vm6, %v4067_v15, %v4236_v8  ;;  %v2039_v63 = vmax.f32 %v2037_v24, %v2038_v3  ;;  %v4232_v61 = vsel %vm12888_vm8, %v10253_v22, %v4231_v32  ;;  %v921_v33 = vadd.f32 %v10100_v4, %v10046_v17 }
 0x1c3   : > { %v10340_v9 = vsel %vm12889_vm7, %v4068_v10, %v4237_v34  ;;  %v2020_v49 = vmax.f32 %v2018_v56, %v2019_v40  ;;  %v2026_v27 = vrot.slane %v2025_v2, 1  ;;  %v2033_v58 = vrot.slane %v2032_v52, 1 }
 0x1c4   : > { %v2040_v6 = vrot.slane %v2039_v63, 1  ;;  %v4355_v36 = vpack.c.b16 %v4232_v61, %v4232_v61  ;;  %v1307_v12 = vmax.f32 %v921_v33, 0.0  ;;  %v924_v60 = vadd.f32 %v10100_v4, %v10054_v0 }
 0x1c5   : > { %v8786_v44 = vpack.c.bf16 %v2020_v49, %v2020_v49  ;;  %v4826_v16 = vsel %vm12890_vm6, %v10272_v26, %v10284_v20  ;;  %v4069_v42 = vunpack.c.l.b16 %v8785_v41  ;;  %v2027_v45 = vmax.f32 %v2025_v2, %v2026_v27  ;;  %v10365_v2 = vpop.f32.mrf.mxu0  ;;  %v10371_v49 = vld [vmem:[%s12880_s6] ss:$0 sm:$0xff] }
 0x1c6   : > { %v2034_v55 = vmax.f32 %v2032_v52, %v2033_v58  ;;  %v2041_v22 = vmax.f32 %v2039_v63, %v2040_v6  ;;  %4705 = vrot.lane.b32.xlu0 %v4355_v36, %s9583_s8  ;;  %4397 = vst.msk [vmem:[#allocation2 + $0xc] sm:$0xf] %vm1733_vm1, %v4355_v36  ;;  %4582 = vrot.lane.b32.xlu1 %v4355_v36, %s9584_s9  ;;  %v2042_v31 = vsel %vm1733_vm1, %v1307_v12, -inf  ;;  %v1308_v47 = vmax.f32 %v924_v60, 0.0 }
 0x1c7   : > { %v4070_v17 = vunpack.c.l.b16 %v8786_v44  ;;  %v1531_v51 = vcombine.high %v1307_v12, %v1307_v12  ;;  %v8787_v0 = vpack.c.bf16 %v2027_v45, %v2027_v45  ;;  %v2043_v19 = vrot.slane %v2042_v31, 4 }
 0x1c8   : > { %v8788_v4 = vpack.c.bf16 %v2034_v55, %v2034_v55  ;;  %v8789_v1 = vpack.c.bf16 %v2041_v22, %v2041_v22  ;;  %v1532_v20 = vcombine.high %v1308_v47, %v1308_v47  ;;  %v2056_v37 = vsel %vm1733_vm1, %v1308_v47, -inf }
 0x1c9   : > { %v2049_v26 = vsel %vm1733_vm1, %v1531_v51, -inf  ;;  %v4827_v24 = vsel %vm12889_vm7, %v10316_v7, %v4826_v16  ;;  %v4071_v11 = vunpack.c.l.b16 %v8787_v0  ;;  %v2044_v15 = vmax.f32 %v2042_v31, %v2043_v19 }
 0x1ca   : > { %v4072_v10 = vunpack.c.l.b16 %v8788_v4  ;;  %v4073_v56 = vunpack.c.l.b16 %v8789_v1  ;;  %4459 = vrot.lane.b32.xlu0 %v4355_v36, %s9585_s13  ;;  %v2050_v30 = vrot.slane %v2049_v26, 4  ;;  %v2057_v59 = vrot.slane %v2056_v37, 4  ;;  %v9183_v36 = vpop.f32.mrf.mxu0 }
 0x1cb   : > { %v2063_v3 = vsel %vm1733_vm1, %v1532_v20, -inf  ;;  %v4828_v8 = vsel %vm12888_vm8, %v4821_v5, %v4827_v24  ;;  %v4240_v41 = vsel %vm4198_vm2, %v4071_v11, %v4070_v17  ;;  %v2045_v40 = vrot.slane %v2044_v15, 2 }
 0x1cc   : > { %v2064_v32 = vrot.slane %v2063_v3, 4  ;;  %v10363_v34 = vpack.c.b16 %v4828_v8, %v4828_v8  ;;  %v4241_v7 = vsel %vm4200_vm3, %v4072_v10, %v4240_v41  ;;  %v2051_v52 = vmax.f32 %v2049_v26, %v2050_v30 }
 0x1cd   : > { %v2058_v63 = vmax.f32 %v2056_v37, %v2057_v59  ;;  %v929_v5 = vadd.f32 %v10371_v49, %v10063_v14  ;;  %v4242_v61 = vsel %vm12892_vm4, %v4073_v56, %v4241_v7  ;;  %v2046_v33 = vmax.f32 %v2044_v15, %v2045_v40 }
 0x1ce   : > { %v2065_v27 = vmax.f32 %v2063_v3, %v2064_v32  ;;  %5239 = vrot.lane.b32.xlu1 %v10363_v34, %s9579_s27  ;;  %5116 = vrot.lane.b32.xlu0 %v10363_v34, %s9580_s28  ;;  %v12936_v58 = vpack.c.bf16 %v9906_v18, %v9906_v18  ;;  %v2052_v44 = vrot.slane %v2051_v52, 2  ;;  %v932_v14 = vadd.f32 %v10371_v49, %v10071_v28 }
 0x1cf   : > { %v2059_v12 = vrot.slane %v2058_v63, 2  ;;  %v1309_v60 = vmax.f32 %v929_v5, 0.0  ;;  %v2047_v16 = vrot.slane %v2046_v33, 1  ;;  %v4239_v55 = vsel %vm12888_vm8, %v4069_v42, %v10340_v9 }
 0x1d0   : > { %v10383_v6 = vunpack.c.l.b16 %v12936_v58  ;;  %v2066_v45 = vrot.slane %v2065_v27, 2  ;;  %v937_v22 = vadd.f32 %v10371_v49, %v10076_v13  ;;  %v2053_v17 = vmax.f32 %v2051_v52, %v2052_v44 }
 0x1d1   : > { %v2060_v51 = vmax.f32 %v2058_v63, %v2059_v12  ;;  %v1533_v18 = vcombine.high %v1309_v60, %v1309_v60  ;;  %v2070_v31 = vsel %vm1733_vm1, %v1309_v60, -inf  ;;  %v2048_v47 = vmax.f32 %v2046_v33, %v2047_v16  ;;  %v10401_v33 = vpop.f32.mrf.mxu0 }
 0x1d2   : > { %v2067_v0 = vmax.f32 %v2065_v27, %v2066_v45  ;;  %v2071_v4 = vrot.slane %v2070_v31, 4  ;;  %4993 = vrot.lane.b32.xlu1 %v10363_v34, %s9581_s29  ;;  %v1310_v28 = vmax.f32 %v932_v14, 0.0  ;;  %v2054_v1 = vrot.slane %v2053_v17, 1 }
 0x1d3   : > { %v2061_v19 = vrot.slane %v2060_v51, 1  ;;  %v2077_v26 = vsel %vm1733_vm1, %v1533_v18, -inf  ;;  %v4356_v9 = vpack.c.b16 %v4239_v55, %v4239_v55  ;;  %v8790_v42 = vpack.c.bf16 %v2048_v47, %v2048_v47  ;;  %v9186_v45 = vpop.f32.mrf.mxu0 }
 0x1d4   : > { %v2068_v20 = vrot.slane %v2067_v0, 1  ;;  %v2072_v13 = vmax.f32 %v2070_v31, %v2071_v4  ;;  %v2078_v37 = vrot.slane %v2077_v26, 4  ;;  %v2055_v24 = vmax.f32 %v2053_v17, %v2054_v1 }
 0x1d5   : > { %v2062_v11 = vmax.f32 %v2060_v51, %v2061_v19  ;;  %v1534_v10 = vcombine.high %v1310_v28, %v1310_v28  ;;  %v2084_v56 = vsel %vm1733_vm1, %v1310_v28, -inf  ;;  %4830 = vrot.lane.b32.xlu0 %v4356_v9, %s9582_s30  ;;  %4398 = vst.msk [vmem:[#allocation2 + $0x10] sm:$0xf] %vm1733_vm1, %v4356_v9  ;;  %v4074_v15 = vunpack.c.l.b16 %v8790_v42  ;;  %v10409_v4 = vpop.f32.mrf.mxu0 }
 0x1d6   : > { %v2069_v30 = vmax.f32 %v2067_v0, %v2068_v20  ;;  %v2073_v59 = vrot.slane %v2072_v13, 2  ;;  %v2079_v3 = vmax.f32 %v2077_v26, %v2078_v37  ;;  %4707 = vrot.lane.b32.xlu1 %v4356_v9, %s9583_s8  ;;  %v8791_v8 = vpack.c.bf16 %v2055_v24, %v2055_v24 }
 0x1d7   : > { %v8792_v41 = vpack.c.bf16 %v2062_v11, %v2062_v11  ;;  %v2085_v40 = vrot.slane %v2084_v56, 4  ;;  %v2091_v32 = vsel %vm1733_vm1, %v1534_v10, -inf  ;;  %v4243_v7 = vsel %vm12891_vm5, %v4074_v15, %v4242_v61 }
 0x1d8   : > { %v8793_v52 = vpack.c.bf16 %v2069_v30, %v2069_v30  ;;  %v2074_v63 = vmax.f32 %v2072_v13, %v2073_v59  ;;  %v2080_v5 = vrot.slane %v2079_v3, 2  ;;  %v4075_v27 = vunpack.c.l.b16 %v8791_v8  ;;  %v9187_v13 = vpop.f32.mrf.mxu0 }
 0x1d9   : > { %v4076_v58 = vunpack.c.l.b16 %v8792_v41  ;;  %v2086_v36 = vmax.f32 %v2084_v56, %v2085_v40  ;;  %v2092_v44 = vrot.slane %v2091_v32, 4  ;;  %4584 = vrot.lane.b32.xlu0 %v4356_v9, %s9584_s9  ;;  %v1311_v16 = vmax.f32 %v937_v22, 0.0 }
 0x1da   : > { %v4077_v12 = vunpack.c.l.b16 %v8793_v52  ;;  %v2075_v60 = vrot.slane %v2074_v63, 1  ;;  %v2081_v14 = vmax.f32 %v2079_v3, %v2080_v5  ;;  %4461 = vrot.lane.b32.xlu1 %v4356_v9, %s9585_s13  ;;  %v4244_v61 = vsel %vm12890_vm6, %v4075_v27, %v4243_v7  ;;  %v10417_v59 = vpop.f32.mrf.mxu0 }
 0x1db   : > { %v2087_v55 = vrot.slane %v2086_v36, 2  ;;  %v2093_v17 = vmax.f32 %v2091_v32, %v2092_v44  ;;  %v940_v51 = vadd.f32 %v10371_v49, %v10094_v50  ;;  %v4245_v18 = vsel %vm12889_vm7, %v4076_v58, %v4244_v61  ;;  %v12937_v44 = vld [vmem:[#allocation10_spill] sm:$0xff] }
 0x1dc   : > { %v2076_v31 = vmax.f32 %v2074_v63, %v2075_v60  ;;  %v2082_v47 = vrot.slane %v2081_v14, 1  ;;  %v1535_v0 = vcombine.high %v1311_v16, %v1311_v16  ;;  %v4246_v28 = vsel %vm12888_vm8, %v4077_v12, %v4245_v18  ;;  %v9190_v5 = vpop.f32.mrf.mxu0 }
 0x1dd   : > { %v2088_v22 = vmax.f32 %v2086_v36, %v2087_v55  ;;  %v2094_v1 = vrot.slane %v2093_v17, 2  ;;  %v2098_v19 = vsel %vm1733_vm1, %v1311_v16, -inf  ;;  %v4357_v26 = vpack.c.b16 %v4246_v28, %v4246_v28  ;;  %v12938_v28 = vld [vmem:[#allocation11_spill] sm:$0xff] }
 0x1de   : > { %v2083_v9 = vmax.f32 %v2081_v14, %v2082_v47  ;;  %v8794_v42 = vpack.c.bf16 %v2076_v31, %v2076_v31  ;;  %v2099_v20 = vrot.slane %v2098_v19, 4  ;;  %v2105_v24 = vsel %vm1733_vm1, %v1535_v0, -inf  ;;  %v10426_v61 = vpop.f32.mrf.mxu0 }
 0x1df   : > { %v2089_v37 = vrot.slane %v2088_v22, 1  ;;  %v2095_v50 = vmax.f32 %v2093_v17, %v2094_v1  ;;  %v1312_v11 = vmax.f32 %v940_v51, 0.0  ;;  %4399 = vst.msk [vmem:[#allocation2 + $0x14] sm:$0xf] %vm1733_vm1, %v4357_v26  ;;  %v2106_v30 = vrot.slane %v2105_v24, 4  ;;  %4955 = vrot.lane.b32.xlu0 %v4357_v26, %s9581_s29  ;;  %4832 = vrot.lane.b32.xlu1 %v4357_v26, %s9582_s30 }
 0x1e0   : > { %v8795_v10 = vpack.c.bf16 %v2083_v9, %v2083_v9  ;;  %v4078_v56 = vunpack.c.l.b16 %v8794_v42  ;;  %v2100_v15 = vmax.f32 %v2098_v19, %v2099_v20  ;;  %v945_v12 = vadd.f32 %v10371_v49, %v12937_v44  ;;  %v9191_v1 = vpop.f32.mrf.mxu0 }
 0x1e1   : > { %v2090_v3 = vmax.f32 %v2088_v22, %v2089_v37  ;;  %v2096_v8 = vrot.slane %v2095_v50, 1  ;;  %v1536_v41 = vcombine.high %v1312_v11, %v1312_v11  ;;  %v2112_v40 = vsel %vm1733_vm1, %v1312_v11, -inf }
 0x1e2   : > { %v4079_v32 = vunpack.c.l.b16 %v8795_v10  ;;  %v2101_v7 = vrot.slane %v2100_v15, 2  ;;  %v2107_v52 = vmax.f32 %v2105_v24, %v2106_v30  ;;  %v2113_v63 = vrot.slane %v2112_v40, 4 }
 0x1e3   : > { %v2097_v27 = vmax.f32 %v2095_v50, %v2096_v8  ;;  %v8796_v58 = vpack.c.bf16 %v2090_v3, %v2090_v3  ;;  %v2119_v36 = vsel %vm1733_vm1, %v1536_v41, -inf  ;;  %4709 = vrot.lane.b32.xlu0 %v4357_v26, %s9583_s8  ;;  %4586 = vrot.lane.b32.xlu1 %v4357_v26, %s9584_s9  ;;  %v1313_v18 = vmax.f32 %v945_v12, 0.0 }
 0x1e4   : > { %v4247_v60 = vsel %vm4198_vm2, %v4079_v32, %v4078_v56  ;;  %v2102_v14 = vmax.f32 %v2100_v15, %v2101_v7  ;;  %v2108_v16 = vrot.slane %v2107_v52, 2  ;;  %v2114_v45 = vmax.f32 %v2112_v40, %v2113_v63 }
 0x1e5   : > { %v8797_v55 = vpack.c.bf16 %v2097_v27, %v2097_v27  ;;  %v4080_v17 = vunpack.c.l.b16 %v8796_v58  ;;  %v2120_v51 = vrot.slane %v2119_v36, 4  ;;  %v948_v22 = vadd.f32 %v10371_v49, %v12938_v28 }
 0x1e6   : > { %v2103_v31 = vrot.slane %v2102_v14, 1  ;;  %v2109_v47 = vmax.f32 %v2107_v52, %v2108_v16  ;;  %v2115_v0 = vrot.slane %v2114_v45, 2  ;;  %v1537_v20 = vcombine.high %v1313_v18, %v1313_v18 }
 0x1e7   : > { %v4081_v19 = vunpack.c.l.b16 %v8797_v55  ;;  %v4248_v9 = vsel %vm4200_vm3, %v4080_v17, %v4247_v60  ;;  %v2121_v42 = vmax.f32 %v2119_v36, %v2120_v51  ;;  %v2126_v24 = vsel %vm1733_vm1, %v1313_v18, -inf  ;;  %4463 = vrot.lane.b32.xlu0 %v4357_v26, %s9585_s13  ;;  %v10439_v55 = vpop.f32.mrf.mxu0 }
 0x1e8   : > { %v2104_v13 = vmax.f32 %v2102_v14, %v2103_v31  ;;  %v2110_v37 = vrot.slane %v2109_v47, 1  ;;  %v2116_v50 = vmax.f32 %v2114_v45, %v2115_v0  ;;  %v2127_v56 = vrot.slane %v2126_v24, 4 }
 0x1e9   : > { %v4249_v11 = vsel %vm12892_vm4, %v4081_v19, %v4248_v9  ;;  %v2122_v10 = vrot.slane %v2121_v42, 2  ;;  %v2133_v15 = vsel %vm1733_vm1, %v1537_v20, -inf  ;;  %v1314_v7 = vmax.f32 %v948_v22, 0.0  ;;  %v9194_v22 = vpop.f32.mrf.mxu0 }
 0x1ea   : > { %v2111_v30 = vmax.f32 %v2109_v47, %v2110_v37  ;;  %v8798_v3 = vpack.c.bf16 %v2104_v13, %v2104_v13  ;;  %v2117_v8 = vrot.slane %v2116_v50, 1  ;;  %v2134_v41 = vrot.slane %v2133_v15, 4 }
 0x1eb   : > { %v2123_v40 = vmax.f32 %v2121_v42, %v2122_v10  ;;  %v2128_v32 = vmax.f32 %v2126_v24, %v2127_v56  ;;  %v953_v52 = vadd.f32 %v10371_v49, %v10138_v29  ;;  %v1538_v44 = vcombine.high %v1314_v7, %v1314_v7  ;;  %v10446_v24 = vpop.f32.mrf.mxu0 }
 0x1ec   : > { %v8799_v63 = vpack.c.bf16 %v2111_v30, %v2111_v30  ;;  %v4082_v5 = vunpack.c.l.b16 %v8798_v3  ;;  %v2118_v27 = vmax.f32 %v2116_v50, %v2117_v8  ;;  %v2135_v26 = vmax.f32 %v2133_v15, %v2134_v41 }
 0x1ed   : > { %v2124_v58 = vrot.slane %v2123_v40, 1  ;;  %v2129_v36 = vrot.slane %v2128_v32, 2  ;;  %v2140_v12 = vsel %vm1733_vm1, %v1314_v7, -inf  ;;  %v2147_v29 = vsel %vm1733_vm1, %v1538_v44, -inf }
 0x1ee   : > { %v4083_v60 = vunpack.c.l.b16 %v8799_v63  ;;  %v4250_v14 = vsel %vm12891_vm5, %v4082_v5, %v4249_v11  ;;  %v8800_v16 = vpack.c.bf16 %v2118_v27, %v2118_v27  ;;  %v2136_v45 = vrot.slane %v2135_v26, 2 }
 0x1ef   : > { %v2125_v17 = vmax.f32 %v2123_v40, %v2124_v58  ;;  %v2130_v51 = vmax.f32 %v2128_v32, %v2129_v36  ;;  %v2141_v18 = vrot.slane %v2140_v12, 4  ;;  %v2148_v28 = vrot.slane %v2147_v29, 4  ;;  %v9195_v40 = vpop.f32.mrf.mxu0 }
 0x1f0   : > { %v4251_v31 = vsel %vm12890_vm6, %v4083_v60, %v4250_v14  ;;  %v4084_v47 = vunpack.c.l.b16 %v8800_v16  ;;  %v2137_v0 = vmax.f32 %v2135_v26, %v2136_v45  ;;  %v1315_v42 = vmax.f32 %v953_v52, 0.0 }
 0x1f1   : > { %v8801_v1 = vpack.c.bf16 %v2125_v17, %v2125_v17  ;;  %v2131_v19 = vrot.slane %v2130_v51, 1  ;;  %v2142_v9 = vmax.f32 %v2140_v12, %v2141_v18  ;;  %v2149_v37 = vmax.f32 %v2147_v29, %v2148_v28  ;;  %v10451_v58 = vpop.f32.mrf.mxu0 }
 0x1f2   : > { %v4252_v20 = vsel %vm12889_vm7, %v4084_v47, %v4251_v31  ;;  %v2138_v13 = vrot.slane %v2137_v0, 1  ;;  %v956_v50 = vadd.f32 %v10371_v49, %v10146_v54  ;;  %v1539_v15 = vcombine.high %v1315_v42, %v1315_v42 }
 0x1f3   : > { %v4085_v11 = vunpack.c.l.b16 %v8801_v1  ;;  %v2132_v10 = vmax.f32 %v2130_v51, %v2131_v19  ;;  %v2143_v56 = vrot.slane %v2142_v9, 2  ;;  %v2150_v3 = vrot.slane %v2149_v37, 2  ;;  %v9198_v51 = vpop.f32.mrf.mxu0 }
 0x1f4   : > { %v2139_v30 = vmax.f32 %v2137_v0, %v2138_v13  ;;  %v2154_v8 = vsel %vm1733_vm1, %v1315_v42, -inf  ;;  %v1316_v41 = vmax.f32 %v956_v50, 0.0  ;;  %v2161_v26 = vsel %vm1733_vm1, %v1539_v15, -inf }
 0x1f5   : > { %v4253_v32 = vsel %vm12888_vm8, %v4085_v11, %v4252_v20  ;;  %v8802_v7 = vpack.c.bf16 %v2132_v10, %v2132_v10  ;;  %v2144_v52 = vmax.f32 %v2142_v9, %v2143_v56  ;;  %v2155_v63 = vrot.slane %v2154_v8, 4  ;;  %v10461_v19 = vpop.f32.mrf.mxu0 }
 0x1f6   : > { %v4358_v5 = vpack.c.b16 %v4253_v32, %v4253_v32  ;;  %v8803_v27 = vpack.c.bf16 %v2139_v30, %v2139_v30  ;;  %v2151_v54 = vmax.f32 %v2149_v37, %v2150_v3  ;;  %v2162_v60 = vrot.slane %v2161_v26, 4 }
 0x1f7   : > { %v4086_v36 = vunpack.c.l.b16 %v8802_v7  ;;  %v2145_v44 = vrot.slane %v2144_v52, 1  ;;  %v2156_v12 = vmax.f32 %v2154_v8, %v2155_v63  ;;  %v1540_v45 = vcombine.high %v1316_v41, %v1316_v41  ;;  %v9199_v56 = vpop.f32.mrf.mxu0 }
 0x1f8   : > { %4400 = vst.msk [vmem:[#allocation2 + $0x18] sm:$0xf] %vm1733_vm1, %v4358_v5  ;;  %v4087_v14 = vunpack.c.l.b16 %v8803_v27  ;;  %v2152_v16 = vrot.slane %v2151_v54, 1  ;;  %v2168_v17 = vsel %vm1733_vm1, %v1316_v41, -inf  ;;  %5080 = vrot.lane.b32.xlu0 %v4358_v5, %s9580_s28  ;;  %4957 = vrot.lane.b32.xlu1 %v4358_v5, %s9581_s29  ;;  %v2163_v31 = vmax.f32 %v2161_v26, %v2162_v60 }
 0x1f9   : > { %v2146_v18 = vmax.f32 %v2144_v52, %v2145_v44  ;;  %v2157_v29 = vrot.slane %v2156_v12, 2  ;;  %v2169_v47 = vrot.slane %v2168_v17, 4  ;;  %v2175_v22 = vsel %vm1733_vm1, %v1540_v45, -inf }
 0x1fa   : > { %v4254_v0 = vsel %vm4198_vm2, %v4087_v14, %v4086_v36  ;;  %v2153_v28 = vmax.f32 %v2151_v54, %v2152_v16  ;;  %v961_v1 = vadd.f32 %v10371_v49, %v10159_v35  ;;  %v2164_v20 = vrot.slane %v2163_v31, 2  ;;  %v10473_v16 = vpop.permute.xlu0 %5233 }
 0x1fb   : > { %v8804_v9 = vpack.c.bf16 %v2146_v18, %v2146_v18  ;;  %v2158_v42 = vmax.f32 %v2156_v12, %v2157_v29  ;;  %v2170_v13 = vmax.f32 %v2168_v17, %v2169_v47  ;;  %v2176_v50 = vrot.slane %v2175_v22, 4 }
 0x1fc   : > { %v8805_v37 = vpack.c.bf16 %v2153_v28, %v2153_v28  ;;  %v1317_v11 = vmax.f32 %v961_v1, 0.0  ;;  %v964_v10 = vadd.f32 %v10371_v49, %v10183_v57  ;;  %4834 = vrot.lane.b32.xlu0 %v4358_v5, %s9582_s30  ;;  %4711 = vrot.lane.b32.xlu1 %v4358_v5, %s9583_s8  ;;  %v2165_v35 = vmax.f32 %v2163_v31, %v2164_v20 }
 0x1fd   : > { %v4088_v15 = vunpack.c.l.b16 %v8804_v9  ;;  %v2159_v30 = vrot.slane %v2158_v42, 1  ;;  %v2171_v3 = vrot.slane %v2170_v13, 2  ;;  %v2177_v41 = vmax.f32 %v2175_v22, %v2176_v50 }
 0x1fe   : > { %v4089_v8 = vunpack.c.l.b16 %v8805_v37  ;;  %v1541_v40 = vcombine.high %v1317_v11, %v1317_v11  ;;  %v2182_v32 = vsel %vm1733_vm1, %v1317_v11, -inf  ;;  %v2166_v63 = vrot.slane %v2165_v35, 1 }
 0x1ff   : > { %v4255_v7 = vsel %vm4200_vm3, %v4088_v15, %v4254_v0  ;;  %v2160_v52 = vmax.f32 %v2158_v42, %v2159_v30  ;;  %v2172_v27 = vmax.f32 %v2170_v13, %v2171_v3  ;;  %v2178_v54 = vrot.slane %v2177_v41, 2  ;;  %v10483_v3 = vpop.f32.mrf.mxu0 }
 0x200   : > { %v4256_v57 = vsel %vm12892_vm4, %v4089_v8, %v4255_v7  ;;  %v2183_v26 = vrot.slane %v2182_v32, 4  ;;  %v2189_v36 = vsel %vm1733_vm1, %v1541_v40, -inf  ;;  %4588 = vrot.lane.b32.xlu0 %v4358_v5, %s9584_s9  ;;  %4465 = vrot.lane.b32.xlu1 %v4358_v5, %s9585_s13  ;;  %v2167_v44 = vmax.f32 %v2165_v35, %v2166_v63  ;;  %v10481_v35 = vpop.permute.xlu0 %4987  ;;  %v10485_v7 = vpop.permute.xlu1 %5110 }
 0x201   : > { %v8806_v12 = vpack.c.bf16 %v2160_v52, %v2160_v52  ;;  %v2173_v60 = vrot.slane %v2172_v27, 1  ;;  %v2190_v14 = vrot.slane %v2189_v36, 4  ;;  %v2179_v45 = vmax.f32 %v2177_v41, %v2178_v54  ;;  %v9202_v54 = vpop.f32.mrf.mxu0 }
 0x202   : > { %v2184_v17 = vmax.f32 %v2182_v32, %v2183_v26  ;;  %v1318_v51 = vmax.f32 %v964_v10, 0.0  ;;  %v969_v18 = vadd.f32 %v10371_v49, %v10198_v39  ;;  %v8807_v29 = vpack.c.bf16 %v2167_v44, %v2167_v44 }
 0x203   : > { %v4090_v31 = vunpack.c.l.b16 %v8806_v12  ;;  %v2174_v47 = vmax.f32 %v2172_v27, %v2173_v60  ;;  %v2191_v0 = vmax.f32 %v2189_v36, %v2190_v14  ;;  %v2180_v28 = vrot.slane %v2179_v45, 1 }
 0x204   : > { %v2185_v22 = vrot.slane %v2184_v17, 2  ;;  %v1542_v1 = vcombine.high %v1318_v51, %v1318_v51  ;;  %v2196_v5 = vsel %vm1733_vm1, %v1318_v51, -inf  ;;  %v4091_v9 = vunpack.c.l.b16 %v8807_v29  ;;  %v10491_v51 = vpop.f32.mrf.mxu0 }
 0x205   : > { %v4257_v42 = vsel %vm12891_vm5, %v4090_v31, %v4256_v57  ;;  %v8808_v20 = vpack.c.bf16 %v2174_v47, %v2174_v47  ;;  %v2192_v13 = vrot.slane %v2191_v0, 2  ;;  %v2181_v37 = vmax.f32 %v2179_v45, %v2180_v28 }
 0x206   : > { %v2186_v50 = vmax.f32 %v2184_v17, %v2185_v22  ;;  %v2197_v11 = vrot.slane %v2196_v5, 4  ;;  %v2203_v10 = vsel %vm1733_vm1, %v1542_v1, -inf  ;;  %v4258_v39 = vsel %vm12890_vm6, %v4091_v9, %v4257_v42  ;;  %v10497_v1 = vpop.permute.xlu0 %4741 }
 0x207   : > { %v4092_v56 = vunpack.c.l.b16 %v8808_v20  ;;  %v2193_v15 = vmax.f32 %v2191_v0, %v2192_v13  ;;  %v2204_v30 = vrot.slane %v2203_v10, 4  ;;  %v8809_v8 = vpack.c.bf16 %v2181_v37, %v2181_v37  ;;  %12939 = vst [vmem:[#allocation10_spill] sm:$0xff] %v10497_v1  ;;  %v10499_v37 = vpop.permute.xlu1 %4864 }
 0x208   : > { %v2187_v41 = vrot.slane %v2186_v50, 1  ;;  %v2198_v40 = vmax.f32 %v2196_v5, %v2197_v11  ;;  %v1319_v32 = vmax.f32 %v969_v18, 0.0  ;;  %v972_v57 = vadd.f32 %v10371_v49, %v10212_v53  ;;  %v9203_v5 = vpop.f32.mrf.mxu0  ;;  %12940 = vst [vmem:[#allocation11_spill] sm:$0xff] %v10499_v37 }
 0x209   : > { %v4259_v52 = vsel %vm12889_vm7, %v4092_v56, %v4258_v39  ;;  %v2194_v63 = vrot.slane %v2193_v15, 1  ;;  %v2205_v27 = vmax.f32 %v2203_v10, %v2204_v30  ;;  %v4093_v26 = vunpack.c.l.b16 %v8809_v8 }
 0x20a   : > { %v2188_v36 = vmax.f32 %v2186_v50, %v2187_v41  ;;  %v2199_v44 = vrot.slane %v2198_v40, 2  ;;  %v1543_v12 = vcombine.high %v1319_v32, %v1319_v32  ;;  %v2210_v45 = vsel %vm1733_vm1, %v1319_v32, -inf  ;;  %v10508_v56 = vpop.f32.mrf.mxu0 }
 0x20b   : > { %v2195_v60 = vmax.f32 %v2193_v15, %v2194_v63  ;;  %v2206_v14 = vrot.slane %v2205_v27, 2  ;;  %v1320_v17 = vmax.f32 %v972_v57, 0.0  ;;  %v4260_v18 = vsel %vm12888_vm8, %v4093_v26, %v4259_v52 }
 0x20c   : > { %v8810_v29 = vpack.c.bf16 %v2188_v36, %v2188_v36  ;;  %v2200_v31 = vmax.f32 %v2198_v40, %v2199_v44  ;;  %v2211_v47 = vrot.slane %v2210_v45, 4  ;;  %v10494_v0 = vpack.c.b16 %v4260_v18, %v4260_v18 }
 0x20d   : > { %v8811_v53 = vpack.c.bf16 %v2195_v60, %v2195_v60  ;;  %v2207_v28 = vmax.f32 %v2205_v27, %v2206_v14  ;;  %v2217_v22 = vsel %vm1733_vm1, %v1543_v12, -inf  ;;  %v1544_v10 = vcombine.high %v1320_v17, %v1320_v17  ;;  %v9206_v27 = vpop.f32.mrf.mxu0 }
 0x20e   : > { %v4094_v9 = vunpack.c.l.b16 %v8810_v29  ;;  %v2201_v42 = vrot.slane %v2200_v31, 1  ;;  %v2212_v20 = vmax.f32 %v2210_v45, %v2211_v47  ;;  %v2218_v13 = vrot.slane %v2217_v22, 4  ;;  %4401 = vst.msk [vmem:[#allocation2 + $0x1c] sm:$0xf] %vm1733_vm1, %v10494_v0  ;;  %5205 = vrot.lane.b32.xlu0 %v10494_v0, %s9579_s27  ;;  %5082 = vrot.lane.b32.xlu1 %v10494_v0, %s9580_s28  ;;  %v10520_v45 = vpop.permute.xlu0 %4455  ;;  %v10524_v47 = vpop.permute.xlu1 %4618 }
 0x20f   : > { %v4095_v50 = vunpack.c.l.b16 %v8811_v53  ;;  %v2208_v11 = vrot.slane %v2207_v28, 1  ;;  %v2224_v39 = vsel %vm1733_vm1, %v1320_v17, -inf  ;;  %v2231_v52 = vsel %vm1733_vm1, %v1544_v10, -inf  ;;  %12941 = vst [vmem:[#allocation13_spill] sm:$0xff] %v10524_v47 }
 0x210   : > { %v2202_v15 = vmax.f32 %v2200_v31, %v2201_v42  ;;  %v2213_v30 = vrot.slane %v2212_v20, 2  ;;  %v2219_v8 = vmax.f32 %v2217_v22, %v2218_v13  ;;  %v2225_v41 = vrot.slane %v2224_v39, 4 }
 0x211   : > { %v4261_v40 = vsel %vm4198_vm2, %v4095_v50, %v4094_v9  ;;  %v2209_v32 = vmax.f32 %v2207_v28, %v2208_v11  ;;  %v977_v63 = vadd.f32 %v10371_v49, %v10220_v62  ;;  %v2232_v12 = vrot.slane %v2231_v52, 4  ;;  %v10522_v62 = vpop.f32.mrf.mxu0 }
 0x212   : > { %v8812_v57 = vpack.c.bf16 %v2202_v15, %v2202_v15  ;;  %v2214_v54 = vmax.f32 %v2212_v20, %v2213_v30  ;;  %v2220_v26 = vrot.slane %v2219_v8, 2  ;;  %v2226_v36 = vmax.f32 %v2224_v39, %v2225_v41  ;;  %4959 = vrot.lane.b32.xlu0 %v10494_v0, %s9581_s29  ;;  %4836 = vrot.lane.b32.xlu1 %v10494_v0, %s9582_s30  ;;  %v10534_v15 = vpop.permute.xlu0 %5112 }
 0x213   : > { %v8813_v44 = vpack.c.bf16 %v2209_v32, %v2209_v32  ;;  %v1321_v60 = vmax.f32 %v977_v63, 0.0  ;;  %v980_v14 = vadd.f32 %v10371_v49, %v10240_v38  ;;  %v2233_v28 = vmax.f32 %v2231_v52, %v2232_v12  ;;  %v9207_v5 = vpop.f32.mrf.mxu0  ;;  %12942 = vst [vmem:[#allocation14_spill] sm:$0xff] %v10534_v15 }
 0x214   : > { %v4096_v17 = vunpack.c.l.b16 %v8812_v57  ;;  %v2215_v18 = vrot.slane %v2214_v54, 1  ;;  %v2221_v29 = vmax.f32 %v2219_v8, %v2220_v26  ;;  %v2227_v31 = vrot.slane %v2226_v36, 2 }
 0x215   : > { %v4097_v53 = vunpack.c.l.b16 %v8813_v44  ;;  %v1545_v22 = vcombine.high %v1321_v60, %v1321_v60  ;;  %v2238_v38 = vsel %vm1733_vm1, %v1321_v60, -inf  ;;  %v2234_v11 = vrot.slane %v2233_v28, 2  ;;  %v10538_v44 = vpop.permute.xlu1 %5235 }
 0x216   : > { %v4262_v9 = vsel %vm4200_vm3, %v4096_v17, %v4261_v40  ;;  %v2216_v42 = vmax.f32 %v2214_v54, %v2215_v18  ;;  %v2222_v20 = vrot.slane %v2221_v29, 1  ;;  %v2228_v13 = vmax.f32 %v2226_v36, %v2227_v31  ;;  %4713 = vrot.lane.b32.xlu0 %v10494_v0, %s9583_s8  ;;  %4590 = vrot.lane.b32.xlu1 %v10494_v0, %s9584_s9 }
 0x217   : > { %v4263_v50 = vsel %vm12892_vm4, %v4097_v53, %v4262_v9  ;;  %v2239_v10 = vrot.slane %v2238_v38, 4  ;;  %v2245_v39 = vsel %vm1733_vm1, %v1545_v22, -inf  ;;  %v2235_v32 = vmax.f32 %v2233_v28, %v2234_v11  ;;  %v10544_v53 = vpop.f32.mrf.mxu0  ;;  %v10547_v9 = vpop.permute.xlu0 %4866 }
 0x218   : > { %v2223_v30 = vmax.f32 %v2221_v29, %v2222_v20  ;;  %v8814_v8 = vpack.c.bf16 %v2216_v42, %v2216_v42  ;;  %v2229_v41 = vrot.slane %v2228_v13, 1  ;;  %v2246_v40 = vrot.slane %v2245_v39, 4  ;;  %12943 = vst [vmem:[#allocation15_spill] sm:$0xff] %v10547_v9 }
 0x219   : > { %v2240_v52 = vmax.f32 %v2238_v38, %v2239_v10  ;;  %v1322_v63 = vmax.f32 %v980_v14, 0.0  ;;  %v985_v27 = vadd.f32 %v10371_v49, %v10249_v25  ;;  %v2236_v12 = vrot.slane %v2235_v32, 1  ;;  %v9210_v11 = vpop.f32.mrf.mxu0 }
 0x21a   : > { %v8815_v57 = vpack.c.bf16 %v2223_v30, %v2223_v30  ;;  %v4098_v54 = vunpack.c.l.b16 %v8814_v8  ;;  %v2230_v26 = vmax.f32 %v2228_v13, %v2229_v41  ;;  %v2247_v36 = vmax.f32 %v2245_v39, %v2246_v40  ;;  %4467 = vrot.lane.b32.xlu0 %v10494_v0, %s9585_s13 }
 0x21b   : > { %v2241_v60 = vrot.slane %v2240_v52, 2  ;;  %v1546_v17 = vcombine.high %v1322_v63, %v1322_v63  ;;  %v2252_v18 = vsel %vm1733_vm1, %v1322_v63, -inf  ;;  %v2237_v28 = vmax.f32 %v2235_v32, %v2236_v12  ;;  %v12944_v32 = vld [vmem:[#allocation12_spill] sm:$0xff]  ;;  %v10553_v63 = vpop.permute.xlu1 %4989 }
 0x21c   : > { %v4099_v29 = vunpack.c.l.b16 %v8815_v57  ;;  %v4264_v14 = vsel %vm12891_vm5, %v4098_v54, %v4263_v50  ;;  %v8816_v31 = vpack.c.bf16 %v2230_v26, %v2230_v26  ;;  %v2248_v25 = vrot.slane %v2247_v36, 2  ;;  %12945 = vst [vmem:[#allocation12_spill] sm:$0xff] %v10553_v63  ;;  %v10555_v57 = vpop.f32.mrf.mxu0 }
 0x21d   : > { %v2242_v22 = vmax.f32 %v2240_v52, %v2241_v60  ;;  %v2253_v38 = vrot.slane %v2252_v18, 4  ;;  %v2259_v5 = vsel %vm1733_vm1, %v1546_v17, -inf  ;;  %v8817_v10 = vpack.c.bf16 %v2237_v28, %v2237_v28 }
 0x21e   : > { %v4265_v42 = vsel %vm12890_vm6, %v4099_v29, %v4264_v14  ;;  %v4100_v20 = vunpack.c.l.b16 %v8816_v31  ;;  %v2249_v13 = vmax.f32 %v2247_v36, %v2248_v25  ;;  %v2260_v0 = vrot.slane %v2259_v5, 4  ;;  %v9211_v29 = vpop.f32.mrf.mxu0 }
 0x21f   : > { %v2243_v39 = vrot.slane %v2242_v22, 1  ;;  %v2254_v50 = vmax.f32 %v2252_v18, %v2253_v38  ;;  %v1323_v30 = vmax.f32 %v985_v27, 0.0  ;;  %v988_v52 = vadd.f32 %v10371_v49, %v12944_v32 }
 0x220   : > { %v4266_v8 = vsel %vm12889_vm7, %v4100_v20, %v4265_v42  ;;  %v2250_v41 = vrot.slane %v2249_v13, 1  ;;  %v2261_v40 = vmax.f32 %v2259_v5, %v2260_v0  ;;  %v4101_v54 = vunpack.c.l.b16 %v8817_v10 }
 0x221   : > { %v2244_v26 = vmax.f32 %v2242_v22, %v2243_v39  ;;  %v2255_v36 = vrot.slane %v2254_v50, 2  ;;  %v1547_v12 = vcombine.high %v1323_v30, %v1323_v30  ;;  %v2266_v18 = vsel %vm1733_vm1, %v1323_v30, -inf }
 0x222   : > { %v2251_v60 = vmax.f32 %v2249_v13, %v2250_v41  ;;  %v2262_v17 = vrot.slane %v2261_v40, 2  ;;  %v1324_v27 = vmax.f32 %v988_v52, 0.0  ;;  %v4267_v14 = vsel %vm12888_vm8, %v4101_v54, %v4266_v8  ;;  %v4458_v38 = vpop.permute.xlu0 %4457  ;;  %v10563_v13 = vpop.f32.mrf.mxu0 }
 0x223   : > { %v8818_v31 = vpack.c.bf16 %v2244_v26, %v2244_v26  ;;  %v2256_v25 = vmax.f32 %v2254_v50, %v2255_v36  ;;  %v2267_v28 = vrot.slane %v2266_v18, 4  ;;  %v10559_v5 = vpack.c.b16 %v4267_v14, %v4267_v14  ;;  %4520 = vst.msk [vmem:[#allocation2 + $0x4] sm:$0xf] %vm4518_vm9, %v4458_v38 }
 0x224   : > { %v8819_v42 = vpack.c.bf16 %v2251_v60, %v2251_v60  ;;  %v2263_v20 = vmax.f32 %v2261_v40, %v2262_v17  ;;  %v2273_v22 = vsel %vm1733_vm1, %v1547_v12, -inf  ;;  %v1548_v8 = vcombine.high %v1324_v27, %v1324_v27  ;;  %v10572_v40 = vpop.permute.xlu1 %4743  ;;  %v9214_v32 = vpop.f32.mrf.mxu0 }
 0x225   : > { %v4102_v0 = vunpack.c.l.b16 %v8818_v31  ;;  %v2257_v11 = vrot.slane %v2256_v25, 1  ;;  %v2268_v10 = vmax.f32 %v2266_v18, %v2267_v28  ;;  %v2274_v39 = vrot.slane %v2273_v22, 4  ;;  %4402 = vst.msk [vmem:[#allocation2 + $0x20] sm:$0xf] %vm1733_vm1, %v10559_v5  ;;  %5084 = vrot.lane.b32.xlu0 %v10559_v5, %s9580_s28  ;;  %5207 = vrot.lane.b32.xlu1 %v10559_v5, %s9579_s27  ;;  %12946 = vst [vmem:[#allocation16_spill] sm:$0xff] %v10572_v40 }
 0x226   : > { %v4103_v50 = vunpack.c.l.b16 %v8819_v42  ;;  %v2264_v30 = vrot.slane %v2263_v20, 1  ;;  %v2280_v41 = vsel %vm1733_vm1, %v1324_v27, -inf  ;;  %v2287_v17 = vsel %vm1733_vm1, %v1548_v8, -inf  ;;  %v10578_v27 = vpop.f32.mrf.mxu0  ;;  %v10589_v32 = vpop.permute.xlu0 %5237 }
 0x227   : > { %v2258_v52 = vmax.f32 %v2256_v25, %v2257_v11  ;;  %v2269_v54 = vrot.slane %v2268_v10, 2  ;;  %v2275_v26 = vmax.f32 %v2273_v22, %v2274_v39  ;;  %v2281_v36 = vrot.slane %v2280_v41, 4  ;;  %12947 = vst [vmem:[#allocation17_spill] sm:$0xff] %v10589_v32 }
 0x228   : > { %v4268_v12 = vsel %vm4198_vm2, %v4103_v50, %v4102_v0  ;;  %v2265_v60 = vmax.f32 %v2263_v20, %v2264_v30  ;;  %v993_v18 = vadd.f32 %v10371_v49, %v10266_v21  ;;  %v2288_v42 = vrot.slane %v2287_v17, 4  ;;  %v9215_v20 = vpop.f32.mrf.mxu0 }
 0x229   : > { %v8820_v29 = vpack.c.bf16 %v2258_v52, %v2258_v52  ;;  %v2270_v14 = vmax.f32 %v2268_v10, %v2269_v54  ;;  %v2276_v31 = vrot.slane %v2275_v26, 2  ;;  %v2282_v28 = vmax.f32 %v2280_v41, %v2281_v36  ;;  %4838 = vrot.lane.b32.xlu0 %v10559_v5, %s9582_s30  ;;  %4961 = vrot.lane.b32.xlu1 %v10559_v5, %s9581_s29  ;;  %v10587_v41 = vpop.permute.xlu1 %4580 }
 0x22a   : > { %v8821_v38 = vpack.c.bf16 %v2265_v60, %v2265_v60  ;;  %v1325_v25 = vmax.f32 %v993_v18, 0.0  ;;  %v996_v22 = vadd.f32 %v10371_v49, %v10290_v23  ;;  %v2289_v50 = vmax.f32 %v2287_v17, %v2288_v42 }
 0x22b   : > { %v4104_v21 = vunpack.c.l.b16 %v8820_v29  ;;  %v2271_v0 = vrot.slane %v2270_v14, 1  ;;  %v2277_v11 = vmax.f32 %v2275_v26, %v2276_v31  ;;  %v2283_v39 = vrot.slane %v2282_v28, 2 }
 0x22c   : > { %v4105_v10 = vunpack.c.l.b16 %v8821_v38  ;;  %v1549_v30 = vcombine.high %v1325_v25, %v1325_v25  ;;  %v2294_v8 = vsel %vm1733_vm1, %v1325_v25, -inf  ;;  %v2290_v18 = vrot.slane %v2289_v50, 2 }
 0x22d   : > { %v4269_v23 = vsel %vm4200_vm3, %v4104_v21, %v4268_v12  ;;  %v2272_v52 = vmax.f32 %v2270_v14, %v2271_v0  ;;  %v2278_v54 = vrot.slane %v2277_v11, 1  ;;  %v2284_v36 = vmax.f32 %v2282_v28, %v2283_v39  ;;  %4592 = vrot.lane.b32.xlu0 %v10559_v5, %s9584_s9  ;;  %4715 = vrot.lane.b32.xlu1 %v10559_v5, %s9583_s8  ;;  %v10600_v20 = vpop.permute.xlu1 %5114 }
 0x22e   : > { %v4270_v60 = vsel %vm12892_vm4, %v4105_v10, %v4269_v23  ;;  %v2295_v29 = vrot.slane %v2294_v8, 4  ;;  %v2301_v26 = vsel %vm1733_vm1, %v1549_v30, -inf  ;;  %v2291_v12 = vmax.f32 %v2289_v50, %v2290_v18  ;;  %12948 = vst [vmem:[#allocation18_spill] sm:$0xff] %v10600_v20  ;;  %v10605_v50 = vpop.permute.xlu0 %4991 }
 0x22f   : > { %v2279_v17 = vmax.f32 %v2277_v11, %v2278_v54  ;;  %v8822_v31 = vpack.c.bf16 %v2272_v52, %v2272_v52  ;;  %v2285_v38 = vrot.slane %v2284_v36, 1  ;;  %v2302_v42 = vrot.slane %v2301_v26, 4  ;;  %12949 = vst [vmem:[#allocation19_spill] sm:$0xff] %v10605_v50 }
 0x230   : > { %v2296_v14 = vmax.f32 %v2294_v8, %v2295_v29  ;;  %v1326_v25 = vmax.f32 %v996_v22, 0.0  ;;  %v1001_v28 = vadd.f32 %v10371_v49, %v10308_v48  ;;  %v2292_v30 = vrot.slane %v2291_v12, 1 }
 0x231   : > { %v8823_v21 = vpack.c.bf16 %v2279_v17, %v2279_v17  ;;  %v4106_v0 = vunpack.c.l.b16 %v8822_v31  ;;  %v2286_v39 = vmax.f32 %v2284_v36, %v2285_v38  ;;  %v2303_v10 = vmax.f32 %v2301_v26, %v2302_v42  ;;  %4469 = vrot.lane.b32.xlu1 %v10559_v5, %s9585_s13  ;;  %v10610_v50 = vpop.permute.xlu1 %4868 }
 0x232   : > { %v2297_v23 = vrot.slane %v2296_v14, 2  ;;  %v1550_v43 = vcombine.high %v1326_v25, %v1326_v25  ;;  %v2308_v11 = vsel %vm1733_vm1, %v1326_v25, -inf  ;;  %v2293_v52 = vmax.f32 %v2291_v12, %v2292_v30  ;;  %12950 = vst [vmem:[#allocation20_spill] sm:$0xff] %v10610_v50 }
 0x233   : > { %v4107_v22 = vunpack.c.l.b16 %v8823_v21  ;;  %v4271_v8 = vsel %vm12891_vm5, %v4106_v0, %v4270_v60  ;;  %v8824_v48 = vpack.c.bf16 %v2286_v39, %v2286_v39  ;;  %v2304_v49 = vrot.slane %v2303_v10, 2  ;;  %v10612_v21 = vpop.f32.mrf.mxu0  ;;  %v12951_v0 = vld [vmem:[#allocation3_spill] sm:$0xff]  ;;  %v12952_v39 = vld [vmem:[#allocation4_spill] sm:$0xff] }
 0x234   : > { %v2298_v54 = vmax.f32 %v2296_v14, %v2297_v23  ;;  %v2309_v18 = vrot.slane %v2308_v11, 4  ;;  %v2315_v36 = vsel %vm1733_vm1, %v1550_v43, -inf  ;;  %v8825_v38 = vpack.c.bf16 %v2293_v52, %v2293_v52 }
 0x235   : > { %v4272_v29 = vsel %vm12890_vm6, %v4107_v22, %v4271_v8  ;;  %v4108_v26 = vunpack.c.l.b16 %v8824_v48  ;;  %v2305_v17 = vmax.f32 %v2303_v10, %v2304_v49  ;;  %v2316_v31 = vrot.slane %v2315_v36, 4  ;;  %v12953_v49 = vld [vmem:[#allocation5_spill] sm:$0xff] }
 0x236   : > { %v2299_v42 = vrot.slane %v2298_v54, 1  ;;  %v2310_v5 = vmax.f32 %v2308_v11, %v2309_v18  ;;  %v1327_v25 = vmax.f32 %v1001_v28, 0.0  ;;  %v4203_v43 = vsel %vm12892_vm4, %v12952_v39, %v12951_v0  ;;  %v9218_v18 = vpop.f32.mrf.mxu0 }
 0x237   : > { %v4273_v60 = vsel %vm12889_vm7, %v4108_v26, %v4272_v29  ;;  %v2306_v12 = vrot.slane %v2305_v17, 1  ;;  %v2317_v14 = vmax.f32 %v2315_v36, %v2316_v31  ;;  %v4109_v30 = vunpack.c.l.b16 %v8825_v38 }
 0x238   : > { %v2300_v23 = vmax.f32 %v2298_v54, %v2299_v42  ;;  %v2311_v10 = vrot.slane %v2310_v5, 2  ;;  %v1551_v22 = vcombine.high %v1327_v25, %v1327_v25  ;;  %v10618_v8 = vpop.permute.xlu0 %4705  ;;  %v2322_v48 = vsel %vm1733_vm1, %v1327_v25, -inf  ;;  %v10627_v39 = vpop.f32.mrf.mxu0 }
 0x239   : > { %v2307_v11 = vmax.f32 %v2305_v17, %v2306_v12  ;;  %v2318_v28 = vrot.slane %v2317_v14, 2  ;;  %v4205_v52 = vsel %vm12891_vm5, %v12953_v49, %v4203_v43  ;;  %v4274_v36 = vsel %vm12888_vm8, %v4109_v30, %v4273_v60  ;;  %v10629_v40 = vpop.permute.xlu1 %4582  ;;  %v12954_v30 = vld [vmem:[#allocation6_spill] sm:$0xff]  ;;  %v12955_v49 = vld [vmem:[#allocation8_spill] sm:$0xff] }
 0x23a   : > { %v8826_v29 = vpack.c.bf16 %v2300_v23, %v2300_v23  ;;  %v2312_v26 = vmax.f32 %v2310_v5, %v2311_v10  ;;  %v2323_v31 = vrot.slane %v2322_v48, 4  ;;  %v10624_v0 = vpack.c.b16 %v4274_v36, %v4274_v36  ;;  %4645 = vst.msk [vmem:[#allocation2 + $0x4] sm:$0xf] %vm4643_vm10, %v10629_v40 }
 0x23b   : > { %v8827_v54 = vpack.c.bf16 %v2307_v11, %v2307_v11  ;;  %v2319_v38 = vmax.f32 %v2317_v14, %v2318_v28  ;;  %v2329_v42 = vsel %vm1733_vm1, %v1551_v22, -inf  ;;  %v4207_v23 = vsel %vm12890_vm6, %v12954_v30, %v4205_v52  ;;  %v10638_v14 = vld [vmem:[%s12880_s6] ss:$0 sm:$0xff]  ;;  %v9219_v22 = vpop.f32.mrf.mxu0 }
 0x23c   : > { %v4110_v17 = vunpack.c.l.b16 %v8826_v29  ;;  %v2313_v12 = vrot.slane %v2312_v26, 1  ;;  %v2324_v25 = vmax.f32 %v2322_v48, %v2323_v31  ;;  %v2330_v50 = vrot.slane %v2329_v42, 4  ;;  %v4460_v43 = vpop.permute.xlu0 %4459  ;;  %4403 = vst.msk [vmem:[#allocation2 + $0x24] sm:$0xf] %vm1733_vm1, %v10624_v0  ;;  %5209 = vrot.lane.b32.xlu0 %v10624_v0, %s9579_s27  ;;  %5086 = vrot.lane.b32.xlu1 %v10624_v0, %s9580_s28 }
 0x23d   : > { %v4111_v5 = vunpack.c.l.b16 %v8827_v54  ;;  %v2320_v60 = vrot.slane %v2319_v38, 1  ;;  %v1004_v10 = vadd.f32 %v10638_v14, %v10365_v2  ;;  %4521 = vst.msk [vmem:[#allocation2 + $0x8] sm:$0xf] %vm4518_vm9, %v4460_v43  ;;  %v4209_v52 = vsel %vm12889_vm7, %v12955_v49, %v4207_v23  ;;  %v10652_v31 = vpop.f32.mrf.mxu0 }
 0x23e   : > { %v2314_v11 = vmax.f32 %v2312_v26, %v2313_v12  ;;  %v2325_v28 = vrot.slane %v2324_v25, 2  ;;  %v2331_v48 = vmax.f32 %v2329_v42, %v2330_v50  ;;  %v4211_v2 = vsel %vm12888_vm8, %v10383_v6, %v4209_v52 }
 0x23f   : > { %v4275_v18 = vsel %vm4198_vm2, %v4111_v5, %v4110_v17  ;;  %v2321_v36 = vmax.f32 %v2319_v38, %v2320_v60  ;;  %v1328_v29 = vmax.f32 %v1004_v10, 0.0  ;;  %v4352_v43 = vpack.c.b16 %v4211_v2, %v4211_v2  ;;  %v9222_v38 = vpop.f32.mrf.mxu0 }
 0x240   : > { %v8828_v54 = vpack.c.bf16 %v2314_v11, %v2314_v11  ;;  %v2326_v30 = vmax.f32 %v2324_v25, %v2325_v28  ;;  %v2332_v9 = vrot.slane %v2331_v48, 2  ;;  %v10654_v22 = vpop.permute.xlu1 %5239  ;;  %v1009_v17 = vadd.f32 %v10638_v14, %v10401_v33  ;;  %4963 = vrot.lane.b32.xlu0 %v10624_v0, %s9581_s29  ;;  %4840 = vrot.lane.b32.xlu1 %v10624_v0, %s9582_s30  ;;  %v10663_v6 = vpop.permute.xlu0 %5116 }
 0x241   : > { %12956 = vst [vmem:[#allocation3_spill] sm:$0xff] %v10654_v22  ;;  %v8829_v26 = vpack.c.bf16 %v2321_v36, %v2321_v36  ;;  %v1552_v50 = vcombine.high %v1328_v29, %v1328_v29  ;;  %v2336_v42 = vsel %vm1733_vm1, %v1328_v29, -inf  ;;  %12957 = vst [vmem:[#allocation4_spill] sm:$0xff] %v10663_v6  ;;  %v1012_v11 = vadd.f32 %v10638_v14, %v10409_v4  ;;  %v10671_v28 = vpop.f32.mrf.mxu0 }
 0x242   : > { %v4112_v12 = vunpack.c.l.b16 %v8828_v54  ;;  %v2327_v25 = vrot.slane %v2326_v30, 1  ;;  %v2333_v5 = vmax.f32 %v2331_v48, %v2332_v9  ;;  %4394 = vst.msk [vmem:[#allocation2] sm:$0xf] %vm1733_vm1, %v4352_v43  ;;  %v2337_v60 = vrot.slane %v2336_v42, 4 }
 0x243   : > { %v4113_v23 = vunpack.c.l.b16 %v8829_v26  ;;  %4519 = vst.msk [vmem:[#allocation2] sm:$0xf] %vm4518_vm9, %v10520_v45  ;;  %v2343_v33 = vsel %vm1733_vm1, %v1552_v50, -inf  ;;  %v1329_v10 = vmax.f32 %v1009_v17, 0.0  ;;  %v9223_v4 = vpop.f32.mrf.mxu0  ;;  %v1330_v17 = vmax.f32 %v1012_v11, 0.0 }
 0x244   : > { %v4276_v49 = vsel %vm4200_vm3, %v4112_v12, %v4275_v18  ;;  %v2328_v52 = vmax.f32 %v2326_v30, %v2327_v25  ;;  %v2334_v36 = vrot.slane %v2333_v5, 1  ;;  %v2338_v9 = vmax.f32 %v2336_v42, %v2337_v60  ;;  %v10674_v48 = vpop.permute.xlu1 %4993  ;;  %4717 = vrot.lane.b32.xlu0 %v10624_v0, %s9583_s8  ;;  %4594 = vrot.lane.b32.xlu1 %v10624_v0, %s9584_s9 }
 0x245   : > { %12958 = vst [vmem:[#allocation5_spill] sm:$0xff] %v10674_v48  ;;  %v4277_v2 = vsel %vm12892_vm4, %v4113_v23, %v4276_v49  ;;  %v2344_v29 = vrot.slane %v2343_v33, 4  ;;  %v1553_v54 = vcombine.high %v1329_v10, %v1329_v10  ;;  %v2350_v45 = vsel %vm1733_vm1, %v1329_v10, -inf  ;;  %4644 = vst.msk [vmem:[#allocation2] sm:$0xf] %vm4643_vm10, %v10587_v41 }
 0x246   : > { %v2335_v43 = vmax.f32 %v2333_v5, %v2334_v36  ;;  %v8830_v18 = vpack.c.bf16 %v2328_v52, %v2328_v52  ;;  %v2339_v30 = vrot.slane %v2338_v9, 2  ;;  %v2351_v26 = vrot.slane %v2350_v45, 4  ;;  %4769 = vst.msk [vmem:[#allocation2] sm:$0xf] %vm4768_vm11, %v10618_v8 }
 0x247   : > { %v2345_v50 = vmax.f32 %v2343_v33, %v2344_v29  ;;  %v2357_v42 = vsel %vm1733_vm1, %v1553_v54, -inf  ;;  %v1017_v38 = vadd.f32 %v10638_v14, %v10417_v59  ;;  %v10685_v12 = vpop.permute.xlu0 %4830  ;;  %v1554_v52 = vcombine.high %v1330_v17, %v1330_v17 }
 0x248   : > { %v8831_v25 = vpack.c.bf16 %v2335_v43, %v2335_v43  ;;  %v4114_v60 = vunpack.c.l.b16 %v8830_v18  ;;  %v2340_v23 = vmax.f32 %v2338_v9, %v2339_v30  ;;  %v2352_v10 = vmax.f32 %v2350_v45, %v2351_v26  ;;  %v10687_v49 = vpop.permute.xlu1 %4707  ;;  %4471 = vrot.lane.b32.xlu0 %v10624_v0, %s9585_s13  ;;  %4894 = vst.msk [vmem:[#allocation2] sm:$0xf] %vm4893_vm12, %v10685_v12 }
 0x249   : > { %v2346_v4 = vrot.slane %v2345_v50, 2  ;;  %v2358_v5 = vrot.slane %v2357_v42, 4  ;;  %v2364_v36 = vsel %vm1733_vm1, %v1330_v17, -inf  ;;  %v2371_v9 = vsel %vm1733_vm1, %v1554_v52, -inf  ;;  %4770 = vst.msk [vmem:[#allocation2 + $0x4] sm:$0xf] %vm4768_vm11, %v10687_v49 }
 0x24a   : > { %v4115_v33 = vunpack.c.l.b16 %v8831_v25  ;;  %v4278_v11 = vsel %vm12891_vm5, %v4114_v60, %v4277_v2  ;;  %v2341_v59 = vrot.slane %v2340_v23, 1  ;;  %v2353_v29 = vrot.slane %v2352_v10, 2 }
 0x24b   : > { %v2347_v54 = vmax.f32 %v2345_v50, %v2346_v4  ;;  %v2359_v43 = vmax.f32 %v2357_v42, %v2358_v5  ;;  %v2365_v18 = vrot.slane %v2364_v36, 4  ;;  %v2372_v48 = vrot.slane %v2371_v9, 4  ;;  %v4585_v6 = vpop.permute.xlu0 %4584  ;;  %v10696_v42 = vpop.f32.mrf.mxu0 }
 0x24c   : > { %v4279_v45 = vsel %vm12890_vm6, %v4115_v33, %v4278_v11  ;;  %v2342_v30 = vmax.f32 %v2340_v23, %v2341_v59  ;;  %v2354_v26 = vmax.f32 %v2352_v10, %v2353_v29  ;;  %v4462_v17 = vpop.permute.xlu1 %4461  ;;  %v1331_v25 = vmax.f32 %v1017_v38, 0.0  ;;  %4646 = vst.msk [vmem:[#allocation2 + $0x8] sm:$0xf] %vm4643_vm10, %v4585_v6  ;;  %v9436_v38 = vld [vmem:[%s12876_s2 + $0x70] ss:$8 sps:$4 sm:$0xff]  }
 0x24d   : > { %v2348_v47 = vrot.slane %v2347_v54, 1  ;;  %v2360_v1 = vrot.slane %v2359_v43, 2  ;;  %v2366_v0 = vmax.f32 %v2364_v36, %v2365_v18  ;;  %4522 = vst.msk [vmem:[#allocation2 + $0xc] sm:$0xf] %vm4518_vm9, %v4462_v17  ;;  %v2373_v50 = vmax.f32 %v2371_v9, %v2372_v48  ;;  %v9438_v48 = vld [vmem:[%s12876_s2 + $0x74] ss:$8 sps:$4 sm:$0xff]   ;;  %v9226_v33 = vpop.f32.mrf.mxu0 }
 0x24e   : > { %v8832_v2 = vpack.c.bf16 %v2342_v30, %v2342_v30  ;;  %v2355_v60 = vrot.slane %v2354_v26, 1  ;;  %v1555_v23 = vcombine.high %v1331_v25, %v1331_v25  ;;  %v2378_v36 = vsel %vm1733_vm1, %v1331_v25, -inf  ;;  %5471 = vmatprep.subr.bf16.mxu1 %v9438_v48 }
 0x24f   : > { %v2349_v4 = vmax.f32 %v2347_v54, %v2348_v47  ;;  %v2361_v5 = vmax.f32 %v2359_v43, %v2360_v1  ;;  %v2367_v52 = vrot.slane %v2366_v0, 2  ;;  %v2374_v10 = vrot.slane %v2373_v50, 2  ;;  %5472 = vmatpush1.bf16.msra.mxu1 %v9436_v38 }
 0x250   : > { %v4116_v47 = vunpack.c.l.b16 %v8832_v2  ;;  %v2356_v1 = vmax.f32 %v2354_v26, %v2355_v60  ;;  %v2379_v40 = vrot.slane %v2378_v36, 4  ;;  %v2385_v43 = vsel %vm1733_vm1, %v1555_v23, -inf  ;;  %v10716_v2 = vpop.f32.mrf.mxu0 }
 0x251   : > { %v8833_v41 = vpack.c.bf16 %v2349_v4, %v2349_v4  ;;  %v2362_v11 = vrot.slane %v2361_v5, 1  ;;  %v2368_v59 = vmax.f32 %v2366_v0, %v2367_v52  ;;  %v2375_v54 = vmax.f32 %v2373_v50, %v2374_v10  ;;  %v10712_v18 = vpop.permute.xlu0 %4955  ;;  %v10714_v9 = vpop.permute.xlu1 %4832 }
 0x252   : > { %v4280_v6 = vsel %vm12889_vm7, %v4116_v47, %v4279_v45  ;;  %v8834_v29 = vpack.c.bf16 %v2356_v1, %v2356_v1  ;;  %v2380_v25 = vmax.f32 %v2378_v36, %v2379_v40  ;;  %v2386_v4 = vrot.slane %v2385_v43, 4  ;;  %v9227_v47 = vpop.f32.mrf.mxu0  ;;  %4895 = vst.msk [vmem:[#allocation2 + $0x4] sm:$0xf] %vm4893_vm12, %v10714_v9 }
 0x253   : > { %v4117_v30 = vunpack.c.l.b16 %v8833_v41  ;;  %v2363_v26 = vmax.f32 %v2361_v5, %v2362_v11  ;;  %v2369_v17 = vrot.slane %v2368_v59, 1  ;;  %v2376_v60 = vrot.slane %v2375_v54, 1  ;;  %v9439_v41 = vld [vmem:[%s12876_s2 + $0x60] ss:$8 sps:$4 sm:$0xff]   ;;  %5019 = vst.msk [vmem:[#allocation2] sm:$0xf] %vm5018_vm13, %v10712_v18 }
 0x254   : > { %v4118_v0 = vunpack.c.l.b16 %v8834_v29  ;;  %v1020_v45 = vadd.f32 %v10638_v14, %v10426_v61  ;;  %v2381_v48 = vrot.slane %v2380_v25, 2  ;;  %v2387_v5 = vmax.f32 %v2385_v43, %v2386_v4  ;;  %v9441_v61 = vld [vmem:[%s12876_s2 + $0x64] ss:$8 sps:$4 sm:$0xff]   ;;  %v10734_v29 = vpop.f32.mrf.mxu0 }
 0x255   : > { %v4281_v50 = vsel %vm12888_vm8, %v4117_v30, %v4280_v6  ;;  %v8835_v52 = vpack.c.bf16 %v2363_v26, %v2363_v26  ;;  %v2370_v23 = vmax.f32 %v2368_v59, %v2369_v17  ;;  %v2377_v38 = vmax.f32 %v2375_v54, %v2376_v60  ;;  %v10723_v36 = vpop.permute.xlu0 %4709  ;;  %v4587_v33 = vpop.permute.xlu1 %4586  ;;  %5473 = vmatprep.subr.bf16.mxu1 %v9441_v61 }
 0x256   : > { %v10721_v1 = vpack.c.b16 %v4281_v50, %v4281_v50  ;;  %v1332_v10 = vmax.f32 %v1020_v45, 0.0  ;;  %v2382_v40 = vmax.f32 %v2380_v25, %v2381_v48  ;;  %v1025_v6 = vadd.f32 %v10638_v14, %v10439_v55  ;;  %4647 = vst.msk [vmem:[#allocation2 + $0xc] sm:$0xf] %vm4643_vm10, %v4587_v33  ;;  %v9230_v4 = vpop.f32.mrf.mxu0  ;;  %5474 = vmatpush1.bf16.msra.mxu1 %v9439_v41 }
 0x257   : > { %v4119_v11 = vunpack.c.l.b16 %v8835_v52  ;;  %v8836_v59 = vpack.c.bf16 %v2370_v23, %v2370_v23  ;;  %v8837_v54 = vpack.c.bf16 %v2377_v38, %v2377_v38  ;;  %v2388_v43 = vrot.slane %v2387_v5, 2  ;;  %4771 = vst.msk [vmem:[#allocation2 + $0x8] sm:$0xf] %vm4768_vm11, %v10723_v36 }
 0x258   : > { %4404 = vst.msk [vmem:[#allocation2 + $0x28] sm:$0xf] %vm1733_vm1, %v10721_v1  ;;  %v1556_v30 = vcombine.high %v1332_v10, %v1332_v10  ;;  %v2392_v26 = vsel %vm1733_vm1, %v1332_v10, -inf  ;;  %5088 = vrot.lane.b32.xlu0 %v10721_v1, %s9580_s28  ;;  %5211 = vrot.lane.b32.xlu1 %v10721_v1, %s9579_s27  ;;  %v2383_v25 = vrot.slane %v2382_v40, 1  ;;  %v1333_v23 = vmax.f32 %v1025_v6, 0.0 }
 0x259   : > { %v4282_v55 = vsel %vm4198_vm2, %v4119_v11, %v4118_v0  ;;  %v4120_v17 = vunpack.c.l.b16 %v8836_v59  ;;  %v2393_v60 = vrot.slane %v2392_v26, 4  ;;  %v4121_v45 = vunpack.c.l.b16 %v8837_v54  ;;  %v4464_v48 = vpop.permute.xlu0 %4463  ;;  %v10747_v0 = vpop.f32.mrf.mxu0 }
 0x25a   : > { %v2389_v50 = vmax.f32 %v2387_v5, %v2388_v43  ;;  %v2399_v52 = vsel %vm1733_vm1, %v1556_v30, -inf  ;;  %v2384_v38 = vmax.f32 %v2382_v40, %v2383_v25  ;;  %4523 = vst.msk [vmem:[#allocation2 + $0x10] sm:$0xf] %vm4518_vm9, %v4464_v48  ;;  %v1557_v59 = vcombine.high %v1333_v23, %v1333_v23 }
 0x25b   : > { %v4283_v47 = vsel %vm4200_vm3, %v4120_v17, %v4282_v55  ;;  %v2394_v10 = vmax.f32 %v2392_v26, %v2393_v60  ;;  %v2400_v33 = vrot.slane %v2399_v52, 4  ;;  %v2406_v5 = vsel %vm1733_vm1, %v1333_v23, -inf  ;;  %v9231_v43 = vpop.f32.mrf.mxu0 }
 0x25c   : > { %v4284_v11 = vsel %vm12892_vm4, %v4121_v45, %v4283_v47  ;;  %v2390_v61 = vrot.slane %v2389_v50, 1  ;;  %4842 = vrot.lane.b32.xlu0 %v10721_v1, %s9582_s30  ;;  %4965 = vrot.lane.b32.xlu1 %v10721_v1, %s9581_s29  ;;  %v8838_v41 = vpack.c.bf16 %v2384_v38, %v2384_v38  ;;  %v2407_v54 = vrot.slane %v2406_v5, 4 }
 0x25d   : > { %v2395_v40 = vrot.slane %v2394_v10, 2  ;;  %v2401_v6 = vmax.f32 %v2399_v52, %v2400_v33  ;;  %v2413_v26 = vsel %vm1733_vm1, %v1557_v59, -inf  ;;  %v1028_v55 = vadd.f32 %v10638_v14, %v10446_v24 }
 0x25e   : > { %v2391_v30 = vmax.f32 %v2389_v50, %v2390_v61  ;;  %v1033_v17 = vadd.f32 %v10638_v14, %v10451_v58  ;;  %v4122_v25 = vunpack.c.l.b16 %v8838_v41  ;;  %v2408_v45 = vmax.f32 %v2406_v5, %v2407_v54 }
 0x25f   : > { %v2396_v60 = vmax.f32 %v2394_v10, %v2395_v40  ;;  %v2402_v4 = vrot.slane %v2401_v6, 2  ;;  %v2414_v48 = vrot.slane %v2413_v26, 4  ;;  %v1334_v47 = vmax.f32 %v1028_v55, 0.0 }
 0x260   : > { %v8839_v23 = vpack.c.bf16 %v2391_v30, %v2391_v30  ;;  %v1335_v38 = vmax.f32 %v1033_v17, 0.0  ;;  %4596 = vrot.lane.b32.xlu0 %v10721_v1, %s9584_s9  ;;  %4719 = vrot.lane.b32.xlu1 %v10721_v1, %s9583_s8  ;;  %v4285_v50 = vsel %vm12891_vm5, %v4122_v25, %v4284_v11  ;;  %v2409_v33 = vrot.slane %v2408_v45, 2 }
 0x261   : > { %v2397_v24 = vrot.slane %v2396_v60, 1  ;;  %v2403_v52 = vmax.f32 %v2401_v6, %v2402_v4  ;;  %v2415_v61 = vmax.f32 %v2413_v26, %v2414_v48  ;;  %v1558_v10 = vcombine.high %v1334_v47, %v1334_v47  ;;  %v9444_v4 = vld [vmem:[%s12876_s2 + $0x54] ss:$8 sps:$4 sm:$0xff]  }
 0x262   : > { %v4123_v58 = vunpack.c.l.b16 %v8839_v23  ;;  %v2420_v59 = vsel %vm1733_vm1, %v1334_v47, -inf  ;;  %v2410_v40 = vmax.f32 %v2408_v45, %v2409_v33  ;;  %v1559_v17 = vcombine.high %v1335_v38, %v1335_v38  ;;  %v10776_v45 = vpop.f32.mrf.mxu0  ;;  %5475 = vmatprep.subr.bf16.mxu1 %v9444_v4 }
 0x263   : > { %v2398_v5 = vmax.f32 %v2396_v60, %v2397_v24  ;;  %v2404_v41 = vrot.slane %v2403_v52, 1  ;;  %v2421_v54 = vrot.slane %v2420_v59, 4  ;;  %v2416_v30 = vrot.slane %v2415_v61, 2  ;;  %v9442_v60 = vld [vmem:[%s12876_s2 + $0x50] ss:$8 sps:$4 sm:$0xff]  }
 0x264   : > { %v4286_v43 = vsel %vm12890_vm6, %v4123_v58, %v4285_v50  ;;  %v2427_v55 = vsel %vm1733_vm1, %v1558_v10, -inf  ;;  %4473 = vrot.lane.b32.xlu1 %v10721_v1, %s9585_s13  ;;  %v2411_v25 = vrot.slane %v2410_v40, 1  ;;  %v2434_v47 = vsel %vm1733_vm1, %v1335_v38, -inf  ;;  %v9447_v58 = vld [vmem:[%s12876_s2 + $0x44] ss:$8 sps:$4 sm:$0xff]   ;;  %v9234_v10 = vpop.f32.mrf.mxu0  ;;  %5476 = vmatpush1.bf16.msra.mxu1 %v9442_v60 }
 0x265   : > { %v2405_v11 = vmax.f32 %v2403_v52, %v2404_v41  ;;  %v8840_v6 = vpack.c.bf16 %v2398_v5, %v2398_v5  ;;  %v2422_v26 = vmax.f32 %v2420_v59, %v2421_v54  ;;  %v2417_v23 = vmax.f32 %v2415_v61, %v2416_v30  ;;  %v9445_v38 = vld [vmem:[%s12876_s2 + $0x40] ss:$8 sps:$4 sm:$0xff]   ;;  %5477 = vmatprep.subr.bf16.mxu1 %v9447_v58 }
 0x266   : > { %v2428_v48 = vrot.slane %v2427_v55, 4  ;;  %v2441_v1 = vsel %vm1733_vm1, %v1559_v17, -inf  ;;  %v2412_v52 = vmax.f32 %v2410_v40, %v2411_v25  ;;  %v2435_v41 = vrot.slane %v2434_v47, 4 }
 0x267   : > { %v8841_v50 = vpack.c.bf16 %v2405_v11, %v2405_v11  ;;  %v4124_v24 = vunpack.c.l.b16 %v8840_v6  ;;  %v2423_v33 = vrot.slane %v2422_v26, 2  ;;  %v2418_v59 = vrot.slane %v2417_v23, 1  ;;  %v10787_v11 = vpop.f32.mrf.mxu0  ;;  %v9450_v6 = vld [vmem:[%s12876_s2 + $0x34] ss:$8 sps:$4 sm:$0xff]  }
 0x268   : > { %v2429_v5 = vmax.f32 %v2427_v55, %v2428_v48  ;;  %v2442_v54 = vrot.slane %v2441_v1, 4  ;;  %v8842_v40 = vpack.c.bf16 %v2412_v52, %v2412_v52  ;;  %v2436_v4 = vmax.f32 %v2434_v47, %v2435_v41  ;;  %5478 = vmatpush1.bf16.msra.mxu1 %v9445_v38  ;;  %v9453_v38 = vld [vmem:[%s12876_s2 + $0x24] ss:$8 sps:$4 sm:$0xff]  }
 0x269   : > { %v4125_v61 = vunpack.c.l.b16 %v8841_v50  ;;  %v4287_v30 = vsel %vm12889_vm7, %v4124_v24, %v4286_v43  ;;  %v2424_v17 = vmax.f32 %v2422_v26, %v2423_v33  ;;  %v2419_v55 = vmax.f32 %v2417_v23, %v2418_v59  ;;  %v9235_v26 = vpop.f32.mrf.mxu0  ;;  %v9448_v23 = vld [vmem:[%s12876_s2 + $0x30] ss:$8 sps:$4 sm:$0xff]   ;;  %5479 = vmatprep.subr.bf16.mxu1 %v9450_v6 }
 0x26a   : > { %v2430_v25 = vrot.slane %v2429_v5, 2  ;;  %v2443_v60 = vmax.f32 %v2441_v1, %v2442_v54  ;;  %v10792_v48 = vpop.permute.xlu0 %5080  ;;  %v10794_v10 = vpop.permute.xlu1 %4957  ;;  %v4126_v43 = vunpack.c.l.b16 %v8842_v40  ;;  %v2437_v22 = vrot.slane %v2436_v4, 2 }
 0x26b   : > { %v4288_v50 = vsel %vm12888_vm8, %v4125_v61, %v4287_v30  ;;  %v2425_v24 = vrot.slane %v2424_v17, 1  ;;  %v8843_v33 = vpack.c.bf16 %v2419_v55, %v2419_v55  ;;  %v1036_v59 = vadd.f32 %v10638_v14, %v10461_v19  ;;  %v10812_v8 = vpop.f32.mrf.mxu0  ;;  %5020 = vst.msk [vmem:[#allocation2 + $0x4] sm:$0xf] %vm5018_vm13, %v10794_v10 }
 0x26c   : > { %v10797_v52 = vpack.c.b16 %v4288_v50, %v4288_v50  ;;  %v2431_v58 = vmax.f32 %v2429_v5, %v2430_v25  ;;  %v2444_v1 = vrot.slane %v2443_v60, 2  ;;  %v1041_v5 = vadd.f32 %v10638_v14, %v10483_v3  ;;  %5480 = vmatpush1.bf16.msra.mxu1 %v9448_v23  ;;  %5144 = vst.msk [vmem:[#allocation2] sm:$0xf] %vm5143_vm14, %v10792_v48 }
 0x26d   : > { %v2426_v47 = vmax.f32 %v2424_v17, %v2425_v24  ;;  %v4127_v49 = vunpack.c.l.b16 %v8843_v33  ;;  %v2438_v41 = vmax.f32 %v2436_v4, %v2437_v22  ;;  %v1044_v54 = vadd.f32 %v10638_v14, %v10491_v51  ;;  %v9238_v51 = vpop.f32.mrf.mxu0  ;;  %v9451_v4 = vld [vmem:[%s12876_s2 + $0x20] ss:$8 sps:$4 sm:$0xff]   ;;  %5481 = vmatprep.subr.bf16.mxu1 %v9453_v38 }
 0x26e   : > { %4405 = vst.msk [vmem:[#allocation2 + $0x2c] sm:$0xf] %vm1733_vm1, %v10797_v52  ;;  %v2432_v36 = vrot.slane %v2431_v58, 1  ;;  %5213 = vrot.lane.b32.xlu0 %v10797_v52, %s9579_s27  ;;  %5090 = vrot.lane.b32.xlu1 %v10797_v52, %s9580_s28  ;;  %v10822_v19 = vpop.permute.xlu0 %4834  ;;  %v4712_v3 = vpop.permute.xlu1 %4711  ;;  %v2445_v30 = vmax.f32 %v2443_v60, %v2444_v1  ;;  %v1336_v40 = vmax.f32 %v1036_v59, 0.0  ;;  %v1337_v22 = vmax.f32 %v1041_v5, 0.0 }
 0x26f   : > { %v8844_v61 = vpack.c.bf16 %v2426_v47, %v2426_v47  ;;  %4772 = vst.msk [vmem:[#allocation2 + $0xc] sm:$0xf] %vm4768_vm11, %v4712_v3  ;;  %v4289_v17 = vsel %vm4198_vm2, %v4127_v49, %v4126_v43  ;;  %v2439_v55 = vrot.slane %v2438_v41, 1  ;;  %v1338_v25 = vmax.f32 %v1044_v54, 0.0  ;;  %v10833_v33 = vpop.f32.mrf.mxu0 }
 0x270   : > { %v2433_v6 = vmax.f32 %v2431_v58, %v2432_v36  ;;  %v2446_v24 = vrot.slane %v2445_v30, 1  ;;  %v1560_v26 = vcombine.high %v1336_v40, %v1336_v40  ;;  %v2448_v60 = vsel %vm1733_vm1, %v1336_v40, -inf  ;;  %5482 = vmatpush1.bf16.msra.mxu1 %v9451_v4  ;;  %4896 = vst.msk [vmem:[#allocation2 + $0x8] sm:$0xf] %vm4893_vm12, %v10822_v19  ;;  %v9458_v19 = vld [vmem:[%s12876_s2] ss:$8 sps:$4 sm:$0xff]  }
 0x271   : > { %v4128_v50 = vunpack.c.l.b16 %v8844_v61  ;;  %v2440_v1 = vmax.f32 %v2438_v41, %v2439_v55  ;;  %v2449_v59 = vrot.slane %v2448_v60, 4  ;;  %v1561_v43 = vcombine.high %v1337_v22, %v1337_v22  ;;  %v9239_v41 = vpop.f32.mrf.mxu0 }
 0x272   : > { %v8845_v47 = vpack.c.bf16 %v2433_v6, %v2433_v6  ;;  %4967 = vrot.lane.b32.xlu0 %v10797_v52, %s9581_s29  ;;  %4844 = vrot.lane.b32.xlu1 %v10797_v52, %s9582_s30  ;;  %v4589_v58 = vpop.permute.xlu0 %4588  ;;  %v4466_v23 = vpop.permute.xlu1 %4465  ;;  %v2447_v49 = vmax.f32 %v2445_v30, %v2446_v24  ;;  %v2455_v36 = vsel %vm1733_vm1, %v1560_v26, -inf  ;;  %v2462_v54 = vsel %vm1733_vm1, %v1337_v22, -inf }
 0x273   : > { %v4290_v5 = vsel %vm4200_vm3, %v4128_v50, %v4289_v17  ;;  %4648 = vst.msk [vmem:[#allocation2 + $0x10] sm:$0xf] %vm4643_vm10, %v4589_v58  ;;  %v8846_v38 = vpack.c.bf16 %v2440_v1, %v2440_v1  ;;  %v2450_v61 = vmax.f32 %v2448_v60, %v2449_v59  ;;  %v2456_v40 = vrot.slane %v2455_v36, 4 }
 0x274   : > { %4524 = vst.msk [vmem:[#allocation2 + $0x14] sm:$0xf] %vm4518_vm9, %v4466_v23  ;;  %v4129_v3 = vunpack.c.l.b16 %v8845_v47  ;;  %v8847_v51 = vpack.c.bf16 %v2447_v49, %v2447_v49  ;;  %v2463_v6 = vrot.slane %v2462_v54, 4  ;;  %v2469_v55 = vsel %vm1733_vm1, %v1561_v43, -inf }
 0x275   : > { %v1562_v17 = vcombine.high %v1338_v25, %v1338_v25  ;;  %v4130_v50 = vunpack.c.l.b16 %v8846_v38  ;;  %v2451_v24 = vrot.slane %v2450_v61, 2  ;;  %v2457_v22 = vmax.f32 %v2455_v36, %v2456_v40 }
 0x276   : > { %v4291_v30 = vsel %vm12892_vm4, %v4129_v3, %v4290_v5  ;;  %4721 = vrot.lane.b32.xlu0 %v10797_v52, %s9583_s8  ;;  %4598 = vrot.lane.b32.xlu1 %v10797_v52, %s9584_s9  ;;  %v4131_v26 = vunpack.c.l.b16 %v8847_v51  ;;  %v2464_v60 = vmax.f32 %v2462_v54, %v2463_v6  ;;  %v2470_v4 = vrot.slane %v2469_v55, 4  ;;  %v9454_v54 = vld [vmem:[%s9661_s12 + $0x1c0] ss:$0 sps:$4 sm:$0xff]  }
 0x277   : > { %v2476_v47 = vsel %vm1733_vm1, %v1338_v25, -inf  ;;  %v4292_v1 = vsel %vm12891_vm5, %v4130_v50, %v4291_v30  ;;  %v2452_v59 = vmax.f32 %v2450_v61, %v2451_v24  ;;  %v2458_v43 = vrot.slane %v2457_v22, 2  ;;  %v9455_v25 = vld [vmem:[%s12876_s2 + $0x10] ss:$8 sps:$4 sm:$0xff]   ;;  %v10860_v61 = vpop.f32.mrf.mxu0  ;;  %9321 = vmatmul.mubr.bf16.gmra.mxu1 %v9454_v54 }
 0x278   : > { %v2477_v58 = vrot.slane %v2476_v47, 4  ;;  %v4293_v23 = vsel %vm12890_vm6, %v4131_v26, %v4292_v1  ;;  %v2465_v5 = vrot.slane %v2464_v60, 2  ;;  %v2471_v49 = vmax.f32 %v2469_v55, %v2470_v4 }
 0x279   : > { %v2483_v36 = vsel %vm1733_vm1, %v1562_v17, -inf  ;;  %v2453_v41 = vrot.slane %v2452_v59, 1  ;;  %v2459_v3 = vmax.f32 %v2457_v22, %v2458_v43  ;;  %v1049_v55 = vadd.f32 %v10638_v14, %v10508_v56  ;;  %v9457_v17 = vld [vmem:[%s12876_s2 + $0x14] ss:$8 sps:$4 sm:$0xff]   ;;  %v9242_v56 = vpop.f32.mrf.mxu0 }
 0x27a   : > { %v2478_v38 = vmax.f32 %v2476_v47, %v2477_v58  ;;  %v2484_v40 = vrot.slane %v2483_v36, 4  ;;  %4475 = vrot.lane.b32.xlu0 %v10797_v52, %s9585_s13  ;;  %v2466_v51 = vmax.f32 %v2464_v60, %v2465_v5  ;;  %v2472_v6 = vrot.slane %v2471_v49, 2  ;;  %5483 = vmatprep.subr.bf16.mxu1 %v9457_v17  ;;  %v9460_v47 = vld [vmem:[%s12876_s2 + $0x4] ss:$8 sps:$4 sm:$0xff]  }
 0x27b   : > { %v2454_v30 = vmax.f32 %v2452_v59, %v2453_v41  ;;  %v2460_v50 = vrot.slane %v2459_v3, 1  ;;  %v1339_v60 = vmax.f32 %v1049_v55, 0.0  ;;  %v1052_v4 = vadd.f32 %v10638_v14, %v10522_v62  ;;  %5484 = vmatpush1.bf16.msra.mxu1 %v9455_v25  ;;  %v10881_v43 = vpop.f32.mrf.mxu0 }
 0x27c   : > { %v2479_v52 = vrot.slane %v2478_v38, 2  ;;  %v2485_v24 = vmax.f32 %v2483_v36, %v2484_v40  ;;  %v2467_v22 = vrot.slane %v2466_v51, 1  ;;  %v2473_v26 = vmax.f32 %v2471_v49, %v2472_v6  ;;  %5485 = vmatprep.subr.bf16.mxu1 %v9460_v47 }
 0x27d   : > { %v2461_v12 = vmax.f32 %v2459_v3, %v2460_v50  ;;  %v8848_v1 = vpack.c.bf16 %v2454_v30, %v2454_v30  ;;  %v1563_v49 = vcombine.high %v1339_v60, %v1339_v60  ;;  %v2490_v62 = vsel %vm1733_vm1, %v1339_v60, -inf  ;;  %v9243_v54 = vpop.f32.mrf.mxu0 }
 0x27e   : > { %v2480_v59 = vmax.f32 %v2478_v38, %v2479_v52  ;;  %v2486_v9 = vrot.slane %v2485_v24, 2  ;;  %v2468_v58 = vmax.f32 %v2466_v51, %v2467_v22  ;;  %v2474_v5 = vrot.slane %v2473_v26, 1 }
 0x27f   : > { %v8849_v36 = vpack.c.bf16 %v2461_v12, %v2461_v12  ;;  %v4132_v41 = vunpack.c.l.b16 %v8848_v1  ;;  %v2491_v25 = vrot.slane %v2490_v62, 4  ;;  %v2497_v55 = vsel %vm1733_vm1, %v1563_v49, -inf  ;;  %5486 = vmatpush1.bf16.msra.mxu1 %v9458_v19  ;;  %v10890_v22 = vpop.f32.mrf.mxu0 }
 0x280   : > { %v2481_v40 = vrot.slane %v2480_v59, 1  ;;  %v2487_v3 = vmax.f32 %v2485_v24, %v2486_v9  ;;  %v2475_v38 = vmax.f32 %v2473_v26, %v2474_v5  ;;  %v8850_v6 = vpack.c.bf16 %v2468_v58, %v2468_v58  ;;  %v10885_v17 = vpop.permute.xlu0 %5205  ;;  %v10887_v30 = vpop.permute.xlu1 %5082 }
 0x281   : > { %v4133_v51 = vunpack.c.l.b16 %v8849_v36  ;;  %v4294_v50 = vsel %vm12889_vm7, %v4132_v41, %v4293_v23  ;;  %v2492_v47 = vmax.f32 %v2490_v62, %v2491_v25  ;;  %v2498_v26 = vrot.slane %v2497_v55, 4  ;;  %v9246_v5 = vpop.f32.mrf.mxu0  ;;  %5145 = vst.msk [vmem:[#allocation2 + $0x4] sm:$0xf] %vm5143_vm14, %v10887_v30 }
 0x282   : > { %v2482_v52 = vmax.f32 %v2480_v59, %v2481_v40  ;;  %v2488_v56 = vrot.slane %v2487_v3, 1  ;;  %v8851_v60 = vpack.c.bf16 %v2475_v38, %v2475_v38  ;;  %v4134_v24 = vunpack.c.l.b16 %v8850_v6  ;;  %5269 = vst.msk [vmem:[#allocation2] sm:$0xf] %vm5268_vm15, %v10885_v17 }
 0x283   : > { %v4295_v12 = vsel %vm12888_vm8, %v4133_v51, %v4294_v50  ;;  %v1340_v58 = vmax.f32 %v1052_v4, 0.0  ;;  %v2493_v54 = vrot.slane %v2492_v47, 2  ;;  %v2499_v23 = vmax.f32 %v2497_v55, %v2498_v26  ;;  %v10899_v6 = vpop.f32.mrf.mxu0 }
 0x284   : > { %v2489_v1 = vmax.f32 %v2487_v3, %v2488_v56  ;;  %v8852_v9 = vpack.c.bf16 %v2482_v52, %v2482_v52  ;;  %v10893_v49 = vpack.c.b16 %v4295_v12, %v4295_v12  ;;  %v4135_v36 = vunpack.c.l.b16 %v8851_v60  ;;  %v10895_v59 = vpop.permute.xlu0 %4959  ;;  %v4837_v19 = vpop.permute.xlu1 %4836 }
 0x285   : > { %v1564_v38 = vcombine.high %v1340_v58, %v1340_v58  ;;  %v2504_v62 = vsel %vm1733_vm1, %v1340_v58, -inf  ;;  %4897 = vst.msk [vmem:[#allocation2 + $0xc] sm:$0xf] %vm4893_vm12, %v4837_v19  ;;  %v2494_v3 = vmax.f32 %v2492_v47, %v2493_v54  ;;  %v2500_v25 = vrot.slane %v2499_v23, 2  ;;  %v9247_v60 = vpop.f32.mrf.mxu0 }
 0x286   : > { %v8853_v41 = vpack.c.bf16 %v2489_v1, %v2489_v1  ;;  %v4136_v40 = vunpack.c.l.b16 %v8852_v9  ;;  %4406 = vst.msk [vmem:[#allocation2 + $0x30] sm:$0xf] %vm1733_vm1, %v10893_v49  ;;  %v4296_v4 = vsel %vm4198_vm2, %v4135_v36, %v4134_v24  ;;  %v2505_v55 = vrot.slane %v2504_v62, 4  ;;  %5092 = vrot.lane.b32.xlu0 %v10893_v49, %s9580_s28  ;;  %5215 = vrot.lane.b32.xlu1 %v10893_v49, %s9579_s27 }
 0x287   : > { %v2511_v52 = vsel %vm1733_vm1, %v1564_v38, -inf  ;;  %v1057_v56 = vadd.f32 %v10638_v14, %v10544_v53  ;;  %v2495_v26 = vrot.slane %v2494_v3, 1  ;;  %v2501_v24 = vmax.f32 %v2499_v23, %v2500_v25  ;;  %5021 = vst.msk [vmem:[#allocation2 + $0x8] sm:$0xf] %vm5018_vm13, %v10895_v59 }
 0x288   : > { %v4137_v51 = vunpack.c.l.b16 %v8853_v41  ;;  %v4297_v50 = vsel %vm4200_vm3, %v4136_v40, %v4296_v4  ;;  %v2506_v47 = vmax.f32 %v2504_v62, %v2505_v55  ;;  %v2512_v12 = vrot.slane %v2511_v52, 4  ;;  %v4714_v1 = vpop.permute.xlu0 %4713  ;;  %v4591_v9 = vpop.permute.xlu1 %4590 }
 0x289   : > { %v1341_v5 = vmax.f32 %v1057_v56, 0.0  ;;  %v1060_v36 = vadd.f32 %v10638_v14, %v10555_v57  ;;  %v1065_v54 = vadd.f32 %v10638_v14, %v10563_v13  ;;  %4773 = vst.msk [vmem:[#allocation2 + $0x10] sm:$0xf] %vm4768_vm11, %v4714_v1  ;;  %v2496_v53 = vmax.f32 %v2494_v3, %v2495_v26 }
 0x28a   : > { %v4298_v58 = vsel %vm12892_vm4, %v4137_v51, %v4297_v50  ;;  %4649 = vst.msk [vmem:[#allocation2 + $0x14] sm:$0xf] %vm4643_vm10, %v4591_v9  ;;  %v2502_v19 = vrot.slane %v2501_v24, 1  ;;  %v2507_v23 = vrot.slane %v2506_v47, 2  ;;  %v2513_v41 = vmax.f32 %v2511_v52, %v2512_v12  ;;  %4846 = vrot.lane.b32.xlu0 %v10893_v49, %s9582_s30  ;;  %4969 = vrot.lane.b32.xlu1 %v10893_v49, %s9581_s29 }
 0x28b   : > { %v1565_v40 = vcombine.high %v1341_v5, %v1341_v5  ;;  %v2518_v57 = vsel %vm1733_vm1, %v1341_v5, -inf  ;;  %v1342_v38 = vmax.f32 %v1060_v36, 0.0  ;;  %v1343_v62 = vmax.f32 %v1065_v54, 0.0 }
 0x28c   : > { %v2503_v13 = vmax.f32 %v2501_v24, %v2502_v19  ;;  %v8854_v14 = vpack.c.bf16 %v2496_v53, %v2496_v53  ;;  %v2508_v4 = vmax.f32 %v2506_v47, %v2507_v23  ;;  %v2514_v25 = vrot.slane %v2513_v41, 2  ;;  %v4468_v55 = vpop.permute.xlu0 %4467  ;;  %v10931_v24 = vpop.f32.mrf.mxu0 }
 0x28d   : > { %v2519_v3 = vrot.slane %v2518_v57, 4  ;;  %v2525_v51 = vsel %vm1733_vm1, %v1565_v40, -inf  ;;  %v1566_v50 = vcombine.high %v1342_v38, %v1342_v38  ;;  %v2532_v52 = vsel %vm1733_vm1, %v1342_v38, -inf  ;;  %4525 = vst.msk [vmem:[#allocation2 + $0x18] sm:$0xf] %vm4518_vm9, %v4468_v55 }
 0x28e   : > { %v8855_v56 = vpack.c.bf16 %v2503_v13, %v2503_v13  ;;  %v4138_v60 = vunpack.c.l.b16 %v8854_v14  ;;  %v2509_v26 = vrot.slane %v2508_v4, 1  ;;  %v2515_v12 = vmax.f32 %v2513_v41, %v2514_v25  ;;  %4600 = vrot.lane.b32.xlu0 %v10893_v49, %s9584_s9  ;;  %4723 = vrot.lane.b32.xlu1 %v10893_v49, %s9583_s8  ;;  %v9250_v23 = vpop.f32.mrf.mxu0 }
 0x28f   : > { %v2520_v47 = vmax.f32 %v2518_v57, %v2519_v3  ;;  %v2526_v1 = vrot.slane %v2525_v51, 4  ;;  %v2533_v9 = vrot.slane %v2532_v52, 4  ;;  %v2539_v5 = vsel %vm1733_vm1, %v1566_v50, -inf }
 0x290   : > { %v4139_v36 = vunpack.c.l.b16 %v8855_v56  ;;  %v4299_v54 = vsel %vm12891_vm5, %v4138_v60, %v4298_v58  ;;  %v2510_v53 = vmax.f32 %v2508_v4, %v2509_v26  ;;  %v2516_v19 = vrot.slane %v2515_v12, 1  ;;  %v10938_v58 = vpop.f32.mrf.mxu0 }
 0x291   : > { %v2521_v41 = vrot.slane %v2520_v47, 2  ;;  %v2527_v40 = vmax.f32 %v2525_v51, %v2526_v1  ;;  %v2534_v38 = vmax.f32 %v2532_v52, %v2533_v9  ;;  %v2540_v13 = vrot.slane %v2539_v5, 4 }
 0x292   : > { %v4300_v14 = vsel %vm12890_vm6, %v4139_v36, %v4299_v54  ;;  %v2517_v25 = vmax.f32 %v2515_v12, %v2516_v19  ;;  %v8856_v55 = vpack.c.bf16 %v2510_v53, %v2510_v53  ;;  %v1567_v20 = vcombine.high %v1343_v62, %v1343_v62  ;;  %4477 = vrot.lane.b32.xlu1 %v10893_v49, %s9585_s13  ;;  %v9251_v36 = vpop.f32.mrf.mxu0 }
 0x293   : > { %v2522_v57 = vmax.f32 %v2520_v47, %v2521_v41  ;;  %v2528_v3 = vrot.slane %v2527_v40, 2  ;;  %v2535_v50 = vrot.slane %v2534_v38, 2  ;;  %v2541_v56 = vmax.f32 %v2539_v5, %v2540_v13 }
 0x294   : > { %v8857_v4 = vpack.c.bf16 %v2517_v25, %v2517_v25  ;;  %v4140_v60 = vunpack.c.l.b16 %v8856_v55  ;;  %v2546_v51 = vsel %vm1733_vm1, %v1343_v62, -inf  ;;  %v2553_v52 = vsel %vm1733_vm1, %v1567_v20, -inf }
 0x295   : > { %v2523_v26 = vrot.slane %v2522_v57, 1  ;;  %v2529_v1 = vmax.f32 %v2527_v40, %v2528_v3  ;;  %v2536_v12 = vmax.f32 %v2534_v38, %v2535_v50  ;;  %v2542_v9 = vrot.slane %v2541_v56, 2  ;;  %v10948_v38 = vpop.f32.mrf.mxu0 }
 0x296   : > { %v4141_v54 = vunpack.c.l.b16 %v8857_v4  ;;  %v4301_v49 = vsel %vm12889_vm7, %v4140_v60, %v4300_v14  ;;  %v2547_v47 = vrot.slane %v2546_v51, 4  ;;  %v2554_v53 = vrot.slane %v2553_v52, 4  ;;  %v10961_v60 = vld [vmem:[%s12880_s6] ss:$0 sm:$0xff] }
 0x297   : > { %v2524_v19 = vmax.f32 %v2522_v57, %v2523_v26  ;;  %v2530_v5 = vrot.slane %v2529_v1, 1  ;;  %v2537_v23 = vrot.slane %v2536_v12, 1  ;;  %v2543_v41 = vmax.f32 %v2541_v56, %v2542_v9  ;;  %v10943_v13 = vpop.permute.xlu0 %5084  ;;  %v10945_v25 = vpop.permute.xlu1 %5207 }
 0x298   : > { %v4302_v20 = vsel %vm12888_vm8, %v4141_v54, %v4301_v49  ;;  %v2548_v62 = vmax.f32 %v2546_v51, %v2547_v47  ;;  %v2555_v40 = vmax.f32 %v2553_v52, %v2554_v53  ;;  %v1068_v51 = vadd.f32 %v10961_v60, %v10578_v27  ;;  %v9254_v52 = vpop.f32.mrf.mxu0  ;;  %5146 = vst.msk [vmem:[#allocation2 + $0x8] sm:$0xf] %vm5143_vm14, %v10943_v13 }
 0x299   : > { %v10950_v55 = vpack.c.b16 %v4302_v20, %v4302_v20  ;;  %v2531_v14 = vmax.f32 %v2529_v1, %v2530_v5  ;;  %v8858_v3 = vpack.c.bf16 %v2524_v19, %v2524_v19  ;;  %v2538_v50 = vmax.f32 %v2536_v12, %v2537_v23  ;;  %5270 = vst.msk [vmem:[#allocation2 + $0x4] sm:$0xf] %vm5268_vm15, %v10945_v25 }
 0x29a   : > { %v2544_v57 = vrot.slane %v2543_v41, 1  ;;  %v2549_v56 = vrot.slane %v2548_v62, 2  ;;  %v2556_v4 = vrot.slane %v2555_v40, 2  ;;  %v1073_v59 = vadd.f32 %v10961_v60, %v10612_v21  ;;  %v10975_v49 = vpop.f32.mrf.mxu0 }
 0x29b   : > { %4407 = vst.msk [vmem:[#allocation2 + $0x34] sm:$0xf] %vm1733_vm1, %v10950_v55  ;;  %v8859_v18 = vpack.c.bf16 %v2531_v14, %v2531_v14  ;;  %v4142_v10 = vunpack.c.l.b16 %v8858_v3  ;;  %v8860_v26 = vpack.c.bf16 %v2538_v50, %v2538_v50  ;;  %5217 = vrot.lane.b32.xlu0 %v10950_v55, %s9579_s27  ;;  %5094 = vrot.lane.b32.xlu1 %v10950_v55, %s9580_s28  ;;  %v4839_v1 = vpop.permute.xlu0 %4838  ;;  %v4962_v12 = vpop.permute.xlu1 %4961  ;;  %v1344_v54 = vmax.f32 %v1068_v51, 0.0 }
 0x29c   : > { %v2545_v9 = vmax.f32 %v2543_v41, %v2544_v57  ;;  %v2550_v27 = vmax.f32 %v2548_v62, %v2549_v56  ;;  %v2557_v36 = vmax.f32 %v2555_v40, %v2556_v4  ;;  %4898 = vst.msk [vmem:[#allocation2 + $0x10] sm:$0xf] %vm4893_vm12, %v4839_v1  ;;  %v1345_v53 = vmax.f32 %v1073_v59, 0.0  ;;  %v9255_v41 = vpop.f32.mrf.mxu0 }
 0x29d   : > { %5022 = vst.msk [vmem:[#allocation2 + $0xc] sm:$0xf] %vm5018_vm13, %v4962_v12  ;;  %v4143_v47 = vunpack.c.l.b16 %v8859_v18  ;;  %v4144_v21 = vunpack.c.l.b16 %v8860_v26  ;;  %v1076_v19 = vadd.f32 %v10961_v60, %v10627_v39  ;;  %v1568_v14 = vcombine.high %v1344_v54, %v1344_v54 }
 0x29e   : > { %v8861_v5 = vpack.c.bf16 %v2545_v9, %v2545_v9  ;;  %v2551_v23 = vrot.slane %v2550_v27, 1  ;;  %v2558_v20 = vrot.slane %v2557_v36, 1  ;;  %v2560_v40 = vsel %vm1733_vm1, %v1344_v54, -inf }
 0x29f   : > { %v4303_v62 = vsel %vm4198_vm2, %v4143_v47, %v4142_v10  ;;  %v1569_v3 = vcombine.high %v1345_v53, %v1345_v53  ;;  %v2574_v50 = vsel %vm1733_vm1, %v1345_v53, -inf  ;;  %4971 = vrot.lane.b32.xlu0 %v10950_v55, %s9581_s29  ;;  %4848 = vrot.lane.b32.xlu1 %v10950_v55, %s9582_s30  ;;  %v4593_v57 = vpop.permute.xlu0 %4592  ;;  %v4716_v39 = vpop.permute.xlu1 %4715  ;;  %v2561_v18 = vrot.slane %v2560_v40, 4 }
 0x2a0   : > { %v4145_v56 = vunpack.c.l.b16 %v8861_v5  ;;  %v4304_v4 = vsel %vm4200_vm3, %v4144_v21, %v4303_v62  ;;  %v2552_v51 = vmax.f32 %v2550_v27, %v2551_v23  ;;  %v2559_v52 = vmax.f32 %v2557_v36, %v2558_v20  ;;  %4650 = vst.msk [vmem:[#allocation2 + $0x18] sm:$0xf] %vm4643_vm10, %v4593_v57 }
 0x2a1   : > { %4774 = vst.msk [vmem:[#allocation2 + $0x14] sm:$0xf] %vm4768_vm11, %v4716_v39  ;;  %v2567_v10 = vsel %vm1733_vm1, %v1568_v14, -inf  ;;  %v2575_v26 = vrot.slane %v2574_v50, 4  ;;  %v2581_v59 = vsel %vm1733_vm1, %v1569_v3, -inf  ;;  %v2562_v47 = vmax.f32 %v2560_v40, %v2561_v18 }
 0x2a2   : > { %v4305_v1 = vsel %vm12892_vm4, %v4145_v56, %v4304_v4  ;;  %v8862_v12 = vpack.c.bf16 %v2552_v51, %v2552_v51  ;;  %v8863_v9 = vpack.c.bf16 %v2559_v52, %v2559_v52  ;;  %v2568_v54 = vrot.slane %v2567_v10, 4 }
 0x2a3   : > { %v2576_v53 = vmax.f32 %v2574_v50, %v2575_v26  ;;  %v2582_v21 = vrot.slane %v2581_v59, 4  ;;  %v1346_v27 = vmax.f32 %v1076_v19, 0.0  ;;  %4725 = vrot.lane.b32.xlu0 %v10950_v55, %s9583_s8  ;;  %4602 = vrot.lane.b32.xlu1 %v10950_v55, %s9584_s9  ;;  %v4470_v36 = vpop.permute.xlu1 %4469  ;;  %v1081_v14 = vadd.f32 %v10961_v60, %v10652_v31 }
 0x2a4   : > { %v4146_v5 = vunpack.c.l.b16 %v8862_v12  ;;  %v4147_v23 = vunpack.c.l.b16 %v8863_v9  ;;  %v2569_v20 = vmax.f32 %v2567_v10, %v2568_v54  ;;  %4526 = vst.msk [vmem:[#allocation2 + $0x1c] sm:$0xf] %vm4518_vm9, %v4470_v36  ;;  %v2563_v41 = vrot.slane %v2562_v47, 2 }
 0x2a5   : > { %v2577_v62 = vrot.slane %v2576_v53, 2  ;;  %v2583_v40 = vmax.f32 %v2581_v59, %v2582_v21  ;;  %v1570_v3 = vcombine.high %v1346_v27, %v1346_v27  ;;  %v2588_v57 = vsel %vm1733_vm1, %v1346_v27, -inf  ;;  %v11005_v59 = vpop.f32.mrf.mxu0 }
 0x2a6   : > { %v4306_v19 = vsel %vm12891_vm5, %v4146_v5, %v4305_v1  ;;  %v2570_v50 = vrot.slane %v2569_v20, 2  ;;  %v1347_v39 = vmax.f32 %v1081_v14, 0.0  ;;  %v2564_v4 = vmax.f32 %v2562_v47, %v2563_v41  ;;  %v11007_v1 = vpop.f32.mrf.mxu1 }
 0x2a7   : > { %v4307_v56 = vsel %vm12890_vm6, %v4147_v23, %v4306_v19  ;;  %v2578_v51 = vmax.f32 %v2576_v53, %v2577_v62  ;;  %v2584_v52 = vrot.slane %v2583_v40, 2  ;;  %4479 = vrot.lane.b32.xlu0 %v10950_v55, %s9585_s13  ;;  %v2589_v18 = vrot.slane %v2588_v57, 4  ;;  %v9258_v55 = vpop.f32.mrf.mxu0 }
 0x2a8   : > { %v2571_v31 = vmax.f32 %v2569_v20, %v2570_v50  ;;  %v2595_v10 = vsel %vm1733_vm1, %v1570_v3, -inf  ;;  %v1571_v26 = vcombine.high %v1347_v39, %v1347_v39  ;;  %v2565_v12 = vrot.slane %v2564_v4, 1  ;;  %v9298_v5 = vpop.f32.mrf.mxu1 }
 0x2a9   : > { %v2579_v9 = vrot.slane %v2578_v51, 1  ;;  %v2585_v54 = vmax.f32 %v2583_v40, %v2584_v52  ;;  %v2596_v21 = vrot.slane %v2595_v10, 4  ;;  %v2590_v47 = vmax.f32 %v2588_v57, %v2589_v18 }
 0x2aa   : > { %v2572_v27 = vrot.slane %v2571_v31, 1  ;;  %v2602_v53 = vsel %vm1733_vm1, %v1347_v39, -inf  ;;  %v2609_v36 = vsel %vm1733_vm1, %v1571_v26, -inf  ;;  %v2566_v23 = vmax.f32 %v2564_v4, %v2565_v12 }
 0x2ab   : > { %v2580_v20 = vmax.f32 %v2578_v51, %v2579_v9  ;;  %v2586_v14 = vrot.slane %v2585_v54, 1  ;;  %v2597_v41 = vmax.f32 %v2595_v10, %v2596_v21  ;;  %v2591_v3 = vrot.slane %v2590_v47, 2 }
 0x2ac   : > { %v2573_v62 = vmax.f32 %v2571_v31, %v2572_v27  ;;  %v2603_v19 = vrot.slane %v2602_v53, 4  ;;  %v2610_v50 = vrot.slane %v2609_v36, 4  ;;  %v8864_v32 = vpack.c.bf16 %v2566_v23, %v2566_v23  ;;  %v11013_v27 = vpop.f32.mrf.mxu0 }
 0x2ad   : > { %v2587_v63 = vmax.f32 %v2585_v54, %v2586_v14  ;;  %v8866_v40 = vpack.c.bf16 %v2580_v20, %v2580_v20  ;;  %v2598_v52 = vrot.slane %v2597_v41, 2  ;;  %v2592_v57 = vmax.f32 %v2590_v47, %v2591_v3  ;;  %v11016_v47 = vpop.f32.mrf.mxu1 }
 0x2ae   : > { %v8865_v15 = vpack.c.bf16 %v2573_v62, %v2573_v62  ;;  %v2604_v18 = vmax.f32 %v2602_v53, %v2603_v19  ;;  %v2611_v39 = vmax.f32 %v2609_v36, %v2610_v50  ;;  %v11011_v37 = vpop.permute.xlu0 %5209  ;;  %v5087_v26 = vpop.permute.xlu1 %5086  ;;  %v4148_v55 = vunpack.c.l.b16 %v8864_v32 }
 0x2af   : > { %v8867_v4 = vpack.c.bf16 %v2587_v63, %v2587_v63  ;;  %v4150_v51 = vunpack.c.l.b16 %v8866_v40  ;;  %v2599_v12 = vmax.f32 %v2597_v41, %v2598_v52  ;;  %v2593_v31 = vrot.slane %v2592_v57, 1  ;;  %5147 = vst.msk [vmem:[#allocation2 + $0xc] sm:$0xf] %vm5143_vm14, %v5087_v26  ;;  %v9259_v48 = vpop.f32.mrf.mxu0  ;;  %v9299_v30 = vpop.f32.mrf.mxu1 }
 0x2b0   : > { %v4149_v10 = vunpack.c.l.b16 %v8865_v15  ;;  %v2605_v9 = vrot.slane %v2604_v18, 2  ;;  %v2612_v21 = vrot.slane %v2611_v39, 2  ;;  %v4308_v54 = vsel %vm12889_vm7, %v4148_v55, %v4307_v56  ;;  %5271 = vst.msk [vmem:[#allocation2 + $0x8] sm:$0xf] %vm5268_vm15, %v11011_v37 }
 0x2b1   : > { %v4151_v5 = vunpack.c.l.b16 %v8867_v4  ;;  %v2600_v23 = vrot.slane %v2599_v12, 1  ;;  %v2594_v36 = vmax.f32 %v2592_v57, %v2593_v31  ;;  %v1084_v62 = vadd.f32 %v10961_v60, %v10671_v28 }
 0x2b2   : > { %v4309_v53 = vsel %vm12888_vm8, %v4149_v10, %v4308_v54  ;;  %v2606_v32 = vmax.f32 %v2604_v18, %v2605_v9  ;;  %v2613_v63 = vmax.f32 %v2611_v39, %v2612_v21  ;;  %v4964_v15 = vpop.permute.xlu0 %4963  ;;  %v4841_v56 = vpop.permute.xlu1 %4840  ;;  %v1089_v50 = vadd.f32 %v10961_v60, %v10696_v42 }
 0x2b3   : > { %v11026_v20 = vpack.c.b16 %v4309_v53, %v4309_v53  ;;  %v4310_v14 = vsel %vm4198_vm2, %v4151_v5, %v4150_v51  ;;  %v2601_v41 = vmax.f32 %v2599_v12, %v2600_v23  ;;  %5023 = vst.msk [vmem:[#allocation2 + $0x10] sm:$0xf] %vm5018_vm13, %v4964_v15  ;;  %v8868_v3 = vpack.c.bf16 %v2594_v36, %v2594_v36  ;;  %v11056_v36 = vpop.f32.mrf.mxu0 }
 0x2b4   : > { %4899 = vst.msk [vmem:[#allocation2 + $0x14] sm:$0xf] %vm4893_vm12, %v4841_v56  ;;  %v2607_v13 = vrot.slane %v2606_v32, 1  ;;  %v2614_v19 = vrot.slane %v2613_v63, 1  ;;  %v1348_v52 = vmax.f32 %v1084_v62, 0.0  ;;  %v1092_v28 = vadd.f32 %v10961_v60, %v10716_v2 }
 0x2b5   : > { %4408 = vst.msk [vmem:[#allocation2 + $0x38] sm:$0xf] %vm1733_vm1, %v11026_v20  ;;  %v8869_v40 = vpack.c.bf16 %v2601_v41, %v2601_v41  ;;  %5096 = vrot.lane.b32.xlu0 %v11026_v20, %s9580_s28  ;;  %5219 = vrot.lane.b32.xlu1 %v11026_v20, %s9579_s27  ;;  %v1097_v57 = vadd.f32 %v10961_v60, %v10734_v29  ;;  %v4152_v18 = vunpack.c.l.b16 %v8868_v3  ;;  %v1349_v26 = vmax.f32 %v1089_v50, 0.0  ;;  %v9262_v3 = vpop.f32.mrf.mxu0 }
 0x2b6   : > { %v2608_v39 = vmax.f32 %v2606_v32, %v2607_v13  ;;  %v2615_v42 = vmax.f32 %v2613_v63, %v2614_v19  ;;  %v4718_v55 = vpop.permute.xlu0 %4717  ;;  %v4595_v4 = vpop.permute.xlu1 %4594  ;;  %v1572_v12 = vcombine.high %v1348_v52, %v1348_v52  ;;  %v2616_v10 = vsel %vm1733_vm1, %v1348_v52, -inf }
 0x2b7   : > { %v4153_v51 = vunpack.c.l.b16 %v8869_v40  ;;  %v1350_v2 = vmax.f32 %v1092_v28, 0.0  ;;  %4775 = vst.msk [vmem:[#allocation2 + $0x18] sm:$0xf] %vm4768_vm11, %v4718_v55  ;;  %v4311_v31 = vsel %vm4200_vm3, %v4152_v18, %v4310_v14  ;;  %v2617_v29 = vrot.slane %v2616_v10, 4 }
 0x2b8   : > { %4651 = vst.msk [vmem:[#allocation2 + $0x1c] sm:$0xf] %vm4643_vm10, %v4595_v4  ;;  %v8870_v9 = vpack.c.bf16 %v2608_v39, %v2608_v39  ;;  %v8871_v21 = vpack.c.bf16 %v2615_v42, %v2615_v42  ;;  %v2623_v5 = vsel %vm1733_vm1, %v1572_v12, -inf  ;;  %v1573_v23 = vcombine.high %v1349_v26, %v1349_v26 }
 0x2b9   : > { %v4312_v54 = vsel %vm12892_vm4, %v4153_v51, %v4311_v31  ;;  %v2630_v53 = vsel %vm1733_vm1, %v1349_v26, -inf  ;;  %4850 = vrot.lane.b32.xlu0 %v11026_v20, %s9582_s30  ;;  %4973 = vrot.lane.b32.xlu1 %v11026_v20, %s9581_s29  ;;  %v2618_v15 = vmax.f32 %v2616_v10, %v2617_v29  ;;  %v2624_v56 = vrot.slane %v2623_v5, 4  ;;  %v11074_v29 = vpop.f32.mrf.mxu1 }
 0x2ba   : > { %v4154_v32 = vunpack.c.l.b16 %v8870_v9  ;;  %v4155_v63 = vunpack.c.l.b16 %v8871_v21  ;;  %v4472_v14 = vpop.permute.xlu0 %4471  ;;  %v2631_v41 = vrot.slane %v2630_v53, 4  ;;  %v2637_v62 = vsel %vm1733_vm1, %v1573_v23, -inf }
 0x2bb   : > { %v1574_v48 = vcombine.high %v1350_v2, %v1350_v2  ;;  %v2644_v30 = vsel %vm1733_vm1, %v1350_v2, -inf  ;;  %4527 = vst.msk [vmem:[#allocation2 + $0x20] sm:$0xf] %vm4518_vm9, %v4472_v14  ;;  %v2619_v19 = vrot.slane %v2618_v15, 2  ;;  %v2625_v50 = vmax.f32 %v2623_v5, %v2624_v56  ;;  %v9302_v25 = vpop.f32.mrf.mxu1 }
 0x2bc   : > { %v4313_v13 = vsel %vm12891_vm5, %v4154_v32, %v4312_v54  ;;  %v2638_v40 = vrot.slane %v2637_v62, 4  ;;  %v2632_v28 = vmax.f32 %v2630_v53, %v2631_v41  ;;  %v2645_v18 = vrot.slane %v2644_v30, 4  ;;  %v11079_v53 = vpop.f32.mrf.mxu0 }
 0x2bd   : > { %v4314_v52 = vsel %vm12890_vm6, %v4155_v63, %v4313_v13  ;;  %v2651_v39 = vsel %vm1733_vm1, %v1574_v48, -inf  ;;  %4604 = vrot.lane.b32.xlu0 %v11026_v20, %s9584_s9  ;;  %4727 = vrot.lane.b32.xlu1 %v11026_v20, %s9583_s8  ;;  %v2620_v42 = vmax.f32 %v2618_v15, %v2619_v19  ;;  %v2626_v26 = vrot.slane %v2625_v50, 2 }
 0x2be   : > { %v2639_v55 = vmax.f32 %v2637_v62, %v2638_v40  ;;  %v2652_v4 = vrot.slane %v2651_v39, 4  ;;  %v2633_v51 = vrot.slane %v2632_v28, 2  ;;  %v2646_v12 = vmax.f32 %v2644_v30, %v2645_v18  ;;  %v9263_v62 = vpop.f32.mrf.mxu0 }
 0x2bf   : > { %v1351_v10 = vmax.f32 %v1097_v57, 0.0  ;;  %v2621_v2 = vrot.slane %v2620_v42, 1  ;;  %v2627_v31 = vmax.f32 %v2625_v50, %v2626_v26  ;;  %vm6224_vm0 = vcmask 1041408  }
 0x2c0   : > { %v2640_v9 = vrot.slane %v2639_v55, 2  ;;  %v2653_v21 = vmax.f32 %v2651_v39, %v2652_v4  ;;  %v2634_v54 = vmax.f32 %v2632_v28, %v2633_v51  ;;  %v2647_v5 = vrot.slane %v2646_v12, 2 }
 0x2c1   : > { %v1575_v23 = vcombine.high %v1351_v10, %v1351_v10  ;;  %v2658_v57 = vsel %vm1733_vm1, %v1351_v10, -inf  ;;  %4481 = vrot.lane.b32.xlu1 %v11026_v20, %s9585_s13  ;;  %v2622_v32 = vmax.f32 %v2620_v42, %v2621_v2  ;;  %v2628_v17 = vrot.slane %v2627_v31, 1 }
 0x2c2   : > { %v2641_v63 = vmax.f32 %v2639_v55, %v2640_v9  ;;  %v2654_v15 = vrot.slane %v2653_v21, 2  ;;  %v2635_v56 = vrot.slane %v2634_v54, 1  ;;  %v2648_v14 = vmax.f32 %v2646_v12, %v2647_v5 }
 0x2c3   : > { %v2659_v37 = vrot.slane %v2658_v57, 4  ;;  %v2665_v41 = vsel %vm1733_vm1, %v1575_v23, -inf  ;;  %v2629_v48 = vmax.f32 %v2627_v31, %v2628_v17  ;;  %v8872_v30 = vpack.c.bf16 %v2622_v32, %v2622_v32 }
 0x2c4   : > { %v2642_v3 = vrot.slane %v2641_v63, 1  ;;  %v2655_v13 = vmax.f32 %v2653_v21, %v2654_v15  ;;  %v2636_v19 = vmax.f32 %v2634_v54, %v2635_v56  ;;  %v2649_v50 = vrot.slane %v2648_v14, 1 }
 0x2c5   : > { %v2660_v20 = vmax.f32 %v2658_v57, %v2659_v37  ;;  %v2666_v40 = vrot.slane %v2665_v41, 4  ;;  %v8873_v28 = vpack.c.bf16 %v2629_v48, %v2629_v48  ;;  %v4156_v18 = vunpack.c.l.b16 %v8872_v30 }
 0x2c6   : > { %v2643_v39 = vmax.f32 %v2641_v63, %v2642_v3  ;;  %v2656_v42 = vrot.slane %v2655_v13, 1  ;;  %v8874_v26 = vpack.c.bf16 %v2636_v19, %v2636_v19  ;;  %v2650_v55 = vmax.f32 %v2648_v14, %v2649_v50 }
 0x2c7   : > { %v2661_v4 = vrot.slane %v2660_v20, 2  ;;  %v2667_v51 = vmax.f32 %v2665_v41, %v2666_v40  ;;  %v4157_v12 = vunpack.c.l.b16 %v8873_v28  ;;  %v4315_v10 = vsel %vm12889_vm7, %v4156_v18, %v4314_v52  ;;  %v11106_v18 = vpop.f32.mrf.mxu1 }
 0x2c8   : > { %v8875_v2 = vpack.c.bf16 %v2643_v39, %v2643_v39  ;;  %v2657_v31 = vmax.f32 %v2655_v13, %v2656_v42  ;;  %v4158_v9 = vunpack.c.l.b16 %v8874_v26  ;;  %v8876_v5 = vpack.c.bf16 %v2650_v55, %v2650_v55 }
 0x2c9   : > { %v2662_v21 = vmax.f32 %v2660_v20, %v2661_v4  ;;  %v2668_v54 = vrot.slane %v2667_v51, 2  ;;  %v4316_v32 = vsel %vm12888_vm8, %v4157_v12, %v4315_v10  ;;  %v1100_v15 = vadd.f32 %v10961_v60, %v10747_v0  ;;  %v9303_v10 = vpop.f32.mrf.mxu1 }
 0x2ca   : > { %v5089_v23 = vpop.permute.xlu0 %5088  ;;  %v5212_v57 = vpop.permute.xlu1 %5211  ;;  %v4159_v17 = vunpack.c.l.b16 %v8875_v2  ;;  %v8877_v63 = vpack.c.bf16 %v2657_v31, %v2657_v31  ;;  %v11088_v52 = vpack.c.b16 %v4316_v32, %v4316_v32  ;;  %v4160_v25 = vunpack.c.l.b16 %v8876_v5 }
 0x2cb   : > { %5148 = vst.msk [vmem:[#allocation2 + $0x10] sm:$0xf] %vm5143_vm14, %v5089_v23  ;;  %v2663_v56 = vrot.slane %v2662_v21, 1  ;;  %v2669_v14 = vmax.f32 %v2667_v51, %v2668_v54  ;;  %v1352_v62 = vmax.f32 %v1100_v15, 0.0  ;;  %v1105_v48 = vadd.f32 %v10961_v60, %v10776_v45 }
 0x2cc   : > { %5272 = vst.msk [vmem:[#allocation2 + $0xc] sm:$0xf] %vm5268_vm15, %v5212_v57  ;;  %v4317_v37 = vsel %vm4198_vm2, %v4159_v17, %v4158_v9  ;;  %v4161_v41 = vunpack.c.l.b16 %v8877_v63  ;;  %v1108_v13 = vadd.f32 %v10961_v60, %v10787_v11  ;;  %5221 = vrot.lane.b32.xlu0 %v11088_v52, %s9579_s27  ;;  %5098 = vrot.lane.b32.xlu1 %v11088_v52, %s9580_s28 }
 0x2cd   : > { %4409 = vst.msk [vmem:[#allocation2 + $0x3c] sm:$0xf] %vm1733_vm1, %v11088_v52  ;;  %v4318_v0 = vsel %vm4200_vm3, %v4160_v25, %v4317_v37  ;;  %v2664_v30 = vmax.f32 %v2662_v21, %v2663_v56  ;;  %v2670_v3 = vrot.slane %v2669_v14, 1  ;;  %v1576_v20 = vcombine.high %v1352_v62, %v1352_v62 }
 0x2ce   : > { %v4843_v19 = vpop.permute.xlu0 %4842  ;;  %v4966_v50 = vpop.permute.xlu1 %4965  ;;  %v4319_v45 = vsel %vm12892_vm4, %v4161_v41, %v4318_v0  ;;  %v2672_v40 = vsel %vm1733_vm1, %v1352_v62, -inf  ;;  %v1353_v28 = vmax.f32 %v1105_v48, 0.0  ;;  %v1354_v26 = vmax.f32 %v1108_v13, 0.0 }
 0x2cf   : > { %4900 = vst.msk [vmem:[#allocation2 + $0x18] sm:$0xf] %vm4893_vm12, %v4843_v19  ;;  %v2671_v11 = vmax.f32 %v2669_v14, %v2670_v3  ;;  %v8878_v39 = vpack.c.bf16 %v2664_v30, %v2664_v30  ;;  %v2673_v42 = vrot.slane %v2672_v40, 4  ;;  %v2679_v55 = vsel %vm1733_vm1, %v1576_v20, -inf }
 0x2d0   : > { %5024 = vst.msk [vmem:[#allocation2 + $0x14] sm:$0xf] %vm5018_vm13, %v4966_v50  ;;  %v1577_v4 = vcombine.high %v1353_v28, %v1353_v28  ;;  %v2686_v51 = vsel %vm1733_vm1, %v1353_v28, -inf  ;;  %v1113_v12 = vadd.f32 %v10961_v60, %v10812_v8  ;;  %v2680_v5 = vrot.slane %v2679_v55, 4  ;;  %4975 = vrot.lane.b32.xlu0 %v11088_v52, %s9581_s29  ;;  %4852 = vrot.lane.b32.xlu1 %v11088_v52, %s9582_s30  ;;  %v11120_v8 = vpop.f32.mrf.mxu1 }
 0x2d1   : > { %v8879_v2 = vpack.c.bf16 %v2671_v11, %v2671_v11  ;;  %v4162_v31 = vunpack.c.l.b16 %v8878_v39  ;;  %v2674_v9 = vmax.f32 %v2672_v40, %v2673_v42  ;;  %v2687_v23 = vrot.slane %v2686_v51, 4 }
 0x2d2   : > { %v4597_v21 = vpop.permute.xlu0 %4596  ;;  %v4720_v54 = vpop.permute.xlu1 %4719  ;;  %v2693_v57 = vsel %vm1733_vm1, %v1577_v4, -inf  ;;  %v1578_v32 = vcombine.high %v1354_v26, %v1354_v26  ;;  %v2700_v17 = vsel %vm1733_vm1, %v1354_v26, -inf  ;;  %v2681_v56 = vmax.f32 %v2679_v55, %v2680_v5 }
 0x2d3   : > { %4652 = vst.msk [vmem:[#allocation2 + $0x20] sm:$0xf] %vm4643_vm10, %v4597_v21  ;;  %v4163_v63 = vunpack.c.l.b16 %v8879_v2  ;;  %v4320_v15 = vsel %vm12891_vm5, %v4162_v31, %v4319_v45  ;;  %v2675_v25 = vrot.slane %v2674_v9, 2  ;;  %v2688_v14 = vmax.f32 %v2686_v51, %v2687_v23  ;;  %v9306_v48 = vpop.f32.mrf.mxu1 }
 0x2d4   : > { %4776 = vst.msk [vmem:[#allocation2 + $0x1c] sm:$0xf] %vm4768_vm11, %v4720_v54  ;;  %v2694_v37 = vrot.slane %v2693_v57, 4  ;;  %v2701_v41 = vrot.slane %v2700_v17, 4  ;;  %v2707_v62 = vsel %vm1733_vm1, %v1578_v32, -inf  ;;  %v2682_v3 = vrot.slane %v2681_v56, 2  ;;  %4729 = vrot.lane.b32.xlu0 %v11088_v52, %s9583_s8  ;;  %4606 = vrot.lane.b32.xlu1 %v11088_v52, %s9584_s9 }
 0x2d5   : > { %v4321_v0 = vsel %vm12890_vm6, %v4163_v63, %v4320_v15  ;;  %v2676_v30 = vmax.f32 %v2674_v9, %v2675_v25  ;;  %v2708_v13 = vrot.slane %v2707_v62, 4  ;;  %v2689_v50 = vrot.slane %v2688_v14, 2  ;;  %v11132_v26 = vpop.f32.mrf.mxu1 }
 0x2d6   : > { %v4474_v19 = vpop.permute.xlu1 %4473  ;;  %v2695_v45 = vmax.f32 %v2693_v57, %v2694_v37  ;;  %v2702_v20 = vmax.f32 %v2700_v17, %v2701_v41  ;;  %v1355_v40 = vmax.f32 %v1113_v12, 0.0  ;;  %v2683_v11 = vmax.f32 %v2681_v56, %v2682_v3 }
 0x2d7   : > { %4528 = vst.msk [vmem:[#allocation2 + $0x24] sm:$0xf] %vm4518_vm9, %v4474_v19  ;;  %v2677_v28 = vrot.slane %v2676_v30, 1  ;;  %v2709_v39 = vmax.f32 %v2707_v62, %v2708_v13  ;;  %v1116_v42 = vadd.f32 %v10961_v60, %v10833_v33  ;;  %v2690_v55 = vmax.f32 %v2688_v14, %v2689_v50  ;;  %v9307_v12 = vpop.f32.mrf.mxu1 }
 0x2d8   : > { %v2696_v4 = vrot.slane %v2695_v45, 2  ;;  %v2703_v51 = vrot.slane %v2702_v20, 2  ;;  %v1579_v10 = vcombine.high %v1355_v40, %v1355_v40  ;;  %v2684_v31 = vrot.slane %v2683_v11, 1  ;;  %4483 = vrot.lane.b32.xlu0 %v11088_v52, %s9585_s13 }
 0x2d9   : > { %v2678_v2 = vmax.f32 %v2676_v30, %v2677_v28  ;;  %v2710_v9 = vrot.slane %v2709_v39, 2  ;;  %v2714_v5 = vsel %vm1733_vm1, %v1355_v40, -inf  ;;  %v2691_v21 = vrot.slane %v2690_v55, 1  ;;  %v11138_v15 = vpop.f32.mrf.mxu1 }
 0x2da   : > { %v2697_v54 = vmax.f32 %v2695_v45, %v2696_v4  ;;  %v2704_v23 = vmax.f32 %v2702_v20, %v2703_v51  ;;  %v2715_v57 = vrot.slane %v2714_v5, 4  ;;  %v2685_v33 = vmax.f32 %v2683_v11, %v2684_v31 }
 0x2db   : > { %v8880_v32 = vpack.c.bf16 %v2678_v2, %v2678_v2  ;;  %v2711_v17 = vmax.f32 %v2709_v39, %v2710_v9  ;;  %v2721_v63 = vsel %vm1733_vm1, %v1579_v10, -inf  ;;  %v2692_v25 = vmax.f32 %v2690_v55, %v2691_v21  ;;  %v9310_v30 = vpop.f32.mrf.mxu1 }
 0x2dc   : > { %v2698_v56 = vrot.slane %v2697_v54, 1  ;;  %v2705_v14 = vrot.slane %v2704_v23, 1  ;;  %v2716_v37 = vmax.f32 %v2714_v5, %v2715_v57  ;;  %v8881_v41 = vpack.c.bf16 %v2685_v33, %v2685_v33 }
 0x2dd   : > { %v4164_v62 = vunpack.c.l.b16 %v8880_v32  ;;  %v2712_v48 = vrot.slane %v2711_v17, 1  ;;  %v2722_v52 = vrot.slane %v2721_v63, 4  ;;  %v8882_v13 = vpack.c.bf16 %v2692_v25, %v2692_v25  ;;  %v11143_v2 = vpop.f32.mrf.mxu1  ;;  %v9461_v25 = vld [vmem:[#allocation2] sm:$0xff]  }
 0x2de   : > { %v2699_v3 = vmax.f32 %v2697_v54, %v2698_v56  ;;  %v2706_v19 = vmax.f32 %v2704_v23, %v2705_v14  ;;  %v2717_v50 = vrot.slane %v2716_v37, 2  ;;  %v4165_v45 = vunpack.c.l.b16 %v8881_v41 }
 0x2df   : > { %v4322_v20 = vsel %vm12889_vm7, %v4164_v62, %v4321_v0  ;;  %v2713_v40 = vmax.f32 %v2711_v17, %v2712_v48  ;;  %v2723_v28 = vmax.f32 %v2721_v63, %v2722_v52  ;;  %v4166_v4 = vunpack.c.l.b16 %v8882_v13  ;;  %v9311_v57 = vpop.f32.mrf.mxu1 }
 0x2e0   : > { %v5214_v11 = vpop.permute.xlu0 %5213  ;;  %v5091_v39 = vpop.permute.xlu1 %5090  ;;  %v8883_v55 = vpack.c.bf16 %v2699_v3, %v2699_v3  ;;  %v8884_v51 = vpack.c.bf16 %v2706_v19, %v2706_v19  ;;  %v2718_v10 = vmax.f32 %v2716_v37, %v2717_v50  ;;  %v4323_v31 = vsel %vm12888_vm8, %v4165_v45, %v4322_v20 }
 0x2e1   : > { %5273 = vst.msk [vmem:[#allocation2 + $0x10] sm:$0xf] %vm5268_vm15, %v5214_v11  ;;  %v8885_v9 = vpack.c.bf16 %v2713_v40, %v2713_v40  ;;  %v2724_v5 = vrot.slane %v2723_v28, 2  ;;  %v1356_v12 = vmax.f32 %v1116_v42, 0.0  ;;  %v11146_v0 = vpack.c.b16 %v4323_v31, %v4323_v31  ;;  %v11164_v45 = vpop.f32.mrf.mxu1 }
 0x2e2   : > { %5149 = vst.msk [vmem:[#allocation2 + $0x14] sm:$0xf] %vm5143_vm14, %v5091_v39  ;;  %v4167_v21 = vunpack.c.l.b16 %v8883_v55  ;;  %v4168_v54 = vunpack.c.l.b16 %v8884_v51  ;;  %v2719_v23 = vrot.slane %v2718_v10, 1  ;;  %v1121_v62 = vadd.f32 %v10961_v60, %v10860_v61 }
 0x2e3   : > { %v4169_v33 = vunpack.c.l.b16 %v8885_v9  ;;  %v2725_v32 = vmax.f32 %v2723_v28, %v2724_v5  ;;  %v1580_v17 = vcombine.high %v1356_v12, %v1356_v12  ;;  %v2728_v63 = vsel %vm1733_vm1, %v1356_v12, -inf  ;;  %4410 = vst.msk [vmem:[#allocation2 + $0x40] sm:$0xf] %vm1733_vm1, %v11146_v0  ;;  %5100 = vrot.lane.b32.xlu0 %v11146_v0, %s9580_s28  ;;  %5223 = vrot.lane.b32.xlu1 %v11146_v0, %s9579_s27 }
 0x2e4   : > { %v4968_v56 = vpop.permute.xlu0 %4967  ;;  %v4845_v14 = vpop.permute.xlu1 %4844  ;;  %v4324_v37 = vsel %vm4198_vm2, %v4167_v21, %v4166_v4  ;;  %v2720_v42 = vmax.f32 %v2718_v10, %v2719_v23  ;;  %v2729_v41 = vrot.slane %v2728_v63, 4  ;;  %v12893_v50 = vmov 0  }
 0x2e5   : > { %5025 = vst.msk [vmem:[#allocation2 + $0x18] sm:$0xf] %vm5018_vm13, %v4968_v56  ;;  %v4325_v48 = vsel %vm4200_vm3, %v4168_v54, %v4324_v37  ;;  %v2726_v52 = vrot.slane %v2725_v32, 1  ;;  %v2735_v30 = vsel %vm1733_vm1, %v1580_v17, -inf  ;;  %5503 = vmatprep.mubr.bf16.mxu1 %v12893_v50  ;;  %v1357_v40 = vmax.f32 %v1121_v62, 0.0  ;;  %v9462_v17 = vld [vmem:[#allocation2 + $0x8] sm:$0xff]  }
 0x2e6   : > { %4901 = vst.msk [vmem:[#allocation2 + $0x1c] sm:$0xf] %vm4893_vm12, %v4845_v14  ;;  %v4326_v3 = vsel %vm12892_vm4, %v4169_v33, %v4325_v48  ;;  %v8886_v13 = vpack.c.bf16 %v2720_v42, %v2720_v42  ;;  %v2730_v19 = vmax.f32 %v2728_v63, %v2729_v41  ;;  %v2736_v61 = vrot.slane %v2735_v30, 4  ;;  %5504 = vmatmul.mubr.bf16.vlgmr.msra.gmra.mxu1 %v9461_v25 }
 0x2e7   : > { %v2727_v20 = vmax.f32 %v2725_v32, %v2726_v52  ;;  %v1124_v28 = vadd.f32 %v10961_v60, %v10881_v43  ;;  %v1129_v11 = vadd.f32 %v10961_v60, %v10890_v22  ;;  %4854 = vrot.lane.b32.xlu0 %v11146_v0, %s9582_s30  ;;  %4977 = vrot.lane.b32.xlu1 %v11146_v0, %s9581_s29  ;;  %v9314_v43 = vpop.f32.mrf.mxu1  ;;  %v2742_v5 = vsel %vm1733_vm1, %v1357_v40, -inf }
 0x2e8   : > { %v4722_v39 = vpop.permute.xlu0 %4721  ;;  %v4599_v55 = vpop.permute.xlu1 %4598  ;;  %v4170_v4 = vunpack.c.l.b16 %v8886_v13  ;;  %v2731_v51 = vrot.slane %v2730_v19, 2  ;;  %v2737_v10 = vmax.f32 %v2735_v30, %v2736_v61  ;;  %v11176_v31 = vadd.f32 %v10961_v60, %v10899_v6  ;;  %5513 = vmatprep.mubr.bf16.mxu1 %v12893_v50 }
 0x2e9   : > { %4777 = vst.msk [vmem:[#allocation2 + $0x20] sm:$0xf] %vm4768_vm11, %v4722_v39  ;;  %v8887_v22 = vpack.c.bf16 %v2727_v20, %v2727_v20  ;;  %v1581_v9 = vcombine.high %v1357_v40, %v1357_v40  ;;  %v1358_v12 = vmax.f32 %v1124_v28, 0.0  ;;  %v2743_v57 = vrot.slane %v2742_v5, 4  ;;  %v11185_v25 = vpop.f32.mrf.mxu1 }
 0x2ea   : > { %4653 = vst.msk [vmem:[#allocation2 + $0x24] sm:$0xf] %vm4643_vm10, %v4599_v55  ;;  %v4327_v21 = vsel %vm12891_vm5, %v4170_v4, %v4326_v3  ;;  %v2732_v54 = vmax.f32 %v2730_v19, %v2731_v51  ;;  %v2738_v23 = vrot.slane %v2737_v10, 2  ;;  %v1359_v52 = vmax.f32 %v1129_v11, 0.0 }
 0x2eb   : > { %v4171_v33 = vunpack.c.l.b16 %v8887_v22  ;;  %v2749_v6 = vsel %vm1733_vm1, %v1581_v9, -inf  ;;  %v1582_v60 = vcombine.high %v1358_v12, %v1358_v12  ;;  %v2756_v32 = vsel %vm1733_vm1, %v1358_v12, -inf  ;;  %4608 = vrot.lane.b32.xlu0 %v11146_v0, %s9584_s9  ;;  %4731 = vrot.lane.b32.xlu1 %v11146_v0, %s9583_s8  ;;  %v9315_v30 = vpop.f32.mrf.mxu1 }
 0x2ec   : > { %v4476_v63 = vpop.permute.xlu0 %4475  ;;  %v2733_v56 = vrot.slane %v2732_v54, 1  ;;  %v2739_v14 = vmax.f32 %v2737_v10, %v2738_v23  ;;  %v2744_v37 = vmax.f32 %v2742_v5, %v2743_v57  ;;  %v2750_v42 = vrot.slane %v2749_v6, 4 }
 0x2ed   : > { %4529 = vst.msk [vmem:[#allocation2 + $0x28] sm:$0xf] %vm4518_vm9, %v4476_v63  ;;  %v4328_v41 = vsel %vm12890_vm6, %v4171_v33, %v4327_v21  ;;  %v2757_v62 = vrot.slane %v2756_v32, 4  ;;  %v2763_v48 = vsel %vm1733_vm1, %v1582_v60, -inf  ;;  %v1583_v28 = vcombine.high %v1359_v52, %v1359_v52  ;;  %v11200_v63 = vpop.f32.mrf.mxu1 }
 0x2ee   : > { %v2734_v3 = vmax.f32 %v2732_v54, %v2733_v56  ;;  %v2740_v13 = vrot.slane %v2739_v14, 1  ;;  %v2745_v19 = vrot.slane %v2744_v37, 2  ;;  %v2751_v61 = vmax.f32 %v2749_v6, %v2750_v42  ;;  %5514 = vmatmul.mubr.bf16.gmra.mxu1 %v9462_v17 }
 0x2ef   : > { %v2758_v20 = vmax.f32 %v2756_v32, %v2757_v62  ;;  %v2764_v40 = vrot.slane %v2763_v48, 4  ;;  %v2770_v39 = vsel %vm1733_vm1, %v1359_v52, -inf  ;;  %4485 = vrot.lane.b32.xlu1 %v11146_v0, %s9585_s13  ;;  %5523 = vmatprep.mubr.bf16.mxu1 %v12893_v50  ;;  %v2777_v9 = vsel %vm1733_vm1, %v1583_v28, -inf }
 0x2f0   : > { %v2741_v55 = vmax.f32 %v2739_v14, %v2740_v13  ;;  %v8888_v4 = vpack.c.bf16 %v2734_v3, %v2734_v3  ;;  %v2746_v51 = vmax.f32 %v2744_v37, %v2745_v19  ;;  %v2752_v10 = vrot.slane %v2751_v61, 2  ;;  %v9318_v3 = vpop.f32.mrf.mxu1 }
 0x2f1   : > { %v2759_v11 = vrot.slane %v2758_v20, 2  ;;  %v2765_v43 = vmax.f32 %v2763_v48, %v2764_v40  ;;  %v2771_v22 = vrot.slane %v2770_v39, 4  ;;  %v2778_v6 = vrot.slane %v2777_v9, 4 }
 0x2f2   : > { %v8889_v5 = vpack.c.bf16 %v2741_v55, %v2741_v55  ;;  %v4172_v12 = vunpack.c.l.b16 %v8888_v4  ;;  %v2747_v21 = vrot.slane %v2746_v51, 1  ;;  %v2753_v54 = vmax.f32 %v2751_v61, %v2752_v10 }
 0x2f3   : > { %v2760_v23 = vmax.f32 %v2758_v20, %v2759_v11  ;;  %v2766_v57 = vrot.slane %v2765_v43, 2  ;;  %v2772_v33 = vmax.f32 %v2770_v39, %v2771_v22  ;;  %v2779_v42 = vmax.f32 %v2777_v9, %v2778_v6 }
 0x2f4   : > { %v4173_v60 = vunpack.c.l.b16 %v8889_v5  ;;  %v4329_v32 = vsel %vm12889_vm7, %v4172_v12, %v4328_v41  ;;  %v2748_v17 = vmax.f32 %v2746_v51, %v2747_v21  ;;  %v2754_v0 = vrot.slane %v2753_v54, 1 }
 0x2f5   : > { %v2761_v56 = vrot.slane %v2760_v23, 1  ;;  %v2767_v14 = vmax.f32 %v2765_v43, %v2766_v57  ;;  %v2773_v37 = vrot.slane %v2772_v33, 2  ;;  %v1360_v30 = vmax.f32 %v11176_v31, 0.0  ;;  %v11215_v43 = vpop.f32.mrf.mxu1 }
 0x2f6   : > { %v4330_v62 = vsel %vm12888_vm8, %v4173_v60, %v4329_v32  ;;  %v2755_v48 = vmax.f32 %v2753_v54, %v2754_v0  ;;  %v8890_v52 = vpack.c.bf16 %v2748_v17, %v2748_v17  ;;  %v2780_v28 = vrot.slane %v2779_v42, 2  ;;  %v11222_v17 = vld [vmem:[%s12880_s6] ss:$0 sm:$0xff] }
 0x2f7   : > { %v11204_v13 = vpack.c.b16 %v4330_v62, %v4330_v62  ;;  %v2762_v19 = vmax.f32 %v2760_v23, %v2761_v56  ;;  %v2768_v61 = vrot.slane %v2767_v14, 1  ;;  %v2774_v41 = vmax.f32 %v2772_v33, %v2773_v37  ;;  %v9319_v33 = vpop.f32.mrf.mxu1 }
 0x2f8   : > { %v8891_v20 = vpack.c.bf16 %v2755_v48, %v2755_v48  ;;  %v4174_v40 = vunpack.c.l.b16 %v8890_v52  ;;  %v1584_v39 = vcombine.high %v1360_v30, %v1360_v30  ;;  %v5093_v55 = vpop.permute.xlu0 %5092  ;;  %v5216_v4 = vpop.permute.xlu1 %5215  ;;  %v2784_v31 = vsel %vm1733_vm1, %v1360_v30, -inf }
 0x2f9   : > { %4411 = vst.msk [vmem:[#allocation2 + $0x44] sm:$0xf] %vm1733_vm1, %v11204_v13  ;;  %v2769_v51 = vmax.f32 %v2767_v14, %v2768_v61  ;;  %v8892_v10 = vpack.c.bf16 %v2762_v19, %v2762_v19  ;;  %v2775_v11 = vrot.slane %v2774_v41, 1  ;;  %5225 = vrot.lane.b32.xlu0 %v11204_v13, %s9579_s27  ;;  %5102 = vrot.lane.b32.xlu1 %v11204_v13, %s9580_s28  ;;  %v2785_v5 = vrot.slane %v2784_v31, 4 }
 0x2fa   : > { %5150 = vst.msk [vmem:[#allocation2 + $0x18] sm:$0xf] %vm5143_vm14, %v5093_v55  ;;  %v4175_v22 = vunpack.c.l.b16 %v8891_v20  ;;  %v2781_v9 = vmax.f32 %v2779_v42, %v2780_v28  ;;  %v2791_v12 = vsel %vm1733_vm1, %v1584_v39, -inf  ;;  %v1137_v0 = vadd.f32 %v11222_v17, %v10931_v24 }
 0x2fb   : > { %5274 = vst.msk [vmem:[#allocation2 + $0x14] sm:$0xf] %vm5268_vm15, %v5216_v4  ;;  %v8893_v21 = vpack.c.bf16 %v2769_v51, %v2769_v51  ;;  %v4176_v54 = vunpack.c.l.b16 %v8892_v10  ;;  %v2776_v23 = vmax.f32 %v2774_v41, %v2775_v11  ;;  %v2792_v57 = vrot.slane %v2791_v12, 4 }
 0x2fc   : > { %v4331_v6 = vsel %vm4198_vm2, %v4175_v22, %v4174_v40  ;;  %v2782_v60 = vrot.slane %v2781_v9, 1  ;;  %v2786_v32 = vmax.f32 %v2784_v31, %v2785_v5  ;;  %v4847_v56 = vpop.permute.xlu0 %4846  ;;  %v4970_v14 = vpop.permute.xlu1 %4969  ;;  %v1361_v24 = vmax.f32 %v1137_v0, 0.0 }
 0x2fd   : > { %v4177_v37 = vunpack.c.l.b16 %v8893_v21  ;;  %v4332_v42 = vsel %vm4200_vm3, %v4176_v54, %v4331_v6  ;;  %v8894_v62 = vpack.c.bf16 %v2776_v23, %v2776_v23  ;;  %v2793_v48 = vmax.f32 %v2791_v12, %v2792_v57  ;;  %4979 = vrot.lane.b32.xlu0 %v11204_v13, %s9581_s29  ;;  %4856 = vrot.lane.b32.xlu1 %v11204_v13, %s9582_s30 }
 0x2fe   : > { %4902 = vst.msk [vmem:[#allocation2 + $0x20] sm:$0xf] %vm4893_vm12, %v4847_v56  ;;  %v2783_v52 = vmax.f32 %v2781_v9, %v2782_v60  ;;  %v2787_v30 = vrot.slane %v2786_v32, 2  ;;  %v1140_v3 = vadd.f32 %v11222_v17, %v10938_v58  ;;  %v1145_v20 = vadd.f32 %v11222_v17, %v10948_v38 }
 0x2ff   : > { %5026 = vst.msk [vmem:[#allocation2 + $0x1c] sm:$0xf] %vm5018_vm13, %v4970_v14  ;;  %v4333_v19 = vsel %vm12892_vm4, %v4177_v37, %v4332_v42  ;;  %v4178_v61 = vunpack.c.l.b16 %v8894_v62  ;;  %v2794_v41 = vrot.slane %v2793_v48, 2  ;;  %v1585_v39 = vcombine.high %v1361_v24, %v1361_v24 }
 0x300   : > { %v8895_v40 = vpack.c.bf16 %v2783_v52, %v2783_v52  ;;  %v2788_v28 = vmax.f32 %v2786_v32, %v2787_v30  ;;  %v2798_v55 = vsel %vm1733_vm1, %v1361_v24, -inf  ;;  %v4601_v4 = vpop.permute.xlu0 %4600  ;;  %v4724_v51 = vpop.permute.xlu1 %4723  ;;  %v1362_v58 = vmax.f32 %v1140_v3, 0.0 }
 0x301   : > { %v4334_v11 = vsel %vm12891_vm5, %v4178_v61, %v4333_v19  ;;  %v2795_v31 = vmax.f32 %v2793_v48, %v2794_v41  ;;  %v2799_v22 = vrot.slane %v2798_v55, 4  ;;  %4733 = vrot.lane.b32.xlu0 %v11204_v13, %s9583_s8  ;;  %4610 = vrot.lane.b32.xlu1 %v11204_v13, %s9584_s9  ;;  %4654 = vst.msk [vmem:[#allocation2 + $0x28] sm:$0xf] %vm4643_vm10, %v4601_v4  ;;  %v2805_v5 = vsel %vm1733_vm1, %v1585_v39, -inf }
 0x302   : > { %v9463_v10 = vld [vmem:[#allocation2 + $0x10] sm:$0xff]   ;;  %4778 = vst.msk [vmem:[#allocation2 + $0x24] sm:$0xf] %vm4768_vm11, %v4724_v51  ;;  %v4179_v38 = vunpack.c.l.b16 %v8895_v40  ;;  %v2789_v9 = vrot.slane %v2788_v28, 1  ;;  %v1363_v12 = vmax.f32 %v1145_v20, 0.0  ;;  %v2806_v23 = vrot.slane %v2805_v5, 4 }
 0x303   : > { %5524 = vmatmul.mubr.bf16.gmra.mxu1 %v9463_v10  ;;  %v2796_v21 = vrot.slane %v2795_v31, 1  ;;  %v2800_v54 = vmax.f32 %v2798_v55, %v2799_v22  ;;  %v1586_v57 = vcombine.high %v1362_v58, %v1362_v58  ;;  %v2812_v60 = vsel %vm1733_vm1, %v1362_v58, -inf }
 0x304   : > { %5533 = vmatprep.mubr.bf16.mxu1 %v12893_v50  ;;  %v4335_v33 = vsel %vm12890_vm6, %v4179_v38, %v4334_v11  ;;  %v2790_v6 = vmax.f32 %v2788_v28, %v2789_v9  ;;  %v1587_v32 = vcombine.high %v1363_v12, %v1363_v12  ;;  %v4478_v0 = vpop.permute.xlu1 %4477  ;;  %v2807_v37 = vmax.f32 %v2805_v5, %v2806_v23 }
 0x305   : > { %v2797_v56 = vmax.f32 %v2795_v31, %v2796_v21  ;;  %v2801_v14 = vrot.slane %v2800_v54, 2  ;;  %v2813_v42 = vrot.slane %v2812_v60, 4  ;;  %4487 = vrot.lane.b32.xlu0 %v11204_v13, %s9585_s13  ;;  %4530 = vst.msk [vmem:[#allocation2 + $0x2c] sm:$0xf] %vm4518_vm9, %v4478_v0  ;;  %v2819_v48 = vsel %vm1733_vm1, %v1586_v57, -inf }
 0x306   : > { %v8896_v62 = vpack.c.bf16 %v2790_v6, %v2790_v6  ;;  %v2826_v52 = vsel %vm1733_vm1, %v1363_v12, -inf  ;;  %v2833_v30 = vsel %vm1733_vm1, %v1587_v32, -inf  ;;  %v2808_v19 = vrot.slane %v2807_v37, 2 }
 0x307   : > { %v8897_v24 = vpack.c.bf16 %v2797_v56, %v2797_v56  ;;  %v2802_v3 = vmax.f32 %v2800_v54, %v2801_v14  ;;  %v2814_v61 = vmax.f32 %v2812_v60, %v2813_v42  ;;  %v2820_v20 = vrot.slane %v2819_v48, 4 }
 0x308   : > { %v4180_v41 = vunpack.c.l.b16 %v8896_v62  ;;  %v2827_v40 = vrot.slane %v2826_v52, 4  ;;  %v2834_v28 = vrot.slane %v2833_v30, 4  ;;  %v2809_v13 = vmax.f32 %v2807_v37, %v2808_v19 }
 0x309   : > { %v4181_v39 = vunpack.c.l.b16 %v8897_v24  ;;  %v2803_v55 = vrot.slane %v2802_v3, 1  ;;  %v2815_v4 = vrot.slane %v2814_v61, 2  ;;  %v2821_v10 = vmax.f32 %v2819_v48, %v2820_v20 }
 0x30a   : > { %v4336_v51 = vsel %vm12889_vm7, %v4180_v41, %v4335_v33  ;;  %v2828_v11 = vmax.f32 %v2826_v52, %v2827_v40  ;;  %v2835_v31 = vmax.f32 %v2833_v30, %v2834_v28  ;;  %v2810_v38 = vrot.slane %v2809_v13, 1 }
 0x30b   : > { %v4337_v22 = vsel %vm12888_vm8, %v4181_v39, %v4336_v51  ;;  %v2804_v58 = vmax.f32 %v2802_v3, %v2803_v55  ;;  %v2816_v9 = vmax.f32 %v2814_v61, %v2815_v4  ;;  %v2822_v12 = vrot.slane %v2821_v10, 2 }
 0x30c   : > { %v11258_v5 = vpack.c.b16 %v4337_v22, %v4337_v22  ;;  %v2829_v21 = vrot.slane %v2828_v11, 2  ;;  %v2836_v54 = vrot.slane %v2835_v31, 2  ;;  %v2811_v23 = vmax.f32 %v2809_v13, %v2810_v38 }
 0x30d   : > { %v8898_v57 = vpack.c.bf16 %v2804_v58, %v2804_v58  ;;  %v2817_v6 = vrot.slane %v2816_v9, 1  ;;  %v1148_v60 = vadd.f32 %v11222_v17, %v10975_v49  ;;  %v5218_v33 = vpop.permute.xlu0 %5217  ;;  %v5095_v32 = vpop.permute.xlu1 %5094  ;;  %v2823_v0 = vmax.f32 %v2821_v10, %v2822_v12 }
 0x30e   : > { %4412 = vst.msk [vmem:[#allocation2 + $0x48] sm:$0xf] %vm1733_vm1, %v11258_v5  ;;  %v2830_v56 = vmax.f32 %v2828_v11, %v2829_v21  ;;  %v2837_v14 = vmax.f32 %v2835_v31, %v2836_v54  ;;  %v1153_v37 = vadd.f32 %v11222_v17, %v11005_v59  ;;  %5104 = vrot.lane.b32.xlu0 %v11258_v5, %s9580_s28 }
 0x30f   : > { %5275 = vst.msk [vmem:[#allocation2 + $0x18] sm:$0xf] %vm5268_vm15, %v5218_v33  ;;  %v8899_v42 = vpack.c.bf16 %v2811_v23, %v2811_v23  ;;  %v4182_v49 = vunpack.c.l.b16 %v8898_v57  ;;  %v2818_v62 = vmax.f32 %v2816_v9, %v2817_v6  ;;  %v1364_v48 = vmax.f32 %v1148_v60, 0.0  ;;  %5227 = vrot.lane.b32.xlu1 %v11258_v5, %s9579_s27 }
 0x310   : > { %5151 = vst.msk [vmem:[#allocation2 + $0x1c] sm:$0xf] %vm5143_vm14, %v5095_v32  ;;  %v2824_v52 = vrot.slane %v2823_v0, 1  ;;  %v2831_v30 = vrot.slane %v2830_v56, 1  ;;  %v2838_v24 = vrot.slane %v2837_v14, 1  ;;  %v1365_v3 = vmax.f32 %v1153_v37, 0.0 }
 0x311   : > { %v4183_v19 = vunpack.c.l.b16 %v8899_v42  ;;  %v8900_v59 = vpack.c.bf16 %v2818_v62, %v2818_v62  ;;  %v1588_v61 = vcombine.high %v1364_v48, %v1364_v48  ;;  %v2840_v41 = vsel %vm1733_vm1, %v1364_v48, -inf  ;;  %v4972_v20 = vpop.permute.xlu0 %4971  ;;  %v4849_v40 = vpop.permute.xlu1 %4848 }
 0x312   : > { %v2825_v28 = vmax.f32 %v2823_v0, %v2824_v52  ;;  %v2832_v39 = vmax.f32 %v2830_v56, %v2831_v30  ;;  %v2839_v55 = vmax.f32 %v2837_v14, %v2838_v24  ;;  %v2841_v13 = vrot.slane %v2840_v41, 4  ;;  %4858 = vrot.lane.b32.xlu0 %v11258_v5, %s9582_s30  ;;  %5027 = vst.msk [vmem:[#allocation2 + $0x20] sm:$0xf] %vm5018_vm13, %v4972_v20 }
 0x313   : > { %4903 = vst.msk [vmem:[#allocation2 + $0x24] sm:$0xf] %vm4893_vm12, %v4849_v40  ;;  %v4338_v4 = vsel %vm4198_vm2, %v4183_v19, %v4182_v49  ;;  %v4184_v51 = vunpack.c.l.b16 %v8900_v59  ;;  %v2847_v10 = vsel %vm1733_vm1, %v1588_v61, -inf  ;;  %v1589_v11 = vcombine.high %v1365_v3, %v1365_v3  ;;  %4981 = vrot.lane.b32.xlu1 %v11258_v5, %s9581_s29 }
 0x314   : > { %v8901_v31 = vpack.c.bf16 %v2825_v28, %v2825_v28  ;;  %v8902_v22 = vpack.c.bf16 %v2832_v39, %v2832_v39  ;;  %v8903_v58 = vpack.c.bf16 %v2839_v55, %v2839_v55  ;;  %v2842_v38 = vmax.f32 %v2840_v41, %v2841_v13 }
 0x315   : > { %v4339_v9 = vsel %vm4200_vm3, %v4184_v51, %v4338_v4  ;;  %v2848_v12 = vrot.slane %v2847_v10, 4  ;;  %v2854_v21 = vsel %vm1733_vm1, %v1365_v3, -inf  ;;  %v2861_v54 = vsel %vm1733_vm1, %v1589_v11, -inf  ;;  %v4726_v23 = vpop.permute.xlu0 %4725  ;;  %v4603_v57 = vpop.permute.xlu1 %4602 }
 0x316   : > { %v4185_v6 = vunpack.c.l.b16 %v8901_v31  ;;  %v4186_v60 = vunpack.c.l.b16 %v8902_v22  ;;  %v4187_v33 = vunpack.c.l.b16 %v8903_v58  ;;  %v2843_v32 = vrot.slane %v2842_v38, 2  ;;  %4612 = vrot.lane.b32.xlu0 %v11258_v5, %s9584_s9  ;;  %4779 = vst.msk [vmem:[#allocation2 + $0x28] sm:$0xf] %vm4768_vm11, %v4726_v23 }
 0x317   : > { %4655 = vst.msk [vmem:[#allocation2 + $0x2c] sm:$0xf] %vm4643_vm10, %v4603_v57  ;;  %v2849_v0 = vmax.f32 %v2847_v10, %v2848_v12  ;;  %v2855_v56 = vrot.slane %v2854_v21, 4  ;;  %v2862_v14 = vrot.slane %v2861_v54, 4  ;;  %v1233_v37 = vadd.f32 %v11222_v17, %v11007_v1  ;;  %4735 = vrot.lane.b32.xlu1 %v11258_v5, %s9583_s8 }
 0x318   : > { %v4340_v42 = vsel %vm12892_vm4, %v4185_v6, %v4339_v9  ;;  %v2844_v49 = vmax.f32 %v2842_v38, %v2843_v32  ;;  %v1156_v62 = vadd.f32 %v11222_v17, %v11013_v27  ;;  %v1236_v48 = vadd.f32 %v11222_v17, %v11016_v47 }
 0x319   : > { %v4341_v52 = vsel %vm12891_vm5, %v4186_v60, %v4340_v42  ;;  %v2850_v30 = vrot.slane %v2849_v0, 2  ;;  %v2856_v24 = vmax.f32 %v2854_v21, %v2855_v56  ;;  %v2863_v3 = vmax.f32 %v2861_v54, %v2862_v14  ;;  %v4480_v19 = vpop.permute.xlu0 %4479 }
 0x31a   : > { %v4342_v1 = vsel %vm12890_vm6, %v4187_v33, %v4341_v52  ;;  %v2845_v59 = vrot.slane %v2844_v49, 1  ;;  %v1385_v61 = vmax.f32 %v1233_v37, 0.0  ;;  %v1366_v41 = vmax.f32 %v1156_v62, 0.0  ;;  %4531 = vst.msk [vmem:[#allocation2 + $0x30] sm:$0xf] %vm4518_vm9, %v4480_v19 }
 0x31b   : > { %v2851_v20 = vmax.f32 %v2849_v0, %v2850_v30  ;;  %v2857_v40 = vrot.slane %v2856_v24, 2  ;;  %v2864_v28 = vrot.slane %v2863_v3, 2  ;;  %v1386_v27 = vmax.f32 %v1236_v48, 0.0  ;;  %4489 = vrot.lane.b32.xlu1 %v11258_v5, %s9585_s13 }
 0x31c   : > { %v2846_v47 = vmax.f32 %v2844_v49, %v2845_v59  ;;  %v1609_v39 = vcombine.high %v1385_v61, %v1385_v61  ;;  %v3134_v55 = vsel %vm1733_vm1, %v1385_v61, -inf  ;;  %v1590_v13 = vcombine.high %v1366_v41, %v1366_v41 }
 0x31d   : > { %v2852_v4 = vrot.slane %v2851_v20, 1  ;;  %v2858_v51 = vmax.f32 %v2856_v24, %v2857_v40  ;;  %v2865_v10 = vmax.f32 %v2863_v3, %v2864_v28  ;;  %v3135_v11 = vrot.slane %v3134_v55, 4 }
 0x31e   : > { %v8904_v31 = vpack.c.bf16 %v2846_v47, %v2846_v47  ;;  %v3141_v22 = vsel %vm1733_vm1, %v1609_v39, -inf  ;;  %v2868_v58 = vsel %vm1733_vm1, %v1366_v41, -inf  ;;  %v2875_v38 = vsel %vm1733_vm1, %v1590_v13, -inf }
 0x31f   : > { %v2853_v9 = vmax.f32 %v2851_v20, %v2852_v4  ;;  %v2859_v12 = vrot.slane %v2858_v51, 1  ;;  %v2866_v21 = vrot.slane %v2865_v10, 1  ;;  %v3136_v5 = vmax.f32 %v3134_v55, %v3135_v11 }
 0x320   : > { %v4188_v54 = vunpack.c.l.b16 %v8904_v31  ;;  %v3142_v23 = vrot.slane %v3141_v22, 4  ;;  %v2869_v57 = vrot.slane %v2868_v58, 4  ;;  %v2876_v6 = vrot.slane %v2875_v38, 4 }
 0x321   : > { %v8905_v60 = vpack.c.bf16 %v2853_v9, %v2853_v9  ;;  %v2860_v33 = vmax.f32 %v2858_v51, %v2859_v12  ;;  %v2867_v32 = vmax.f32 %v2865_v10, %v2866_v21  ;;  %v3137_v0 = vrot.slane %v3136_v5, 2 }
 0x322   : > { %v4343_v56 = vsel %vm12889_vm7, %v4188_v54, %v4342_v1  ;;  %v3143_v14 = vmax.f32 %v3141_v22, %v3142_v23  ;;  %v2870_v37 = vmax.f32 %v2868_v58, %v2869_v57  ;;  %v2877_v42 = vmax.f32 %v2875_v38, %v2876_v6 }
 0x323   : > { %v4189_v49 = vunpack.c.l.b16 %v8905_v60  ;;  %v8906_v62 = vpack.c.bf16 %v2860_v33, %v2860_v33  ;;  %v8907_v48 = vpack.c.bf16 %v2867_v32, %v2867_v32  ;;  %v3138_v52 = vmax.f32 %v3136_v5, %v3137_v0 }
 0x324   : > { %v3144_v30 = vrot.slane %v3143_v14, 2  ;;  %v2871_v24 = vrot.slane %v2870_v37, 2  ;;  %v2878_v3 = vrot.slane %v2877_v42, 2  ;;  %v1610_v19 = vcombine.high %v1386_v27, %v1386_v27 }
 0x325   : > { %v4344_v59 = vsel %vm12888_vm8, %v4189_v49, %v4343_v56  ;;  %v4190_v61 = vunpack.c.l.b16 %v8906_v62  ;;  %v3139_v41 = vrot.slane %v3138_v52, 1  ;;  %v4191_v47 = vunpack.c.l.b16 %v8907_v48 }
 0x326   : > { %v11308_v20 = vpack.c.b16 %v4344_v59, %v4344_v59  ;;  %v3145_v40 = vmax.f32 %v3143_v14, %v3144_v30  ;;  %v2872_v28 = vmax.f32 %v2870_v37, %v2871_v24  ;;  %v2879_v1 = vmax.f32 %v2877_v42, %v2878_v3 }
 0x327   : > { %v3140_v39 = vmax.f32 %v3138_v52, %v3139_v41  ;;  %v3148_v55 = vsel %vm1733_vm1, %v1386_v27, -inf  ;;  %v3155_v13 = vsel %vm1733_vm1, %v1610_v19, -inf  ;;  %v5097_v4 = vpop.permute.xlu0 %5096  ;;  %v5220_v51 = vpop.permute.xlu1 %5219  ;;  %v1161_v38 = vadd.f32 %v11222_v17, %v11056_v36 }
 0x328   : > { %4413 = vst.msk [vmem:[#allocation2 + $0x4c] sm:$0xf] %vm1733_vm1, %v11308_v20  ;;  %v3146_v10 = vrot.slane %v3145_v40, 1  ;;  %v2873_v11 = vrot.slane %v2872_v28, 1  ;;  %v2880_v31 = vrot.slane %v2879_v1, 1  ;;  %v3149_v22 = vrot.slane %v3148_v55, 4  ;;  %5229 = vrot.lane.b32.xlu0 %v11308_v20, %s9579_s27  ;;  %5106 = vrot.lane.b32.xlu1 %v11308_v20, %s9580_s28 }
 0x329   : > { %5152 = vst.msk [vmem:[#allocation2 + $0x20] sm:$0xf] %vm5143_vm14, %v5097_v4  ;;  %v8946_v27 = vpack.c.bf16 %v3140_v39, %v3140_v39  ;;  %v3156_v58 = vrot.slane %v3155_v13, 4  ;;  %v1241_v9 = vadd.f32 %v11222_v17, %v11074_v29  ;;  %v1367_v6 = vmax.f32 %v1161_v38, 0.0 }
 0x32a   : > { %5276 = vst.msk [vmem:[#allocation2 + $0x1c] sm:$0xf] %vm5268_vm15, %v5220_v51  ;;  %v3147_v12 = vmax.f32 %v3145_v40, %v3146_v10  ;;  %v2874_v21 = vmax.f32 %v2872_v28, %v2873_v11  ;;  %v2881_v5 = vmax.f32 %v2879_v1, %v2880_v31  ;;  %v3150_v54 = vmax.f32 %v3148_v55, %v3149_v22 }
 0x32b   : > { %v4939_v23 = vunpack.c.l.b16 %v8946_v27  ;;  %v3157_v57 = vmax.f32 %v3155_v13, %v3156_v58  ;;  %v1387_v60 = vmax.f32 %v1241_v9, 0.0  ;;  %v4851_v33 = vpop.permute.xlu0 %4850  ;;  %v4974_v32 = vpop.permute.xlu1 %4973  ;;  %v4345_v36 = vsel %vm4198_vm2, %v4191_v47, %v4190_v61 }
 0x32c   : > { %v8947_v0 = vpack.c.bf16 %v3147_v12, %v3147_v12  ;;  %v8908_v56 = vpack.c.bf16 %v2874_v21, %v2874_v21  ;;  %v8909_v14 = vpack.c.bf16 %v2881_v5, %v2881_v5  ;;  %v3151_v37 = vrot.slane %v3150_v54, 2  ;;  %4983 = vrot.lane.b32.xlu0 %v11308_v20, %s9581_s29  ;;  %4860 = vrot.lane.b32.xlu1 %v11308_v20, %s9582_s30 }
 0x32d   : > { %4904 = vst.msk [vmem:[#allocation2 + $0x28] sm:$0xf] %vm4893_vm12, %v4851_v33  ;;  %v3158_v29 = vrot.slane %v3157_v57, 2  ;;  %v1591_v42 = vcombine.high %v1367_v6, %v1367_v6  ;;  %v2882_v49 = vsel %vm1733_vm1, %v1367_v6, -inf  ;;  %v1611_v30 = vcombine.high %v1387_v60, %v1387_v60 }
 0x32e   : > { %5028 = vst.msk [vmem:[#allocation2 + $0x24] sm:$0xf] %vm5018_vm13, %v4974_v32  ;;  %v4940_v62 = vunpack.c.l.b16 %v8947_v0  ;;  %v4192_v48 = vunpack.c.l.b16 %v8908_v56  ;;  %v3152_v52 = vmax.f32 %v3150_v54, %v3151_v37  ;;  %v2883_v3 = vrot.slane %v2882_v49, 4 }
 0x32f   : > { %v3159_v24 = vmax.f32 %v3157_v57, %v3158_v29  ;;  %v2889_v19 = vsel %vm1733_vm1, %v1591_v42, -inf  ;;  %v3162_v59 = vsel %vm1733_vm1, %v1387_v60, -inf  ;;  %v4605_v41 = vpop.permute.xlu0 %4604  ;;  %v4728_v40 = vpop.permute.xlu1 %4727  ;;  %v4193_v61 = vunpack.c.l.b16 %v8909_v14 }
 0x330   : > { %v4947_v1 = vsel %vm4198_vm2, %v4940_v62, %v4939_v23  ;;  %v3153_v47 = vrot.slane %v3152_v52, 1  ;;  %v2890_v39 = vrot.slane %v2889_v19, 4  ;;  %4737 = vrot.lane.b32.xlu0 %v11308_v20, %s9583_s8  ;;  %4614 = vrot.lane.b32.xlu1 %v11308_v20, %s9584_s9  ;;  %4656 = vst.msk [vmem:[#allocation2 + $0x30] sm:$0xf] %vm4643_vm10, %v4605_v41  ;;  %v4346_v55 = vsel %vm4200_vm3, %v4192_v48, %v4345_v36 }
 0x331   : > { %v9464_v28 = vld [vmem:[#allocation2 + $0x18] sm:$0xff]   ;;  %4780 = vst.msk [vmem:[#allocation2 + $0x2c] sm:$0xf] %vm4768_vm11, %v4728_v40  ;;  %v3160_v13 = vrot.slane %v3159_v24, 1  ;;  %v2884_v4 = vmax.f32 %v2882_v49, %v2883_v3  ;;  %v3163_v51 = vrot.slane %v3162_v59, 4  ;;  %v3169_v31 = vsel %vm1733_vm1, %v1611_v30, -inf }
 0x332   : > { %5534 = vmatmul.mubr.bf16.gmra.mxu1 %v9464_v28  ;;  %v3154_v10 = vmax.f32 %v3152_v52, %v3153_v47  ;;  %v2891_v11 = vmax.f32 %v2889_v19, %v2890_v39  ;;  %v1164_v22 = vadd.f32 %v11222_v17, %v11079_v53  ;;  %v3170_v9 = vrot.slane %v3169_v31, 4 }
 0x333   : > { %5543 = vmatprep.mubr.bf16.mxu1 %v12893_v50  ;;  %v3161_v27 = vmax.f32 %v3159_v24, %v3160_v13  ;;  %v2885_v58 = vrot.slane %v2884_v4, 2  ;;  %v3164_v38 = vmax.f32 %v3162_v59, %v3163_v51  ;;  %v4482_v12 = vpop.permute.xlu1 %4481  ;;  %v1244_v23 = vadd.f32 %v11222_v17, %v11106_v18 }
 0x334   : > { %v8948_v21 = vpack.c.bf16 %v3154_v10, %v3154_v10  ;;  %v2892_v5 = vrot.slane %v2891_v11, 2  ;;  %v1368_v54 = vmax.f32 %v1164_v22, 0.0  ;;  %4491 = vrot.lane.b32.xlu0 %v11308_v20, %s9585_s13  ;;  %4532 = vst.msk [vmem:[#allocation2 + $0x34] sm:$0xf] %vm4518_vm9, %v4482_v12  ;;  %v3171_v60 = vmax.f32 %v3169_v31, %v3170_v9 }
 0x335   : > { %v8949_v57 = vpack.c.bf16 %v3161_v27, %v3161_v27  ;;  %v2886_v53 = vmax.f32 %v2884_v4, %v2885_v58  ;;  %v3165_v6 = vrot.slane %v3164_v38, 2  ;;  %v4347_v14 = vsel %vm12892_vm4, %v4193_v61, %v4346_v55 }
 0x336   : > { %v4941_v33 = vunpack.c.l.b16 %v8948_v21  ;;  %v2893_v32 = vmax.f32 %v2891_v11, %v2892_v5  ;;  %v1592_v0 = vcombine.high %v1368_v54, %v1368_v54  ;;  %v2896_v56 = vsel %vm1733_vm1, %v1368_v54, -inf }
 0x337   : > { %v2887_v37 = vrot.slane %v2886_v53, 1  ;;  %v3166_v36 = vmax.f32 %v3164_v38, %v3165_v6  ;;  %v3172_v29 = vrot.slane %v3171_v60, 2  ;;  %v4942_v18 = vunpack.c.l.b16 %v8949_v57  ;;  %v1280_v47 = vpop.f32.mrf.mxu1 }
 0x338   : > { %v2894_v42 = vrot.slane %v2893_v32, 1  ;;  %v2897_v49 = vrot.slane %v2896_v56, 4  ;;  %v2903_v20 = vsel %vm1733_vm1, %v1592_v0, -inf  ;;  %v4948_v62 = vsel %vm4200_vm3, %v4941_v33, %v4947_v1 }
 0x339   : > { %v2888_v48 = vmax.f32 %v2886_v53, %v2887_v37  ;;  %v3167_v52 = vrot.slane %v3166_v36, 1  ;;  %v3173_v30 = vmax.f32 %v3171_v60, %v3172_v29  ;;  %v2904_v19 = vrot.slane %v2903_v20, 4  ;;  %v9322_v31 = vpop.f32.mrf.mxu1 }
 0x33a   : > { %v2895_v24 = vmax.f32 %v2893_v32, %v2894_v42  ;;  %v2898_v3 = vmax.f32 %v2896_v56, %v2897_v49  ;;  %v1388_v59 = vmax.f32 %v1244_v23, 0.0  ;;  %v1249_v61 = vadd.f32 %v11222_v17, %v11120_v8 }
 0x33b   : > { %v8910_v41 = vpack.c.bf16 %v2888_v48, %v2888_v48  ;;  %v3168_v40 = vmax.f32 %v3166_v36, %v3167_v52  ;;  %v3174_v28 = vrot.slane %v3173_v30, 1  ;;  %v2905_v13 = vmax.f32 %v2903_v20, %v2904_v19  ;;  %v1282_v6 = vpop.f32.mrf.mxu1 }
 0x33c   : > { %v8911_v39 = vpack.c.bf16 %v2895_v24, %v2895_v24  ;;  %v2899_v55 = vrot.slane %v2898_v3, 2  ;;  %v1612_v4 = vcombine.high %v1388_v59, %v1388_v59  ;;  %v3176_v11 = vsel %vm1733_vm1, %v1388_v59, -inf }
 0x33d   : > { %v4194_v51 = vunpack.c.l.b16 %v8910_v41  ;;  %v11357_v1 = vmax.f32 %v3173_v30, %v3174_v28  ;;  %v8950_v10 = vpack.c.bf16 %v3168_v40, %v3168_v40  ;;  %v2906_v58 = vrot.slane %v2905_v13, 2  ;;  %v9323_v29 = vpop.f32.mrf.mxu1 }
 0x33e   : > { %v4195_v22 = vunpack.c.l.b16 %v8911_v39  ;;  %v2900_v27 = vmax.f32 %v2898_v3, %v2899_v55  ;;  %v3177_v38 = vrot.slane %v3176_v11, 4  ;;  %v11361_v9 = vsel %vm12892_vm4, %v4942_v18, %v4948_v62  ;;  %v5222_v21 = vpop.permute.xlu0 %5221  ;;  %v5099_v5 = vpop.permute.xlu1 %5098 }
 0x33f   : > { %v4348_v8 = vsel %vm12891_vm5, %v4194_v51, %v4347_v14  ;;  %v3183_v12 = vsel %vm1733_vm1, %v1612_v4, -inf  ;;  %v8951_v54 = vpack.c.bf16 %v11357_v1, %v11357_v1  ;;  %v2907_v57 = vmax.f32 %v2905_v13, %v2906_v58  ;;  %5277 = vst.msk [vmem:[#allocation2 + $0x20] sm:$0xf] %vm5268_vm15, %v5222_v21 }
 0x340   : > { %v2901_v23 = vrot.slane %v2900_v27, 1  ;;  %v3178_v53 = vmax.f32 %v3176_v11, %v3177_v38  ;;  %5153 = vst.msk [vmem:[#allocation2 + $0x24] sm:$0xf] %vm5143_vm14, %v5099_v5  ;;  %v4349_v60 = vsel %vm12890_vm6, %v4195_v22, %v4348_v8  ;;  %v4943_v33 = vunpack.c.l.b16 %v8950_v10 }
 0x341   : > { %v3184_v32 = vrot.slane %v3183_v12, 4  ;;  %v1389_v0 = vmax.f32 %v1249_v61, 0.0  ;;  %v2908_v14 = vrot.slane %v2907_v57, 1  ;;  %v1252_v36 = vadd.f32 %v11222_v17, %v11132_v26 }
 0x342   : > { %v2902_v56 = vmax.f32 %v2900_v27, %v2901_v23  ;;  %v3179_v37 = vrot.slane %v3178_v53, 2  ;;  %v1257_v20 = vadd.f32 %v11222_v17, %v11138_v15  ;;  %v4976_v62 = vpop.permute.xlu0 %4975  ;;  %v4853_v48 = vpop.permute.xlu1 %4852  ;;  %v11383_v8 = vunpack.c.l.b16 %v8951_v54 }
 0x343   : > { %v3185_v18 = vmax.f32 %v3183_v12, %v3184_v32  ;;  %v1613_v42 = vcombine.high %v1389_v0, %v1389_v0  ;;  %v3190_v49 = vsel %vm1733_vm1, %v1389_v0, -inf  ;;  %v2909_v52 = vmax.f32 %v2907_v57, %v2908_v14  ;;  %5029 = vst.msk [vmem:[#allocation2 + $0x28] sm:$0xf] %vm5018_vm13, %v4976_v62 }
 0x344   : > { %v8912_v30 = vpack.c.bf16 %v2902_v56, %v2902_v56  ;;  %v3180_v24 = vmax.f32 %v3178_v53, %v3179_v37  ;;  %v3191_v3 = vrot.slane %v3190_v49, 4  ;;  %4905 = vst.msk [vmem:[#allocation2 + $0x2c] sm:$0xf] %vm4893_vm12, %v4853_v48  ;;  %v1390_v59 = vmax.f32 %v1252_v36, 0.0 }
 0x345   : > { %v3186_v19 = vrot.slane %v3185_v18, 2  ;;  %v3197_v26 = vsel %vm1733_vm1, %v1613_v42, -inf  ;;  %v1391_v41 = vmax.f32 %v1257_v20, 0.0  ;;  %v8913_v40 = vpack.c.bf16 %v2909_v52, %v2909_v52 }
 0x346   : > { %v4196_v28 = vunpack.c.l.b16 %v8912_v30  ;;  %v3181_v61 = vrot.slane %v3180_v24, 1  ;;  %v3192_v47 = vmax.f32 %v3190_v49, %v3191_v3  ;;  %v3198_v39 = vrot.slane %v3197_v26, 4  ;;  %v4730_v4 = vpop.permute.xlu0 %4729  ;;  %v4607_v51 = vpop.permute.xlu1 %4606 }
 0x347   : > { %v3187_v15 = vmax.f32 %v3185_v18, %v3186_v19  ;;  %v1614_v55 = vcombine.high %v1390_v59, %v1390_v59  ;;  %v3204_v13 = vsel %vm1733_vm1, %v1390_v59, -inf  ;;  %v4197_v1 = vunpack.c.l.b16 %v8913_v40  ;;  %4781 = vst.msk [vmem:[#allocation2 + $0x30] sm:$0xf] %vm4768_vm11, %v4730_v4 }
 0x348   : > { %v4350_v10 = vsel %vm12889_vm7, %v4196_v28, %v4349_v60  ;;  %v3182_v11 = vmax.f32 %v3180_v24, %v3181_v61  ;;  %v3193_v31 = vrot.slane %v3192_v47, 2  ;;  %4657 = vst.msk [vmem:[#allocation2 + $0x34] sm:$0xf] %vm4643_vm10, %v4607_v51  ;;  %v3199_v27 = vmax.f32 %v3197_v26, %v3198_v39 }
 0x349   : > { %v3188_v22 = vrot.slane %v3187_v15, 1  ;;  %v3205_v58 = vrot.slane %v3204_v13, 4  ;;  %v3211_v38 = vsel %vm1733_vm1, %v1614_v55, -inf  ;;  %v4351_v12 = vsel %vm12888_vm8, %v4197_v1, %v4350_v10 }
 0x34a   : > { %v3194_v21 = vmax.f32 %v3192_v47, %v3193_v31  ;;  %v3212_v5 = vrot.slane %v3211_v38, 4  ;;  %v11386_v23 = vpack.c.b16 %v4351_v12, %v4351_v12  ;;  %v8952_v57 = vpack.c.bf16 %v3182_v11, %v3182_v11  ;;  %v4484_v60 = vpop.permute.xlu0 %4483 }
 0x34b   : > { %v3200_v53 = vrot.slane %v3199_v27, 2  ;;  %v3206_v6 = vmax.f32 %v3204_v13, %v3205_v58  ;;  %v11390_v32 = vsel %vm12891_vm5, %v4943_v33, %v11361_v9  ;;  %v1615_v14 = vcombine.high %v1391_v41, %v1391_v41  ;;  %4533 = vst.msk [vmem:[#allocation2 + $0x38] sm:$0xf] %vm4518_vm9, %v4484_v60 }
 0x34c   : > { %v3195_v0 = vrot.slane %v3194_v21, 1  ;;  %v3213_v56 = vmax.f32 %v3211_v38, %v3212_v5  ;;  %4414 = vst.msk [vmem:[#allocation2 + $0x50] sm:$0xf] %vm1733_vm1, %v11386_v23  ;;  %v11395_v54 = vmax.f32 %v3187_v15, %v3188_v22  ;;  %v3218_v29 = vsel %vm1733_vm1, %v1391_v41, -inf  ;;  %5108 = vrot.lane.b32.xlu0 %v11386_v23, %s9580_s28  ;;  %5231 = vrot.lane.b32.xlu1 %v11386_v23, %s9579_s27 }
 0x34d   : > { %v3201_v37 = vmax.f32 %v3199_v27, %v3200_v53  ;;  %v3207_v36 = vrot.slane %v3206_v6, 2  ;;  %v3219_v18 = vrot.slane %v3218_v29, 4  ;;  %v3225_v42 = vsel %vm1733_vm1, %v1615_v14, -inf }
 0x34e   : > { %v3196_v9 = vmax.f32 %v3194_v21, %v3195_v0  ;;  %v3214_v33 = vrot.slane %v3213_v56, 2  ;;  %v11403_v49 = vunpack.c.l.b16 %v8952_v57  ;;  %v3226_v48 = vrot.slane %v3225_v42, 4 }
 0x34f   : > { %v3202_v20 = vrot.slane %v3201_v37, 1  ;;  %v3208_v62 = vmax.f32 %v3206_v6, %v3207_v36  ;;  %v3220_v24 = vmax.f32 %v3218_v29, %v3219_v18  ;;  %v1260_v3 = vadd.f32 %v11222_v17, %v11143_v2 }
 0x350   : > { %v8954_v52 = vpack.c.bf16 %v3196_v9, %v3196_v9  ;;  %v3215_v30 = vmax.f32 %v3213_v56, %v3214_v33  ;;  %v3227_v59 = vmax.f32 %v3225_v42, %v3226_v48  ;;  %v1265_v41 = vadd.f32 %v11222_v17, %v11164_v45  ;;  %4985 = vrot.lane.b32.xlu1 %v11386_v23, %s9581_s29 }
 0x351   : > { %v3203_v19 = vmax.f32 %v3201_v37, %v3202_v20  ;;  %v3209_v26 = vrot.slane %v3208_v62, 1  ;;  %v3221_v61 = vrot.slane %v3220_v24, 2  ;;  %v1392_v47 = vmax.f32 %v1260_v3, 0.0 }
 0x352   : > { %v5064_v40 = vunpack.c.l.b16 %v8954_v52  ;;  %v3216_v28 = vrot.slane %v3215_v30, 1  ;;  %v3228_v55 = vrot.slane %v3227_v59, 2  ;;  %v1393_v13 = vmax.f32 %v1265_v41, 0.0 }
 0x353   : > { %v8955_v15 = vpack.c.bf16 %v3203_v19, %v3203_v19  ;;  %v3210_v39 = vmax.f32 %v3208_v62, %v3209_v26  ;;  %v3222_v51 = vmax.f32 %v3220_v24, %v3221_v61  ;;  %v1616_v2 = vcombine.high %v1392_v47, %v1392_v47 }
 0x354   : > { %v3217_v4 = vmax.f32 %v3215_v30, %v3216_v28  ;;  %v3232_v1 = vsel %vm1733_vm1, %v1392_v47, -inf  ;;  %v3229_v31 = vmax.f32 %v3227_v59, %v3228_v55  ;;  %v1617_v38 = vcombine.high %v1393_v13, %v1393_v13 }
 0x355   : > { %v5065_v10 = vunpack.c.l.b16 %v8955_v15  ;;  %v8956_v11 = vpack.c.bf16 %v3210_v39, %v3210_v39  ;;  %v3233_v45 = vrot.slane %v3232_v1, 4  ;;  %v3223_v27 = vrot.slane %v3222_v51, 1  ;;  %v5101_v12 = vpop.permute.xlu0 %5100  ;;  %v5224_v21 = vpop.permute.xlu1 %5223 }
 0x356   : > { %v8957_v22 = vpack.c.bf16 %v3217_v4, %v3217_v4  ;;  %v3239_v58 = vsel %vm1733_vm1, %v1616_v2, -inf  ;;  %v3230_v53 = vrot.slane %v3229_v31, 1  ;;  %5154 = vst.msk [vmem:[#allocation2 + $0x28] sm:$0xf] %vm5143_vm14, %v5101_v12  ;;  %v8953_v60 = vpack.c.bf16 %v11395_v54, %v11395_v54 }
 0x357   : > { %v5072_v5 = vsel %vm4198_vm2, %v5065_v10, %v5064_v40  ;;  %v5066_v57 = vunpack.c.l.b16 %v8956_v11  ;;  %v3234_v6 = vmax.f32 %v3232_v1, %v3233_v45  ;;  %5278 = vst.msk [vmem:[#allocation2 + $0x24] sm:$0xf] %vm5268_vm15, %v5224_v21  ;;  %v3224_v0 = vmax.f32 %v3222_v51, %v3223_v27 }
 0x358   : > { %v3240_v56 = vrot.slane %v3239_v58, 4  ;;  %v3246_v14 = vsel %vm1733_vm1, %v1393_v13, -inf  ;;  %v5067_v37 = vunpack.c.l.b16 %v8957_v22  ;;  %v3231_v36 = vmax.f32 %v3229_v31, %v3230_v53 }
 0x359   : > { %v3235_v29 = vrot.slane %v3234_v6, 2  ;;  %v3247_v9 = vrot.slane %v3246_v14, 4  ;;  %v5073_v33 = vsel %vm4200_vm3, %v5066_v57, %v5072_v5  ;;  %v8958_v18 = vpack.c.bf16 %v3224_v0, %v3224_v0  ;;  %v4855_v62 = vpop.permute.xlu0 %4854  ;;  %v4978_v48 = vpop.permute.xlu1 %4977 }
 0x35a   : > { %v3241_v42 = vmax.f32 %v3239_v58, %v3240_v56  ;;  %v3253_v20 = vsel %vm1733_vm1, %v1617_v38, -inf  ;;  %v8959_v52 = vpack.c.bf16 %v3231_v36, %v3231_v36  ;;  %4906 = vst.msk [vmem:[#allocation2 + $0x30] sm:$0xf] %vm4893_vm12, %v4855_v62  ;;  %v4946_v3 = vunpack.c.l.b16 %v8953_v60 }
 0x35b   : > { %v3236_v30 = vmax.f32 %v3234_v6, %v3235_v29  ;;  %v3248_v24 = vmax.f32 %v3246_v14, %v3247_v9  ;;  %v3254_v54 = vrot.slane %v3253_v20, 4  ;;  %5030 = vst.msk [vmem:[#allocation2 + $0x2c] sm:$0xf] %vm5018_vm13, %v4978_v48  ;;  %v1268_v26 = vadd.f32 %v11222_v17, %v11185_v25 }
 0x35c   : > { %v3242_v19 = vrot.slane %v3241_v42, 2  ;;  %v1273_v59 = vadd.f32 %v11222_v17, %v11200_v63  ;;  %v5074_v41 = vsel %vm12892_vm4, %v5067_v37, %v5073_v33  ;;  %v5068_v47 = vunpack.c.l.b16 %v8958_v18 }
 0x35d   : > { %v3237_v40 = vrot.slane %v3236_v30, 1  ;;  %v3249_v28 = vrot.slane %v3248_v24, 2  ;;  %v3255_v61 = vmax.f32 %v3253_v20, %v3254_v54  ;;  %v1394_v39 = vmax.f32 %v1268_v26, 0.0  ;;  %v4609_v13 = vpop.permute.xlu0 %4608  ;;  %v4732_v4 = vpop.permute.xlu1 %4731 }
 0x35e   : > { %v3243_v15 = vmax.f32 %v3241_v42, %v3242_v19  ;;  %v1395_v55 = vmax.f32 %v1273_v59, 0.0  ;;  %v9465_v51 = vld [vmem:[#allocation2 + $0x20] sm:$0xff]   ;;  %v5069_v2 = vunpack.c.l.b16 %v8959_v52  ;;  %4658 = vst.msk [vmem:[#allocation2 + $0x38] sm:$0xf] %vm4643_vm10, %v4609_v13  ;;  %v4951_v58 = vsel %vm12890_vm6, %v11383_v8, %v11390_v32 }
 0x35f   : > { %v3238_v1 = vmax.f32 %v3236_v30, %v3237_v40  ;;  %v3250_v10 = vmax.f32 %v3248_v24, %v3249_v28  ;;  %v3256_v11 = vrot.slane %v3255_v61, 2  ;;  %4782 = vst.msk [vmem:[#allocation2 + $0x34] sm:$0xf] %vm4768_vm11, %v4732_v4  ;;  %v1618_v63 = vcombine.high %v1394_v39, %v1394_v39  ;;  %5544 = vmatmul.mubr.bf16.gmra.mxu1 %v9465_v51 }
 0x360   : > { %v3244_v25 = vrot.slane %v3243_v15, 1  ;;  %v3260_v17 = vsel %vm1733_vm1, %v1394_v39, -inf  ;;  %v1619_v31 = vcombine.high %v1395_v55, %v1395_v55  ;;  %5553 = vmatprep.mubr.bf16.mxu1 %v12893_v50  ;;  %v3274_v21 = vsel %vm1733_vm1, %v1395_v55, -inf }
 0x361   : > { %v3251_v45 = vrot.slane %v3250_v10, 1  ;;  %v3257_v22 = vmax.f32 %v3255_v61, %v3256_v11  ;;  %v3261_v27 = vrot.slane %v3260_v17, 4  ;;  %v8960_v38 = vpack.c.bf16 %v3238_v1, %v3238_v1  ;;  %v4486_v57 = vpop.permute.xlu1 %4485 }
 0x362   : > { %v3267_v12 = vsel %vm1733_vm1, %v1618_v63, -inf  ;;  %v3281_v5 = vsel %vm1733_vm1, %v1619_v31, -inf  ;;  %v3245_v53 = vmax.f32 %v3243_v15, %v3244_v25  ;;  %4534 = vst.msk [vmem:[#allocation2 + $0x3c] sm:$0xf] %vm4518_vm9, %v4486_v57  ;;  %v5075_v56 = vsel %vm12891_vm5, %v5068_v47, %v5074_v41 }
 0x363   : > { %v3252_v6 = vmax.f32 %v3250_v10, %v3251_v45  ;;  %v3258_v60 = vrot.slane %v3257_v22, 1  ;;  %v3262_v0 = vmax.f32 %v3260_v17, %v3261_v27  ;;  %v3268_v14 = vrot.slane %v3267_v12, 4 }
 0x364   : > { %v3275_v8 = vrot.slane %v3274_v21, 4  ;;  %v3282_v32 = vrot.slane %v3281_v5, 4  ;;  %v4952_v9 = vsel %vm12889_vm7, %v11403_v49, %v4951_v58  ;;  %v5070_v33 = vunpack.c.l.b16 %v8960_v38  ;;  %v9567_v49 = vld [vmem:[%s12880_s6] ss:$0 sm:$0xff] }
 0x365   : > { %v3259_v37 = vmax.f32 %v3257_v22, %v3258_v60  ;;  %v8962_v36 = vpack.c.bf16 %v3252_v6, %v3252_v6  ;;  %v3263_v29 = vrot.slane %v3262_v0, 2  ;;  %v3269_v18 = vmax.f32 %v3267_v12, %v3268_v14 }
 0x366   : > { %v3276_v42 = vmax.f32 %v3274_v21, %v3275_v8  ;;  %v3283_v20 = vmax.f32 %v3281_v5, %v3282_v32  ;;  %v8961_v62 = vpack.c.bf16 %v3245_v53, %v3245_v53  ;;  %v4953_v30 = vsel %vm12888_vm8, %v4946_v3, %v4952_v9 }
 0x367   : > { %v8963_v48 = vpack.c.bf16 %v3259_v37, %v3259_v37  ;;  %v3264_v52 = vmax.f32 %v3262_v0, %v3263_v29  ;;  %v3270_v24 = vrot.slane %v3269_v18, 2  ;;  %v11443_v26 = vpack.c.b16 %v4953_v30, %v4953_v30 }
 0x368   : > { %v3277_v54 = vrot.slane %v3276_v42, 2  ;;  %v3284_v19 = vrot.slane %v3283_v20, 2  ;;  %v5189_v59 = vunpack.c.l.b16 %v8962_v36  ;;  %v1276_v40 = vadd.f32 %v9567_v49, %v11215_v43 }
 0x369   : > { %v3265_v41 = vrot.slane %v3264_v52, 1  ;;  %v5076_v28 = vsel %vm12890_vm6, %v5069_v2, %v5075_v56  ;;  %v5190_v61 = vunpack.c.l.b16 %v8963_v48  ;;  %v3271_v47 = vmax.f32 %v3269_v18, %v3270_v24  ;;  %5241 = vrot.lane.b32.xlu0 %v11443_v26, %s9579_s27  ;;  %5118 = vrot.lane.b32.xlu1 %v11443_v26, %s9580_s28 }
 0x36a   : > { %v3278_v15 = vmax.f32 %v3276_v42, %v3277_v54  ;;  %v3285_v39 = vmax.f32 %v3283_v20, %v3284_v19  ;;  %v5071_v3 = vunpack.c.l.b16 %v8961_v62  ;;  %v1396_v13 = vmax.f32 %v1276_v40, 0.0  ;;  %v12959_v62 = vld [vmem:[#allocation7_spill] sm:$0xff] }
 0x36b   : > { %v3266_v55 = vmax.f32 %v3264_v52, %v3265_v41  ;;  %v5226_v4 = vpop.permute.xlu0 %5225  ;;  %v5103_v51 = vpop.permute.xlu1 %5102  ;;  %v3272_v1 = vrot.slane %v3271_v47, 1  ;;  %v5077_v2 = vsel %vm12889_vm7, %v5070_v33, %v5076_v28  ;;  %v5197_v17 = vsel %vm4198_vm2, %v5190_v61, %v5189_v59  ;;  %v12960_v59 = vld [vmem:[#allocation9_spill] sm:$0xff] }
 0x36c   : > { %v3279_v10 = vrot.slane %v3278_v15, 1  ;;  %v3286_v43 = vrot.slane %v3285_v39, 1  ;;  %5279 = vst.msk [vmem:[#allocation2 + $0x28] sm:$0xf] %vm5268_vm15, %v5226_v4  ;;  %v1620_v25 = vcombine.high %v1396_v13, %v1396_v13  ;;  %v3288_v63 = vsel %vm1733_vm1, %v1396_v13, -inf }
 0x36d   : > { %5155 = vst.msk [vmem:[#allocation2 + $0x2c] sm:$0xf] %vm5143_vm14, %v5103_v51  ;;  %v8964_v11 = vpack.c.bf16 %v3266_v55, %v3266_v55  ;;  %v3273_v31 = vmax.f32 %v3271_v47, %v3272_v1  ;;  %v3289_v22 = vrot.slane %v3288_v63, 4  ;;  %4862 = vrot.lane.b32.xlu0 %v11386_v23, %s9582_s30  ;;  %4739 = vrot.lane.b32.xlu1 %v11386_v23, %s9583_s8 }
 0x36e   : > { %v3280_v45 = vmax.f32 %v3278_v15, %v3279_v10  ;;  %v3287_v58 = vmax.f32 %v3285_v39, %v3286_v43  ;;  %v3295_v38 = vsel %vm1733_vm1, %v1620_v25, -inf  ;;  %v5078_v12 = vsel %vm12888_vm8, %v5071_v3, %v5077_v2 }
 0x36f   : > { %v5191_v27 = vunpack.c.l.b16 %v8964_v11  ;;  %v4980_v21 = vpop.permute.xlu0 %4979  ;;  %v4857_v5 = vpop.permute.xlu1 %4856  ;;  %v8965_v57 = vpack.c.bf16 %v3273_v31, %v3273_v31  ;;  %v3290_v6 = vmax.f32 %v3288_v63, %v3289_v22  ;;  %v3296_v60 = vrot.slane %v3295_v38, 4 }
 0x370   : > { %v8966_v53 = vpack.c.bf16 %v3280_v45, %v3280_v45  ;;  %5031 = vst.msk [vmem:[#allocation2 + $0x30] sm:$0xf] %vm5018_vm13, %v4980_v21  ;;  %v5079_v8 = vpack.c.b16 %v5078_v12, %v5078_v12  ;;  %v8967_v32 = vpack.c.bf16 %v3287_v58, %v3287_v58  ;;  %vm6102_vm1 = vcmask 1042432  }
 0x371   : > { %4907 = vst.msk [vmem:[#allocation2 + $0x34] sm:$0xf] %vm4893_vm12, %v4857_v5  ;;  %v5192_v0 = vunpack.c.l.b16 %v8965_v57  ;;  %v5198_v56 = vsel %vm4200_vm3, %v5191_v27, %v5197_v17  ;;  %v3291_v14 = vrot.slane %v3290_v6, 2  ;;  %4616 = vrot.lane.b32.xlu0 %v11386_v23, %s9584_s9  ;;  %4493 = vrot.lane.b32.xlu1 %v11386_v23, %s9585_s13  ;;  %v3297_v37 = vmax.f32 %v3295_v38, %v3296_v60 }
 0x372   : > { %v5193_v9 = vunpack.c.l.b16 %v8966_v53  ;;  %v5194_v23 = vunpack.c.l.b16 %v8967_v32 }
 0x373   : > { %v4734_v36 = vpop.permute.xlu0 %4733  ;;  %v4611_v29 = vpop.permute.xlu1 %4610  ;;  %v3292_v33 = vmax.f32 %v3290_v6, %v3291_v14  ;;  %v5199_v18 = vsel %vm12892_vm4, %v5192_v0, %v5198_v56  ;;  %v3298_v42 = vrot.slane %v3297_v37, 2  ;;  %vm5877_vm4 = vcmask 1044480  }
 0x374   : > { %4783 = vst.msk [vmem:[#allocation2 + $0x38] sm:$0xf] %vm4768_vm11, %v4734_v36  ;;  %v5200_v30 = vsel %vm12891_vm5, %v5193_v9, %v5199_v18  ;;  %vm5755_vm5 = vcmask 1045504  }
 0x375   : > { %4659 = vst.msk [vmem:[#allocation2 + $0x3c] sm:$0xf] %vm4643_vm10, %v4611_v29  ;;  %v3293_v20 = vrot.slane %v3292_v33, 1  ;;  %4495 = vrot.lane.b32.xlu0 %v12959_v62, %s9585_s13  ;;  %5243 = vrot.lane.b32.xlu1 %v5079_v8, %s9579_s27  ;;  %v3299_v48 = vmax.f32 %v3297_v37, %v3298_v42  ;;  %v5201_v49 = vsel %vm12890_vm6, %v5194_v23, %v5200_v30  ;;  %vm5633_vm6 = vcmask 1046528  }
 0x377   : > { %v4488_v52 = vpop.permute.xlu0 %4487  ;;  %v3294_v24 = vmax.f32 %v3292_v33, %v3293_v20  ;;  %v3300_v54 = vrot.slane %v3299_v48, 1 }
 0x378   : > { %4535 = vst.msk [vmem:[#allocation2 + $0x40] sm:$0xf] %vm4518_vm9, %v4488_v52 }
 0x379   : > { %v8968_v19 = vpack.c.bf16 %v3294_v24, %v3294_v24  ;;  %4745 = vrot.lane.b32.xlu0 %v10306_v46, %s9583_s8  ;;  %4620 = vrot.lane.b32.xlu1 %v12960_v59, %s9584_s9  ;;  %v3301_v41 = vmax.f32 %v3299_v48, %v3300_v54 }
 0x37b   : > { %v5195_v40 = vunpack.c.l.b16 %v8968_v19  ;;  %v8969_v28 = vpack.c.bf16 %v3301_v41, %v3301_v41 }
 0x37d   : > { %4995 = vrot.lane.b32.xlu0 %v11443_v26, %s9581_s29  ;;  %4870 = vrot.lane.b32.xlu1 %v10363_v34, %s9582_s30  ;;  %v5202_v61 = vsel %vm12889_vm7, %v5195_v40, %v5201_v49  ;;  %v5196_v47 = vunpack.c.l.b16 %v8969_v28  ;;  %vm6020_vm7 = vcmask 1043456  }
 0x37f   : > { %v5203_v46 = vsel %vm12888_vm8, %v5196_v47, %v5202_v61  ;;  %vm6346_vm8 = vcmask 1040384  }
 0x380   : > { %v5105_v15 = vpop.permute.xlu0 %5104  ;;  %v5204_v3 = vpack.c.b16 %v5203_v46, %v5203_v46 }
 0x381   : > { %5156 = vst.msk [vmem:[#allocation2 + $0x30] sm:$0xf] %vm5143_vm14, %v5105_v15  ;;  %v5228_v39 = vpop.permute.xlu1 %5227  ;;  %5120 = vrot.lane.b32.xlu1 %v5079_v8, %s9580_s28 }
 0x382   : > { %5280 = vst.msk [vmem:[#allocation2 + $0x2c] sm:$0xf] %vm5268_vm15, %v5228_v39  ;;  %5245 = vrot.lane.b32.xlu0 %v5204_v3, %s9579_s27 }
 0x384   : > { %v4859_v26 = vpop.permute.xlu0 %4858 }
 0x385   : > { %4908 = vst.msk [vmem:[#allocation2 + $0x38] sm:$0xf] %vm4893_vm12, %v4859_v26  ;;  %v4982_v34 = vpop.permute.xlu1 %4981 }
 0x386   : > { %5032 = vst.msk [vmem:[#allocation2 + $0x34] sm:$0xf] %vm5018_vm13, %v4982_v34 }
 0x388   : > { %v4613_v55 = vpop.permute.xlu0 %4612 }
 0x389   : > { %4660 = vst.msk [vmem:[#allocation2 + $0x40] sm:$0xf] %vm4643_vm10, %v4613_v55  ;;  %v4736_v13 = vpop.permute.xlu1 %4735  ;;  %v9466_v4 = vld [vmem:[#allocation2 + $0x28] sm:$0xff]  }
 0x38a   : > { %4784 = vst.msk [vmem:[#allocation2 + $0x3c] sm:$0xf] %vm4768_vm11, %v4736_v13  ;;  %5554 = vmatmul.mubr.bf16.gmra.mxu1 %v9466_v4 }
 0x38b   : > { %5563 = vmatprep.mubr.bf16.mxu1 %v12893_v50 }
 0x38d   : > { %v4490_v51 = vpop.permute.xlu1 %4489 }
 0x38e   : > { %4536 = vst.msk [vmem:[#allocation2 + $0x44] sm:$0xf] %vm4518_vm9, %v4490_v51 }
 0x39a   : > { %v5230_v1 = vpop.permute.xlu0 %5229  ;;  %v5107_v10 = vpop.permute.xlu1 %5106 }
 0x39b   : > { %5281 = vst.msk [vmem:[#allocation2 + $0x30] sm:$0xf] %vm5268_vm15, %v5230_v1 }
 0x39c   : > { %5157 = vst.msk [vmem:[#allocation2 + $0x34] sm:$0xf] %vm5143_vm14, %v5107_v10 }
 0x39e   : > { %v4984_v43 = vpop.permute.xlu0 %4983  ;;  %v4861_v2 = vpop.permute.xlu1 %4860 }
 0x39f   : > { %5033 = vst.msk [vmem:[#allocation2 + $0x38] sm:$0xf] %vm5018_vm13, %v4984_v43 }
 0x3a0   : > { %4909 = vst.msk [vmem:[#allocation2 + $0x3c] sm:$0xf] %vm4893_vm12, %v4861_v2 }
 0x3a2   : > { %v4738_v11 = vpop.permute.xlu0 %4737  ;;  %v4615_v25 = vpop.permute.xlu1 %4614 }
 0x3a3   : > { %4785 = vst.msk [vmem:[#allocation2 + $0x40] sm:$0xf] %vm4768_vm11, %v4738_v11 }
 0x3a4   : > { %4661 = vst.msk [vmem:[#allocation2 + $0x44] sm:$0xf] %vm4643_vm10, %v4615_v25 }
 0x3a6   : > { %v4492_v63 = vpop.permute.xlu0 %4491  ;;  %v11508_v17 = vpop.f32.mrf.mxu1 }
 0x3a7   : > { %4537 = vst.msk [vmem:[#allocation2 + $0x48] sm:$0xf] %vm4518_vm9, %v4492_v63 }
 0x3a8   : > { %v5507_v31 = vpop.f32.mrf.mxu1 }
 0x3a9   : > { %v6225_v22 = vrot.slane %v5507_v31, 6  ;;  %v6021_v5 = vrot.slane %v5507_v31, 4  ;;  %v6103_v57 = vrot.slane %v5507_v31, 5  ;;  %v6347_v53 = vrot.slane %v5507_v31, 7 }
 0x3aa   : > { %v11510_v45 = vpop.f32.mrf.mxu1 }
 0x3ac   : > { %v5511_v27 = vpop.f32.mrf.mxu1 }
 0x3ad   : > { %v6022_v58 = vrot.slane %v5511_v27, 4  ;;  %v6104_v38 = vrot.slane %v5511_v27, 5  ;;  %v6226_v12 = vrot.slane %v5511_v27, 6  ;;  %v6348_v21 = vrot.slane %v5511_v27, 7 }
 0x3ae   : > { %v11512_v6 = vpop.f32.mrf.mxu1 }
 0x3af   : > { %v11515_v60 = vsel %vm6224_vm0, %v6225_v22, %v6226_v12  ;;  %v11518_v56 = vsel %vm6102_vm1, %v6103_v57, %v6104_v38  ;;  %v11521_v14 = vsel %vm6346_vm8, %v6347_v53, %v6348_v21  ;;  %v11524_v8 = vsel %vm6020_vm7, %v6021_v5, %v6022_v58 }
 0x3b0   : > { %v5517_v0 = vpop.f32.mrf.mxu1  ;;  %12961 = vst [vmem:[#allocation6_spill] sm:$0xff] %v11521_v14  ;;  %12962 = vst [vmem:[#allocation8_spill] sm:$0xff] %v11524_v8 }
 0x3b1   : > { %v6024_v32 = vrot.slane %v5517_v0, 4  ;;  %v6106_v37 = vrot.slane %v5517_v0, 5  ;;  %v6228_v36 = vrot.slane %v5517_v0, 6  ;;  %v6350_v29 = vrot.slane %v5517_v0, 7 }
 0x3b2   : > { %v11526_v9 = vpop.f32.mrf.mxu1 }
 0x3b3   : > { %v11529_v33 = vsel %vm6224_vm0, %v6226_v12, %v6228_v36  ;;  %v11532_v42 = vsel %vm6346_vm8, %v6348_v21, %v6350_v29  ;;  %v11535_v20 = vsel %vm6102_vm1, %v6104_v38, %v6106_v37  ;;  %v11538_v62 = vsel %vm6020_vm7, %v6022_v58, %v6024_v32 }
 0x3b4   : > { %v5521_v18 = vpop.f32.mrf.mxu1  ;;  %12963 = vst [vmem:[#allocation7_spill] sm:$0xff] %v11538_v62 }
 0x3b5   : > { %v6026_v23 = vrot.slane %v5521_v18, 4  ;;  %v6108_v48 = vrot.slane %v5521_v18, 5  ;;  %v6230_v52 = vrot.slane %v5521_v18, 6  ;;  %v6352_v30 = vrot.slane %v5521_v18, 7  ;;  %v12973_v18 = vld [vmem:[#allocation17_spill] sm:$0xff] }
 0x3b7   : > { %v11541_v24 = vsel %vm6346_vm8, %v6350_v29, %v6352_v30  ;;  %v11544_v54 = vsel %vm6102_vm1, %v6106_v37, %v6108_v48  ;;  %v11547_v19 = vsel %vm6224_vm0, %v6228_v36, %v6230_v52  ;;  %v11550_v59 = vsel %vm6020_vm7, %v6024_v32, %v6026_v23  ;;  %v12970_v37 = vld [vmem:[#allocation11_spill] sm:$0xff]  ;;  %v12971_v36 = vld [vmem:[#allocation14_spill] sm:$0xff]  ;;  %v12972_v29 = vld [vmem:[#allocation12_spill] sm:$0xff] }
 0x3b8   : > { %12964 = vst [vmem:[#allocation9_spill] sm:$0xff] %v11544_v54  ;;  %12965 = vst [vmem:[#allocation21_spill] sm:$0xff] %v11547_v19 }
 0x3b9   : > { %12966 = vst [vmem:[#allocation22_spill] sm:$0xff] %v11550_v59 }
 0x3be   : > { %v5109_v41 = vpop.permute.xlu0 %5108  ;;  %v5232_v49 = vpop.permute.xlu1 %5231 }
 0x3bf   : > { %5158 = vst.msk [vmem:[#allocation2 + $0x38] sm:$0xf] %vm5143_vm14, %v5109_v41  ;;  %v12977_v41 = vld [vmem:[#allocation13_spill] sm:$0xff] }
 0x3c0   : > { %5282 = vst.msk [vmem:[#allocation2 + $0x34] sm:$0xf] %vm5268_vm15, %v5232_v49  ;;  %5283 = vst.msk [vmem:[#allocation2 + $0x38] sm:$0xf] %vm5268_vm15, %v10473_v16  ;;  %v12978_v49 = vld [vmem:[#allocation15_spill] sm:$0xff] }
 0x3c2   : > { %v4986_v28 = vpop.permute.xlu1 %4985 }
 0x3c3   : > { %v11556_v40 = vpop.f32.mrf.mxu1  ;;  %5034 = vst.msk [vmem:[#allocation2 + $0x3c] sm:$0xf] %vm5018_vm13, %v4986_v28  ;;  %v12979_v28 = vld [vmem:[#allocation16_spill] sm:$0xff] }
 0x3c4   : > { %5159 = vst.msk [vmem:[#allocation2 + $0x3c] sm:$0xf] %vm5143_vm14, %v10485_v7  ;;  %v12897_v55 = vrot.slane %v11556_v40, 1  ;;  %v12895_v2 = vrot.slane %v11556_v40, 2  ;;  %v12896_v31 = vrot.slane %v11556_v40, 3 }
 0x3c5   : > { %v5527_v61 = vpop.f32.mrf.mxu1  ;;  %5284 = vst.msk [vmem:[#allocation2 + $0x3c] sm:$0xf] %vm5268_vm15, %v10538_v44 }
 0x3c6   : > { %v6028_v47 = vrot.slane %v5527_v61, 4  ;;  %v6110_v15 = vrot.slane %v5527_v61, 5  ;;  %v6232_v46 = vrot.slane %v5527_v61, 6  ;;  %v6354_v39 = vrot.slane %v5527_v61, 7  ;;  %v12980_v61 = vld [vmem:[#allocation19_spill] sm:$0xff] }
 0x3c7   : > { %v11563_v3 = vpop.f32.mrf.mxu1  ;;  %v9467_v26 = vld [vmem:[#allocation2 + $0x30] sm:$0xff]  }
 0x3c8   : > { %v5643_v16 = vrot.slane %v11563_v3, 1  ;;  %v11567_v34 = vsel %vm6102_vm1, %v6108_v48, %v6110_v15  ;;  %v11573_v7 = vsel %vm6224_vm0, %v6230_v52, %v6232_v46  ;;  %v11576_v4 = vsel %vm6346_vm8, %v6352_v30, %v6354_v39  ;;  %5564 = vmatmul.mubr.bf16.gmra.mxu1 %v9467_v26  ;;  %v12974_v48 = vld [vmem:[#allocation18_spill] sm:$0xff]  ;;  %v12983_v26 = vld [vmem:[#allocation5_spill] sm:$0xff] }
 0x3c9   : > { %v11570_v13 = vpop.f32.mrf.mxu1  ;;  %12967 = vst [vmem:[#allocation23_spill] sm:$0xff] %v11573_v7  ;;  %12968 = vst [vmem:[#allocation24_spill] sm:$0xff] %v11576_v4  ;;  %v11579_v44 = vsel %vm6020_vm7, %v6026_v23, %v6028_v47  ;;  %5573 = vmatprep.mubr.bf16.mxu1 %v12893_v50  ;;  %v5765_v1 = vrot.slane %v11563_v3, 2  ;;  %v5887_v11 = vrot.slane %v11563_v3, 3  ;;  %v12976_v30 = vld [vmem:[#allocation10_spill] sm:$0xff] }
 0x3ca   : > { %12969 = vst [vmem:[#allocation25_spill] sm:$0xff] %v11579_v44  ;;  %v6030_v51 = vrot.slane %v11570_v13, 4  ;;  %v5644_v10 = vsel %vm5633_vm6, %v12897_v55, %v5643_v16  ;;  %v6112_v22 = vrot.slane %v11570_v13, 5  ;;  %v6234_v58 = vrot.slane %v11570_v13, 6 }
 0x3cb   : > { %5683 = vrot.lane.b32.xlu1 %v5644_v10, %s9580_s28  ;;  %v5766_v25 = vsel %vm5755_vm5, %v12895_v2, %v5765_v1  ;;  %v5888_v27 = vsel %vm5877_vm4, %v12896_v31, %v5887_v11  ;;  %v6356_v12 = vrot.slane %v11570_v13, 7 }
 0x3cc   : > { %v11593_v43 = vsel %vm6020_vm7, %v6028_v47, %v6030_v51  ;;  %v9468_v63 = vld [vmem:[#allocation2 + $0x38] sm:$0xff]   ;;  %v6113_v38 = vsel %vm6102_vm1, %v6110_v15, %v6112_v22  ;;  %v6235_v21 = vsel %vm6224_vm0, %v6232_v46, %v6234_v58 }
 0x3cd   : > { %v6357_v53 = vsel %vm6346_vm8, %v6354_v39, %v6356_v12  ;;  %v12981_v15 = vld [vmem:[#allocation20_spill] sm:$0xff] }
 0x3ce   : > { %v12982_v39 = vld [vmem:[#allocation4_spill] sm:$0xff] }
 0x3cf   : > { %5805 = vrot.lane.b32.xlu1 %v5766_v25, %s9582_s30 }
 0x3d0   : > { %5574 = vmatmul.mubr.bf16.gmra.mxu1 %v9468_v63 }
 0x3d1   : > { %5583 = vmatprep.mubr.bf16.mxu1 %v12893_v50 }
 0x3d3   : > { %5927 = vrot.lane.b32.xlu1 %v5888_v27, %s9584_s9 }
 0x3d7   : > { %6152 = vrot.lane.b32.xlu1 %v6113_v38, %s9580_s28 }
 0x3db   : > { %6274 = vrot.lane.b32.xlu1 %v6235_v21, %s9582_s30  ;;  %v5242_v5 = vpop.permute.xlu0 %5241  ;;  %v5119_v57 = vpop.permute.xlu1 %5118 }
 0x3df   : > { %6396 = vrot.lane.b32.xlu1 %v6357_v53, %s9584_s9  ;;  %v4863_v0 = vpop.permute.xlu0 %4862  ;;  %v4740_v32 = vpop.permute.xlu1 %4739 }
 0x3e0   : > { %4910 = vst.msk [vmem:[#allocation2 + $0x40] sm:$0xf] %vm4893_vm12, %v4863_v0 }
 0x3e1   : > { %4786 = vst.msk [vmem:[#allocation2 + $0x44] sm:$0xf] %vm4768_vm11, %v4740_v32 }
 0x3e2   : > { %5035 = vst.msk [vmem:[#allocation2 + $0x40] sm:$0xf] %vm5018_vm13, %v10481_v35  ;;  %v12975_v35 = vld [vmem:[#allocation3_spill] sm:$0xff] }
 0x3e3   : > { %4911 = vst.msk [vmem:[#allocation2 + $0x44] sm:$0xf] %vm4893_vm12, %v12970_v37  ;;  %v4617_v23 = vpop.permute.xlu0 %4616  ;;  %v4494_v52 = vpop.permute.xlu1 %4493 }
 0x3e4   : > { %5160 = vst.msk [vmem:[#allocation2 + $0x40] sm:$0xf] %vm5143_vm14, %v12971_v36 }
 0x3e5   : > { %5036 = vst.msk [vmem:[#allocation2 + $0x44] sm:$0xf] %vm5018_vm13, %v12972_v29 }
 0x3e6   : > { %5285 = vst.msk [vmem:[#allocation2 + $0x40] sm:$0xf] %vm5268_vm15, %v12973_v18 }
 0x3e7   : > { %5161 = vst.msk [vmem:[#allocation2 + $0x44] sm:$0xf] %vm5143_vm14, %v12974_v48  ;;  %v4496_v47 = vpop.permute.xlu0 %4495  ;;  %v5244_v46 = vpop.permute.xlu1 %5243 }
 0x3e8   : > { %4662 = vst.msk [vmem:[#allocation2 + $0x48] sm:$0xf] %vm4643_vm10, %v4617_v23 }
 0x3e9   : > { %5286 = vst.msk [vmem:[#allocation2 + $0x44] sm:$0xf] %vm5268_vm15, %v12975_v35 }
 0x3ea   : > { %4538 = vst.msk [vmem:[#allocation2 + $0x4c] sm:$0xf] %vm4518_vm9, %v4494_v52  ;;  %4539 = vst.msk [vmem:[#allocation2 + $0x50] sm:$0xf] %vm4518_vm9, %v4496_v47  ;;  %vm6569_vm9 = vcmask 257024  }
 0x3eb   : > { %4787 = vst.msk [vmem:[#allocation2 + $0x48] sm:$0xf] %vm4768_vm11, %v12976_v30  ;;  %v4746_v10 = vpop.permute.xlu0 %4745  ;;  %v4621_v25 = vpop.permute.xlu1 %4620 }
 0x3ec   : > { %4663 = vst.msk [vmem:[#allocation2 + $0x4c] sm:$0xf] %vm4643_vm10, %v12977_v41  ;;  %4664 = vst.msk [vmem:[#allocation2 + $0x50] sm:$0xf] %vm4643_vm10, %v4621_v25  ;;  %vm12988_vm10 = vcmask 1043459  }
 0x3ed   : > { %4912 = vst.msk [vmem:[#allocation2 + $0x48] sm:$0xf] %vm4893_vm12, %v12978_v49 }
 0x3ee   : > { %4788 = vst.msk [vmem:[#allocation2 + $0x4c] sm:$0xf] %vm4768_vm11, %v12979_v28  ;;  %4789 = vst.msk [vmem:[#allocation2 + $0x50] sm:$0xf] %vm4768_vm11, %v4746_v10  ;;  %vm13006_vm11 = vcmask 1044484  }
 0x3ef   : > { %5037 = vst.msk [vmem:[#allocation2 + $0x48] sm:$0xf] %vm5018_vm13, %v12980_v61  ;;  %v4871_v27 = vpop.permute.xlu1 %4870  ;;  %v4996_v38 = vpop.permute.xlu0 %4995 }
 0x3f0   : > { %4913 = vst.msk [vmem:[#allocation2 + $0x4c] sm:$0xf] %vm4893_vm12, %v12981_v15  ;;  %v9469_v63 = vld [vmem:[#allocation2 + $0x40] sm:$0xff]   ;;  %4914 = vst.msk [vmem:[#allocation2 + $0x50] sm:$0xf] %vm4893_vm12, %v4871_v27  ;;  %vm13007_vm12 = vcmask 1045509  }
 0x3f1   : > { %5162 = vst.msk [vmem:[#allocation2 + $0x48] sm:$0xf] %vm5143_vm14, %v12982_v39  ;;  %5584 = vmatmul.mubr.bf16.gmra.mxu1 %v9469_v63 }
 0x3f2   : > { %5038 = vst.msk [vmem:[#allocation2 + $0x4c] sm:$0xf] %vm5018_vm13, %v12983_v26  ;;  %5593 = vmatprep.mubr.bf16.mxu1 %v12893_v50  ;;  %v11668_v21 = vpop.f32.mrf.mxu1  ;;  %5039 = vst.msk [vmem:[#allocation2 + $0x50] sm:$0xf] %vm5018_vm13, %v4996_v38  ;;  %vm13013_vm13 = vcmask 1046534  }
 0x3f3   : > { %5287 = vst.msk [vmem:[#allocation2 + $0x48] sm:$0xf] %vm5268_vm15, %v5242_v5  ;;  %v5645_v5 = vrot.slane %v11668_v21, 1  ;;  %v5121_v53 = vpop.permute.xlu1 %5120  ;;  %v5767_v37 = vrot.slane %v11668_v21, 2  ;;  %v5889_v35 = vrot.slane %v11668_v21, 3 }
 0x3f4   : > { %5163 = vst.msk [vmem:[#allocation2 + $0x4c] sm:$0xf] %vm5143_vm14, %v5119_v57  ;;  %v5537_v57 = vpop.f32.mrf.mxu1  ;;  %5164 = vst.msk [vmem:[#allocation2 + $0x50] sm:$0xf] %vm5143_vm14, %v5121_v53  ;;  %v5246_v18 = vpop.permute.xlu0 %5245  ;;  %vm13017_vm14 = vcmask 1047559  }
 0x3f5   : > { %5288 = vst.msk [vmem:[#allocation2 + $0x4c] sm:$0xf] %vm5268_vm15, %v5244_v46  ;;  %v6032_v32 = vrot.slane %v5537_v57, 4  ;;  %v5646_v29 = vsel %vm5633_vm6, %v5643_v16, %v5645_v5  ;;  %5289 = vst.msk [vmem:[#allocation2 + $0x50] sm:$0xf] %vm5268_vm15, %v5246_v18  ;;  %v5768_v16 = vsel %vm5755_vm5, %v5765_v1, %v5767_v37  ;;  %v6114_v41 = vrot.slane %v5537_v57, 5 }
 0x3f6   : > { %v11674_v36 = vpop.f32.mrf.mxu1  ;;  %5685 = vrot.lane.b32.xlu1 %v5646_v29, %s9580_s28  ;;  %v5890_v49 = vsel %vm5877_vm4, %v5887_v11, %v5889_v35  ;;  %v6236_v28 = vrot.slane %v5537_v57, 6  ;;  %v6358_v1 = vrot.slane %v5537_v57, 7  ;;  %vm13035_vm15 = vmmov %vm12988_vm10 }
 0x3f7   : > { %v11687_v48 = vsel %vm6020_vm7, %v6030_v51, %v6032_v32  ;;  %v6115_v61 = vsel %vm6102_vm1, %v6112_v22, %v6114_v41  ;;  %v5647_v11 = vrot.slane %v11674_v36, 1  ;;  %v5769_v22 = vrot.slane %v11674_v36, 2 }
 0x3f8   : > { %v11682_v23 = vpop.f32.mrf.mxu1  ;;  %v6237_v47 = vsel %vm6224_vm0, %v6234_v58, %v6236_v28  ;;  %v6359_v15 = vsel %vm6346_vm8, %v6356_v12, %v6358_v1  ;;  %v5891_v39 = vrot.slane %v11674_v36, 3 }
 0x3f9   : > { %v6034_v52 = vrot.slane %v11682_v23, 4  ;;  %v5648_v46 = vsel %vm5633_vm6, %v5645_v5, %v5647_v11  ;;  %v5770_v58 = vsel %vm5755_vm5, %v5767_v37, %v5769_v22  ;;  %v6116_v26 = vrot.slane %v11682_v23, 5 }
 0x3fa   : > { %5807 = vrot.lane.b32.xlu1 %v5768_v16, %s9582_s30  ;;  %v5892_v13 = vsel %vm5877_vm4, %v5889_v35, %v5891_v39  ;;  %v6238_v12 = vrot.slane %v11682_v23, 6  ;;  %v6360_v25 = vrot.slane %v11682_v23, 7 }
 0x3fb   : > { %v11696_v30 = vsel %vm6020_vm7, %v6032_v32, %v6034_v52  ;;  %v6117_v10 = vsel %vm6102_vm1, %v6114_v41, %v6116_v26 }
 0x3fc   : > { %v9470_v0 = vld [vmem:[#allocation2 + $0x48] sm:$0xff]   ;;  %v9471_v51 = vld [vmem:[#allocation2 + $0x50] ss:$0 sps:$4 sm:$0xff]   ;;  %v6239_v63 = vsel %vm6224_vm0, %v6236_v28, %v6238_v12  ;;  %v6361_v5 = vsel %vm6346_vm8, %v6358_v1, %v6360_v25 }
 0x3fd   : > { %5594 = vmatmul.mubr.bf16.gmra.mxu1 %v9470_v0 }
 0x3fe   : > { %5603 = vmatprep.mubr.bf16.mxu1 %v12893_v50  ;;  %5929 = vrot.lane.b32.xlu1 %v5890_v49, %s9584_s9 }
 0x402   : > { %6154 = vrot.lane.b32.xlu1 %v6115_v61, %s9580_s28 }
 0x405   : > { %5604 = vmatmul.mubr.bf16.gmra.mxu1 %v9471_v51 }
 0x406   : > { %7264 = vmatprep.mubr.bf16.mxu1 %v12893_v50  ;;  %6276 = vrot.lane.b32.xlu1 %v6237_v47, %s9582_s30 }
 0x40a   : > { %6398 = vrot.lane.b32.xlu1 %v6359_v15, %s9584_s9 }
 0x40e   : > { %5687 = vrot.lane.b32.xlu1 %v5648_v46, %s9580_s28 }
 0x412   : > { %5809 = vrot.lane.b32.xlu1 %v5770_v58, %s9582_s30 }
 0x416   : > { %5931 = vrot.lane.b32.xlu1 %v5892_v13, %s9584_s9 }
 0x41a   : > { %6156 = vrot.lane.b32.xlu1 %v6117_v10, %s9580_s28 }
 0x41e   : > { %6278 = vrot.lane.b32.xlu1 %v6239_v63, %s9582_s30 }
 0x41f   : > { %v11731_v27 = vpop.f32.mrf.mxu1 }
 0x420   : > { %v5649_v38 = vrot.slane %v11731_v27, 1  ;;  %v5771_v32 = vrot.slane %v11731_v27, 2  ;;  %v5893_v49 = vrot.slane %v11731_v27, 3 }
 0x421   : > { %v5547_v57 = vpop.f32.mrf.mxu1 }
 0x422   : > { %6400 = vrot.lane.b32.xlu1 %v6361_v5, %s9584_s9  ;;  %v6036_v53 = vrot.slane %v5547_v57, 4  ;;  %v5650_v29 = vsel %vm5633_vm6, %v5647_v11, %v5649_v38  ;;  %v5772_v51 = vsel %vm5755_vm5, %v5769_v22, %v5771_v32  ;;  %v6118_v1 = vrot.slane %v5547_v57, 5 }
 0x423   : > { %v11736_v0 = vpop.f32.mrf.mxu1  ;;  %v5894_v47 = vsel %vm5877_vm4, %v5891_v39, %v5893_v49  ;;  %v6240_v22 = vrot.slane %v5547_v57, 6  ;;  %v6362_v10 = vrot.slane %v5547_v57, 7 }
 0x424   : > { %v5651_v37 = vrot.slane %v11736_v0, 1  ;;  %v11745_v23 = vsel %vm6020_vm7, %v6034_v52, %v6036_v53  ;;  %v5773_v16 = vrot.slane %v11736_v0, 2  ;;  %v5895_v52 = vrot.slane %v11736_v0, 3 }
 0x425   : > { %v11741_v18 = vpop.f32.mrf.mxu1  ;;  %v6119_v46 = vsel %vm6102_vm1, %v6116_v26, %v6118_v1  ;;  %v6241_v39 = vsel %vm6224_vm0, %v6238_v12, %v6240_v22  ;;  %v6363_v26 = vsel %vm6346_vm8, %v6360_v25, %v6362_v10 }
 0x426   : > { %5689 = vrot.lane.b32.xlu1 %v5650_v29, %s9580_s28  ;;  %v6038_v35 = vrot.slane %v11741_v18, 4  ;;  %v5652_v41 = vsel %vm5633_vm6, %v5649_v38, %v5651_v37  ;;  %v5774_v61 = vsel %vm5755_vm5, %v5771_v32, %v5773_v16  ;;  %v6120_v11 = vrot.slane %v11741_v18, 5 }
 0x427   : > { %5691 = vrot.lane.b32.xlu0 %v5652_v41, %s9580_s28  ;;  %v5896_v15 = vsel %vm5877_vm4, %v5893_v49, %v5895_v52  ;;  %v6242_v58 = vrot.slane %v11741_v18, 6  ;;  %v6364_v63 = vrot.slane %v11741_v18, 7 }
 0x428   : > { %v11754_v28 = vsel %vm6020_vm7, %v6036_v53, %v6038_v35  ;;  %v6121_v13 = vsel %vm6102_vm1, %v6118_v1, %v6120_v11 }
 0x429   : > { %v6243_v38 = vsel %vm6224_vm0, %v6240_v22, %v6242_v58  ;;  %v6365_v5 = vsel %vm6346_vm8, %v6362_v10, %v6364_v63 }
 0x42a   : > { %5811 = vrot.lane.b32.xlu1 %v5772_v51, %s9582_s30 }
 0x42b   : > { %5813 = vrot.lane.b32.xlu0 %v5774_v61, %s9582_s30 }
 0x42e   : > { %5933 = vrot.lane.b32.xlu1 %v5894_v47, %s9584_s9 }
 0x42f   : > { %5935 = vrot.lane.b32.xlu0 %v5896_v15, %s9584_s9 }
 0x432   : > { %6158 = vrot.lane.b32.xlu1 %v6119_v46, %s9580_s28 }
 0x433   : > { %6160 = vrot.lane.b32.xlu0 %v6121_v13, %s9580_s28 }
 0x436   : > { %6280 = vrot.lane.b32.xlu1 %v6241_v39, %s9582_s30 }
 0x437   : > { %6282 = vrot.lane.b32.xlu0 %v6243_v38, %s9582_s30 }
 0x43a   : > { %6402 = vrot.lane.b32.xlu1 %v6363_v26, %s9584_s9 }
 0x43b   : > { %6404 = vrot.lane.b32.xlu0 %v6365_v5, %s9584_s9 }
 0x43d   : > { %v5684_v57 = vpop.permute.xlu1 %5683 }
 0x43e   : > { %v5739_v46 = vadd.f32 %v5684_v57, %v11556_v40 }
 0x441   : > { %v5806_v53 = vpop.permute.xlu1 %5805 }
 0x442   : > { %v5861_v10 = vadd.f32 %v5806_v53, %v5739_v46 }
 0x445   : > { %v5928_v51 = vpop.permute.xlu1 %5927 }
 0x446   : > { %v5983_v38 = vadd.f32 %v5928_v51, %v5861_v10 }
 0x448   : > { %v6086_v57 = vadd.f32 %v11593_v43, %v5983_v38  ;;  %v11821_v43 = vld [vmem:[%s12880_s6 + $0x1] ss:$0 sm:$0xff] }
 0x449   : > { %v6153_v13 = vpop.permute.xlu1 %6152 }
 0x44a   : > { %v11779_v32 = vpop.f32.mrf.mxu1 }
 0x44b   : > { %v5653_v12 = vrot.slane %v11779_v32, 1  ;;  %v5775_v41 = vrot.slane %v11779_v32, 2  ;;  %v5897_v15 = vrot.slane %v11779_v32, 3 }
 0x44c   : > { %v11782_v29 = vpop.f32.mrf.mxu1 }
 0x44d   : > { %v6040_v18 = vrot.slane %v11782_v29, 4  ;;  %v5654_v25 = vsel %vm5633_vm6, %v5651_v37, %v5653_v12  ;;  %v5776_v22 = vsel %vm5755_vm5, %v5773_v16, %v5775_v41  ;;  %v5898_v39 = vsel %vm5877_vm4, %v5895_v52, %v5897_v15  ;;  %v6275_v5 = vpop.permute.xlu1 %6274 }
 0x44e   : > { %v11786_v49 = vpop.f32.mrf.mxu1  ;;  %5693 = vrot.lane.b32.xlu0 %v5654_v25, %s9580_s28  ;;  %v6244_v16 = vrot.slane %v11782_v29, 6  ;;  %v6208_v25 = vadd.f32 %v6153_v13, %v6086_v57 }
 0x44f   : > { %v11793_v1 = vsel %vm6020_vm7, %v6038_v35, %v6040_v18  ;;  %v6122_v35 = vrot.slane %v11782_v29, 5  ;;  %v5655_v51 = vrot.slane %v11786_v49, 1 }
 0x450   : > { %v11790_v61 = vpop.f32.mrf.mxu1  ;;  %v6245_v53 = vsel %vm6224_vm0, %v6242_v58, %v6244_v16 }
 0x451   : > { %v12899_v47 = vrot.slane %v11790_v61, 4  ;;  %v6123_v26 = vsel %vm6102_vm1, %v6120_v11, %v6122_v35  ;;  %v6397_v52 = vpop.permute.xlu1 %6396  ;;  %v5656_v58 = vsel %vm5633_vm6, %v5653_v12, %v5655_v51  ;;  %v12901_v57 = vrot.slane %v11790_v61, 5 }
 0x452   : > { %5815 = vrot.lane.b32.xlu0 %v5776_v22, %s9582_s30  ;;  %v6330_v22 = vadd.f32 %v6275_v5, %v6208_v25 }
 0x453   : > { %v11803_v37 = vsel %vm6020_vm7, %v6040_v18, %v12899_v47  ;;  %v6366_v18 = vrot.slane %v11782_v29, 7  ;;  %v5777_v29 = vrot.slane %v11786_v49, 2 }
 0x454   : > { %v6452_v11 = vadd.f32 %v6397_v52, %v6330_v22 }
 0x455   : > { %v6367_v46 = vsel %vm6346_vm8, %v6364_v63, %v6366_v18  ;;  %v5899_v63 = vrot.slane %v11786_v49, 3 }
 0x456   : > { %5937 = vrot.lane.b32.xlu0 %v5898_v39, %s9584_s9  ;;  %v6473_v13 = vadd.f32 %v11821_v43, %v6452_v11  ;;  %v5778_v39 = vsel %vm5755_vm5, %v5775_v41, %v5777_v29  ;;  %v12900_v41 = vrot.slane %v11790_v61, 6 }
 0x457   : > { %v5900_v12 = vsel %vm5877_vm4, %v5897_v15, %v5899_v63 }
 0x458   : > { %v6493_v38 = vmax.f32 %v6473_v13, 0.0  ;;  %v12898_v13 = vrot.slane %v11790_v61, 7 }
 0x45a   : > { %6162 = vrot.lane.b32.xlu0 %v6123_v26, %s9580_s28  ;;  %v6533_v25 = vcombine.high %v6493_v38, %v6493_v38  ;;  %v6626_v15 = vsel %vm6569_vm9, %v6493_v38, -inf }
 0x45e   : > { %6284 = vrot.lane.b32.xlu0 %v6245_v53, %s9582_s30 }
 0x462   : > { %6406 = vrot.lane.b32.xlu0 %v6367_v46, %s9584_s9  ;;  %v6125_v46 = vsel %vm6102_vm1, %v6122_v35, %v12901_v57 }
 0x466   : > { %5695 = vrot.lane.b32.xlu0 %v5656_v58, %s9580_s28 }
 0x468   : > { %v5686_v10 = vpop.permute.xlu1 %5685 }
 0x469   : > { %v5740_v5 = vadd.f32 %v5686_v10, %v11563_v3  ;;  %v6633_v3 = vsel %vm6569_vm9, %v6533_v25, -inf  ;;  %v6247_v10 = vsel %vm6224_vm0, %v6244_v16, %v12900_v41 }
 0x46a   : > { %5817 = vrot.lane.b32.xlu0 %v5778_v39, %s9582_s30  ;;  %v6634_v39 = vrot.slane %v6633_v3, 4 }
 0x46c   : > { %v5808_v26 = vpop.permute.xlu1 %5807 }
 0x46d   : > { %v5862_v53 = vadd.f32 %v5808_v26, %v5740_v5  ;;  %v6627_v26 = vrot.slane %v6626_v15, 4 }
 0x46e   : > { %5939 = vrot.lane.b32.xlu0 %v5900_v12, %s9584_s9  ;;  %v6635_v12 = vmax.f32 %v6633_v3, %v6634_v39 }
 0x46f   : > { %v6628_v25 = vmax.f32 %v6626_v15, %v6627_v26 }
 0x470   : > { %v5930_v52 = vpop.permute.xlu1 %5929 }
 0x471   : > { %v5984_v22 = vadd.f32 %v5930_v52, %v5862_v53  ;;  %v6369_v53 = vsel %vm6346_vm8, %v6366_v18, %v12898_v13 }
 0x472   : > { %6164 = vrot.lane.b32.xlu0 %v6125_v46, %s9580_s28  ;;  %v6629_v46 = vrot.slane %v6628_v25, 2 }
 0x473   : > { %v6087_v58 = vadd.f32 %v11687_v48, %v5984_v22  ;;  %v6636_v22 = vrot.slane %v6635_v12, 2 }
 0x474   : > { %v6155_v11 = vpop.permute.xlu1 %6154 }
 0x475   : > { %v6209_v5 = vadd.f32 %v6155_v11, %v6087_v58  ;;  %v6637_v2 = vmax.f32 %v6635_v12, %v6636_v22  ;;  %v6630_v11 = vmax.f32 %v6628_v25, %v6629_v46 }
 0x476   : > { %6286 = vrot.lane.b32.xlu0 %v6247_v10, %s9582_s30 }
 0x478   : > { %v6277_v35 = vpop.permute.xlu1 %6276 }
 0x479   : > { %v6331_v38 = vadd.f32 %v6277_v35, %v6209_v5  ;;  %v6638_v35 = vrot.slane %v6637_v2, 1  ;;  %v6631_v5 = vrot.slane %v6630_v11, 1 }
 0x47a   : > { %6408 = vrot.lane.b32.xlu0 %v6369_v53, %s9584_s9 }
 0x47b   : > { %v6632_v46 = vmax.f32 %v6630_v11, %v6631_v5 }
 0x47c   : > { %v6399_v48 = vpop.permute.xlu1 %6398 }
 0x47d   : > { %v6453_v52 = vadd.f32 %v6399_v48, %v6331_v38  ;;  %v8978_v5 = vpack.c.bf16 %v6632_v46, %v6632_v46 }
 0x47f   : > { %v6474_v16 = vadd.f32 %v11821_v43, %v6453_v52  ;;  %v6994_v46 = vunpack.c.l.b16 %v8978_v5 }
 0x480   : > { %v5688_v50 = vpop.permute.xlu1 %5687 }
 0x481   : > { %v6494_v10 = vmax.f32 %v6474_v16, 0.0  ;;  %v5741_v55 = vadd.f32 %v5688_v50, %v11668_v21 }
 0x483   : > { %v6534_v31 = vcombine.high %v6494_v10, %v6494_v10  ;;  %v6640_v3 = vsel %vm6569_vm9, %v6494_v10, -inf  ;;  %v6639_v10 = vmax.f32 %v6637_v2, %v6638_v35 }
 0x484   : > { %v6641_v58 = vrot.slane %v6640_v3, 4  ;;  %v5810_v39 = vpop.permute.xlu1 %5809 }
 0x485   : > { %v6647_v18 = vsel %vm6569_vm9, %v6534_v31, -inf  ;;  %v8979_v11 = vpack.c.bf16 %v6639_v10, %v6639_v10 }
 0x486   : > { %v6642_v15 = vmax.f32 %v6640_v3, %v6641_v58  ;;  %v6648_v26 = vrot.slane %v6647_v18, 4 }
 0x488   : > { %v6643_v53 = vrot.slane %v6642_v15, 2  ;;  %v6649_v38 = vmax.f32 %v6647_v18, %v6648_v26  ;;  %v5932_v48 = vpop.permute.xlu1 %5931  ;;  %v11860_v52 = vpop.f32.mrf.mxu1 }
 0x489   : > { %v5657_v16 = vrot.slane %v11860_v52, 1  ;;  %v5779_v3 = vrot.slane %v11860_v52, 2  ;;  %v5901_v21 = vrot.slane %v11860_v52, 3 }
 0x48a   : > { %v6644_v12 = vmax.f32 %v6642_v15, %v6643_v53  ;;  %v11863_v22 = vpop.f32.mrf.mxu1  ;;  %v6650_v25 = vrot.slane %v6649_v38, 2  ;;  %v5863_v15 = vadd.f32 %v5810_v39, %v5741_v55 }
 0x48b   : > { %v5658_v18 = vsel %vm5633_vm6, %v5655_v51, %v5657_v16  ;;  %v5780_v55 = vsel %vm5755_vm5, %v5777_v29, %v5779_v3  ;;  %v6248_v5 = vrot.slane %v11863_v22, 6 }
 0x48c   : > { %v6157_v31 = vpop.permute.xlu1 %6156  ;;  %v11867_v58 = vpop.f32.mrf.mxu1  ;;  %v6645_v26 = vrot.slane %v6644_v12, 1  ;;  %5697 = vrot.lane.b32.xlu0 %v5658_v18, %s9580_s28  ;;  %v6651_v50 = vmax.f32 %v6649_v38, %v6650_v25  ;;  %v5985_v53 = vadd.f32 %v5932_v48, %v5863_v15  ;;  %v6995_v48 = vunpack.c.l.b16 %v8979_v11 }
 0x48d   : > { %v12903_v13 = vrot.slane %v11867_v58, 1  ;;  %v12902_v41 = vrot.slane %v11867_v58, 2  ;;  %v6126_v25 = vrot.slane %v11863_v22, 5  ;;  %v5902_v11 = vsel %vm5877_vm4, %v5899_v63, %v5901_v21 }
 0x48e   : > { %v11874_v2 = vpop.f32.mrf.mxu1  ;;  %v6646_v35 = vmax.f32 %v6644_v12, %v6645_v26  ;;  %v6652_v39 = vrot.slane %v6651_v50, 1  ;;  %v5903_v26 = vrot.slane %v11867_v58, 3 }
 0x48f   : > { %v5660_v51 = vsel %vm5633_vm6, %v5657_v16, %v12903_v13  ;;  %v6088_v16 = vadd.f32 %v11696_v30, %v5985_v53  ;;  %v5782_v29 = vsel %vm5755_vm5, %v5779_v3, %v12902_v41  ;;  %v6044_v30 = vrot.slane %v11863_v22, 4 }
 0x490   : > { %v6279_v47 = vpop.permute.xlu1 %6278  ;;  %v11881_v57 = vpop.f32.mrf.mxu1  ;;  %5699 = vrot.lane.b32.xlu1 %v5660_v51, %s9580_s28  ;;  %5819 = vrot.lane.b32.xlu0 %v5780_v55, %s9582_s30  ;;  %v6653_v12 = vmax.f32 %v6651_v50, %v6652_v39  ;;  %v8980_v10 = vpack.c.bf16 %v6646_v35, %v6646_v35  ;;  %v6046_v53 = vrot.slane %v11874_v2, 4  ;;  %v7025_v3 = vsel %vm4198_vm2, %v6995_v48, %v6994_v46 }
 0x491   : > { %12984 = vst [vmem:[#allocation11_spill] sm:$0xff] %v11881_v57  ;;  %v12985_v39 = vrot.slane %v11790_v61, 5  ;;  %v5904_v41 = vsel %vm5877_vm4, %v5901_v21, %v5903_v26  ;;  %v6210_v44 = vadd.f32 %v6157_v31, %v6088_v16  ;;  %v6370_v48 = vrot.slane %v11863_v22, 7 }
 0x492   : > { %v11888_v38 = vpop.f32.mrf.mxu1  ;;  %v8981_v50 = vpack.c.bf16 %v6653_v12, %v6653_v12  ;;  %v6996_v35 = vunpack.c.l.b16 %v8980_v10  ;;  %v12987_v21 = vrot.slane %v11790_v61, 4 }
 0x493   : > { %v6048_v63 = vrot.slane %v11888_v38, 4  ;;  %v6127_v12 = vsel %vm6102_vm1, %v12985_v39, %v6126_v25  ;;  %v6332_v55 = vadd.f32 %v6279_v47, %v6210_v44  ;;  %v12986_v39 = vrot.slane %v11790_v61, 6 }
 0x494   : > { %v6401_v18 = vpop.permute.xlu1 %6400  ;;  %v11896_v15 = vpop.f32.mrf.mxu1  ;;  %5821 = vrot.lane.b32.xlu1 %v5782_v29, %s9582_s30  ;;  %5941 = vrot.lane.b32.xlu0 %v5902_v11, %s9584_s9  ;;  %v6997_v29 = vunpack.c.l.b16 %v8981_v50  ;;  %v7026_v13 = vsel %vm4200_vm3, %v6996_v35, %v7025_v3  ;;  %v11923_v50 = vsel %vm6020_vm7, %v6044_v30, %v6046_v53  ;;  %v11931_v31 = vsel %vm6020_vm7, %v12987_v21, %v6044_v30 }
 0x495   : > { %v6249_v11 = vsel %vm6224_vm0, %v12986_v39, %v6248_v5  ;;  %v11937_v22 = vsel %vm6020_vm7, %v6046_v53, %v6048_v63  ;;  %v6250_v44 = vrot.slane %v11874_v2, 6  ;;  %v12989_v47 = vrot.slane %v11874_v2, 5 }
 0x496   : > { %v11906_v51 = vpop.f32.mrf.mxu1  ;;  %v6454_v35 = vadd.f32 %v6401_v18, %v6332_v55  ;;  %v12992_v18 = vrot.slane %v11790_v61, 7 }
 0x497   : > { %v6129_v16 = vsel %vm6102_vm1, %v6126_v25, %v12989_v47  ;;  %v12990_v3 = vrot.slane %v11906_v51, 4  ;;  %v6251_v25 = vsel %vm6224_vm0, %v6248_v5, %v6250_v44 }
 0x498   : > { %v5690_v10 = vpop.permute.xlu1 %5689  ;;  %5943 = vrot.lane.b32.xlu1 %v5904_v41, %s9584_s9  ;;  %6166 = vrot.lane.b32.xlu0 %v6127_v12, %s9580_s28  ;;  %v11934_v41 = vsel %vm12988_vm10, %v6997_v29, %v7026_v13  ;;  %v6475_v30 = vadd.f32 %v11821_v43, %v6454_v35  ;;  %v12905_v29 = vrot.slane %v11874_v2, 7  ;;  %v6371_v55 = vsel %vm6346_vm8, %v12992_v18, %v6370_v48  ;;  %vm13038_vm10 = vmmov %vm13006_vm11 }
 0x499   : > { %v5692_v46 = vpop.permute.xlu0 %5691  ;;  %v11946_v12 = vsel %vm6020_vm7, %v6048_v63, %v12990_v3  ;;  %v12904_v35 = vrot.slane %v11881_v57, 1 }
 0x49a   : > { %12991 = vst [vmem:[#allocation14_spill] sm:$0xff] %v11946_v12  ;;  %v6495_v63 = vmax.f32 %v6475_v30, 0.0  ;;  %v6373_v5 = vsel %vm6346_vm8, %v6370_v48, %v12905_v29 }
 0x49c   : > { %v5812_v59 = vpop.permute.xlu1 %5811  ;;  %6168 = vrot.lane.b32.xlu1 %v6129_v16, %s9580_s28  ;;  %6288 = vrot.lane.b32.xlu0 %v6249_v11, %s9582_s30  ;;  %v5742_v11 = vadd.f32 %v5690_v10, %v11674_v36  ;;  %v6535_v21 = vcombine.high %v6495_v63, %v6495_v63  ;;  %v6654_v61 = vsel %vm6569_vm9, %v6495_v63, -inf  ;;  %v5743_v10 = vadd.f32 %v5692_v46, %v11731_v27 }
 0x49d   : > { %v5814_v13 = vpop.permute.xlu0 %5813  ;;  %v6655_v18 = vrot.slane %v6654_v61, 4 }
 0x49e   : > { %v5864_v47 = vadd.f32 %v5812_v59, %v5742_v11  ;;  %v6661_v30 = vsel %vm6569_vm9, %v6535_v21, -inf  ;;  %v12993_v59 = vrot.slane %v11867_v58, 1  ;;  %v12906_v21 = vrot.slane %v11881_v57, 3 }
 0x49f   : > { %v6662_v11 = vrot.slane %v6661_v30, 4 }
 0x4a0   : > { %v5934_v53 = vpop.permute.xlu1 %5933  ;;  %6290 = vrot.lane.b32.xlu1 %v6251_v25, %s9582_s30  ;;  %6410 = vrot.lane.b32.xlu0 %v6371_v55, %s9584_s9  ;;  %v12916_v25 = vrot.slane %v11881_v57, 2  ;;  %v5662_v36 = vsel %vm5633_vm6, %v12993_v59, %v12904_v35  ;;  %v6656_v35 = vmax.f32 %v6654_v61, %v6655_v18 }
 0x4a1   : > { %v5936_v39 = vpop.permute.xlu0 %5935  ;;  %v5986_v3 = vadd.f32 %v5934_v53, %v5864_v47  ;;  %v5865_v53 = vadd.f32 %v5814_v13, %v5743_v10  ;;  %v12994_v47 = vrot.slane %v11867_v58, 2  ;;  %v12909_v10 = vrot.slane %v11888_v38, 5 }
 0x4a2   : > { %v6657_v61 = vrot.slane %v6656_v35, 2 }
 0x4a3   : > { %v6089_v63 = vadd.f32 %v11745_v23, %v5986_v3  ;;  %v5987_v59 = vadd.f32 %v5936_v39, %v5865_v53  ;;  %v5906_v39 = vsel %vm5877_vm4, %v5903_v26, %v12906_v21  ;;  %v12995_v26 = vrot.slane %v11874_v2, 5 }
 0x4a4   : > { %v6159_v16 = vpop.permute.xlu1 %6158  ;;  %6412 = vrot.lane.b32.xlu1 %v6373_v5, %s9584_s9  ;;  %v5784_v5 = vsel %vm5755_vm5, %v12994_v47, %v12916_v25  ;;  %v12910_v47 = vrot.slane %v11888_v38, 6 }
 0x4a5   : > { %v6161_v48 = vpop.permute.xlu0 %6160  ;;  %v6211_v46 = vadd.f32 %v6159_v16, %v6089_v63  ;;  %v6090_v18 = vadd.f32 %v11754_v28, %v5987_v59  ;;  %v6131_v28 = vsel %vm6102_vm1, %v12995_v26, %v12909_v10 }
 0x4a7   : > { %v6212_v59 = vadd.f32 %v6161_v48, %v6090_v18  ;;  %v12913_v18 = vrot.slane %v11888_v38, 7 }
 0x4a8   : > { %v6281_v55 = vpop.permute.xlu1 %6280  ;;  %5701 = vrot.lane.b32.xlu1 %v5662_v36, %s9580_s28  ;;  %v6663_v36 = vmax.f32 %v6661_v30, %v6662_v11 }
 0x4a9   : > { %v6283_v13 = vpop.permute.xlu0 %6282  ;;  %v6333_v3 = vadd.f32 %v6281_v55, %v6211_v46 }
 0x4aa   : > { %v6664_v63 = vrot.slane %v6663_v36, 2 }
 0x4ac   : > { %5823 = vrot.lane.b32.xlu1 %v5784_v5, %s9582_s30  ;;  %v6403_v29 = vpop.permute.xlu1 %6402  ;;  %v6658_v5 = vmax.f32 %v6656_v35, %v6657_v61  ;;  %v6665_v26 = vmax.f32 %v6663_v36, %v6664_v63  ;;  %v6334_v35 = vadd.f32 %v6283_v13, %v6212_v59 }
 0x4ad   : > { %v6455_v16 = vadd.f32 %v6403_v29, %v6333_v3 }
 0x4ae   : > { %v6666_v63 = vrot.slane %v6665_v26, 1 }
 0x4af   : > { %v6476_v21 = vadd.f32 %v11821_v43, %v6455_v16 }
 0x4b0   : > { %5945 = vrot.lane.b32.xlu1 %v5906_v39, %s9584_s9  ;;  %v6405_v39 = vpop.permute.xlu0 %6404 }
 0x4b1   : > { %v11983_v27 = vpop.f32.mrf.mxu1  ;;  %v6496_v13 = vmax.f32 %v6476_v21, 0.0 }
 0x4b2   : > { %v12907_v55 = vrot.slane %v11983_v27, 1  ;;  %v12911_v48 = vrot.slane %v11983_v27, 2 }
 0x4b3   : > { %v11986_v23 = vpop.f32.mrf.mxu1 }
 0x4b4   : > { %6170 = vrot.lane.b32.xlu1 %v6131_v28, %s9580_s28  ;;  %v6253_v28 = vsel %vm6224_vm0, %v6250_v44, %v12910_v47  ;;  %v12914_v44 = vrot.slane %v11983_v27, 3 }
 0x4b5   : > { %v11995_v53 = vpop.f32.mrf.mxu1 }
 0x4b6   : > { %v12908_v30 = vrot.slane %v11995_v53, 1  ;;  %v12912_v46 = vrot.slane %v11995_v53, 2  ;;  %v12915_v16 = vrot.slane %v11995_v53, 3 }
 0x4b7   : > { %v12000_v11 = vpop.f32.mrf.mxu1 }
 0x4b8   : > { %v5668_v3 = vsel %vm5633_vm6, %v12907_v55, %v12908_v30  ;;  %v6659_v55 = vrot.slane %v6658_v5, 1  ;;  %v6456_v30 = vadd.f32 %v6405_v39, %v6334_v35  ;;  %6292 = vrot.lane.b32.xlu1 %v6253_v28, %s9582_s30  ;;  %v5790_v36 = vsel %vm5755_vm5, %v12911_v48, %v12912_v46 }
 0x4b9   : > { %5707 = vrot.lane.b32.xlu0 %v5668_v3, %s9580_s28  ;;  %v12917_v3 = vrot.slane %v11896_v15, 1  ;;  %v12996_v39 = vrot.slane %v11874_v2, 7  ;;  %v12919_v21 = vrot.slane %v12000_v11, 5  ;;  %v6536_v48 = vcombine.high %v6496_v13, %v6496_v13 }
 0x4ba   : > { %v6660_v28 = vmax.f32 %v6658_v5, %v6659_v55  ;;  %v6477_v47 = vadd.f32 %v11821_v43, %v6456_v30  ;;  %v6668_v46 = vsel %vm6569_vm9, %v6496_v13, -inf  ;;  %v6667_v2 = vmax.f32 %v6665_v26, %v6666_v63 }
 0x4bb   : > { %v6375_v35 = vsel %vm6346_vm8, %v12996_v39, %v12913_v18  ;;  %v6669_v39 = vrot.slane %v6668_v46, 4  ;;  %v12918_v5 = vrot.slane %v11986_v23, 5  ;;  %v6675_v18 = vsel %vm6569_vm9, %v6536_v48, -inf }
 0x4bc   : > { %6414 = vrot.lane.b32.xlu1 %v6375_v35, %s9584_s9  ;;  %v6497_v30 = vmax.f32 %v6477_v47, 0.0  ;;  %v6676_v55 = vrot.slane %v6675_v18, 4  ;;  %v13001_v47 = vrot.slane %v11881_v57, 3  ;;  %v6054_v62 = vrot.slane %v12000_v11, 4 }
 0x4bd   : > { %v12009_v29 = vpop.f32.mrf.mxu1  ;;  %5829 = vrot.lane.b32.xlu0 %v5790_v36, %s9582_s30  ;;  %v5912_v36 = vsel %vm5877_vm4, %v12914_v44, %v12915_v16  ;;  %v12997_v44 = vrot.slane %v11881_v57, 1  ;;  %v8982_v16 = vpack.c.bf16 %v6660_v28, %v6660_v28  ;;  %v6137_v48 = vsel %vm6102_vm1, %v12918_v5, %v12919_v21 }
 0x4be   : > { %v13000_v5 = vrot.slane %v11896_v15, 3  ;;  %v6677_v28 = vmax.f32 %v6675_v18, %v6676_v55  ;;  %v6537_v12 = vcombine.high %v6497_v30, %v6497_v30 }
 0x4bf   : > { %v12020_v61 = vpop.f32.mrf.mxu1  ;;  %v5664_v13 = vsel %vm5633_vm6, %v12997_v44, %v12917_v3 }
 0x4c0   : > { %5703 = vrot.lane.b32.xlu1 %v5664_v13, %s9580_s28  ;;  %v5694_v25 = vpop.permute.xlu0 %5693  ;;  %v12999_v13 = vrot.slane %v11881_v57, 2  ;;  %v5908_v21 = vsel %vm5877_vm4, %v13001_v47, %v13000_v5  ;;  %v6056_v44 = vrot.slane %v12020_v61, 4  ;;  %v6678_v55 = vrot.slane %v6677_v28, 2 }
 0x4c1   : > { %v12029_v10 = vpop.f32.mrf.mxu1  ;;  %5951 = vrot.lane.b32.xlu0 %v5912_v36, %s9584_s9  ;;  %v6670_v36 = vmax.f32 %v6668_v46, %v6669_v39  ;;  %v8983_v46 = vpack.c.bf16 %v6667_v2, %v6667_v2  ;;  %v12998_v39 = vrot.slane %v11896_v15, 2  ;;  %v5744_v18 = vadd.f32 %v5694_v25, %v11736_v0 }
 0x4c2   : > { %v6689_v0 = vsel %vm6569_vm9, %v6537_v12, -inf }
 0x4c3   : > { %v12039_v59 = vpop.f32.mrf.mxu1  ;;  %v5786_v3 = vsel %vm5755_vm5, %v12999_v13, %v12998_v39  ;;  %v6671_v8 = vrot.slane %v6670_v36, 2  ;;  %v13002_v39 = vrot.slane %v12000_v11, 6  ;;  %v13003_v13 = vrot.slane %v11986_v23, 6 }
 0x4c4   : > { %5825 = vrot.lane.b32.xlu1 %v5786_v3, %s9582_s30  ;;  %v5816_v5 = vpop.permute.xlu0 %5815  ;;  %v6052_v3 = vrot.slane %v11986_v23, 4  ;;  %v6058_v7 = vrot.slane %v12039_v59, 4 }
 0x4c5   : > { %v12060_v35 = vpop.f32.mrf.mxu1  ;;  %6176 = vrot.lane.b32.xlu0 %v6137_v48, %s9580_s28  ;;  %v6998_v48 = vunpack.c.l.b16 %v8982_v16  ;;  %v6259_v4 = vsel %vm6224_vm0, %v13003_v13, %v13002_v39  ;;  %v6672_v47 = vmax.f32 %v6670_v36, %v6671_v8  ;;  %v6999_v16 = vunpack.c.l.b16 %v8983_v46 }
 0x4c6   : > { %v13004_v8 = vrot.slane %v12000_v11, 7  ;;  %v13005_v36 = vrot.slane %v11986_v23, 7  ;;  %v6679_v46 = vmax.f32 %v6677_v28, %v6678_v55  ;;  %v12117_v57 = vsel %vm6020_vm7, %v6052_v3, %v6054_v62 }
 0x4c7   : > { %v12069_v63 = vpop.f32.mrf.mxu1  ;;  %v6673_v19 = vrot.slane %v6672_v47, 1  ;;  %v7028_v2 = vsel %vm13006_vm11, %v6998_v48, %v11934_v41  ;;  %v12122_v28 = vsel %vm6020_vm7, %v6054_v62, %v6056_v44  ;;  %v12131_v41 = vsel %vm6020_vm7, %v6056_v44, %v6058_v7  ;;  %vm13039_vm11 = vmmov %vm13007_vm12 }
 0x4c8   : > { %v6060_v39 = vrot.slane %v12069_v63, 4  ;;  %v6381_v13 = vsel %vm6346_vm8, %v13005_v36, %v13004_v8  ;;  %5947 = vrot.lane.b32.xlu1 %v5908_v21, %s9584_s9  ;;  %v6680_v14 = vrot.slane %v6679_v46, 1  ;;  %v7029_v8 = vsel %vm13007_vm12, %v6999_v16, %v7028_v2  ;;  %vm13042_vm12 = vmmov %vm13013_vm13 }
 0x4c9   : > { %v5609_v26 = vpop.f32.mrf.mxu1  ;;  %6298 = vrot.lane.b32.xlu0 %v6259_v4, %s9582_s30  ;;  %v5866_v4 = vadd.f32 %v5816_v5, %v5744_v18  ;;  %v6674_v25 = vmax.f32 %v6672_v47, %v6673_v19  ;;  %v6682_v21 = vsel %vm6569_vm9, %v6497_v30, -inf  ;;  %v13008_v19 = vrot.slane %v11906_v51, 4 }
 0x4ca   : > { %v13009_v48 = vrot.slane %v11906_v51, 5  ;;  %v13010_v47 = vrot.slane %v11888_v38, 5  ;;  %v6690_v16 = vrot.slane %v6689_v0, 4  ;;  %v6681_v62 = vmax.f32 %v6679_v46, %v6680_v14 }
 0x4cb   : > { %v5610_v26 = vpop.f32.mrf.mxu1  ;;  %v8984_v12 = vpack.c.bf16 %v6674_v25, %v6674_v25  ;;  %v12128_v5 = vsel %vm6020_vm7, %v13008_v19, %v6052_v3  ;;  %v12139_v18 = vsel %vm6020_vm7, %v6058_v7, %v6060_v39  ;;  %v5791_v30 = vrot.slane %v12009_v29, 2 }
 0x4cc   : > { %v5938_v26 = vpop.permute.xlu0 %5937  ;;  %v6133_v2 = vsel %vm6102_vm1, %v13010_v47, %v13009_v48  ;;  %v13011_v55 = vrot.slane %v12009_v29, 1  ;;  %v13012_v44 = vrot.slane %v11995_v53, 1  ;;  %v8985_v25 = vpack.c.bf16 %v6681_v62, %v6681_v62 }
 0x4cd   : > { %6420 = vrot.lane.b32.xlu0 %v6381_v13, %s9584_s9  ;;  %v5988_v54 = vadd.f32 %v5938_v26, %v5866_v4  ;;  %6172 = vrot.lane.b32.xlu1 %v6133_v2, %s9580_s28  ;;  %v7000_v36 = vunpack.c.l.b16 %v8984_v12  ;;  %v6683_v4 = vrot.slane %v6682_v21, 4  ;;  %v6376_v39 = vrot.slane %v11906_v51, 7 }
 0x4ce   : > { %v5670_v3 = vsel %vm5633_vm6, %v13012_v44, %v13011_v55  ;;  %v13014_v46 = vrot.slane %v11906_v51, 6  ;;  %v13015_v26 = vrot.slane %v11888_v38, 6  ;;  %v6691_v48 = vmax.f32 %v6689_v0, %v6690_v16 }
 0x4cf   : > { %v6091_v14 = vadd.f32 %v11793_v1, %v5988_v54  ;;  %v7030_v7 = vsel %vm13013_vm13, %v7000_v36, %v7029_v8  ;;  %v7001_v47 = vunpack.c.l.b16 %v8985_v25  ;;  %v5913_v12 = vrot.slane %v12009_v29, 3  ;;  %vm13043_vm13 = vmmov %vm13017_vm14 }
 0x4d0   : > { %v6163_v13 = vpop.permute.xlu0 %6162  ;;  %v6255_v19 = vsel %vm6224_vm0, %v13015_v26, %v13014_v46  ;;  %v13016_v54 = vrot.slane %v11995_v53, 2  ;;  %v6684_v2 = vmax.f32 %v6682_v21, %v6683_v4  ;;  %v13018_v0 = vrot.slane %v11888_v38, 7 }
 0x4d1   : > { %5709 = vrot.lane.b32.xlu0 %v5670_v3, %s9580_s28  ;;  %6294 = vrot.lane.b32.xlu1 %v6255_v19, %s9582_s30  ;;  %v6213_v62 = vadd.f32 %v6163_v13, %v6091_v14  ;;  %v7031_v55 = vsel %vm13017_vm14, %v7001_v47, %v7030_v7  ;;  %v6692_v3 = vrot.slane %v6691_v48, 2  ;;  %v12921_v25 = vrot.slane %v12020_v61, 5  ;;  %vm13051_vm14 = vmmov %vm13035_vm15 }
 0x4d2   : > { %v5792_v1 = vsel %vm5755_vm5, %v13016_v54, %v5791_v30  ;;  %v12166_v44 = vpack.c.b16 %v7031_v55, %v7031_v55  ;;  %v6377_v16 = vsel %vm6346_vm8, %v13018_v0, %v6376_v39  ;;  %v13019_v21 = vrot.slane %v11995_v53, 3 }
 0x4d3   : > { %v6685_v38 = vrot.slane %v6684_v2, 2  ;;  %v6693_v7 = vmax.f32 %v6691_v48, %v6692_v3  ;;  %v13020_v46 = vrot.slane %v11983_v27, 1  ;;  %v13021_v26 = vrot.slane %v11896_v15, 1 }
 0x4d4   : > { %v6285_v8 = vpop.permute.xlu0 %6284  ;;  %v5914_v13 = vsel %vm5877_vm4, %v13019_v21, %v5913_v12  ;;  %7055 = vst.msk [vmem:[#allocation2 + $0x4] sm:$0xf] %vm6569_vm9, %v12166_v44  ;;  %v6260_v54 = vrot.slane %v12020_v61, 6  ;;  %v13024_v3 = vrot.slane %v11896_v15, 2 }
 0x4d5   : > { %5831 = vrot.lane.b32.xlu0 %v5792_v1, %s9582_s30  ;;  %v6335_v36 = vadd.f32 %v6285_v8, %v6213_v62  ;;  %6416 = vrot.lane.b32.xlu1 %v6377_v16, %s9584_s9  ;;  %v5666_v19 = vsel %vm5633_vm6, %v13021_v26, %v13020_v46  ;;  %v13022_v1 = vrot.slane %v12000_v11, 5  ;;  %v6686_v48 = vmax.f32 %v6684_v2, %v6685_v38 }
 0x4d6   : > { %v6694_v0 = vrot.slane %v6693_v7, 1  ;;  %v13023_v16 = vrot.slane %v11983_v27, 2  ;;  %v13025_v2 = vrot.slane %v12000_v11, 6 }
 0x4d7   : > { %v6139_v8 = vsel %vm6102_vm1, %v13022_v1, %v12921_v25  ;;  %v6687_v26 = vrot.slane %v6686_v48, 1 }
 0x4d8   : > { %v6407_v4 = vpop.permute.xlu0 %6406  ;;  %v6261_v38 = vsel %vm6224_vm0, %v13025_v2, %v6260_v54  ;;  %v5671_v2 = vrot.slane %v12029_v10, 1 }
 0x4d9   : > { %5953 = vrot.lane.b32.xlu0 %v5914_v13, %s9584_s9  ;;  %v6457_v14 = vadd.f32 %v6407_v4, %v6335_v36  ;;  %5705 = vrot.lane.b32.xlu1 %v5666_v19, %s9580_s28  ;;  %v5788_v36 = vsel %vm5755_vm5, %v13024_v3, %v13023_v16  ;;  %v6382_v4 = vrot.slane %v12020_v61, 7  ;;  %v13026_v16 = vrot.slane %v11983_v27, 3 }
 0x4da   : > { %v13027_v3 = vrot.slane %v11896_v15, 3 }
 0x4db   : > { %v6478_v47 = vadd.f32 %v11821_v43, %v6457_v14 }
 0x4dc   : > { %v5696_v62 = vpop.permute.xlu0 %5695 }
 0x4dd   : > { %6178 = vrot.lane.b32.xlu0 %v6139_v8, %s9580_s28  ;;  %v6498_v55 = vmax.f32 %v6478_v47, 0.0  ;;  %5827 = vrot.lane.b32.xlu1 %v5788_v36, %s9582_s30  ;;  %v5745_v47 = vadd.f32 %v5696_v62, %v11779_v32  ;;  %v5910_v36 = vsel %vm5877_vm4, %v13027_v3, %v13026_v16  ;;  %v13030_v3 = vrot.slane %v11906_v51, 5 }
 0x4df   : > { %v6538_v21 = vcombine.high %v6498_v55, %v6498_v55  ;;  %v6696_v13 = vsel %vm6569_vm9, %v6498_v55, -inf  ;;  %v6695_v55 = vmax.f32 %v6693_v7, %v6694_v0  ;;  %v6688_v0 = vmax.f32 %v6686_v48, %v6687_v26 }
 0x4e0   : > { %v6697_v14 = vrot.slane %v6696_v13, 4  ;;  %v5818_v46 = vpop.permute.xlu0 %5817 }
 0x4e1   : > { %6300 = vrot.lane.b32.xlu0 %v6261_v38, %s9582_s30  ;;  %v6703_v19 = vsel %vm6569_vm9, %v6538_v21, -inf  ;;  %v5867_v25 = vadd.f32 %v5818_v46, %v5745_v47  ;;  %5949 = vrot.lane.b32.xlu1 %v5910_v36, %s9584_s9  ;;  %v13028_v21 = vrot.slane %v12000_v11, 7  ;;  %v8987_v46 = vpack.c.bf16 %v6695_v55, %v6695_v55 }
 0x4e2   : > { %v6698_v1 = vmax.f32 %v6696_v13, %v6697_v14  ;;  %v6704_v8 = vrot.slane %v6703_v19, 4  ;;  %v13029_v47 = vrot.slane %v11986_v23, 5  ;;  %v5793_v11 = vrot.slane %v12029_v10, 2 }
 0x4e3   : > { %v6383_v32 = vsel %vm6346_vm8, %v13028_v21, %v6382_v4 }
 0x4e4   : > { %v6699_v62 = vrot.slane %v6698_v1, 2  ;;  %v6705_v13 = vmax.f32 %v6703_v19, %v6704_v8  ;;  %v5940_v7 = vpop.permute.xlu0 %5939  ;;  %v6135_v36 = vsel %vm6102_vm1, %v13030_v3, %v13029_v47  ;;  %v13031_v19 = vrot.slane %v12009_v29, 1 }
 0x4e5   : > { %6422 = vrot.lane.b32.xlu0 %v6383_v32, %s9584_s9  ;;  %v5989_v38 = vadd.f32 %v5940_v7, %v5867_v25  ;;  %6174 = vrot.lane.b32.xlu1 %v6135_v36, %s9580_s28  ;;  %v8986_v8 = vpack.c.bf16 %v6688_v0, %v6688_v0  ;;  %v13032_v7 = vrot.slane %v11986_v23, 6  ;;  %v13033_v47 = vrot.slane %v11906_v51, 6 }
 0x4e6   : > { %v6700_v14 = vmax.f32 %v6698_v1, %v6699_v62  ;;  %v6706_v16 = vrot.slane %v6705_v13, 2  ;;  %v5672_v48 = vsel %vm5633_vm6, %v13031_v19, %v5671_v2  ;;  %v7003_v62 = vunpack.c.l.b16 %v8987_v46 }
 0x4e7   : > { %v6092_v55 = vadd.f32 %v11803_v37, %v5989_v38  ;;  %v6257_v3 = vsel %vm6224_vm0, %v13033_v47, %v13032_v7  ;;  %v5915_v19 = vrot.slane %v12029_v10, 3  ;;  %v13034_v7 = vrot.slane %v11986_v23, 7 }
 0x4e8   : > { %v6701_v25 = vrot.slane %v6700_v14, 1  ;;  %v6707_v26 = vmax.f32 %v6705_v13, %v6706_v16  ;;  %v6165_v1 = vpop.permute.xlu0 %6164  ;;  %v5794_v13 = vsel %vm5755_vm5, %v5791_v30, %v5793_v11  ;;  %v5634_v23 = vrot.slane %v11508_v17, 1 }
 0x4e9   : > { %5711 = vrot.lane.b32.xlu0 %v5672_v48, %s9580_s28  ;;  %6296 = vrot.lane.b32.xlu1 %v6257_v3, %s9582_s30  ;;  %v6214_v16 = vadd.f32 %v6165_v1, %v6092_v55  ;;  %v5635_v48 = vrot.slane %v11510_v45, 1  ;;  %v6379_v30 = vsel %vm6346_vm8, %v6376_v39, %v13034_v7  ;;  %v5916_v1 = vsel %vm5877_vm4, %v5913_v12, %v5915_v19 }
 0x4ea   : > { %v6702_v21 = vmax.f32 %v6700_v14, %v6701_v25  ;;  %v6708_v32 = vrot.slane %v6707_v26, 1  ;;  %v7002_v14 = vunpack.c.l.b16 %v8986_v8  ;;  %v6262_v3 = vrot.slane %v12039_v59, 6 }
 0x4eb   : > { %v5636_v12 = vsel %vm5633_vm6, %v5634_v23, %v5635_v48 }
 0x4ec   : > { %v6709_v37 = vmax.f32 %v6707_v26, %v6708_v32  ;;  %v8988_v0 = vpack.c.bf16 %v6702_v21, %v6702_v21  ;;  %v6287_v38 = vpop.permute.xlu0 %6286  ;;  %v7032_v25 = vsel %vm4198_vm2, %v7003_v62, %v7002_v14  ;;  %v6140_v26 = vrot.slane %v12039_v59, 5 }
 0x4ed   : > { %5833 = vrot.lane.b32.xlu0 %v5794_v13, %s9582_s30  ;;  %v6336_v47 = vadd.f32 %v6287_v38, %v6214_v16  ;;  %6418 = vrot.lane.b32.xlu1 %v6379_v30, %s9584_s9  ;;  %v5757_v32 = vrot.slane %v11510_v45, 2  ;;  %v13036_v13 = vrot.slane %v12020_v61, 5  ;;  %v5759_v14 = vrot.slane %v11512_v6, 2 }
 0x4ee   : > { %v8989_v46 = vpack.c.bf16 %v6709_v37, %v6709_v37  ;;  %v7004_v36 = vunpack.c.l.b16 %v8988_v0  ;;  %v5756_v0 = vrot.slane %v11508_v17, 2  ;;  %v6263_v7 = vsel %vm6224_vm0, %v6260_v54, %v6262_v3 }
 0x4ef   : > { %v6141_v37 = vsel %vm6102_vm1, %v13036_v13, %v6140_v26 }
 0x4f0   : > { %v7005_v8 = vunpack.c.l.b16 %v8989_v46  ;;  %v7033_v55 = vsel %vm4200_vm3, %v7004_v36, %v7032_v25  ;;  %v6409_v21 = vpop.permute.xlu0 %6408  ;;  %v5758_v16 = vsel %vm5755_vm5, %v5756_v0, %v5757_v32  ;;  %v6384_v25 = vrot.slane %v12039_v59, 7 }
 0x4f1   : > { %5955 = vrot.lane.b32.xlu0 %v5916_v1, %s9584_s9  ;;  %v6458_v51 = vadd.f32 %v6409_v21, %v6336_v47  ;;  %5675 = vrot.lane.b32.xlu1 %v5636_v12, %s9580_s28  ;;  %v5673_v21 = vrot.slane %v12060_v35, 1  ;;  %v5639_v12 = vrot.slane %v11526_v9, 1 }
 0x4f2   : > { %v12271_v39 = vsel %vm13035_vm15, %v7005_v8, %v7033_v55  ;;  %v5760_v55 = vsel %vm5755_vm5, %v5757_v32, %v5759_v14  ;;  %v6385_v54 = vsel %vm6346_vm8, %v6382_v4, %v6384_v25  ;;  %v5881_v32 = vrot.slane %v11512_v6, 3  ;;  %vm13052_vm15 = vmmov %vm13038_vm10 }
 0x4f3   : > { %v6479_v62 = vadd.f32 %v11821_v43, %v6458_v51  ;;  %v5795_v4 = vrot.slane %v12060_v35, 2  ;;  %v5674_v0 = vsel %vm5633_vm6, %v5671_v2, %v5673_v21 }
 0x4f5   : > { %6180 = vrot.lane.b32.xlu0 %v6141_v37, %s9580_s28  ;;  %v6499_v38 = vmax.f32 %v6479_v62, 0.0  ;;  %5797 = vrot.lane.b32.xlu1 %v5758_v16, %s9582_s30  ;;  %v13037_v37 = vrot.slane %v11556_v40, 1  ;;  %v5796_v2 = vsel %vm5755_vm5, %v5793_v11, %v5795_v4 }
 0x4f7   : > { %v6539_v46 = vcombine.high %v6499_v38, %v6499_v38  ;;  %v6710_v36 = vsel %vm6569_vm9, %v6499_v38, -inf  ;;  %v5642_v61 = vsel %vm5633_vm6, %v5639_v12, %v13037_v37 }
 0x4f8   : > { %v6711_v30 = vrot.slane %v6710_v36, 4 }
 0x4f9   : > { %6302 = vrot.lane.b32.xlu0 %v6263_v7, %s9582_s30  ;;  %v6717_v47 = vsel %vm6569_vm9, %v6539_v46, -inf  ;;  %5799 = vrot.lane.b32.xlu1 %v5760_v55, %s9582_s30  ;;  %v5879_v46 = vrot.slane %v11510_v45, 3 }
 0x4fa   : > { %v6712_v1 = vmax.f32 %v6710_v36, %v6711_v30  ;;  %v6718_v8 = vrot.slane %v6717_v47, 4 }
 0x4fc   : > { %v6713_v23 = vrot.slane %v6712_v1, 2  ;;  %v6719_v51 = vmax.f32 %v6717_v47, %v6718_v8  ;;  %v5883_v47 = vrot.slane %v11526_v9, 3  ;;  %v5917_v8 = vrot.slane %v12060_v35, 3 }
 0x4fd   : > { %6424 = vrot.lane.b32.xlu0 %v6385_v54, %s9584_s9  ;;  %5681 = vrot.lane.b32.xlu1 %v5642_v61, %s9580_s28  ;;  %v6142_v35 = vrot.slane %v12069_v63, 5 }
 0x4fe   : > { %v6714_v62 = vmax.f32 %v6712_v1, %v6713_v23  ;;  %v6720_v13 = vrot.slane %v6719_v51, 2  ;;  %v5698_v30 = vpop.permute.xlu0 %5697  ;;  %v5882_v1 = vsel %vm5877_vm4, %v5879_v46, %v5881_v32  ;;  %v5918_v11 = vsel %vm5877_vm4, %v5915_v19, %v5917_v8 }
 0x4ff   : > { %v5746_v37 = vadd.f32 %v5698_v30, %v11786_v49 }
 0x500   : > { %v6715_v38 = vrot.slane %v6714_v62, 1  ;;  %v6721_v16 = vmax.f32 %v6719_v51, %v6720_v13  ;;  %v5884_v13 = vsel %vm5877_vm4, %v5881_v32, %v5883_v47 }
 0x501   : > { %5713 = vrot.lane.b32.xlu0 %v5674_v0, %s9580_s28  ;;  %5921 = vrot.lane.b32.xlu1 %v5882_v1, %s9584_s9  ;;  %v6264_v1 = vrot.slane %v12069_v63, 6 }
 0x502   : > { %v6716_v36 = vmax.f32 %v6714_v62, %v6715_v38  ;;  %v6722_v7 = vrot.slane %v6721_v16, 1  ;;  %v5700_v54 = vpop.permute.xlu1 %5699  ;;  %v5820_v62 = vpop.permute.xlu0 %5819 }
 0x503   : > { %v5747_v0 = vadd.f32 %v5700_v54, %v11860_v52  ;;  %v5868_v38 = vadd.f32 %v5820_v62, %v5746_v37  ;;  %v6143_v52 = vsel %vm6102_vm1, %v6140_v26, %v6142_v35 }
 0x504   : > { %v6723_v55 = vmax.f32 %v6721_v16, %v6722_v7  ;;  %v8990_v21 = vpack.c.bf16 %v6716_v36, %v6716_v36  ;;  %v13040_v7 = vrot.slane %v11556_v40, 3 }
 0x505   : > { %5835 = vrot.lane.b32.xlu0 %v5796_v2, %s9582_s30  ;;  %5923 = vrot.lane.b32.xlu1 %v5884_v13, %s9584_s9  ;;  %v5637_v13 = vrot.slane %v11512_v6, 1 }
 0x506   : > { %v8991_v23 = vpack.c.bf16 %v6723_v55, %v6723_v55  ;;  %v7006_v51 = vunpack.c.l.b16 %v8990_v21  ;;  %v5822_v32 = vpop.permute.xlu1 %5821  ;;  %v5942_v16 = vpop.permute.xlu0 %5941  ;;  %v5886_v30 = vsel %vm5877_vm4, %v5883_v47, %v13040_v7  ;;  %v6386_v21 = vrot.slane %v12069_v63, 7 }
 0x507   : > { %v5869_v36 = vadd.f32 %v5822_v32, %v5747_v0  ;;  %v5990_v19 = vadd.f32 %v5942_v16, %v5868_v38  ;;  %v6265_v47 = vsel %vm6224_vm0, %v6262_v3, %v6264_v1  ;;  %v5638_v35 = vsel %vm5633_vm6, %v5635_v48, %v5637_v13 }
 0x508   : > { %v7007_v61 = vunpack.c.l.b16 %v8991_v23  ;;  %v7035_v4 = vsel %vm13038_vm10, %v7006_v51, %v12271_v39  ;;  %v5878_v0 = vrot.slane %v11508_v17, 3  ;;  %vm13053_vm10 = vmmov %vm13039_vm11 }
 0x509   : > { %5957 = vrot.lane.b32.xlu0 %v5918_v11, %s9584_s9  ;;  %5925 = vrot.lane.b32.xlu1 %v5886_v30, %s9584_s9  ;;  %v6093_v55 = vadd.f32 %v11931_v31, %v5990_v19 }
 0x50a   : > { %v12346_v49 = vsel %vm13039_vm11, %v7007_v61, %v7035_v4  ;;  %v5944_v39 = vpop.permute.xlu1 %5943  ;;  %v6167_v8 = vpop.permute.xlu0 %6166  ;;  %v5640_v61 = vsel %vm5633_vm6, %v5637_v13, %v5639_v12  ;;  %v5761_v12 = vrot.slane %v11526_v9, 2  ;;  %vm13054_vm11 = vmmov %vm13051_vm14 }
 0x50b   : > { %v5991_v2 = vadd.f32 %v5944_v39, %v5869_v36  ;;  %v6215_v62 = vadd.f32 %v6167_v8, %v6093_v55  ;;  %v5880_v36 = vsel %vm5877_vm4, %v5878_v0, %v5879_v46 }
 0x50d   : > { %6182 = vrot.lane.b32.xlu0 %v6143_v52, %s9580_s28  ;;  %6266 = vrot.lane.b32.xlu1 %v11515_v60, %s9582_s30  ;;  %v6094_v26 = vadd.f32 %v11923_v50, %v5991_v2  ;;  %v6387_v60 = vsel %vm6346_vm8, %v6384_v25, %v6386_v21 }
 0x50e   : > { %v6169_v54 = vpop.permute.xlu1 %6168  ;;  %v6289_v23 = vpop.permute.xlu0 %6288 }
 0x50f   : > { %v6216_v51 = vadd.f32 %v6169_v54, %v6094_v26  ;;  %v6337_v31 = vadd.f32 %v6289_v23, %v6215_v62 }
 0x511   : > { %6304 = vrot.lane.b32.xlu0 %v6265_v47, %s9582_s30  ;;  %6268 = vrot.lane.b32.xlu1 %v11529_v33, %s9582_s30 }
 0x512   : > { %v6291_v63 = vpop.permute.xlu1 %6290  ;;  %v6411_v3 = vpop.permute.xlu0 %6410 }
 0x513   : > { %v6338_v37 = vadd.f32 %v6291_v63, %v6216_v51  ;;  %v6459_v50 = vadd.f32 %v6411_v3, %v6337_v31 }
 0x515   : > { %6426 = vrot.lane.b32.xlu0 %v6387_v60, %s9584_s9  ;;  %6150 = vrot.lane.b32.xlu1 %v11567_v34, %s9580_s28  ;;  %v6480_v33 = vadd.f32 %v11821_v43, %v6459_v50  ;;  %v12388_v34 = vld [vmem:[%s12880_s6 + $0x1] ss:$0 sm:$0xff] }
 0x516   : > { %v6413_v59 = vpop.permute.xlu1 %6412 }
 0x517   : > { %v6460_v25 = vadd.f32 %v6413_v59, %v6338_v37  ;;  %v6500_v11 = vmax.f32 %v6480_v33, 0.0 }
 0x519   : > { %5677 = vrot.lane.b32.xlu0 %v5638_v35, %s9580_s28  ;;  %6390 = vrot.lane.b32.xlu1 %v11532_v42, %s9584_s9  ;;  %v6481_v48 = vadd.f32 %v12388_v34, %v6460_v25  ;;  %v6540_v43 = vcombine.high %v6500_v11, %v6500_v11  ;;  %v6724_v4 = vsel %vm6569_vm9, %v6500_v11, -inf }
 0x51a   : > { %v5702_v38 = vpop.permute.xlu1 %5701  ;;  %v6725_v42 = vrot.slane %v6724_v4, 4 }
 0x51b   : > { %v6501_v32 = vmax.f32 %v6481_v48, 0.0  ;;  %v6731_v16 = vsel %vm6569_vm9, %v6540_v43, -inf  ;;  %v5748_v8 = vadd.f32 %v5702_v38, %v11867_v58 }
 0x51c   : > { %v6726_v7 = vmax.f32 %v6724_v4, %v6725_v42  ;;  %v6732_v30 = vrot.slane %v6731_v16, 4 }
 0x51d   : > { %5679 = vrot.lane.b32.xlu0 %v5640_v61, %s9580_s28  ;;  %6392 = vrot.lane.b32.xlu1 %v11541_v24, %s9584_s9  ;;  %v6541_v19 = vcombine.high %v6501_v32, %v6501_v32  ;;  %v5762_v24 = vsel %vm5755_vm5, %v5759_v14, %v5761_v12  ;;  %v6738_v58 = vsel %vm6569_vm9, %v6501_v32, -inf }
 0x51e   : > { %v5824_v1 = vpop.permute.xlu1 %5823  ;;  %v6727_v52 = vrot.slane %v6726_v7, 2  ;;  %v6733_v39 = vmax.f32 %v6731_v16, %v6732_v30  ;;  %v6739_v3 = vrot.slane %v6738_v58, 4  ;;  %v13044_v30 = vld [vmem:[#allocation9_spill] sm:$0xff] }
 0x51f   : > { %v5870_v46 = vadd.f32 %v5824_v1, %v5748_v8  ;;  %v6745_v21 = vsel %vm6569_vm9, %v6541_v19, -inf }
 0x520   : > { %v6728_v2 = vmax.f32 %v6726_v7, %v6727_v52  ;;  %v6734_v55 = vrot.slane %v6733_v39, 2  ;;  %v6746_v14 = vrot.slane %v6745_v21, 4  ;;  %v6740_v48 = vmax.f32 %v6738_v58, %v6739_v3 }
 0x521   : > { %5919 = vrot.lane.b32.xlu0 %v5880_v36, %s9584_s9  ;;  %7098 = vrot.lane.b32.xlu1 %v12166_v44, %s9584_s9  ;;  %v13041_v44 = vrot.slane %v11556_v40, 2 }
 0x522   : > { %v6729_v47 = vrot.slane %v6728_v2, 1  ;;  %v6735_v26 = vmax.f32 %v6733_v39, %v6734_v55  ;;  %v5946_v54 = vpop.permute.xlu1 %5945  ;;  %v6747_v59 = vmax.f32 %v6745_v21, %v6746_v14 }
 0x523   : > { %v5992_v23 = vadd.f32 %v5946_v54, %v5870_v46  ;;  %v5764_v13 = vsel %vm5755_vm5, %v5761_v12, %v13041_v44  ;;  %v13045_v46 = vld [vmem:[#allocation6_spill] sm:$0xff] }
 0x524   : > { %v6730_v51 = vmax.f32 %v6728_v2, %v6729_v47  ;;  %v6736_v62 = vrot.slane %v6735_v26, 1 }
 0x525   : > { %5801 = vrot.lane.b32.xlu0 %v5762_v24, %s9582_s30  ;;  %v6095_v50 = vadd.f32 %v11937_v22, %v5992_v23  ;;  %v6748_v22 = vrot.slane %v6747_v59, 2  ;;  %v13046_v23 = vld [vmem:[#allocation11_spill] sm:$0xff] }
 0x526   : > { %v6737_v60 = vmax.f32 %v6735_v26, %v6736_v62  ;;  %v8992_v31 = vpack.c.bf16 %v6730_v51, %v6730_v51  ;;  %v6171_v63 = vpop.permute.xlu1 %6170 }
 0x527   : > { %v6217_v43 = vadd.f32 %v6171_v63, %v6095_v50  ;;  %v6749_v36 = vmax.f32 %v6747_v59, %v6748_v22  ;;  %v13049_v22 = vld [vmem:[#allocation14_spill] sm:$0xff] }
 0x528   : > { %v8993_v35 = vpack.c.bf16 %v6737_v60, %v6737_v60  ;;  %v7008_v33 = vunpack.c.l.b16 %v8992_v31  ;;  %v13047_v60 = vld [vmem:[#allocation21_spill] sm:$0xff] }
 0x529   : > { %5803 = vrot.lane.b32.xlu0 %v5764_v13, %s9582_s30  ;;  %v6750_v24 = vrot.slane %v6749_v36, 1 }
 0x52a   : > { %v6293_v25 = vpop.permute.xlu1 %6292  ;;  %v7009_v11 = vunpack.c.l.b16 %v8993_v35  ;;  %v7037_v61 = vsel %vm13042_vm12, %v7008_v33, %v12346_v49 }
 0x52b   : > { %v5708_v37 = vpop.permute.xlu0 %5707  ;;  %v6339_v42 = vadd.f32 %v6293_v25, %v6217_v43  ;;  %v6751_v13 = vmax.f32 %v6749_v36, %v6750_v24 }
 0x52c   : > { %v5751_v40 = vadd.f32 %v5708_v37, %v11983_v27  ;;  %v7038_v38 = vsel %vm13043_vm13, %v7009_v11, %v7037_v61  ;;  %v6741_v27 = vrot.slane %v6740_v48, 2  ;;  %v13048_v11 = vld [vmem:[#allocation23_spill] sm:$0xff] }
 0x52d   : > { %6144 = vrot.lane.b32.xlu0 %v11518_v56, %s9580_s28  ;;  %v12424_v32 = vpack.c.b16 %v7038_v38, %v7038_v38  ;;  %v8995_v25 = vpack.c.bf16 %v6751_v13, %v6751_v13 }
 0x52e   : > { %v6415_v56 = vpop.permute.xlu1 %6414 }
 0x52f   : > { %v5830_v4 = vpop.permute.xlu0 %5829  ;;  %v6461_v12 = vadd.f32 %v6415_v56, %v6339_v42  ;;  %7056 = vst.msk [vmem:[#allocation2 + $0x8] sm:$0xf] %vm6569_vm9, %v12424_v32 }
 0x530   : > { %v5873_v0 = vadd.f32 %v5830_v4, %v5751_v40 }
 0x531   : > { %6146 = vrot.lane.b32.xlu0 %v11535_v20, %s9580_s28  ;;  %v6482_v7 = vadd.f32 %v12388_v34, %v6461_v12  ;;  %v6742_v20 = vmax.f32 %v6740_v48, %v6741_v27  ;;  %v7011_v12 = vunpack.c.l.b16 %v8995_v25 }
 0x532   : > { %v5704_v1 = vpop.permute.xlu1 %5703 }
 0x533   : > { %v5952_v16 = vpop.permute.xlu0 %5951  ;;  %v6502_v52 = vmax.f32 %v6482_v7, 0.0  ;;  %v6743_v26 = vrot.slane %v6742_v20, 1  ;;  %v5749_v58 = vadd.f32 %v5704_v1, %v13046_v23 }
 0x534   : > { %v5995_v49 = vadd.f32 %v5952_v16, %v5873_v0 }
 0x535   : > { %6148 = vrot.lane.b32.xlu0 %v13044_v30, %s9580_s28  ;;  %v6542_v2 = vcombine.high %v6502_v52, %v6502_v52  ;;  %v6752_v55 = vsel %vm6569_vm9, %v6502_v52, -inf  ;;  %v6744_v37 = vmax.f32 %v6742_v20, %v6743_v26 }
 0x536   : > { %v6098_v19 = vadd.f32 %v12117_v57, %v5995_v49  ;;  %v6753_v21 = vrot.slane %v6752_v55, 4  ;;  %v5826_v47 = vpop.permute.xlu1 %5825  ;;  %v13050_v49 = vld [vmem:[#allocation24_spill] sm:$0xff] }
 0x537   : > { %v6177_v39 = vpop.permute.xlu0 %6176  ;;  %v6759_v54 = vsel %vm6569_vm9, %v6542_v2, -inf  ;;  %v5871_v14 = vadd.f32 %v5826_v47, %v5749_v58  ;;  %v8994_v0 = vpack.c.bf16 %v6744_v37, %v6744_v37 }
 0x538   : > { %v6220_v8 = vadd.f32 %v6177_v39, %v6098_v19  ;;  %v6754_v51 = vmax.f32 %v6752_v55, %v6753_v21  ;;  %v6760_v62 = vrot.slane %v6759_v54, 4 }
 0x539   : > { %6388 = vrot.lane.b32.xlu0 %v13045_v46, %s9584_s9  ;;  %v7010_v1 = vunpack.c.l.b16 %v8994_v0  ;;  %v9474_v0 = vld [vmem:[%s12877_s3 + $0x64] ss:$16 sps:$4 sm:$0xff]  }
 0x53a   : > { %v6755_v31 = vrot.slane %v6754_v51, 2  ;;  %v6761_v63 = vmax.f32 %v6759_v54, %v6760_v62  ;;  %v5948_v3 = vpop.permute.xlu1 %5947  ;;  %7240 = vmatprep.subr.bf16.mxu1 %v9474_v0 }
 0x53b   : > { %v6299_v57 = vpop.permute.xlu0 %6298  ;;  %v5993_v35 = vadd.f32 %v5948_v3, %v5871_v14  ;;  %v7039_v2 = vsel %vm4198_vm2, %v7011_v12, %v7010_v1  ;;  %v9480_v1 = vld [vmem:[%s12877_s3 + $0x24] ss:$16 sps:$4 sm:$0xff]  }
 0x53c   : > { %v6342_v44 = vadd.f32 %v6299_v57, %v6220_v8  ;;  %v6756_v33 = vmax.f32 %v6754_v51, %v6755_v31  ;;  %v6762_v59 = vrot.slane %v6761_v63, 2 }
 0x53d   : > { %6270 = vrot.lane.b32.xlu0 %v13047_v60, %s9582_s30  ;;  %v6096_v42 = vadd.f32 %v13049_v22, %v5993_v35 }
 0x53e   : > { %v6757_v61 = vrot.slane %v6756_v33, 1  ;;  %v6763_v48 = vmax.f32 %v6761_v63, %v6762_v59 }
 0x53f   : > { %v6421_v50 = vpop.permute.xlu0 %6420  ;;  %v6173_v4 = vpop.permute.xlu1 %6172 }
 0x540   : > { %v6464_v40 = vadd.f32 %v6421_v50, %v6342_v44  ;;  %v6758_v56 = vmax.f32 %v6756_v33, %v6757_v61  ;;  %v6764_v27 = vrot.slane %v6763_v48, 1  ;;  %v6218_v20 = vadd.f32 %v6173_v4, %v6096_v42 }
 0x541   : > { %6272 = vrot.lane.b32.xlu0 %v13048_v11, %s9582_s30 }
 0x542   : > { %v6485_v43 = vadd.f32 %v12388_v34, %v6464_v40  ;;  %v6765_v36 = vmax.f32 %v6763_v48, %v6764_v27  ;;  %v8996_v7 = vpack.c.bf16 %v6758_v56, %v6758_v56 }
 0x543   : > { %v5710_v38 = vpop.permute.xlu0 %5709  ;;  %v6295_v19 = vpop.permute.xlu1 %6294 }
 0x544   : > { %v6505_v16 = vmax.f32 %v6485_v43, 0.0  ;;  %v8997_v39 = vpack.c.bf16 %v6765_v36, %v6765_v36  ;;  %v7012_v8 = vunpack.c.l.b16 %v8996_v7  ;;  %v5752_v24 = vadd.f32 %v5710_v38, %v11995_v53 }
 0x545   : > { %6394 = vrot.lane.b32.xlu0 %v13050_v49, %s9584_s9  ;;  %v6340_v55 = vadd.f32 %v6295_v19, %v6218_v20 }
 0x546   : > { %v6545_v30 = vcombine.high %v6505_v16, %v6505_v16  ;;  %v7013_v46 = vunpack.c.l.b16 %v8997_v39  ;;  %v7040_v21 = vsel %vm4200_vm3, %v7012_v8, %v7039_v2  ;;  %v6794_v57 = vsel %vm6569_vm9, %v6505_v16, -inf }
 0x547   : > { %v5832_v52 = vpop.permute.xlu0 %5831  ;;  %v6417_v54 = vpop.permute.xlu1 %6416 }
 0x548   : > { %v6801_v47 = vsel %vm6569_vm9, %v6545_v30, -inf  ;;  %v5874_v26 = vadd.f32 %v5832_v52, %v5752_v24  ;;  %v6462_v58 = vadd.f32 %v6417_v54, %v6340_v55  ;;  %v12453_v53 = vsel %vm13051_vm14, %v7013_v46, %v7040_v21  ;;  %v9475_v30 = vld [vmem:[%s12877_s3 + $0x40] ss:$16 sps:$4 sm:$0xff]   ;;  %vm13055_vm14 = vmmov %vm13052_vm15 }
 0x549   : > { %7100 = vrot.lane.b32.xlu0 %v12424_v32, %s9584_s9  ;;  %v6802_v62 = vrot.slane %v6801_v47, 4  ;;  %v6795_v32 = vrot.slane %v6794_v57, 4 }
 0x54a   : > { %v6483_v44 = vadd.f32 %v12388_v34, %v6462_v58 }
 0x54b   : > { %v5954_v23 = vpop.permute.xlu0 %5953  ;;  %v5706_v13 = vpop.permute.xlu1 %5705  ;;  %v6803_v63 = vmax.f32 %v6801_v47, %v6802_v62  ;;  %v6796_v33 = vmax.f32 %v6794_v57, %v6795_v32 }
 0x54c   : > { %v5996_v51 = vadd.f32 %v5954_v23, %v5874_v26  ;;  %v6503_v14 = vmax.f32 %v6483_v44, 0.0  ;;  %v5750_v40 = vadd.f32 %v5706_v13, %v11896_v15  ;;  %v9477_v15 = vld [vmem:[%s12877_s3 + $0x44] ss:$16 sps:$4 sm:$0xff]   ;;  %v9478_v26 = vld [vmem:[%s12877_s3 + $0x20] ss:$16 sps:$4 sm:$0xff]  }
 0x54d   : > { %v6804_v43 = vrot.slane %v6803_v63, 2  ;;  %v6797_v27 = vrot.slane %v6796_v33, 2  ;;  %v9483_v23 = vld [vmem:[%s12877_s3 + $0x4] ss:$16 sps:$4 sm:$0xff]  }
 0x54e   : > { %v6099_v31 = vadd.f32 %v12122_v28, %v5996_v51  ;;  %v6543_v3 = vcombine.high %v6503_v14, %v6503_v14  ;;  %v6766_v37 = vsel %vm6569_vm9, %v6503_v14, -inf  ;;  %v9472_v28 = vld [vmem:[%s12877_s3 + $0x60] ss:$16 sps:$4 sm:$0xff]  }
 0x54f   : > { %v6179_v60 = vpop.permute.xlu0 %6178  ;;  %v6767_v50 = vrot.slane %v6766_v37, 4  ;;  %v5828_v35 = vpop.permute.xlu1 %5827  ;;  %7241 = vmatpush1.bf16.msra.mxu1 %v9472_v28  ;;  %v6805_v19 = vmax.f32 %v6803_v63, %v6804_v43  ;;  %v6798_v24 = vmax.f32 %v6796_v33, %v6797_v27 }
 0x550   : > { %v6773_v59 = vsel %vm6569_vm9, %v6543_v3, -inf  ;;  %v6221_v48 = vadd.f32 %v6179_v60, %v6099_v31  ;;  %v5872_v4 = vadd.f32 %v5828_v35, %v5750_v40  ;;  %7242 = vmatprep.subr.bf16.mxu1 %v9477_v15 }
 0x551   : > { %v6768_v11 = vmax.f32 %v6766_v37, %v6767_v50  ;;  %v6774_v61 = vrot.slane %v6773_v59, 4  ;;  %v6806_v54 = vrot.slane %v6805_v19, 1  ;;  %v6799_v44 = vrot.slane %v6798_v24, 1  ;;  %v9481_v37 = vld [vmem:[%s12877_s3] ss:$16 sps:$4 sm:$0xff]  }
 0x553   : > { %v6301_v25 = vpop.permute.xlu0 %6300  ;;  %v6769_v38 = vrot.slane %v6768_v11, 2  ;;  %v6775_v22 = vmax.f32 %v6773_v59, %v6774_v61  ;;  %v5950_v56 = vpop.permute.xlu1 %5949  ;;  %7243 = vmatpush1.bf16.msra.mxu1 %v9475_v30  ;;  %v6807_v59 = vmax.f32 %v6805_v19, %v6806_v54  ;;  %v6800_v28 = vmax.f32 %v6798_v24, %v6799_v44 }
 0x554   : > { %v6343_v42 = vadd.f32 %v6301_v25, %v6221_v48  ;;  %v5994_v12 = vadd.f32 %v5950_v56, %v5872_v4  ;;  %7244 = vmatprep.subr.bf16.mxu1 %v9480_v1 }
 0x555   : > { %v6770_v49 = vmax.f32 %v6768_v11, %v6769_v38  ;;  %v6776_v36 = vrot.slane %v6775_v22, 2  ;;  %v9003_v15 = vpack.c.bf16 %v6807_v59, %v6807_v59 }
 0x556   : > { %v6097_v55 = vadd.f32 %v12128_v5, %v5994_v12 }
 0x557   : > { %v6423_v16 = vpop.permute.xlu0 %6422  ;;  %v6771_v20 = vrot.slane %v6770_v49, 1  ;;  %v6777_v52 = vmax.f32 %v6775_v22, %v6776_v36  ;;  %v6175_v8 = vpop.permute.xlu1 %6174  ;;  %7245 = vmatpush1.bf16.msra.mxu1 %v9478_v26 }
 0x558   : > { %v6465_v7 = vadd.f32 %v6423_v16, %v6343_v42  ;;  %v6219_v32 = vadd.f32 %v6175_v8, %v6097_v55  ;;  %7246 = vmatprep.subr.bf16.mxu1 %v9483_v23 }
 0x559   : > { %v6772_v46 = vmax.f32 %v6770_v49, %v6771_v20  ;;  %v6778_v21 = vrot.slane %v6777_v52, 1  ;;  %v7083_v20 = vunpack.c.l.b16 %v9003_v15 }
 0x55a   : > { %v6486_v39 = vadd.f32 %v12388_v34, %v6465_v7 }
 0x55b   : > { %v5712_v2 = vpop.permute.xlu0 %5711  ;;  %v6779_v58 = vmax.f32 %v6777_v52, %v6778_v21  ;;  %v8998_v57 = vpack.c.bf16 %v6772_v46, %v6772_v46  ;;  %v6297_v5 = vpop.permute.xlu1 %6296  ;;  %7247 = vmatpush1.bf16.msra.mxu1 %v9481_v37 }
 0x55c   : > { %v6506_v47 = vmax.f32 %v6486_v39, 0.0  ;;  %v5753_v3 = vadd.f32 %v5712_v2, %v12009_v29  ;;  %v6341_v33 = vadd.f32 %v6297_v5, %v6219_v32 }
 0x55d   : > { %v8999_v60 = vpack.c.bf16 %v6779_v58, %v6779_v58  ;;  %v7014_v31 = vunpack.c.l.b16 %v8998_v57 }
 0x55e   : > { %v6546_v51 = vcombine.high %v6506_v47, %v6506_v47  ;;  %v6808_v62 = vsel %vm6569_vm9, %v6506_v47, -inf }
 0x55f   : > { %v6809_v13 = vrot.slane %v6808_v62, 4  ;;  %v5834_v14 = vpop.permute.xlu0 %5833  ;;  %v7015_v40 = vunpack.c.l.b16 %v8999_v60  ;;  %v6419_v11 = vpop.permute.xlu1 %6418  ;;  %v7042_v61 = vsel %vm13052_vm15, %v7014_v31, %v12453_v53  ;;  %v9002_v53 = vpack.c.bf16 %v6800_v28, %v6800_v28  ;;  %vm13056_vm15 = vmmov %vm13053_vm10 }
 0x560   : > { %v6815_v63 = vsel %vm6569_vm9, %v6546_v51, -inf  ;;  %v5875_v25 = vadd.f32 %v5834_v14, %v5753_v3  ;;  %v6463_v29 = vadd.f32 %v6419_v11, %v6341_v33 }
 0x561   : > { %v6810_v50 = vmax.f32 %v6808_v62, %v6809_v13  ;;  %v6816_v35 = vrot.slane %v6815_v63, 4  ;;  %v12492_v38 = vsel %vm13053_vm10, %v7015_v40, %v7042_v61  ;;  %v7082_v46 = vunpack.c.l.b16 %v9002_v53  ;;  %vm13057_vm10 = vmmov %vm13042_vm12 }
 0x562   : > { %v6484_v56 = vadd.f32 %v12388_v34, %v6463_v29 }
 0x563   : > { %v6811_v48 = vrot.slane %v6810_v50, 2  ;;  %v6817_v43 = vmax.f32 %v6815_v63, %v6816_v35  ;;  %v5956_v4 = vpop.permute.xlu0 %5955  ;;  %v12498_v2 = vpop.permute.xlu1 %5675  ;;  %v7090_v23 = vsel %vm4198_vm2, %v7083_v20, %v7082_v46 }
 0x564   : > { %v5997_v0 = vadd.f32 %v5956_v4, %v5875_v25  ;;  %v6504_v12 = vmax.f32 %v6484_v56, 0.0 }
 0x565   : > { %v6812_v22 = vmax.f32 %v6810_v50, %v6811_v48  ;;  %v6818_v42 = vrot.slane %v6817_v43, 2 }
 0x566   : > { %v6100_v36 = vadd.f32 %v12131_v41, %v5997_v0  ;;  %v6544_v19 = vcombine.high %v6504_v12, %v6504_v12  ;;  %v6780_v1 = vsel %vm6569_vm9, %v6504_v12, -inf }
 0x567   : > { %v6813_v27 = vrot.slane %v6812_v22, 1  ;;  %v6819_v16 = vmax.f32 %v6817_v43, %v6818_v42  ;;  %v6181_v49 = vpop.permute.xlu0 %6180  ;;  %v6781_v52 = vrot.slane %v6780_v1, 4  ;;  %v12502_v60 = vpop.permute.xlu1 %5797 }
 0x568   : > { %v6787_v24 = vsel %vm6569_vm9, %v6544_v19, -inf  ;;  %v6222_v26 = vadd.f32 %v6181_v49, %v6100_v36 }
 0x569   : > { %v6814_v7 = vmax.f32 %v6812_v22, %v6813_v27  ;;  %v6820_v30 = vrot.slane %v6819_v16, 1  ;;  %v6782_v21 = vmax.f32 %v6780_v1, %v6781_v52  ;;  %v6788_v47 = vrot.slane %v6787_v24, 4 }
 0x56b   : > { %v6821_v39 = vmax.f32 %v6819_v16, %v6820_v30  ;;  %v9004_v8 = vpack.c.bf16 %v6814_v7, %v6814_v7  ;;  %v6303_v55 = vpop.permute.xlu0 %6302  ;;  %v6783_v58 = vrot.slane %v6782_v21, 2  ;;  %v6789_v57 = vmax.f32 %v6787_v24, %v6788_v47  ;;  %v12507_v43 = vpop.permute.xlu1 %5799 }
 0x56c   : > { %v6344_v51 = vadd.f32 %v6303_v55, %v6222_v26 }
 0x56d   : > { %v9005_v54 = vpack.c.bf16 %v6821_v39, %v6821_v39  ;;  %v7084_v41 = vunpack.c.l.b16 %v9004_v8  ;;  %v6784_v13 = vmax.f32 %v6782_v21, %v6783_v58  ;;  %v6790_v32 = vrot.slane %v6789_v57, 2 }
 0x56f   : > { %v7085_v62 = vunpack.c.l.b16 %v9005_v54  ;;  %v7091_v5 = vsel %vm4200_vm3, %v7084_v41, %v7090_v23  ;;  %v6425_v44 = vpop.permute.xlu0 %6424  ;;  %v6785_v63 = vrot.slane %v6784_v13, 1  ;;  %v6791_v3 = vmax.f32 %v6789_v57, %v6790_v32  ;;  %v12514_v1 = vpop.permute.xlu1 %5681 }
 0x570   : > { %v6466_v14 = vadd.f32 %v6425_v44, %v6344_v51 }
 0x571   : > { %v7092_v31 = vsel %vm13054_vm11, %v7085_v62, %v7091_v5  ;;  %v6786_v35 = vmax.f32 %v6784_v13, %v6785_v63  ;;  %v6792_v33 = vrot.slane %v6791_v3, 1  ;;  %vm13058_vm11 = vmmov %vm13043_vm13 }
 0x572   : > { %v6487_v37 = vadd.f32 %v12388_v34, %v6466_v14 }
 0x573   : > { %v5714_v50 = vpop.permute.xlu0 %5713  ;;  %v6793_v40 = vmax.f32 %v6791_v3, %v6792_v33  ;;  %v9000_v25 = vpack.c.bf16 %v6786_v35, %v6786_v35  ;;  %v5922_v21 = vpop.permute.xlu1 %5921 }
 0x574   : > { %v6507_v59 = vmax.f32 %v6487_v37, 0.0  ;;  %v5754_v22 = vadd.f32 %v5714_v50, %v12029_v10 }
 0x575   : > { %v9001_v29 = vpack.c.bf16 %v6793_v40, %v6793_v40  ;;  %v7016_v28 = vunpack.c.l.b16 %v9000_v25 }
 0x576   : > { %v6547_v11 = vcombine.high %v6507_v59, %v6507_v59  ;;  %v6822_v61 = vsel %vm6569_vm9, %v6507_v59, -inf }
 0x577   : > { %v6823_v48 = vrot.slane %v6822_v61, 4  ;;  %v5836_v4 = vpop.permute.xlu0 %5835  ;;  %v7017_v27 = vunpack.c.l.b16 %v9001_v29  ;;  %v7044_v16 = vsel %vm13042_vm12, %v7016_v28, %v12492_v38  ;;  %v5924_v5 = vpop.permute.xlu1 %5923  ;;  %vm7110_vm12 = vcmask 519424  }
 0x578   : > { %v6829_v0 = vsel %vm6569_vm9, %v6547_v11, -inf  ;;  %v5876_v15 = vadd.f32 %v5836_v4, %v5754_v22  ;;  %v9487_v22 = vld [vmem:[%s12877_s3 + $0x6c] ss:$16 sps:$4 sm:$0xff]  }
 0x579   : > { %v6824_v42 = vmax.f32 %v6822_v61, %v6823_v48  ;;  %v6830_v56 = vrot.slane %v6829_v0, 4  ;;  %v7045_v7 = vsel %vm13043_vm13, %v7017_v27, %v7044_v16  ;;  %7293 = vmatprep.subr.bf16.mxu1 %v9487_v22  ;;  %vm13063_vm13 = vcmask 1043459  }
 0x57a   : > { %v7049_v20 = vpack.c.b16 %v7045_v7, %v7045_v7 }
 0x57b   : > { %v6825_v12 = vrot.slane %v6824_v42, 2  ;;  %v6831_v49 = vmax.f32 %v6829_v0, %v6830_v56  ;;  %v5958_v53 = vpop.permute.xlu0 %5957  ;;  %v5926_v3 = vpop.permute.xlu1 %5925 }
 0x57c   : > { %v5998_v36 = vadd.f32 %v5958_v53, %v5876_v15  ;;  %7102 = vrot.lane.b32.xlu1 %v7049_v20, %s9584_s9  ;;  %7057 = vst.msk [vmem:[#allocation2 + $0xc] sm:$0xf] %vm6569_vm9, %v7049_v20  ;;  %v5735_v53 = vadd.f32 %v12498_v2, %v11508_v17  ;;  %v13060_v2 = vld [vmem:[#allocation8_spill] sm:$0xff] }
 0x57d   : > { %v6826_v30 = vmax.f32 %v6824_v42, %v6825_v12  ;;  %v6832_v19 = vrot.slane %v6831_v49, 2 }
 0x57e   : > { %v6101_v38 = vadd.f32 %v12139_v18, %v5998_v36  ;;  %v5857_v7 = vadd.f32 %v12502_v60, %v5735_v53  ;;  %v5738_v60 = vadd.f32 %v12514_v1, %v11526_v9 }
 0x57f   : > { %v6827_v52 = vrot.slane %v6826_v30, 1  ;;  %v6833_v10 = vmax.f32 %v6831_v49, %v6832_v19  ;;  %v6183_v39 = vpop.permute.xlu0 %6182  ;;  %v6267_v11 = vpop.permute.xlu1 %6266 }
 0x580   : > { %v6223_v26 = vadd.f32 %v6183_v39, %v6101_v38 }
 0x581   : > { %v6828_v8 = vmax.f32 %v6826_v30, %v6827_v52  ;;  %v6834_v24 = vrot.slane %v6833_v10, 1 }
 0x583   : > { %v6835_v55 = vmax.f32 %v6833_v10, %v6834_v24  ;;  %v9006_v46 = vpack.c.bf16 %v6828_v8, %v6828_v8  ;;  %v6305_v47 = vpop.permute.xlu0 %6304  ;;  %v6269_v27 = vpop.permute.xlu1 %6268  ;;  %v13059_v8 = vld [vmem:[#allocation7_spill] sm:$0xff] }
 0x584   : > { %v6345_v23 = vadd.f32 %v6305_v47, %v6223_v26 }
 0x585   : > { %v9007_v54 = vpack.c.bf16 %v6835_v55, %v6835_v55  ;;  %v7086_v41 = vunpack.c.l.b16 %v9006_v46 }
 0x587   : > { %v7087_v58 = vunpack.c.l.b16 %v9007_v54  ;;  %v6427_v57 = vpop.permute.xlu0 %6426  ;;  %v7093_v51 = vsel %vm13055_vm14, %v7086_v41, %v7092_v31  ;;  %v6151_v39 = vpop.permute.xlu1 %6150 }
 0x588   : > { %v6467_v62 = vadd.f32 %v6427_v57, %v6345_v23 }
 0x589   : > { %v7094_v44 = vsel %vm13056_vm15, %v7087_v58, %v7093_v51 }
 0x58a   : > { %v6488_v18 = vadd.f32 %v12388_v34, %v6467_v62 }
 0x58b   : > { %v5678_v13 = vpop.permute.xlu0 %5677  ;;  %v6391_v41 = vpop.permute.xlu1 %6390 }
 0x58c   : > { %v6508_v32 = vmax.f32 %v6488_v18, 0.0  ;;  %v5736_v4 = vadd.f32 %v5678_v13, %v11510_v45 }
 0x58e   : > { %v6548_v14 = vcombine.high %v6508_v32, %v6508_v32  ;;  %v6836_v63 = vsel %vm6569_vm9, %v6508_v32, -inf  ;;  %v5858_v15 = vadd.f32 %v12507_v43, %v5736_v4  ;;  %v13061_v32 = vld [vmem:[#allocation22_spill] sm:$0xff] }
 0x58f   : > { %v6837_v37 = vrot.slane %v6836_v63, 4  ;;  %v5680_v50 = vpop.permute.xlu0 %5679 }
 0x590   : > { %v6843_v35 = vsel %vm6569_vm9, %v6548_v14, -inf  ;;  %v5980_v30 = vadd.f32 %v5922_v21, %v5858_v15  ;;  %v5737_v38 = vadd.f32 %v5680_v50, %v11512_v6 }
 0x591   : > { %v6838_v33 = vmax.f32 %v6836_v63, %v6837_v37  ;;  %v6844_v59 = vrot.slane %v6843_v35, 4 }
 0x592   : > { %v6083_v24 = vadd.f32 %v13059_v8, %v5980_v30 }
 0x593   : > { %v6839_v40 = vrot.slane %v6838_v33, 2  ;;  %v6845_v31 = vmax.f32 %v6843_v35, %v6844_v59  ;;  %v5920_v25 = vpop.permute.xlu0 %5919 }
 0x594   : > { %v5979_v10 = vadd.f32 %v5920_v25, %v5857_v7 }
 0x595   : > { %v6840_v61 = vmax.f32 %v6838_v33, %v6839_v40  ;;  %v6846_v48 = vrot.slane %v6845_v31, 2 }
 0x596   : > { %v6082_v47 = vadd.f32 %v13060_v2, %v5979_v10 }
 0x597   : > { %v6841_v29 = vrot.slane %v6840_v61, 1  ;;  %v6847_v28 = vmax.f32 %v6845_v31, %v6846_v48  ;;  %v5802_v0 = vpop.permute.xlu0 %5801  ;;  %v13062_v31 = vld [vmem:[#allocation25_spill] sm:$0xff] }
 0x598   : > { %v5859_v17 = vadd.f32 %v5802_v0, %v5737_v38 }
 0x599   : > { %v6842_v42 = vmax.f32 %v6840_v61, %v6841_v29  ;;  %v6848_v56 = vrot.slane %v6847_v28, 1 }
 0x59a   : > { %v5981_v58 = vadd.f32 %v5924_v5, %v5859_v17 }
 0x59b   : > { %v6849_v16 = vmax.f32 %v6847_v28, %v6848_v56  ;;  %v9008_v12 = vpack.c.bf16 %v6842_v42, %v6842_v42  ;;  %v5804_v49 = vpop.permute.xlu0 %5803 }
 0x59c   : > { %v5860_v57 = vadd.f32 %v5804_v49, %v5738_v60  ;;  %v6084_v14 = vadd.f32 %v13061_v32, %v5981_v58 }
 0x59d   : > { %v9009_v45 = vpack.c.bf16 %v6849_v16, %v6849_v16  ;;  %v7088_v36 = vunpack.c.l.b16 %v9008_v12 }
 0x59e   : > { %v5982_v18 = vadd.f32 %v5926_v3, %v5860_v57 }
 0x59f   : > { %v6145_v19 = vpop.permute.xlu0 %6144  ;;  %v7089_v20 = vunpack.c.l.b16 %v9009_v45  ;;  %v7095_v52 = vsel %vm13057_vm10, %v7088_v36, %v7094_v44 }
 0x5a0   : > { %v6204_v21 = vadd.f32 %v6145_v19, %v6082_v47  ;;  %v6085_v25 = vadd.f32 %v13062_v31, %v5982_v18 }
 0x5a1   : > { %v7096_v43 = vsel %vm13058_vm11, %v7089_v20, %v7095_v52 }
 0x5a2   : > { %v7097_v55 = vpack.c.b16 %v7096_v43, %v7096_v43  ;;  %v6326_v62 = vadd.f32 %v6267_v11, %v6204_v21  ;;  %v6393_v11 = vpop.permute.xlu1 %6392 }
 0x5a3   : > { %v6147_v46 = vpop.permute.xlu0 %6146 }
 0x5a4   : > { %v6205_v26 = vadd.f32 %v6147_v46, %v6083_v24  ;;  %7104 = vrot.lane.b32.xlu0 %v7097_v55, %s9584_s9 }
 0x5a6   : > { %v6327_v54 = vadd.f32 %v6269_v27, %v6205_v26  ;;  %v6207_v27 = vadd.f32 %v6151_v39, %v6085_v25 }
 0x5a7   : > { %v6149_v23 = vpop.permute.xlu0 %6148 }
 0x5a8   : > { %v6449_v6 = vadd.f32 %v6391_v41, %v6327_v54  ;;  %v6206_v9 = vadd.f32 %v6149_v23, %v6084_v14 }
 0x5aa   : > { %v6470_v51 = vadd.f32 %v12388_v34, %v6449_v6 }
 0x5ab   : > { %v6389_v44 = vpop.permute.xlu0 %6388 }
 0x5ac   : > { %v6490_v13 = vmax.f32 %v6470_v51, 0.0  ;;  %v6448_v63 = vadd.f32 %v6389_v44, %v6326_v62 }
 0x5ae   : > { %v6530_v37 = vcombine.high %v6490_v13, %v6490_v13  ;;  %v6584_v50 = vsel %vm6569_vm9, %v6490_v13, -inf  ;;  %v6469_v1 = vadd.f32 %v12388_v34, %v6448_v63 }
 0x5af   : > { %v6585_v35 = vrot.slane %v6584_v50, 4  ;;  %v6271_v33 = vpop.permute.xlu0 %6270 }
 0x5b0   : > { %v6591_v5 = vsel %vm6569_vm9, %v6530_v37, -inf  ;;  %v6489_v59 = vmax.f32 %v6469_v1, 0.0  ;;  %v6328_v40 = vadd.f32 %v6271_v33, %v6206_v9 }
 0x5b1   : > { %v6586_v3 = vmax.f32 %v6584_v50, %v6585_v35  ;;  %v6592_v61 = vrot.slane %v6591_v5, 4 }
 0x5b2   : > { %v6529_v48 = vcombine.high %v6489_v59, %v6489_v59  ;;  %v6570_v4 = vsel %vm6569_vm9, %v6489_v59, -inf  ;;  %v6450_v29 = vadd.f32 %v6393_v11, %v6328_v40 }
 0x5b3   : > { %v6587_v28 = vrot.slane %v6586_v3, 2  ;;  %v6593_v0 = vmax.f32 %v6591_v5, %v6592_v61  ;;  %v6571_v22 = vrot.slane %v6570_v4, 4  ;;  %v6273_v42 = vpop.permute.xlu0 %6272 }
 0x5b4   : > { %v6577_v56 = vsel %vm6569_vm9, %v6529_v48, -inf  ;;  %v6471_v15 = vadd.f32 %v12388_v34, %v6450_v29  ;;  %v6329_v36 = vadd.f32 %v6273_v42, %v6207_v27 }
 0x5b5   : > { %v6588_v16 = vmax.f32 %v6586_v3, %v6587_v28  ;;  %v6594_v12 = vrot.slane %v6593_v0, 2  ;;  %v6572_v49 = vmax.f32 %v6570_v4, %v6571_v22  ;;  %v6578_v53 = vrot.slane %v6577_v56, 4 }
 0x5b6   : > { %v6491_v45 = vmax.f32 %v6471_v15, 0.0 }
 0x5b7   : > { %v6595_v7 = vmax.f32 %v6593_v0, %v6594_v12  ;;  %v6573_v30 = vrot.slane %v6572_v49, 2  ;;  %v6579_v19 = vmax.f32 %v6577_v56, %v6578_v53  ;;  %v6395_v20 = vpop.permute.xlu0 %6394  ;;  %v6589_v52 = vrot.slane %v6588_v16, 1 }
 0x5b8   : > { %v6531_v10 = vcombine.high %v6491_v45, %v6491_v45  ;;  %v6598_v43 = vsel %vm6569_vm9, %v6491_v45, -inf  ;;  %v6451_v38 = vadd.f32 %v6395_v20, %v6329_v36 }
 0x5b9   : > { %v6596_v8 = vrot.slane %v6595_v7, 1  ;;  %v6574_v24 = vmax.f32 %v6572_v49, %v6573_v30  ;;  %v6580_v55 = vrot.slane %v6579_v19, 2  ;;  %v6599_v39 = vrot.slane %v6598_v43, 4 }
 0x5ba   : > { %v6605_v46 = vsel %vm6569_vm9, %v6531_v10, -inf  ;;  %v6472_v17 = vadd.f32 %v12388_v34, %v6451_v38  ;;  %v6590_v60 = vmax.f32 %v6588_v16, %v6589_v52 }
 0x5bb   : > { %v6575_v2 = vrot.slane %v6574_v24, 1  ;;  %v6581_v47 = vmax.f32 %v6579_v19, %v6580_v55  ;;  %v7101_v26 = vpop.permute.xlu0 %7100  ;;  %v6600_v21 = vmax.f32 %v6598_v43, %v6599_v39  ;;  %v6606_v54 = vrot.slane %v6605_v46, 4  ;;  %v9485_v55 = vld [vmem:[%s12877_s3 + $0x68] ss:$16 sps:$4 sm:$0xff]  }
 0x5bc   : > { %v6492_v41 = vmax.f32 %v6472_v17, 0.0  ;;  %7112 = vst.msk [vmem:[#allocation2 + $0x4] sm:$0xf] %vm7110_vm12, %v7101_v26  ;;  %v6597_v23 = vmax.f32 %v6595_v7, %v6596_v8  ;;  %v8972_v32 = vpack.c.bf16 %v6590_v60, %v6590_v60  ;;  %v9488_v17 = vld [vmem:[%s12877_s3 + $0x48] ss:$16 sps:$4 sm:$0xff]  }
 0x5bd   : > { %v6576_v58 = vmax.f32 %v6574_v24, %v6575_v2  ;;  %v6582_v57 = vrot.slane %v6581_v47, 1  ;;  %v6601_v6 = vrot.slane %v6600_v21, 2  ;;  %v6607_v51 = vmax.f32 %v6605_v46, %v6606_v54  ;;  %v7099_v24 = vpop.permute.xlu1 %7098  ;;  %v9490_v46 = vld [vmem:[%s12877_s3 + $0x4c] ss:$16 sps:$4 sm:$0xff]   ;;  %v9491_v26 = vld [vmem:[%s12877_s3 + $0x28] ss:$16 sps:$4 sm:$0xff]  }
 0x5be   : > { %v6532_v62 = vcombine.high %v6492_v41, %v6492_v41  ;;  %v6612_v44 = vsel %vm6569_vm9, %v6492_v41, -inf  ;;  %v8973_v50 = vpack.c.bf16 %v6597_v23, %v6597_v23  ;;  %v6988_v11 = vunpack.c.l.b16 %v8972_v32  ;;  %v9497_v60 = vld [vmem:[%s12877_s3 + $0xc] ss:$16 sps:$4 sm:$0xff]  }
 0x5bf   : > { %v6583_v18 = vmax.f32 %v6581_v47, %v6582_v57  ;;  %v8970_v13 = vpack.c.bf16 %v6576_v58, %v6576_v58  ;;  %v6613_v34 = vrot.slane %v6612_v44, 4  ;;  %v6602_v14 = vmax.f32 %v6600_v21, %v6601_v6  ;;  %v9493_v47 = vld [vmem:[%s12877_s3 + $0x2c] ss:$16 sps:$4 sm:$0xff]   ;;  %v9495_v21 = vld [vmem:[%s12877_s3 + $0x8] ss:$16 sps:$4 sm:$0xff]  }
 0x5c0   : > { %v6608_v63 = vrot.slane %v6607_v51, 2  ;;  %v6619_v37 = vsel %vm6569_vm9, %v6532_v62, -inf  ;;  %v6989_v48 = vunpack.c.l.b16 %v8973_v50  ;;  %v13064_v2 = vmov 0  }
 0x5c1   : > { %v8971_v9 = vpack.c.bf16 %v6583_v18, %v6583_v18  ;;  %v6614_v1 = vmax.f32 %v6612_v44, %v6613_v34  ;;  %v6620_v35 = vrot.slane %v6619_v37, 4  ;;  %v6603_v33 = vrot.slane %v6602_v14, 1 }
 0x5c2   : > { %v6609_v5 = vmax.f32 %v6607_v51, %v6608_v63  ;;  %v6986_v59 = vunpack.c.l.b16 %v8970_v13 }
 0x5c3   : > { %v6987_v40 = vunpack.c.l.b16 %v8971_v9  ;;  %v6615_v31 = vrot.slane %v6614_v1, 2  ;;  %v6621_v25 = vmax.f32 %v6619_v37, %v6620_v35  ;;  %v6604_v3 = vmax.f32 %v6602_v14, %v6603_v33 }
 0x5c4   : > { %v6610_v61 = vrot.slane %v6609_v5, 1 }
 0x5c5   : > { %v7018_v4 = vsel %vm4198_vm2, %v6987_v40, %v6986_v59  ;;  %v6616_v29 = vmax.f32 %v6614_v1, %v6615_v31  ;;  %v6622_v28 = vrot.slane %v6621_v25, 2  ;;  %v8974_v42 = vpack.c.bf16 %v6604_v3, %v6604_v3 }
 0x5c6   : > { %v7019_v0 = vsel %vm4200_vm3, %v6988_v11, %v7018_v4  ;;  %v6611_v22 = vmax.f32 %v6609_v5, %v6610_v61 }
 0x5c7   : > { %v7020_v56 = vsel %vm13063_vm13, %v6989_v48, %v7019_v0  ;;  %v6617_v15 = vrot.slane %v6616_v29, 1  ;;  %v6623_v27 = vmax.f32 %v6621_v25, %v6622_v28  ;;  %v6990_v12 = vunpack.c.l.b16 %v8974_v42 }
 0x5c8   : > { %v8975_v16 = vpack.c.bf16 %v6611_v22, %v6611_v22  ;;  %vm7225_vm13 = vcmask 523264  }
 0x5c9   : > { %v6618_v49 = vmax.f32 %v6616_v29, %v6617_v15  ;;  %v6624_v53 = vrot.slane %v6623_v27, 1  ;;  %v7021_v36 = vsel %vm13055_vm14, %v6990_v12, %v7020_v56 }
 0x5ca   : > { %v6991_v45 = vunpack.c.l.b16 %v8975_v16 }
 0x5cb   : > { %v6625_v7 = vmax.f32 %v6623_v27, %v6624_v53  ;;  %v8976_v30 = vpack.c.bf16 %v6618_v49, %v6618_v49 }
 0x5cc   : > { %v7022_v19 = vsel %vm13056_vm15, %v6991_v45, %v7021_v36 }
 0x5cd   : > { %v8977_v20 = vpack.c.bf16 %v6625_v7, %v6625_v7  ;;  %v6992_v52 = vunpack.c.l.b16 %v8976_v30 }
 0x5cf   : > { %v6993_v10 = vunpack.c.l.b16 %v8977_v20  ;;  %v7023_v43 = vsel %vm13057_vm10, %v6992_v52, %v7022_v19 }
 0x5d1   : > { %v7024_v38 = vsel %vm13058_vm11, %v6993_v10, %v7023_v43 }
 0x5d2   : > { %v7046_v8 = vpack.c.b16 %v7024_v38, %v7024_v38 }
 0x5d4   : > { %7054 = vst.msk [vmem:[#allocation2] sm:$0xf] %vm6569_vm9, %v7046_v8  ;;  %vm13069_vm9 = vmmov %vm13056_vm15  ;;  %vm13072_vm15 = vmmov 0  }
 0x5d5   : > { %7111 = vst.msk [vmem:[#allocation2] sm:$0xf] %vm7110_vm12, %v7099_v24 }
 0x5dc   : > { %v9484_v39 = vld [vmem:[#allocation2] sm:$0xff]  }
 0x5dd   : > { %8692 = vmatmul.mubr.msk.bf16.vlgmr.msra.gmra.mxu1 %vm7225_vm13, %v9484_v39 }
 0x5de   : > { %7294 = vmatpush1.bf16.msra.mxu1 %v9485_v55  ;;  %7274 = vmatprep.mubr.bf16.mxu1 %v13064_v2 }
 0x5df   : > { %7295 = vmatprep.subr.bf16.mxu1 %v9490_v46 }
 0x5e2   : > { %7296 = vmatpush1.bf16.msra.mxu1 %v9488_v17 }
 0x5e3   : > { %7297 = vmatprep.subr.bf16.mxu1 %v9493_v47 }
 0x5e6   : > { %7298 = vmatpush1.bf16.msra.mxu1 %v9491_v26 }
 0x5e7   : > { %7299 = vmatprep.subr.bf16.mxu1 %v9497_v60 }
 0x5ea   : > { %7300 = vmatpush1.bf16.msra.mxu1 %v9495_v21 }
 0x5ee   : > { %v7103_v54 = vpop.permute.xlu1 %7102 }
 0x5ef   : > { %7113 = vst.msk [vmem:[#allocation2 + $0x8] sm:$0xf] %vm7110_vm12, %v7103_v54 }
 0x616   : > { %v7105_v41 = vpop.permute.xlu0 %7104 }
 0x617   : > { %7114 = vst.msk [vmem:[#allocation2 + $0xc] sm:$0xf] %vm7110_vm12, %v7105_v41  ;;  %vm13070_vm12 = vmmov %vm13057_vm10 }
 0x61e   : > { %v9494_v23 = vld [vmem:[#allocation2 + $0x8] sm:$0xff]  }
 0x61f   : > { %8693 = vmatmul.mubr.msk.bf16.gmra.mxu1 %vm7225_vm13, %v9494_v23 }
 0x620   : > { %7317 = vmatprep.mubr.bf16.mxu1 %v13064_v2 }
 0x627   : > { %8694 = vmatmul.mubr.msk.bf16.vlgmr.msra.gmra.mxu1 %vm7225_vm13, %v9484_v39 }
 0x628   : > { %7327 = vmatprep.mubr.bf16.mxu1 %v13064_v2 }
 0x62f   : > { %8695 = vmatmul.mubr.msk.bf16.gmra.mxu1 %vm7225_vm13, %v9494_v23 }
 0x630   : > { %7789 = vmatprep.mubr.bf16.mxu1 %v13064_v2 }
 0x69d   : > { %v12595_v58 = vpop.f32.mrf.mxu1 }
 0x69e   : > { %v7342_v51 = vrot.slane %v12595_v58, 1 }
 0x69f   : > { %v7268_v57 = vpop.f32.mrf.mxu1 }
 0x6a0   : > { %v7365_v44 = vrot.slane %v7268_v57, 2  ;;  %v7378_v13 = vrot.slane %v7268_v57, 3 }
 0x6a1   : > { %v12597_v6 = vpop.f32.mrf.mxu1 }
 0x6a2   : > { %v7343_v62 = vrot.slane %v12597_v6, 1 }
 0x6a3   : > { %v7272_v18 = vpop.f32.mrf.mxu1 }
 0x6a4   : > { %v7366_v34 = vrot.slane %v7272_v18, 2  ;;  %v7379_v32 = vrot.slane %v7272_v18, 3  ;;  %v7344_v14 = vsel %vm5633_vm6, %v7342_v51, %v7343_v62  ;;  %v9500_v18 = vld [vmem:[%s12878_s4 + $0x4c] ss:$12 sps:$4 sm:$0xff]  }
 0x6a5   : > { %7349 = vrot.lane.b32.xlu1 %v7344_v14, %s9582_s30  ;;  %7765 = vmatprep.subr.bf16.mxu1 %v9500_v18 }
 0x6a6   : > { %v7380_v63 = vsel %vm5877_vm4, %v7378_v13, %v7379_v32  ;;  %v12605_v37 = vsel %vm5755_vm5, %v7365_v44, %v7366_v34  ;;  %v9498_v44 = vld [vmem:[%s12878_s4 + $0x48] ss:$12 sps:$4 sm:$0xff]  }
 0x6a7   : > { %7385 = vrot.lane.b32.xlu0 %v7380_v63, %s9582_s30  ;;  %7766 = vmatpush1.bf16.msra.mxu1 %v9498_v44  ;;  %v9506_v63 = vld [vmem:[%s12878_s4 + $0x1c] ss:$12 sps:$4 sm:$0xff]  }
 0x6df   : > { %v12608_v50 = vpop.f32.mrf.mxu1 }
 0x6e0   : > { %v7345_v9 = vrot.slane %v12608_v50, 1 }
 0x6e1   : > { %v7278_v1 = vpop.f32.mrf.mxu1 }
 0x6e2   : > { %v7368_v35 = vrot.slane %v7278_v1, 2  ;;  %v7381_v33 = vrot.slane %v7278_v1, 3  ;;  %v7346_v5 = vsel %vm5633_vm6, %v7343_v62, %v7345_v9  ;;  %v9507_v1 = vld [vmem:[%s12878_s4] ss:$12 sps:$4 sm:$0xff]  }
 0x6e3   : > { %7351 = vrot.lane.b32.xlu0 %v7346_v5, %s9582_s30  ;;  %v7280_v59 = vpop.f32.mrf.mxu1 }
 0x6e4   : > { %v7347_v40 = vrot.slane %v7280_v59, 1  ;;  %v7382_v31 = vsel %vm5877_vm4, %v7379_v32, %v7381_v33  ;;  %v12615_v25 = vsel %vm5755_vm5, %v7366_v34, %v7368_v35  ;;  %v9503_v34 = vld [vmem:[%s12878_s4 + $0x34] ss:$12 sps:$4 sm:$0xff]  }
 0x6e5   : > { %7387 = vrot.lane.b32.xlu1 %v7382_v31, %s9582_s30  ;;  %v7282_v11 = vpop.f32.mrf.mxu1  ;;  %7767 = vmatprep.subr.bf16.mxu1 %v9503_v34 }
 0x6e6   : > { %v7370_v3 = vrot.slane %v7282_v11, 2  ;;  %v7383_v61 = vrot.slane %v7282_v11, 3  ;;  %v7348_v4 = vsel %vm5633_vm6, %v7345_v9, %v7347_v40  ;;  %v9509_v9 = vld [vmem:[%s12878_s4 + $0x4] ss:$12 sps:$4 sm:$0xff]  }
 0x6e7   : > { %v7319_v48 = vpop.f32.mrf.mxu1 }
 0x6e8   : > { %v7384_v29 = vsel %vm5877_vm4, %v7381_v33, %v7383_v61  ;;  %v12621_v28 = vsel %vm5755_vm5, %v7368_v35, %v7370_v3  ;;  %v7401_v42 = vrot.slane %v7319_v48, 4  ;;  %v7414_v56 = vrot.slane %v7319_v48, 5 }
 0x6e9   : > { %7353 = vrot.lane.b32.xlu1 %v7348_v4, %s9582_s30  ;;  %7389 = vrot.lane.b32.xlu0 %v7384_v29, %s9582_s30  ;;  %v7321_v0 = vpop.f32.mrf.mxu1  ;;  %v13065_v35 = vmov 0.0   ;;  %vm7542_vm4 = vcmask 517120  }
 0x6ea   : > { %v7437_v16 = vrot.slane %v7321_v0, 6  ;;  %v7450_v12 = vrot.slane %v7321_v0, 7  ;;  %v9587_v0 = vmov 1983009808  }
 0x6eb   : > { %v7323_v22 = vpop.f32.mrf.mxu1 }
 0x6ec   : > { %v7402_v15 = vrot.slane %v7323_v22, 4  ;;  %v7415_v27 = vrot.slane %v7323_v22, 5  ;;  %v7481_v22 = vunpack.c.l.s4 %v9587_v0 }
 0x6ed   : > { %v7325_v49 = vpop.f32.mrf.mxu1 }
 0x6ee   : > { %v7438_v53 = vrot.slane %v7325_v49, 6  ;;  %v7451_v45 = vrot.slane %v7325_v49, 7  ;;  %v7416_v36 = vsel %vm6102_vm1, %v7414_v56, %v7415_v27  ;;  %v7403_v7 = vsel %vm6020_vm7, %v7401_v42, %v7402_v15 }
 0x6ef   : > { %7421 = vrot.lane.b32.xlu1 %v7416_v36, %s9582_s30  ;;  %v7329_v30 = vpop.f32.mrf.mxu1  ;;  %v7483_v42 = vlaneseq }
 0x6f0   : > { %v7404_v19 = vrot.slane %v7329_v30, 4  ;;  %v7417_v20 = vrot.slane %v7329_v30, 5  ;;  %v7452_v52 = vsel %vm6346_vm8, %v7450_v12, %v7451_v45  ;;  %v12630_v10 = vsel %vm6224_vm0, %v7437_v16, %v7438_v53 }
 0x6f1   : > { %7457 = vrot.lane.b32.xlu0 %v7452_v52, %s9582_s30  ;;  %v12633_v43 = vpop.f32.mrf.mxu1  ;;  %v12686_v12 = vshrl.u32 %v7483_v42, 7 }
 0x6f2   : > { %v7440_v38 = vrot.slane %v12633_v43, 6  ;;  %v7405_v8 = vsel %vm6020_vm7, %v7402_v15, %v7404_v19  ;;  %v7418_v46 = vsel %vm6102_vm1, %v7415_v27, %v7417_v20  ;;  %v7453_v26 = vrot.slane %v12633_v43, 7 }
 0x6f3   : > { %v7333_v24 = vpop.f32.mrf.mxu1 }
 0x6f4   : > { %v7406_v55 = vrot.slane %v7333_v24, 4  ;;  %v7419_v39 = vrot.slane %v7333_v24, 5  ;;  %v12641_v17 = vsel %vm6224_vm0, %v7438_v53, %v7440_v38  ;;  %v7454_v23 = vsel %vm6346_vm8, %v7451_v45, %v7453_v26 }
 0x6f5   : > { %7423 = vrot.lane.b32.xlu0 %v7418_v46, %s9582_s30  ;;  %v12644_v47 = vpop.f32.mrf.mxu1 }
 0x6f6   : > { %v7455_v60 = vrot.slane %v12644_v47, 7  ;;  %v7420_v21 = vsel %vm6102_vm1, %v7417_v20, %v7419_v39  ;;  %v7407_v54 = vsel %vm6020_vm7, %v7404_v19, %v7406_v55  ;;  %vm13066_vm7 = vcmask 1043459  }
 0x6f7   : > { %7425 = vrot.lane.b32.xlu1 %v7420_v21, %s9582_s30  ;;  %vm13068_vm1 = vmmov %vm13066_vm7 }
 0x6f8   : > { %v7456_v41 = vsel %vm6346_vm8, %v7453_v26, %v7455_v60  ;;  %vm13067_vm8 = vmmov %vm13055_vm14 }
 0x6f9   : > { %7461 = vrot.lane.b32.xlu0 %v7456_v41, %s9582_s30  ;;  %vm13071_vm14 = vmmov %vm13058_vm11 }
 0x6fb   : > { %7459 = vrot.lane.b32.xlu1 %v7454_v23, %s9582_s30 }
 0x717   : > { %v7350_v57 = vpop.permute.xlu1 %7349 }
 0x718   : > { %v7358_v51 = vadd.f32 %v7350_v57, %v12595_v58  ;;  %v9501_v58 = vld [vmem:[%s12878_s4 + $0x30] ss:$12 sps:$4 sm:$0xff]  }
 0x719   : > { %v7386_v13 = vpop.permute.xlu0 %7385  ;;  %7768 = vmatpush1.bf16.msra.mxu1 %v9501_v58 }
 0x71a   : > { %v7375_v62 = vadd.f32 %v12605_v37, %v7358_v51  ;;  %v9504_v37 = vld [vmem:[%s12878_s4 + $0x18] ss:$12 sps:$4 sm:$0xff]   ;;  %7769 = vmatprep.subr.bf16.mxu1 %v9506_v63 }
 0x71c   : > { %v7394_v32 = vadd.f32 %v7386_v13, %v7375_v62 }
 0x71d   : > { %7770 = vmatpush1.bf16.msra.mxu1 %v9504_v37 }
 0x71e   : > { %v7411_v14 = vadd.f32 %v7403_v7, %v7394_v32  ;;  %7771 = vmatprep.subr.bf16.mxu1 %v9509_v9 }
 0x721   : > { %7772 = vmatpush1.bf16.msra.mxu1 %v9507_v1 }
 0x722   : > { %9324 = vmatprep.subr.bf16.mxu1 %v13065_v35 }
 0x755   : > { %v7352_v33 = vpop.permute.xlu0 %7351 }
 0x756   : > { %v7359_v5 = vadd.f32 %v7352_v33, %v12597_v6  ;;  %v7482_v6 = vunpack.c.0.s8 %v7481_v22 }
 0x757   : > { %v7388_v59 = vpop.permute.xlu1 %7387 }
 0x758   : > { %v7376_v40 = vadd.f32 %v12615_v25, %v7359_v5  ;;  %v12694_v45 = vsub.s32 %v7482_v6, %v12686_v12 }
 0x75a   : > { %v7395_v31 = vadd.f32 %v7388_v59, %v7376_v40 }
 0x75b   : > { %v7354_v11 = vpop.permute.xlu1 %7353  ;;  %v7390_v4 = vpop.permute.xlu0 %7389 }
 0x75c   : > { %v7360_v3 = vadd.f32 %v7354_v11, %v12608_v50  ;;  %v7412_v61 = vadd.f32 %v7405_v8, %v7395_v31  ;;  %v7469_v50 = vld [vmem:[%s12880_s6 + $0x2] ss:$0 sm:$0xff] }
 0x75e   : > { %v7377_v48 = vadd.f32 %v12621_v28, %v7360_v3  ;;  %v7442_v28 = vrot.slane %v12644_v47, 6 }
 0x760   : > { %v7396_v29 = vadd.f32 %v7390_v4, %v7377_v48 }
 0x761   : > { %v7422_v56 = vpop.permute.xlu1 %7421 }
 0x762   : > { %v7430_v15 = vadd.f32 %v7422_v56, %v7411_v14  ;;  %v7413_v27 = vadd.f32 %v7407_v54, %v7396_v29 }
 0x763   : > { %v7458_v16 = vpop.permute.xlu0 %7457 }
 0x764   : > { %v7447_v25 = vadd.f32 %v12630_v10, %v7430_v15  ;;  %v7443_v10 = vsel %vm6224_vm0, %v7440_v38, %v7442_v28 }
 0x766   : > { %v7466_v49 = vadd.f32 %v7458_v16, %v7447_v25 }
 0x767   : > { %v7424_v53 = vpop.permute.xlu0 %7423 }
 0x768   : > { %v7470_v36 = vadd.f32 %v7469_v50, %v7466_v49  ;;  %v7431_v7 = vadd.f32 %v7424_v53, %v7412_v61 }
 0x769   : > { %v7426_v30 = vpop.permute.xlu1 %7425 }
 0x76a   : > { %v7473_v19 = vmax.f32 %v7470_v36, 0.0  ;;  %v7432_v20 = vadd.f32 %v7426_v30, %v7413_v27  ;;  %v7448_v52 = vadd.f32 %v12641_v17, %v7431_v7 }
 0x76b   : > { %v7462_v39 = vpop.permute.xlu0 %7461 }
 0x76c   : > { %v7479_v8 = vcombine.high %v7473_v19, %v7473_v19  ;;  %v7486_v24 = vrot.slane %v7473_v19, %v12694_v45  ;;  %v7449_v55 = vadd.f32 %v7443_v10, %v7432_v20 }
 0x76d   : > { %v7460_v21 = vpop.permute.xlu1 %7459 }
 0x76e   : > { %v7493_v46 = vrot.slane %v7479_v8, %v12694_v45  ;;  %v7494_v47 = vcombine.high %v7486_v24, %v7486_v24  ;;  %v7543_v26 = vsel %vm7542_vm4, %v7486_v24, -inf  ;;  %v7468_v60 = vadd.f32 %v7462_v39, %v7449_v55 }
 0x76f   : > { %v7544_v54 = vrot.slane %v7543_v26, 4  ;;  %v7467_v62 = vadd.f32 %v7460_v21, %v7448_v52 }
 0x770   : > { %v7495_v41 = vcombine.high %v7493_v46, %v7493_v46  ;;  %v7550_v17 = vsel %vm7542_vm4, %v7494_v47, -inf  ;;  %v7557_v43 = vsel %vm7542_vm4, %v7493_v46, -inf  ;;  %v7472_v23 = vadd.f32 %v7469_v50, %v7468_v60 }
 0x771   : > { %v7545_v38 = vmax.f32 %v7543_v26, %v7544_v54  ;;  %v7551_v57 = vrot.slane %v7550_v17, 4  ;;  %v7558_v51 = vrot.slane %v7557_v43, 4  ;;  %v7471_v1 = vadd.f32 %v7469_v50, %v7467_v62 }
 0x772   : > { %v7564_v44 = vsel %vm7542_vm4, %v7495_v41, -inf  ;;  %v7475_v18 = vmax.f32 %v7472_v23, 0.0 }
 0x773   : > { %v7552_v13 = vmax.f32 %v7550_v17, %v7551_v57  ;;  %v7559_v34 = vmax.f32 %v7557_v43, %v7558_v51  ;;  %v7565_v32 = vrot.slane %v7564_v44, 4  ;;  %v7546_v63 = vrot.slane %v7545_v38, 2 }
 0x774   : > { %v7513_v58 = vcombine.high %v7475_v18, %v7475_v18  ;;  %v7520_v14 = vrot.slane %v7475_v18, %v12694_v45  ;;  %v7474_v0 = vmax.f32 %v7471_v1, 0.0 }
 0x775   : > { %v7553_v37 = vrot.slane %v7552_v13, 2  ;;  %v7566_v9 = vmax.f32 %v7564_v44, %v7565_v32  ;;  %v7560_v31 = vrot.slane %v7559_v34, 2  ;;  %v7547_v4 = vmax.f32 %v7545_v38, %v7546_v63 }
 0x776   : > { %v7527_v33 = vrot.slane %v7513_v58, %v12694_v45  ;;  %v7528_v5 = vcombine.high %v7520_v14, %v7520_v14  ;;  %v7599_v59 = vsel %vm7542_vm4, %v7520_v14, -inf  ;;  %v7496_v36 = vcombine.high %v7474_v0, %v7474_v0 }
 0x777   : > { %v7554_v40 = vmax.f32 %v7552_v13, %v7553_v37  ;;  %v7600_v3 = vrot.slane %v7599_v59, 4  ;;  %v7567_v29 = vrot.slane %v7566_v9, 2  ;;  %v7561_v16 = vmax.f32 %v7559_v34, %v7560_v31 }
 0x778   : > { %v7529_v11 = vcombine.high %v7527_v33, %v7527_v33  ;;  %v7606_v61 = vsel %vm7542_vm4, %v7528_v5, -inf  ;;  %v7613_v48 = vsel %vm7542_vm4, %v7527_v33, -inf  ;;  %v7548_v28 = vrot.slane %v7547_v4, 1 }
 0x779   : > { %v7601_v22 = vmax.f32 %v7599_v59, %v7600_v3  ;;  %v7607_v42 = vrot.slane %v7606_v61, 4  ;;  %v7614_v56 = vrot.slane %v7613_v48, 4  ;;  %v7555_v27 = vrot.slane %v7554_v40, 1 }
 0x77a   : > { %v7620_v15 = vsel %vm7542_vm4, %v7529_v11, -inf  ;;  %v7568_v53 = vmax.f32 %v7566_v9, %v7567_v29  ;;  %v7562_v52 = vrot.slane %v7561_v16, 1  ;;  %v7503_v10 = vrot.slane %v7474_v0, %v12694_v45 }
 0x77b   : > { %v7602_v6 = vrot.slane %v7601_v22, 2  ;;  %v7608_v25 = vmax.f32 %v7606_v61, %v7607_v42  ;;  %v7615_v50 = vmax.f32 %v7613_v48, %v7614_v56  ;;  %v7621_v49 = vrot.slane %v7620_v15, 4 }
 0x77c   : > { %v7556_v8 = vmax.f32 %v7554_v40, %v7555_v27  ;;  %v7510_v46 = vrot.slane %v7496_v36, %v12694_v45  ;;  %v7511_v47 = vcombine.high %v7503_v10, %v7503_v10  ;;  %v7549_v26 = vmax.f32 %v7547_v4, %v7548_v28 }
 0x77d   : > { %v7603_v7 = vmax.f32 %v7601_v22, %v7602_v6  ;;  %v7609_v30 = vrot.slane %v7608_v25, 2  ;;  %v7616_v19 = vrot.slane %v7615_v50, 2  ;;  %v7622_v20 = vmax.f32 %v7620_v15, %v7621_v49 }
 0x77e   : > { %v7569_v60 = vrot.slane %v7568_v53, 1  ;;  %v7512_v17 = vcombine.high %v7510_v46, %v7510_v46  ;;  %v7571_v43 = vsel %vm7542_vm4, %v7503_v10, -inf  ;;  %v7563_v23 = vmax.f32 %v7561_v16, %v7562_v52 }
 0x77f   : > { %v7610_v24 = vmax.f32 %v7608_v25, %v7609_v30  ;;  %v7617_v55 = vmax.f32 %v7615_v50, %v7616_v19  ;;  %v7623_v39 = vrot.slane %v7622_v20, 2  ;;  %v7604_v21 = vrot.slane %v7603_v7, 1 }
 0x780   : > { %v7628_v38 = vpack.c.bf16 %v7556_v8, %v7556_v8  ;;  %v7572_v51 = vrot.slane %v7571_v43, 4  ;;  %v7578_v44 = vsel %vm7542_vm4, %v7511_v47, -inf  ;;  %v7585_v18 = vsel %vm7542_vm4, %v7510_v46, -inf }
 0x781   : > { %v7611_v54 = vrot.slane %v7610_v24, 1  ;;  %v7624_v41 = vmax.f32 %v7622_v20, %v7623_v39  ;;  %v7618_v57 = vrot.slane %v7617_v55, 1  ;;  %v7592_v13 = vsel %vm7542_vm4, %v7512_v17, -inf }
 0x782   : > { %v7570_v34 = vmax.f32 %v7568_v53, %v7569_v60  ;;  %v7627_v32 = vpack.c.bf16 %v7549_v26, %v7549_v26  ;;  %v7605_v58 = vmax.f32 %v7603_v7, %v7604_v21  ;;  %v7573_v14 = vmax.f32 %v7571_v43, %v7572_v51 }
 0x783   : > { %v7612_v62 = vmax.f32 %v7610_v24, %v7611_v54  ;;  %v7625_v63 = vrot.slane %v7624_v41, 1  ;;  %v7579_v37 = vrot.slane %v7578_v44, 4  ;;  %v7586_v9 = vrot.slane %v7585_v18, 4 }
 0x784   : > { %v7593_v1 = vrot.slane %v7592_v13, 4  ;;  %v7629_v33 = vpack.c.bf16 %v7563_v23, %v7563_v23  ;;  %v7668_v5 = vunpack.c.l.b16 %v7628_v38  ;;  %v7619_v59 = vmax.f32 %v7617_v55, %v7618_v57 }
 0x785   : > { %v7574_v40 = vrot.slane %v7573_v14, 2  ;;  %v7636_v31 = vpack.c.bf16 %v7612_v62, %v7612_v62  ;;  %v7580_v11 = vmax.f32 %v7578_v44, %v7579_v37  ;;  %v7587_v3 = vmax.f32 %v7585_v18, %v7586_v9  ;;  %v9513_v37 = vld [vmem:[%s12878_s4 + $0x8] ss:$12 sps:$4 sm:$0xff]   ;;  %v9514_v9 = vld [vmem:[%s12879_s5 + $0xe0] ss:$16 sps:$4 sm:$0xff]  }
 0x786   : > { %v7594_v61 = vmax.f32 %v7592_v13, %v7593_v1  ;;  %v7630_v48 = vpack.c.bf16 %v7570_v34, %v7570_v34  ;;  %v7667_v4 = vunpack.c.l.b16 %v7627_v32  ;;  %v7626_v0 = vmax.f32 %v7624_v41, %v7625_v63  ;;  %v9510_v32 = vld [vmem:[%s12878_s4 + $0x50] ss:$12 sps:$4 sm:$0xff]   ;;  %v9512_v63 = vld [vmem:[%s12878_s4 + $0x20] ss:$12 sps:$4 sm:$0xff]   ;;  %v9516_v1 = vld [vmem:[%s12879_s5 + $0xe4] ss:$16 sps:$4 sm:$0xff]  }
 0x787   : > { %v7575_v29 = vmax.f32 %v7573_v14, %v7574_v40  ;;  %v7635_v22 = vpack.c.bf16 %v7605_v58, %v7605_v58  ;;  %v7581_v42 = vrot.slane %v7580_v11, 2  ;;  %v7588_v56 = vrot.slane %v7587_v3, 2  ;;  %v9511_v14 = vld [vmem:[%s12878_s4 + $0x38] ss:$12 sps:$4 sm:$0xff]  }
 0x788   : > { %v7669_v15 = vunpack.c.l.b16 %v7629_v33  ;;  %v7637_v27 = vpack.c.bf16 %v7619_v59, %v7619_v59  ;;  %v7595_v6 = vrot.slane %v7594_v61, 2  ;;  %v7679_v25 = vsel %vm4198_vm2, %v7668_v5, %v7667_v4  ;;  %v9519_v33 = vld [vmem:[%s12879_s5 + $0xc4] ss:$16 sps:$4 sm:$0xff]   ;;  %v9520_v59 = vld [vmem:[%s12879_s5 + $0xa0] ss:$16 sps:$4 sm:$0xff]  }
 0x789   : > { %v7576_v16 = vrot.slane %v7575_v29, 1  ;;  %v7676_v50 = vunpack.c.l.b16 %v7636_v31  ;;  %v7582_v49 = vmax.f32 %v7580_v11, %v7581_v42  ;;  %v7589_v28 = vmax.f32 %v7587_v3, %v7588_v56  ;;  %v9522_v5 = vld [vmem:[%s12879_s5 + $0xa4] ss:$16 sps:$4 sm:$0xff]   ;;  %v9523_v31 = vld [vmem:[%s12879_s5 + $0x80] ss:$16 sps:$4 sm:$0xff]  }
 0x78a   : > { %v7670_v53 = vunpack.c.l.b16 %v7630_v48  ;;  %v7596_v7 = vmax.f32 %v7594_v61, %v7595_v6  ;;  %v7638_v30 = vpack.c.bf16 %v7626_v0, %v7626_v0  ;;  %v7675_v19 = vunpack.c.l.b16 %v7635_v22  ;;  %v9525_v40 = vld [vmem:[%s12879_s5 + $0x84] ss:$16 sps:$4 sm:$0xff]   ;;  %v9526_v3 = vld [vmem:[%s12879_s5 + $0x60] ss:$16 sps:$4 sm:$0xff]   ;;  %v9540_v42 = vld [vmem:[%s12879_s5 + $0xec] ss:$16 sps:$4 sm:$0xff]  }
 0x78b   : > { %v7577_v36 = vmax.f32 %v7575_v29, %v7576_v16  ;;  %v7583_v20 = vrot.slane %v7582_v49, 1  ;;  %v7590_v52 = vrot.slane %v7589_v28, 1  ;;  %v7680_v10 = vsel %vm4200_vm3, %v7669_v15, %v7679_v25  ;;  %v9528_v11 = vld [vmem:[%s12879_s5 + $0x64] ss:$16 sps:$4 sm:$0xff]   ;;  %v9529_v48 = vld [vmem:[%s12879_s5 + $0x40] ss:$16 sps:$4 sm:$0xff]  }
 0x78c   : > { %v7677_v8 = vunpack.c.l.b16 %v7637_v27  ;;  %v7597_v24 = vrot.slane %v7596_v7, 1  ;;  %v7686_v39 = vsel %vm4198_vm2, %v7676_v50, %v7675_v19  ;;  %v7678_v21 = vunpack.c.l.b16 %v7638_v30  ;;  %v9531_v61 = vld [vmem:[%s12879_s5 + $0x44] ss:$16 sps:$4 sm:$0xff]   ;;  %v9532_v29 = vld [vmem:[%s12879_s5 + $0x20] ss:$16 sps:$4 sm:$0xff]  }
 0x78d   : > { %v7631_v55 = vpack.c.bf16 %v7577_v36, %v7577_v36  ;;  %v7584_v46 = vmax.f32 %v7582_v49, %v7583_v20  ;;  %v7591_v47 = vmax.f32 %v7589_v28, %v7590_v52  ;;  %v7681_v54 = vsel %vm13066_vm7, %v7670_v53, %v7680_v10  ;;  %v9534_v4 = vld [vmem:[%s12879_s5 + $0x24] ss:$16 sps:$4 sm:$0xff]   ;;  %v9535_v22 = vld [vmem:[%s12879_s5] ss:$16 sps:$4 sm:$0xff]  }
 0x78e   : > { %v7598_v26 = vmax.f32 %v7596_v7, %v7597_v24  ;;  %v7687_v43 = vsel %vm4200_vm3, %v7677_v8, %v7686_v39  ;;  %v9537_v0 = vld [vmem:[%s12879_s5 + $0x4] ss:$16 sps:$4 sm:$0xff]   ;;  %v7859_v20 = vld [vmem:[%s12880_s6 + $0x3] ss:$0 sm:$0xff] }
 0x78f   : > { %v7671_v60 = vunpack.c.l.b16 %v7631_v55  ;;  %v7632_v41 = vpack.c.bf16 %v7584_v46, %v7584_v46  ;;  %v7633_v17 = vpack.c.bf16 %v7591_v47, %v7591_v47  ;;  %v7688_v44 = vsel %vm13068_vm1, %v7678_v21, %v7687_v43 }
 0x790   : > { %v7634_v23 = vpack.c.bf16 %v7598_v26, %v7598_v26 }
 0x791   : > { %v7682_v38 = vsel %vm13067_vm8, %v7671_v60, %v7681_v54  ;;  %v7672_v57 = vunpack.c.l.b16 %v7632_v41  ;;  %v7673_v51 = vunpack.c.l.b16 %v7633_v17 }
 0x792   : > { %v7674_v62 = vunpack.c.l.b16 %v7634_v23 }
 0x793   : > { %v7683_v18 = vsel %vm13069_vm9, %v7672_v57, %v7682_v38 }
 0x794   : > { %v7684_v13 = vsel %vm13070_vm12, %v7673_v51, %v7683_v18 }
 0x795   : > { %v7685_v34 = vsel %vm13071_vm14, %v7674_v62, %v7684_v13 }
 0x796   : > { %v7689_v58 = vpack.c.b16 %v7688_v44, %v7685_v34 }
 0x798   : > { %8708 = vmatmul.mubr.msk.bf16.vlgmr.msra.gmra.mxu1 %vm7225_vm13, %v7689_v58 }
 0x799   : > { %9325 = vmatpush3.bf16.msra.mxu1 %v9510_v32  ;;  %9332 = vmatprep.mubr.msk.bf16.mxu1 %vm13072_vm15, %v13065_v35 }
 0x79a   : > { %9326 = vmatprep.subr.bf16.mxu1 %v13065_v35 }
 0x79d   : > { %9327 = vmatpush3.bf16.msra.mxu1 %v9511_v14 }
 0x79e   : > { %9328 = vmatprep.subr.bf16.mxu1 %v13065_v35 }
 0x7a1   : > { %9329 = vmatpush3.bf16.msra.mxu1 %v9512_v63 }
 0x7a2   : > { %9330 = vmatprep.subr.bf16.mxu1 %v13065_v35  ;;  %v9517_v35 = vld [vmem:[%s12879_s5 + $0xc0] ss:$16 sps:$4 sm:$0xff]  }
 0x7a5   : > { %9331 = vmatpush3.bf16.msra.mxu1 %v9513_v37 }
 0x7a6   : > { %8143 = vmatprep.subr.bf16.mxu1 %v9516_v1 }
 0x7a8   : > { %9333 = vmatmul.mubr.msk.bf16.vlgmr.msra.gmra.mxu1 %vm7225_vm13, %v7689_v58 }
 0x7a9   : > { %8175 = vmatprep.mubr.bf16.mxu1 %v13064_v2  ;;  %8144 = vmatpush1.bf16.msra.mxu1 %v9514_v9 }
 0x7aa   : > { %8145 = vmatprep.subr.bf16.mxu1 %v9519_v33 }
 0x7ad   : > { %8146 = vmatpush1.bf16.msra.mxu1 %v9517_v35 }
 0x7ae   : > { %8147 = vmatprep.subr.bf16.mxu1 %v9522_v5 }
 0x7b1   : > { %8148 = vmatpush1.bf16.msra.mxu1 %v9520_v59 }
 0x7b2   : > { %8149 = vmatprep.subr.bf16.mxu1 %v9525_v40 }
 0x7b5   : > { %8150 = vmatpush1.bf16.msra.mxu1 %v9523_v31 }
 0x7b6   : > { %8151 = vmatprep.subr.bf16.mxu1 %v9528_v11 }
 0x7b9   : > { %8152 = vmatpush1.bf16.msra.mxu1 %v9526_v3 }
 0x7ba   : > { %8153 = vmatprep.subr.bf16.mxu1 %v9531_v61 }
 0x7bd   : > { %8154 = vmatpush1.bf16.msra.mxu1 %v9529_v48 }
 0x7be   : > { %8155 = vmatprep.subr.bf16.mxu1 %v9534_v4 }
 0x7c1   : > { %8156 = vmatpush1.bf16.msra.mxu1 %v9532_v29 }
 0x7c2   : > { %8157 = vmatprep.subr.bf16.mxu1 %v9537_v0 }
 0x7c5   : > { %8158 = vmatpush1.bf16.msra.mxu1 %v9535_v22 }
 0x7c6   : > { %8184 = vmatprep.subr.bf16.mxu1 %v9540_v42 }
 0x858   : > { %v7791_v56 = vpop.f32.mrf.mxu1 }
 0x85a   : > { %v7793_v15 = vpop.f32.mrf.mxu1 }
 0x85b   : > { %v7843_v50 = vrot.slane %v7793_v15, 1 }
 0x85c   : > { %v7795_v27 = vpop.f32.mrf.mxu1 }
 0x85e   : > { %v7797_v16 = vpop.f32.mrf.mxu1 }
 0x85f   : > { %v7844_v6 = vrot.slane %v7797_v16, 1 }
 0x861   : > { %v7845_v28 = vsel %vm5633_vm6, %v7843_v50, %v7844_v6  ;;  %v7849_v36 = vadd.f32 %v7844_v6, %v7795_v27 }
 0x862   : > { %v7848_v19 = vadd.f32 %v7845_v28, %v7791_v56 }
 0x868   : > { %v7834_v25 = vpop.f32.mrf.mxu1 }
 0x869   : > { %v7852_v7 = vrot.slane %v7834_v25, 2 }
 0x86a   : > { %v9334_v49 = vpop.f32.mrf.mxu1 }
 0x86c   : > { %v7837_v53 = vpop.f32.mrf.mxu1 }
 0x86d   : > { %v7853_v30 = vrot.slane %v7837_v53, 2 }
 0x86e   : > { %v9335_v52 = vpop.f32.mrf.mxu1 }
 0x86f   : > { %v7854_v10 = vsel %vm5755_vm5, %v7852_v7, %v7853_v30  ;;  %v7858_v8 = vadd.f32 %v7853_v30, %v7849_v36  ;;  %v9538_v52 = vld [vmem:[%s12879_s5 + $0xe8] ss:$16 sps:$4 sm:$0xff]   ;;  %vm13074_vm5 = vmmov %vm13067_vm8 }
 0x870   : > { %v7857_v24 = vadd.f32 %v7854_v10, %v7848_v19 }
 0x871   : > { %v7861_v55 = vadd.f32 %v7859_v20, %v7858_v8 }
 0x872   : > { %v7860_v39 = vadd.f32 %v7859_v20, %v7857_v24  ;;  %v9543_v24 = vld [vmem:[%s12879_s5 + $0xcc] ss:$16 sps:$4 sm:$0xff]  }
 0x873   : > { %v7863_v46 = vmax.f32 %v7861_v55, 0.0  ;;  %v9541_v55 = vld [vmem:[%s12879_s5 + $0xc8] ss:$16 sps:$4 sm:$0xff]  }
 0x874   : > { %v7862_v47 = vmax.f32 %v7860_v39, 0.0  ;;  %v9546_v39 = vld [vmem:[%s12879_s5 + $0xac] ss:$16 sps:$4 sm:$0xff]  }
 0x875   : > { %v7889_v26 = vrot.slane %v7863_v46, %v12694_v45  ;;  %v9544_v46 = vld [vmem:[%s12879_s5 + $0xa8] ss:$16 sps:$4 sm:$0xff]  }
 0x876   : > { %v7866_v60 = vcombine.high %v7862_v47, %v7862_v47  ;;  %v7873_v21 = vrot.slane %v7862_v47, %v12694_v45  ;;  %v9549_v47 = vld [vmem:[%s12879_s5 + $0x8c] ss:$16 sps:$4 sm:$0xff]  }
 0x877   : > { %v7923_v54 = vsel %vm6224_vm0, %v7889_v26, -inf  ;;  %v9552_v26 = vld [vmem:[%s12879_s5 + $0x6c] ss:$16 sps:$4 sm:$0xff]  }
 0x878   : > { %v7880_v41 = vrot.slane %v7866_v60, %v12694_v45  ;;  %v7881_v17 = vcombine.high %v7873_v21, %v7873_v21  ;;  %v7895_v43 = vsel %vm6224_vm0, %v7873_v21, -inf  ;;  %v7924_v23 = vrot.slane %v7923_v54, 4  ;;  %v9550_v60 = vld [vmem:[%s12879_s5 + $0x68] ss:$16 sps:$4 sm:$0xff]   ;;  %v9555_v21 = vld [vmem:[%s12879_s5 + $0x4c] ss:$16 sps:$4 sm:$0xff]  }
 0x879   : > { %v7896_v38 = vrot.slane %v7895_v43, 4 }
 0x87a   : > { %v7882_v57 = vcombine.high %v7880_v41, %v7880_v41  ;;  %v7902_v51 = vsel %vm6224_vm0, %v7881_v17, -inf  ;;  %v7909_v62 = vsel %vm6224_vm0, %v7880_v41, -inf  ;;  %v7925_v44 = vmax.f32 %v7923_v54, %v7924_v23  ;;  %v9553_v54 = vld [vmem:[%s12879_s5 + $0x48] ss:$16 sps:$4 sm:$0xff]   ;;  %v9558_v41 = vld [vmem:[%s12879_s5 + $0x2c] ss:$16 sps:$4 sm:$0xff]  }
 0x87b   : > { %v7897_v18 = vmax.f32 %v7895_v43, %v7896_v38  ;;  %v7903_v13 = vrot.slane %v7902_v51, 4  ;;  %v7910_v34 = vrot.slane %v7909_v62, 4  ;;  %v9556_v17 = vld [vmem:[%s12879_s5 + $0x28] ss:$16 sps:$4 sm:$0xff]   ;;  %v9561_v43 = vld [vmem:[%s12879_s5 + $0xc] ss:$16 sps:$4 sm:$0xff]  }
 0x87c   : > { %v7916_v32 = vsel %vm6224_vm0, %v7882_v57, -inf  ;;  %v7926_v58 = vrot.slane %v7925_v44, 2  ;;  %vm13073_vm0 = vmmov %vm13068_vm1  ;;  %v9559_v23 = vld [vmem:[%s12879_s5 + $0x8] ss:$16 sps:$4 sm:$0xff]  }
 0x87d   : > { %v7898_v14 = vrot.slane %v7897_v18, 2  ;;  %v7904_v63 = vmax.f32 %v7902_v51, %v7903_v13  ;;  %v7911_v45 = vmax.f32 %v7909_v62, %v7910_v34  ;;  %v7917_v37 = vrot.slane %v7916_v32, 4 }
 0x87e   : > { %v7927_v9 = vmax.f32 %v7925_v44, %v7926_v58  ;;  %v8238_v44 = vsub.s32 0, %v12686_v12  ;;  %v8242_v13 = vsub.s32 1, %v12686_v12 }
 0x87f   : > { %v7899_v1 = vmax.f32 %v7897_v18, %v7898_v14  ;;  %v7905_v33 = vrot.slane %v7904_v63, 2  ;;  %v7912_v35 = vrot.slane %v7911_v45, 2  ;;  %v7918_v5 = vmax.f32 %v7916_v32, %v7917_v37  ;;  %v8742_v18 = vld [vmem:[%s12880_s6 + $0x4] ss:$8 sm:$0x3] }
 0x880   : > { %v7928_v59 = vrot.slane %v7927_v9, 1  ;;  %v8239_v58 = vrot.slane %v8742_v18, %v8238_v44  ;;  %v8243_v37 = vrot.slane %v8742_v18, %v8242_v13 }
 0x881   : > { %v7900_v40 = vrot.slane %v7899_v1, 1  ;;  %v7906_v31 = vmax.f32 %v7904_v63, %v7905_v33  ;;  %v7913_v11 = vmax.f32 %v7911_v45, %v7912_v35  ;;  %v7919_v3 = vrot.slane %v7918_v5, 2 }
 0x882   : > { %v7929_v0 = vmax.f32 %v7927_v9, %v7928_v59 }
 0x883   : > { %v7901_v61 = vmax.f32 %v7899_v1, %v7900_v40  ;;  %v7907_v48 = vrot.slane %v7906_v31, 1  ;;  %v7914_v4 = vrot.slane %v7913_v11, 1  ;;  %v7920_v29 = vmax.f32 %v7918_v5, %v7919_v3 }
 0x884   : > { %v7934_v25 = vpack.c.bf16 %v7929_v0, %v7929_v0 }
 0x885   : > { %v7908_v22 = vmax.f32 %v7906_v31, %v7907_v48  ;;  %v7915_v42 = vmax.f32 %v7913_v11, %v7914_v4  ;;  %v7921_v56 = vrot.slane %v7920_v29, 1  ;;  %v7930_v15 = vpack.c.bf16 %v7901_v61, %v7901_v61 }
 0x886   : > { %v7976_v30 = vunpack.c.l.b16 %v7934_v25 }
 0x887   : > { %v7931_v27 = vpack.c.bf16 %v7908_v22, %v7908_v22  ;;  %v7932_v16 = vpack.c.bf16 %v7915_v42, %v7915_v42  ;;  %v7922_v6 = vmax.f32 %v7920_v29, %v7921_v56  ;;  %v7972_v50 = vunpack.c.l.b16 %v7930_v15 }
 0x889   : > { %v7973_v49 = vunpack.c.l.b16 %v7931_v27  ;;  %v7974_v28 = vunpack.c.l.b16 %v7932_v16  ;;  %v7933_v53 = vpack.c.bf16 %v7922_v6, %v7922_v6 }
 0x88b   : > { %v7975_v36 = vunpack.c.l.b16 %v7933_v53  ;;  %v7977_v7 = vsel %vm4198_vm2, %v7973_v49, %v7972_v50 }
 0x88c   : > { %v7978_v19 = vsel %vm4200_vm3, %v7974_v28, %v7977_v7 }
 0x88d   : > { %v7979_v20 = vsel %vm13073_vm0, %v7975_v36, %v7978_v19 }
 0x88e   : > { %v7980_v10 = vsel %vm13074_vm5, %v7976_v30, %v7979_v20 }
 0x88f   : > { %v7981_v8 = vpack.c.b16 %v7980_v10, %v7980_v10 }
 0x891   : > { %8176 = vmatmul.mubr.bf16.vlgmr.msra.gmra.mxu1 %v7981_v8 }
 0x892   : > { %8185 = vmatpush1.bf16.msra.mxu1 %v9538_v52  ;;  %8216 = vmatprep.mubr.bf16.mxu1 %v13064_v2  ;;  %v9547_v2 = vld [vmem:[%s12879_s5 + $0x88] ss:$16 sps:$4 sm:$0xff]  }
 0x893   : > { %8186 = vmatprep.subr.bf16.mxu1 %v9543_v24 }
 0x896   : > { %8187 = vmatpush1.bf16.msra.mxu1 %v9541_v55 }
 0x897   : > { %8188 = vmatprep.subr.bf16.mxu1 %v9546_v39 }
 0x89a   : > { %8189 = vmatpush1.bf16.msra.mxu1 %v9544_v46 }
 0x89b   : > { %8190 = vmatprep.subr.bf16.mxu1 %v9549_v47 }
 0x89e   : > { %8191 = vmatpush1.bf16.msra.mxu1 %v9547_v2 }
 0x89f   : > { %8192 = vmatprep.subr.bf16.mxu1 %v9552_v26 }
 0x8a2   : > { %8193 = vmatpush1.bf16.msra.mxu1 %v9550_v60 }
 0x8a3   : > { %8194 = vmatprep.subr.bf16.mxu1 %v9555_v21 }
 0x8a6   : > { %8195 = vmatpush1.bf16.msra.mxu1 %v9553_v54 }
 0x8a7   : > { %8196 = vmatprep.subr.bf16.mxu1 %v9558_v41 }
 0x8aa   : > { %8197 = vmatpush1.bf16.msra.mxu1 %v9556_v17 }
 0x8ab   : > { %8198 = vmatprep.subr.bf16.mxu1 %v9561_v43 }
 0x8ae   : > { %8199 = vmatpush1.bf16.msra.mxu1 %v9559_v23 }
 0x8b1   : > { %8217 = vmatmul.mubr.bf16.vlgmr.msra.gmra.mxu1 %v7981_v8 }
 0x951   : > { %v8177_v38 = vpop.f32.mrf.mxu1 }
 0x953   : > { %v8179_v57 = vpop.f32.mrf.mxu1 }
 0x955   : > { %v8181_v51 = vpop.f32.mrf.mxu1 }
 0x957   : > { %v8182_v62 = vpop.f32.mrf.mxu1 }
 0x971   : > { %v8218_v34 = vpop.f32.mrf.mxu1 }
 0x972   : > { %v8227_v32 = vrot.slane %v8218_v34, 1 }
 0x973   : > { %v8220_v14 = vpop.f32.mrf.mxu1 }
 0x974   : > { %v8231_v63 = vadd.f32 %v8227_v32, %v8177_v38  ;;  %v8228_v45 = vrot.slane %v8220_v14, 1 }
 0x975   : > { %v8222_v9 = vpop.f32.mrf.mxu1 }
 0x976   : > { %v8246_v1 = vadd.f32 %v8239_v58, %v8231_v63  ;;  %v8232_v33 = vadd.f32 %v8228_v45, %v8179_v57 }
 0x977   : > { %v8223_v35 = vpop.f32.mrf.mxu1 }
 0x978   : > { %v8247_v5 = vadd.f32 %v8243_v37, %v8232_v33  ;;  %v8248_v59 = vmax.f32 %v8246_v1, 0.0 }
 0x97a   : > { %v8249_v40 = vmax.f32 %v8247_v5, 0.0 }
 0x97c   : > { %v8252_v12 = vcombine.low %v8248_v59, %v8249_v40 }
 0x97e   : > { %8254 = vst [vmem:[%s278_s19] sm:$0xff] %v8252_v12 }
 0x97f PF: > { %s17_s24 = sadd.s32 1, %s9575_s24  }
 0x980   : > { %p14_p4 = scmp.ge.s32.totalorder %s17_s24, 4  }
 0x982   :  { %16 = sbr.rel (!%p14_p4) target bundleno = 1 (0x1), region = 79 }

</bundles_post_ra>
